<compile_context>
chip_gen: v7x
topology: tpu7x:2x2x1
jax: 0.10.0
libtpu: 0.0.40
codegen_flags: <defaults>
</compile_context>

<pallas_src>
import math
from functools import partial

import jax
import jax.numpy as jnp
from jax.experimental import pallas as pl
from jax.experimental.pallas import tpu as pltpu


def _round_up(x, m):
    return (x + m - 1) // m * m


def _conv_block2_kernel(xf_ref, w_ref, mask_ref, o_ref, *,
                        cout, hp, wp, l_out, count, eps):
    """Fused Conv3d(k3, p1, no bias) + InstanceNorm3d + SiLU for one sample.

    xf_ref  : (1, Cin, Lin) f32  zero-padded volume, flattened row-major over
                                 padded (d, h, w), zero tail so every shifted
                                 window stays in bounds.
    w_ref   : (27, Cout, Cin) f32 weights, tap index t = kd*9 + kh*3 + kw.
    mask_ref: (1, Lout) f32      1.0 on real output voxels, 0.0 on halo/tail.
    o_ref   : (1, Cout, Lout) f32 normalized+SiLU output (halo lanes garbage,
                                 sliced away by the caller).
    """
    plane = hp * wp
    x = xf_ref[0].astype(jnp.bfloat16)            # cast once, slice 27 times
    acc = jnp.zeros((cout, l_out), jnp.float32)
    for kd in range(3):
        for kh in range(3):
            for kw in range(3):
                t = kd * 9 + kh * 3 + kw
                off = kd * plane + kh * wp + kw   # static lane offset
                xw = x[:, off:off + l_out]                     # (Cin, Lout)
                wt = w_ref[t].astype(jnp.bfloat16)             # (Cout, Cin)
                acc = acc + jnp.dot(wt, xw,
                                    preferred_element_type=jnp.float32)

    # InstanceNorm3d (affine=False, biased variance) over valid voxels only.
    mask = mask_ref[...]                                       # (1, Lout)
    inv_n = 1.0 / count
    mean = jnp.sum(acc * mask, axis=1, keepdims=True) * inv_n  # (Cout, 1)
    cen = (acc - mean) * mask
    var = jnp.sum(cen * cen, axis=1, keepdims=True) * inv_n
    y = (acc - mean) * jax.lax.rsqrt(var + eps)
    o_ref[0] = y * jax.nn.sigmoid(y)                           # SiLU


def conv_block2(x, w, *, eps=1e-5):
    """ConvBlock2 forward.  x: (N, Cin, D, H, W) f32, w: (Cout, Cin, 3, 3, 3)."""
    n, cin, d, h, wd = x.shape
    cout = w.shape[0]
    dp, hp, wp = d + 2, h + 2, wd + 2
    plane = hp * wp
    l_out = _round_up(d * plane, 128)            # lane-dense output extent
    max_off = 2 * plane + 2 * wp + 2             # largest tap offset
    l_in = _round_up(l_out + max_off, 128)

    # Per-step VMEM working set must fit (double-buffered) — fine at demo size.
    assert (cin * l_in + 2 * cout * l_out) * 4 < 12 * 1024 * 1024, \
        "volume too large for the single-block fused kernel (tile depth + 2-pass norm)"

    # Zero-pad and flatten: ~1x HBM traffic, no 27x im2col blow-up.
    xp = jnp.pad(x, ((0, 0), (0, 0), (1, 1), (1, 1), (1, 1)))
    xf = xp.reshape(n, cin, dp * plane)
    xf = jnp.pad(xf, ((0, 0), (0, 0), (0, l_in - dp * plane)))

    wt = w.reshape(cout, cin, 27).transpose(2, 0, 1)           # (27, Cout, Cin)

    # Validity mask over the flattened padded layout.
    p = jnp.arange(l_out)
    rem = p % plane
    valid = (p < d * plane) & (rem // wp < h) & (rem % wp < wd)
    mask = valid.astype(jnp.float32)[None, :]                  # (1, Lout)

    kern = partial(_conv_block2_kernel, cout=cout, hp=hp, wp=wp, l_out=l_out,
                   count=float(d * h * wd), eps=eps)

    flops = 2 * n * cout * cin * 27 * d * h * wd
    bytes_accessed = 4 * (xf.size + wt.size + mask.size + n * cout * l_out)

    out = pl.pallas_call(
        kern,
        out_shape=jax.ShapeDtypeStruct((n, cout, l_out), jnp.float32),
        grid_spec=pltpu.PrefetchScalarGridSpec(
            num_scalar_prefetch=0,
            grid=(n,),
            in_specs=[
                pl.BlockSpec((1, cin, l_in), lambda i: (i, 0, 0)),
                pl.BlockSpec((27, cout, cin), lambda i: (0, 0, 0)),
                pl.BlockSpec((1, l_out), lambda i: (0, 0)),
            ],
            out_specs=pl.BlockSpec((1, cout, l_out), lambda i: (i, 0, 0)),
        ),
        compiler_params=pltpu.CompilerParams(
            dimension_semantics=("parallel",),       # shard batch across cores
            vmem_limit_bytes=32 * 1024 * 1024,
        ),
        cost_estimate=pl.CostEstimate(
            flops=flops,
            transcendentals=n * cout * l_out,
            bytes_accessed=bytes_accessed),
    )(xf, wt, mask)

    # Drop halo/tail lanes -> (N, Cout, D, H, W).
    out = out[:, :, :d * plane].reshape(n, cout, d, hp, wp)[:, :, :, :h, :wd]
    return out


if __name__ == "__main__":
    in_ch, out_ch = 4, 8
    N, D, H, W = 2, 8, 16, 16

    key = jax.random.PRNGKey(0)
    kx, kw = jax.random.split(key)
    x = jax.random.normal(kx, (N, in_ch, D, H, W), jnp.float32)
    w = (jax.random.normal(kw, (out_ch, in_ch, 3, 3, 3), jnp.float32)
         * math.sqrt(2.0 / (in_ch * 27)))

    out = jax.jit(conv_block2)(x, w)
    out = jax.block_until_ready(out)
    assert out.shape == (N, out_ch, D, H, W), out.shape
    assert bool(jnp.all(jnp.isfinite(out)))

    # Pure-JAX reference (f32, highest-precision conv) for a sanity check.
    ref_conv = jax.lax.conv_general_dilated(
        x, w, window_strides=(1, 1, 1),
        padding=((1, 1), (1, 1), (1, 1)),
        dimension_numbers=("NCDHW", "OIDHW", "NCDHW"),
        precision=jax.lax.Precision.HIGHEST)
    mu = jnp.mean(ref_conv, axis=(2, 3, 4), keepdims=True)
    var = jnp.mean((ref_conv - mu) ** 2, axis=(2, 3, 4), keepdims=True)
    yn = (ref_conv - mu) * jax.lax.rsqrt(var + 1e-5)
    ref = yn * jax.nn.sigmoid(yn)

    err = float(jnp.max(jnp.abs(out - ref)))
    assert err < 8e-2, err                       # bf16-MXU tolerance
    print("KERNEL_OK")
</pallas_src>

<mosaic_0001>
module attributes {stable_mosaic.version = 11 : i64} {
  func.func @_conv_block2_kernel(%arg0: i32, %arg1: memref<1x4x3456xf32, #tpu.memory_space<vmem>>, %arg2: memref<27x8x4xf32, #tpu.memory_space<vmem>>, %arg3: memref<1x2688xf32, #tpu.memory_space<vmem>>, %arg4: memref<1x8x2688xf32, #tpu.memory_space<vmem>>) attributes {dimension_semantics = [#tpu.dimension_semantics<parallel>], iteration_bounds = array<i64: 2>, scalar_prefetch = 0 : i64, scratch_operands = 0 : i64, tpu.core_type = #tpu.core_type<tc>, window_params = [{transform_indices = @transform_0, window_bounds = array<i64: 1, 4, 3456>}, {pipeline_mode = #tpu.pipeline_mode<synchronous>, transform_indices = @transform_1, window_bounds = array<i64: 27, 8, 4>}, {pipeline_mode = #tpu.pipeline_mode<synchronous>, transform_indices = @transform_2, window_bounds = array<i64: 1, 2688>}, {transform_indices = @transform_3, window_bounds = array<i64: 1, 8, 2688>}]} {
    %c0 = arith.constant 0 : index
    %c0_0 = arith.constant 0 : index
    %c0_1 = arith.constant 0 : index
    %0 = vector.load %arg1[%c0, %c0_0, %c0_1] : memref<1x4x3456xf32, #tpu.memory_space<vmem>>, vector<1x4x3456xf32>
    %1 = vector.shape_cast %0 : vector<1x4x3456xf32> to vector<4x3456xf32>
    %2 = arith.truncf %1 : vector<4x3456xf32> to vector<4x3456xbf16>
    %cst = arith.constant 0.000000e+00 : f32
    %3 = vector.broadcast %cst : f32 to vector<8x2688xf32>
    %4 = vector.extract_strided_slice %2 {offsets = [0, 0], sizes = [4, 2688], strides = [1, 1]} : vector<4x3456xbf16> to vector<4x2688xbf16>
    %c0_2 = arith.constant 0 : index
    %c0_3 = arith.constant 0 : index
    %c0_4 = arith.constant 0 : index
    %5 = vector.load %arg2[%c0_2, %c0_3, %c0_4] : memref<27x8x4xf32, #tpu.memory_space<vmem>>, vector<1x8x4xf32>
    %6 = vector.shape_cast %5 : vector<1x8x4xf32> to vector<8x4xf32>
    %7 = arith.truncf %6 : vector<8x4xf32> to vector<8x4xbf16>
    %cst_5 = arith.constant dense<0.000000e+00> : vector<8x2688xf32>
    %8 = tpu.matmul %7, %4, %cst_5 {dimension_numbers = #tpu.dot_dimension_numbers<[1], [0], [0], [1], [0, 0, 1, 1], [], []>} : vector<8x4xbf16>, vector<4x2688xbf16>, vector<8x2688xf32> -> vector<8x2688xf32>
    %9 = arith.addf %3, %8 : vector<8x2688xf32>
    %10 = vector.extract_strided_slice %2 {offsets = [0, 1], sizes = [4, 2688], strides = [1, 1]} : vector<4x3456xbf16> to vector<4x2688xbf16>
    %c1 = arith.constant 1 : index
    %c0_6 = arith.constant 0 : index
    %c0_7 = arith.constant 0 : index
    %11 = vector.load %arg2[%c1, %c0_6, %c0_7] : memref<27x8x4xf32, #tpu.memory_space<vmem>>, vector<1x8x4xf32>
    %12 = vector.shape_cast %11 : vector<1x8x4xf32> to vector<8x4xf32>
    %13 = arith.truncf %12 : vector<8x4xf32> to vector<8x4xbf16>
    %cst_8 = arith.constant dense<0.000000e+00> : vector<8x2688xf32>
    %14 = tpu.matmul %13, %10, %cst_8 {dimension_numbers = #tpu.dot_dimension_numbers<[1], [0], [0], [1], [0, 0, 1, 1], [], []>} : vector<8x4xbf16>, vector<4x2688xbf16>, vector<8x2688xf32> -> vector<8x2688xf32>
    %15 = arith.addf %9, %14 : vector<8x2688xf32>
    %16 = vector.extract_strided_slice %2 {offsets = [0, 2], sizes = [4, 2688], strides = [1, 1]} : vector<4x3456xbf16> to vector<4x2688xbf16>
    %c2 = arith.constant 2 : index
    %c0_9 = arith.constant 0 : index
    %c0_10 = arith.constant 0 : index
    %17 = vector.load %arg2[%c2, %c0_9, %c0_10] : memref<27x8x4xf32, #tpu.memory_space<vmem>>, vector<1x8x4xf32>
    %18 = vector.shape_cast %17 : vector<1x8x4xf32> to vector<8x4xf32>
    %19 = arith.truncf %18 : vector<8x4xf32> to vector<8x4xbf16>
    %cst_11 = arith.constant dense<0.000000e+00> : vector<8x2688xf32>
    %20 = tpu.matmul %19, %16, %cst_11 {dimension_numbers = #tpu.dot_dimension_numbers<[1], [0], [0], [1], [0, 0, 1, 1], [], []>} : vector<8x4xbf16>, vector<4x2688xbf16>, vector<8x2688xf32> -> vector<8x2688xf32>
    %21 = arith.addf %15, %20 : vector<8x2688xf32>
    %22 = vector.extract_strided_slice %2 {offsets = [0, 18], sizes = [4, 2688], strides = [1, 1]} : vector<4x3456xbf16> to vector<4x2688xbf16>
    %c3 = arith.constant 3 : index
    %c0_12 = arith.constant 0 : index
    %c0_13 = arith.constant 0 : index
    %23 = vector.load %arg2[%c3, %c0_12, %c0_13] : memref<27x8x4xf32, #tpu.memory_space<vmem>>, vector<1x8x4xf32>
    %24 = vector.shape_cast %23 : vector<1x8x4xf32> to vector<8x4xf32>
    %25 = arith.truncf %24 : vector<8x4xf32> to vector<8x4xbf16>
    %cst_14 = arith.constant dense<0.000000e+00> : vector<8x2688xf32>
    %26 = tpu.matmul %25, %22, %cst_14 {dimension_numbers = #tpu.dot_dimension_numbers<[1], [0], [0], [1], [0, 0, 1, 1], [], []>} : vector<8x4xbf16>, vector<4x2688xbf16>, vector<8x2688xf32> -> vector<8x2688xf32>
    %27 = arith.addf %21, %26 : vector<8x2688xf32>
    %28 = vector.extract_strided_slice %2 {offsets = [0, 19], sizes = [4, 2688], strides = [1, 1]} : vector<4x3456xbf16> to vector<4x2688xbf16>
    %c4 = arith.constant 4 : index
    %c0_15 = arith.constant 0 : index
    %c0_16 = arith.constant 0 : index
    %29 = vector.load %arg2[%c4, %c0_15, %c0_16] : memref<27x8x4xf32, #tpu.memory_space<vmem>>, vector<1x8x4xf32>
    %30 = vector.shape_cast %29 : vector<1x8x4xf32> to vector<8x4xf32>
    %31 = arith.truncf %30 : vector<8x4xf32> to vector<8x4xbf16>
    %cst_17 = arith.constant dense<0.000000e+00> : vector<8x2688xf32>
    %32 = tpu.matmul %31, %28, %cst_17 {dimension_numbers = #tpu.dot_dimension_numbers<[1], [0], [0], [1], [0, 0, 1, 1], [], []>} : vector<8x4xbf16>, vector<4x2688xbf16>, vector<8x2688xf32> -> vector<8x2688xf32>
    %33 = arith.addf %27, %32 : vector<8x2688xf32>
    %34 = vector.extract_strided_slice %2 {offsets = [0, 20], sizes = [4, 2688], strides = [1, 1]} : vector<4x3456xbf16> to vector<4x2688xbf16>
    %c5 = arith.constant 5 : index
    %c0_18 = arith.constant 0 : index
    %c0_19 = arith.constant 0 : index
    %35 = vector.load %arg2[%c5, %c0_18, %c0_19] : memref<27x8x4xf32, #tpu.memory_space<vmem>>, vector<1x8x4xf32>
    %36 = vector.shape_cast %35 : vector<1x8x4xf32> to vector<8x4xf32>
    %37 = arith.truncf %36 : vector<8x4xf32> to vector<8x4xbf16>
    %cst_20 = arith.constant dense<0.000000e+00> : vector<8x2688xf32>
    %38 = tpu.matmul %37, %34, %cst_20 {dimension_numbers = #tpu.dot_dimension_numbers<[1], [0], [0], [1], [0, 0, 1, 1], [], []>} : vector<8x4xbf16>, vector<4x2688xbf16>, vector<8x2688xf32> -> vector<8x2688xf32>
    %39 = arith.addf %33, %38 : vector<8x2688xf32>
    %40 = vector.extract_strided_slice %2 {offsets = [0, 36], sizes = [4, 2688], strides = [1, 1]} : vector<4x3456xbf16> to vector<4x2688xbf16>
    %c6 = arith.constant 6 : index
    %c0_21 = arith.constant 0 : index
    %c0_22 = arith.constant 0 : index
    %41 = vector.load %arg2[%c6, %c0_21, %c0_22] : memref<27x8x4xf32, #tpu.memory_space<vmem>>, vector<1x8x4xf32>
    %42 = vector.shape_cast %41 : vector<1x8x4xf32> to vector<8x4xf32>
    %43 = arith.truncf %42 : vector<8x4xf32> to vector<8x4xbf16>
    %cst_23 = arith.constant dense<0.000000e+00> : vector<8x2688xf32>
    %44 = tpu.matmul %43, %40, %cst_23 {dimension_numbers = #tpu.dot_dimension_numbers<[1], [0], [0], [1], [0, 0, 1, 1], [], []>} : vector<8x4xbf16>, vector<4x2688xbf16>, vector<8x2688xf32> -> vector<8x2688xf32>
    %45 = arith.addf %39, %44 : vector<8x2688xf32>
    %46 = vector.extract_strided_slice %2 {offsets = [0, 37], sizes = [4, 2688], strides = [1, 1]} : vector<4x3456xbf16> to vector<4x2688xbf16>
    %c7 = arith.constant 7 : index
    %c0_24 = arith.constant 0 : index
    %c0_25 = arith.constant 0 : index
    %47 = vector.load %arg2[%c7, %c0_24, %c0_25] : memref<27x8x4xf32, #tpu.memory_space<vmem>>, vector<1x8x4xf32>
    %48 = vector.shape_cast %47 : vector<1x8x4xf32> to vector<8x4xf32>
    %49 = arith.truncf %48 : vector<8x4xf32> to vector<8x4xbf16>
    %cst_26 = arith.constant dense<0.000000e+00> : vector<8x2688xf32>
    %50 = tpu.matmul %49, %46, %cst_26 {dimension_numbers = #tpu.dot_dimension_numbers<[1], [0], [0], [1], [0, 0, 1, 1], [], []>} : vector<8x4xbf16>, vector<4x2688xbf16>, vector<8x2688xf32> -> vector<8x2688xf32>
    %51 = arith.addf %45, %50 : vector<8x2688xf32>
    %52 = vector.extract_strided_slice %2 {offsets = [0, 38], sizes = [4, 2688], strides = [1, 1]} : vector<4x3456xbf16> to vector<4x2688xbf16>
    %c8 = arith.constant 8 : index
    %c0_27 = arith.constant 0 : index
    %c0_28 = arith.constant 0 : index
    %53 = vector.load %arg2[%c8, %c0_27, %c0_28] : memref<27x8x4xf32, #tpu.memory_space<vmem>>, vector<1x8x4xf32>
    %54 = vector.shape_cast %53 : vector<1x8x4xf32> to vector<8x4xf32>
    %55 = arith.truncf %54 : vector<8x4xf32> to vector<8x4xbf16>
    %cst_29 = arith.constant dense<0.000000e+00> : vector<8x2688xf32>
    %56 = tpu.matmul %55, %52, %cst_29 {dimension_numbers = #tpu.dot_dimension_numbers<[1], [0], [0], [1], [0, 0, 1, 1], [], []>} : vector<8x4xbf16>, vector<4x2688xbf16>, vector<8x2688xf32> -> vector<8x2688xf32>
    %57 = arith.addf %51, %56 : vector<8x2688xf32>
    %58 = vector.extract_strided_slice %2 {offsets = [0, 324], sizes = [4, 2688], strides = [1, 1]} : vector<4x3456xbf16> to vector<4x2688xbf16>
    %c9 = arith.constant 9 : index
    %c0_30 = arith.constant 0 : index
    %c0_31 = arith.constant 0 : index
    %59 = vector.load %arg2[%c9, %c0_30, %c0_31] : memref<27x8x4xf32, #tpu.memory_space<vmem>>, vector<1x8x4xf32>
    %60 = vector.shape_cast %59 : vector<1x8x4xf32> to vector<8x4xf32>
    %61 = arith.truncf %60 : vector<8x4xf32> to vector<8x4xbf16>
    %cst_32 = arith.constant dense<0.000000e+00> : vector<8x2688xf32>
    %62 = tpu.matmul %61, %58, %cst_32 {dimension_numbers = #tpu.dot_dimension_numbers<[1], [0], [0], [1], [0, 0, 1, 1], [], []>} : vector<8x4xbf16>, vector<4x2688xbf16>, vector<8x2688xf32> -> vector<8x2688xf32>
    %63 = arith.addf %57, %62 : vector<8x2688xf32>
    %64 = vector.extract_strided_slice %2 {offsets = [0, 325], sizes = [4, 2688], strides = [1, 1]} : vector<4x3456xbf16> to vector<4x2688xbf16>
    %c10 = arith.constant 10 : index
    %c0_33 = arith.constant 0 : index
    %c0_34 = arith.constant 0 : index
    %65 = vector.load %arg2[%c10, %c0_33, %c0_34] : memref<27x8x4xf32, #tpu.memory_space<vmem>>, vector<1x8x4xf32>
    %66 = vector.shape_cast %65 : vector<1x8x4xf32> to vector<8x4xf32>
    %67 = arith.truncf %66 : vector<8x4xf32> to vector<8x4xbf16>
    %cst_35 = arith.constant dense<0.000000e+00> : vector<8x2688xf32>
    %68 = tpu.matmul %67, %64, %cst_35 {dimension_numbers = #tpu.dot_dimension_numbers<[1], [0], [0], [1], [0, 0, 1, 1], [], []>} : vector<8x4xbf16>, vector<4x2688xbf16>, vector<8x2688xf32> -> vector<8x2688xf32>
    %69 = arith.addf %63, %68 : vector<8x2688xf32>
    %70 = vector.extract_strided_slice %2 {offsets = [0, 326], sizes = [4, 2688], strides = [1, 1]} : vector<4x3456xbf16> to vector<4x2688xbf16>
    %c11 = arith.constant 11 : index
    %c0_36 = arith.constant 0 : index
    %c0_37 = arith.constant 0 : index
    %71 = vector.load %arg2[%c11, %c0_36, %c0_37] : memref<27x8x4xf32, #tpu.memory_space<vmem>>, vector<1x8x4xf32>
    %72 = vector.shape_cast %71 : vector<1x8x4xf32> to vector<8x4xf32>
    %73 = arith.truncf %72 : vector<8x4xf32> to vector<8x4xbf16>
    %cst_38 = arith.constant dense<0.000000e+00> : vector<8x2688xf32>
    %74 = tpu.matmul %73, %70, %cst_38 {dimension_numbers = #tpu.dot_dimension_numbers<[1], [0], [0], [1], [0, 0, 1, 1], [], []>} : vector<8x4xbf16>, vector<4x2688xbf16>, vector<8x2688xf32> -> vector<8x2688xf32>
    %75 = arith.addf %69, %74 : vector<8x2688xf32>
    %76 = vector.extract_strided_slice %2 {offsets = [0, 342], sizes = [4, 2688], strides = [1, 1]} : vector<4x3456xbf16> to vector<4x2688xbf16>
    %c12 = arith.constant 12 : index
    %c0_39 = arith.constant 0 : index
    %c0_40 = arith.constant 0 : index
    %77 = vector.load %arg2[%c12, %c0_39, %c0_40] : memref<27x8x4xf32, #tpu.memory_space<vmem>>, vector<1x8x4xf32>
    %78 = vector.shape_cast %77 : vector<1x8x4xf32> to vector<8x4xf32>
    %79 = arith.truncf %78 : vector<8x4xf32> to vector<8x4xbf16>
    %cst_41 = arith.constant dense<0.000000e+00> : vector<8x2688xf32>
    %80 = tpu.matmul %79, %76, %cst_41 {dimension_numbers = #tpu.dot_dimension_numbers<[1], [0], [0], [1], [0, 0, 1, 1], [], []>} : vector<8x4xbf16>, vector<4x2688xbf16>, vector<8x2688xf32> -> vector<8x2688xf32>
    %81 = arith.addf %75, %80 : vector<8x2688xf32>
    %82 = vector.extract_strided_slice %2 {offsets = [0, 343], sizes = [4, 2688], strides = [1, 1]} : vector<4x3456xbf16> to vector<4x2688xbf16>
    %c13 = arith.constant 13 : index
    %c0_42 = arith.constant 0 : index
    %c0_43 = arith.constant 0 : index
    %83 = vector.load %arg2[%c13, %c0_42, %c0_43] : memref<27x8x4xf32, #tpu.memory_space<vmem>>, vector<1x8x4xf32>
    %84 = vector.shape_cast %83 : vector<1x8x4xf32> to vector<8x4xf32>
    %85 = arith.truncf %84 : vector<8x4xf32> to vector<8x4xbf16>
    %cst_44 = arith.constant dense<0.000000e+00> : vector<8x2688xf32>
    %86 = tpu.matmul %85, %82, %cst_44 {dimension_numbers = #tpu.dot_dimension_numbers<[1], [0], [0], [1], [0, 0, 1, 1], [], []>} : vector<8x4xbf16>, vector<4x2688xbf16>, vector<8x2688xf32> -> vector<8x2688xf32>
    %87 = arith.addf %81, %86 : vector<8x2688xf32>
    %88 = vector.extract_strided_slice %2 {offsets = [0, 344], sizes = [4, 2688], strides = [1, 1]} : vector<4x3456xbf16> to vector<4x2688xbf16>
    %c14 = arith.constant 14 : index
    %c0_45 = arith.constant 0 : index
    %c0_46 = arith.constant 0 : index
    %89 = vector.load %arg2[%c14, %c0_45, %c0_46] : memref<27x8x4xf32, #tpu.memory_space<vmem>>, vector<1x8x4xf32>
    %90 = vector.shape_cast %89 : vector<1x8x4xf32> to vector<8x4xf32>
    %91 = arith.truncf %90 : vector<8x4xf32> to vector<8x4xbf16>
    %cst_47 = arith.constant dense<0.000000e+00> : vector<8x2688xf32>
    %92 = tpu.matmul %91, %88, %cst_47 {dimension_numbers = #tpu.dot_dimension_numbers<[1], [0], [0], [1], [0, 0, 1, 1], [], []>} : vector<8x4xbf16>, vector<4x2688xbf16>, vector<8x2688xf32> -> vector<8x2688xf32>
    %93 = arith.addf %87, %92 : vector<8x2688xf32>
    %94 = vector.extract_strided_slice %2 {offsets = [0, 360], sizes = [4, 2688], strides = [1, 1]} : vector<4x3456xbf16> to vector<4x2688xbf16>
    %c15 = arith.constant 15 : index
    %c0_48 = arith.constant 0 : index
    %c0_49 = arith.constant 0 : index
    %95 = vector.load %arg2[%c15, %c0_48, %c0_49] : memref<27x8x4xf32, #tpu.memory_space<vmem>>, vector<1x8x4xf32>
    %96 = vector.shape_cast %95 : vector<1x8x4xf32> to vector<8x4xf32>
    %97 = arith.truncf %96 : vector<8x4xf32> to vector<8x4xbf16>
    %cst_50 = arith.constant dense<0.000000e+00> : vector<8x2688xf32>
    %98 = tpu.matmul %97, %94, %cst_50 {dimension_numbers = #tpu.dot_dimension_numbers<[1], [0], [0], [1], [0, 0, 1, 1], [], []>} : vector<8x4xbf16>, vector<4x2688xbf16>, vector<8x2688xf32> -> vector<8x2688xf32>
    %99 = arith.addf %93, %98 : vector<8x2688xf32>
    %100 = vector.extract_strided_slice %2 {offsets = [0, 361], sizes = [4, 2688], strides = [1, 1]} : vector<4x3456xbf16> to vector<4x2688xbf16>
    %c16 = arith.constant 16 : index
    %c0_51 = arith.constant 0 : index
    %c0_52 = arith.constant 0 : index
    %101 = vector.load %arg2[%c16, %c0_51, %c0_52] : memref<27x8x4xf32, #tpu.memory_space<vmem>>, vector<1x8x4xf32>
    %102 = vector.shape_cast %101 : vector<1x8x4xf32> to vector<8x4xf32>
    %103 = arith.truncf %102 : vector<8x4xf32> to vector<8x4xbf16>
    %cst_53 = arith.constant dense<0.000000e+00> : vector<8x2688xf32>
    %104 = tpu.matmul %103, %100, %cst_53 {dimension_numbers = #tpu.dot_dimension_numbers<[1], [0], [0], [1], [0, 0, 1, 1], [], []>} : vector<8x4xbf16>, vector<4x2688xbf16>, vector<8x2688xf32> -> vector<8x2688xf32>
    %105 = arith.addf %99, %104 : vector<8x2688xf32>
    %106 = vector.extract_strided_slice %2 {offsets = [0, 362], sizes = [4, 2688], strides = [1, 1]} : vector<4x3456xbf16> to vector<4x2688xbf16>
    %c17 = arith.constant 17 : index
    %c0_54 = arith.constant 0 : index
    %c0_55 = arith.constant 0 : index
    %107 = vector.load %arg2[%c17, %c0_54, %c0_55] : memref<27x8x4xf32, #tpu.memory_space<vmem>>, vector<1x8x4xf32>
    %108 = vector.shape_cast %107 : vector<1x8x4xf32> to vector<8x4xf32>
    %109 = arith.truncf %108 : vector<8x4xf32> to vector<8x4xbf16>
    %cst_56 = arith.constant dense<0.000000e+00> : vector<8x2688xf32>
    %110 = tpu.matmul %109, %106, %cst_56 {dimension_numbers = #tpu.dot_dimension_numbers<[1], [0], [0], [1], [0, 0, 1, 1], [], []>} : vector<8x4xbf16>, vector<4x2688xbf16>, vector<8x2688xf32> -> vector<8x2688xf32>
    %111 = arith.addf %105, %110 : vector<8x2688xf32>
    %112 = vector.extract_strided_slice %2 {offsets = [0, 648], sizes = [4, 2688], strides = [1, 1]} : vector<4x3456xbf16> to vector<4x2688xbf16>
    %c18 = arith.constant 18 : index
    %c0_57 = arith.constant 0 : index
    %c0_58 = arith.constant 0 : index
    %113 = vector.load %arg2[%c18, %c0_57, %c0_58] : memref<27x8x4xf32, #tpu.memory_space<vmem>>, vector<1x8x4xf32>
    %114 = vector.shape_cast %113 : vector<1x8x4xf32> to vector<8x4xf32>
    %115 = arith.truncf %114 : vector<8x4xf32> to vector<8x4xbf16>
    %cst_59 = arith.constant dense<0.000000e+00> : vector<8x2688xf32>
    %116 = tpu.matmul %115, %112, %cst_59 {dimension_numbers = #tpu.dot_dimension_numbers<[1], [0], [0], [1], [0, 0, 1, 1], [], []>} : vector<8x4xbf16>, vector<4x2688xbf16>, vector<8x2688xf32> -> vector<8x2688xf32>
    %117 = arith.addf %111, %116 : vector<8x2688xf32>
    %118 = vector.extract_strided_slice %2 {offsets = [0, 649], sizes = [4, 2688], strides = [1, 1]} : vector<4x3456xbf16> to vector<4x2688xbf16>
    %c19 = arith.constant 19 : index
    %c0_60 = arith.constant 0 : index
    %c0_61 = arith.constant 0 : index
    %119 = vector.load %arg2[%c19, %c0_60, %c0_61] : memref<27x8x4xf32, #tpu.memory_space<vmem>>, vector<1x8x4xf32>
    %120 = vector.shape_cast %119 : vector<1x8x4xf32> to vector<8x4xf32>
    %121 = arith.truncf %120 : vector<8x4xf32> to vector<8x4xbf16>
    %cst_62 = arith.constant dense<0.000000e+00> : vector<8x2688xf32>
    %122 = tpu.matmul %121, %118, %cst_62 {dimension_numbers = #tpu.dot_dimension_numbers<[1], [0], [0], [1], [0, 0, 1, 1], [], []>} : vector<8x4xbf16>, vector<4x2688xbf16>, vector<8x2688xf32> -> vector<8x2688xf32>
    %123 = arith.addf %117, %122 : vector<8x2688xf32>
    %124 = vector.extract_strided_slice %2 {offsets = [0, 650], sizes = [4, 2688], strides = [1, 1]} : vector<4x3456xbf16> to vector<4x2688xbf16>
    %c20 = arith.constant 20 : index
    %c0_63 = arith.constant 0 : index
    %c0_64 = arith.constant 0 : index
    %125 = vector.load %arg2[%c20, %c0_63, %c0_64] : memref<27x8x4xf32, #tpu.memory_space<vmem>>, vector<1x8x4xf32>
    %126 = vector.shape_cast %125 : vector<1x8x4xf32> to vector<8x4xf32>
    %127 = arith.truncf %126 : vector<8x4xf32> to vector<8x4xbf16>
    %cst_65 = arith.constant dense<0.000000e+00> : vector<8x2688xf32>
    %128 = tpu.matmul %127, %124, %cst_65 {dimension_numbers = #tpu.dot_dimension_numbers<[1], [0], [0], [1], [0, 0, 1, 1], [], []>} : vector<8x4xbf16>, vector<4x2688xbf16>, vector<8x2688xf32> -> vector<8x2688xf32>
    %129 = arith.addf %123, %128 : vector<8x2688xf32>
    %130 = vector.extract_strided_slice %2 {offsets = [0, 666], sizes = [4, 2688], strides = [1, 1]} : vector<4x3456xbf16> to vector<4x2688xbf16>
    %c21 = arith.constant 21 : index
    %c0_66 = arith.constant 0 : index
    %c0_67 = arith.constant 0 : index
    %131 = vector.load %arg2[%c21, %c0_66, %c0_67] : memref<27x8x4xf32, #tpu.memory_space<vmem>>, vector<1x8x4xf32>
    %132 = vector.shape_cast %131 : vector<1x8x4xf32> to vector<8x4xf32>
    %133 = arith.truncf %132 : vector<8x4xf32> to vector<8x4xbf16>
    %cst_68 = arith.constant dense<0.000000e+00> : vector<8x2688xf32>
    %134 = tpu.matmul %133, %130, %cst_68 {dimension_numbers = #tpu.dot_dimension_numbers<[1], [0], [0], [1], [0, 0, 1, 1], [], []>} : vector<8x4xbf16>, vector<4x2688xbf16>, vector<8x2688xf32> -> vector<8x2688xf32>
    %135 = arith.addf %129, %134 : vector<8x2688xf32>
    %136 = vector.extract_strided_slice %2 {offsets = [0, 667], sizes = [4, 2688], strides = [1, 1]} : vector<4x3456xbf16> to vector<4x2688xbf16>
    %c22 = arith.constant 22 : index
    %c0_69 = arith.constant 0 : index
    %c0_70 = arith.constant 0 : index
    %137 = vector.load %arg2[%c22, %c0_69, %c0_70] : memref<27x8x4xf32, #tpu.memory_space<vmem>>, vector<1x8x4xf32>
    %138 = vector.shape_cast %137 : vector<1x8x4xf32> to vector<8x4xf32>
    %139 = arith.truncf %138 : vector<8x4xf32> to vector<8x4xbf16>
    %cst_71 = arith.constant dense<0.000000e+00> : vector<8x2688xf32>
    %140 = tpu.matmul %139, %136, %cst_71 {dimension_numbers = #tpu.dot_dimension_numbers<[1], [0], [0], [1], [0, 0, 1, 1], [], []>} : vector<8x4xbf16>, vector<4x2688xbf16>, vector<8x2688xf32> -> vector<8x2688xf32>
    %141 = arith.addf %135, %140 : vector<8x2688xf32>
    %142 = vector.extract_strided_slice %2 {offsets = [0, 668], sizes = [4, 2688], strides = [1, 1]} : vector<4x3456xbf16> to vector<4x2688xbf16>
    %c23 = arith.constant 23 : index
    %c0_72 = arith.constant 0 : index
    %c0_73 = arith.constant 0 : index
    %143 = vector.load %arg2[%c23, %c0_72, %c0_73] : memref<27x8x4xf32, #tpu.memory_space<vmem>>, vector<1x8x4xf32>
    %144 = vector.shape_cast %143 : vector<1x8x4xf32> to vector<8x4xf32>
    %145 = arith.truncf %144 : vector<8x4xf32> to vector<8x4xbf16>
    %cst_74 = arith.constant dense<0.000000e+00> : vector<8x2688xf32>
    %146 = tpu.matmul %145, %142, %cst_74 {dimension_numbers = #tpu.dot_dimension_numbers<[1], [0], [0], [1], [0, 0, 1, 1], [], []>} : vector<8x4xbf16>, vector<4x2688xbf16>, vector<8x2688xf32> -> vector<8x2688xf32>
    %147 = arith.addf %141, %146 : vector<8x2688xf32>
    %148 = vector.extract_strided_slice %2 {offsets = [0, 684], sizes = [4, 2688], strides = [1, 1]} : vector<4x3456xbf16> to vector<4x2688xbf16>
    %c24 = arith.constant 24 : index
    %c0_75 = arith.constant 0 : index
    %c0_76 = arith.constant 0 : index
    %149 = vector.load %arg2[%c24, %c0_75, %c0_76] : memref<27x8x4xf32, #tpu.memory_space<vmem>>, vector<1x8x4xf32>
    %150 = vector.shape_cast %149 : vector<1x8x4xf32> to vector<8x4xf32>
    %151 = arith.truncf %150 : vector<8x4xf32> to vector<8x4xbf16>
    %cst_77 = arith.constant dense<0.000000e+00> : vector<8x2688xf32>
    %152 = tpu.matmul %151, %148, %cst_77 {dimension_numbers = #tpu.dot_dimension_numbers<[1], [0], [0], [1], [0, 0, 1, 1], [], []>} : vector<8x4xbf16>, vector<4x2688xbf16>, vector<8x2688xf32> -> vector<8x2688xf32>
    %153 = arith.addf %147, %152 : vector<8x2688xf32>
    %154 = vector.extract_strided_slice %2 {offsets = [0, 685], sizes = [4, 2688], strides = [1, 1]} : vector<4x3456xbf16> to vector<4x2688xbf16>
    %c25 = arith.constant 25 : index
    %c0_78 = arith.constant 0 : index
    %c0_79 = arith.constant 0 : index
    %155 = vector.load %arg2[%c25, %c0_78, %c0_79] : memref<27x8x4xf32, #tpu.memory_space<vmem>>, vector<1x8x4xf32>
    %156 = vector.shape_cast %155 : vector<1x8x4xf32> to vector<8x4xf32>
    %157 = arith.truncf %156 : vector<8x4xf32> to vector<8x4xbf16>
    %cst_80 = arith.constant dense<0.000000e+00> : vector<8x2688xf32>
    %158 = tpu.matmul %157, %154, %cst_80 {dimension_numbers = #tpu.dot_dimension_numbers<[1], [0], [0], [1], [0, 0, 1, 1], [], []>} : vector<8x4xbf16>, vector<4x2688xbf16>, vector<8x2688xf32> -> vector<8x2688xf32>
    %159 = arith.addf %153, %158 : vector<8x2688xf32>
    %160 = vector.extract_strided_slice %2 {offsets = [0, 686], sizes = [4, 2688], strides = [1, 1]} : vector<4x3456xbf16> to vector<4x2688xbf16>
    %c26 = arith.constant 26 : index
    %c0_81 = arith.constant 0 : index
    %c0_82 = arith.constant 0 : index
    %161 = vector.load %arg2[%c26, %c0_81, %c0_82] : memref<27x8x4xf32, #tpu.memory_space<vmem>>, vector<1x8x4xf32>
    %162 = vector.shape_cast %161 : vector<1x8x4xf32> to vector<8x4xf32>
    %163 = arith.truncf %162 : vector<8x4xf32> to vector<8x4xbf16>
    %cst_83 = arith.constant dense<0.000000e+00> : vector<8x2688xf32>
    %164 = tpu.matmul %163, %160, %cst_83 {dimension_numbers = #tpu.dot_dimension_numbers<[1], [0], [0], [1], [0, 0, 1, 1], [], []>} : vector<8x4xbf16>, vector<4x2688xbf16>, vector<8x2688xf32> -> vector<8x2688xf32>
    %165 = arith.addf %159, %164 : vector<8x2688xf32>
    %c0_84 = arith.constant 0 : index
    %c0_85 = arith.constant 0 : index
    %166 = vector.load %arg3[%c0_84, %c0_85] : memref<1x2688xf32, #tpu.memory_space<vmem>>, vector<1x2688xf32>
    %167 = vector.broadcast %166 : vector<1x2688xf32> to vector<8x2688xf32>
    %168 = arith.mulf %165, %167 : vector<8x2688xf32>
    %cst_86 = arith.constant dense<0.000000e+00> : vector<8xf32>
    %169 = vector.multi_reduction <add>, %168, %cst_86 [1] : vector<8x2688xf32> to vector<8xf32>
    %170 = vector.shape_cast %169 : vector<8xf32> to vector<8x1xf32>
    %cst_87 = arith.constant 4.8828125E-4 : f32
    %171 = vector.broadcast %cst_87 : f32 to vector<8x1xf32>
    %172 = arith.mulf %170, %171 : vector<8x1xf32>
    %173 = vector.broadcast %172 : vector<8x1xf32> to vector<8x2688xf32>
    %174 = arith.subf %165, %173 : vector<8x2688xf32>
    %175 = vector.broadcast %166 : vector<1x2688xf32> to vector<8x2688xf32>
    %176 = arith.mulf %174, %175 : vector<8x2688xf32>
    %177 = arith.mulf %176, %176 : vector<8x2688xf32>
    %cst_88 = arith.constant dense<0.000000e+00> : vector<8xf32>
    %178 = vector.multi_reduction <add>, %177, %cst_88 [1] : vector<8x2688xf32> to vector<8xf32>
    %179 = vector.shape_cast %178 : vector<8xf32> to vector<8x1xf32>
    %cst_89 = arith.constant 4.8828125E-4 : f32
    %180 = vector.broadcast %cst_89 : f32 to vector<8x1xf32>
    %181 = arith.mulf %179, %180 : vector<8x1xf32>
    %182 = vector.broadcast %172 : vector<8x1xf32> to vector<8x2688xf32>
    %183 = arith.subf %165, %182 : vector<8x2688xf32>
    %cst_90 = arith.constant 9.99999974E-6 : f32
    %184 = vector.broadcast %cst_90 : f32 to vector<8x1xf32>
    %185 = arith.addf %181, %184 : vector<8x1xf32>
    %186 = math.rsqrt %185 : vector<8x1xf32>
    %187 = vector.broadcast %186 : vector<8x1xf32> to vector<8x2688xf32>
    %188 = arith.mulf %183, %187 : vector<8x2688xf32>
    %189 = arith.negf %188 : vector<8x2688xf32>
    %190 = math.exp %189 : vector<8x2688xf32>
    %cst_91 = arith.constant 1.000000e+00 : f32
    %191 = vector.broadcast %cst_91 : f32 to vector<8x2688xf32>
    %192 = arith.addf %191, %190 : vector<8x2688xf32>
    %193 = arith.divf %191, %192 : vector<8x2688xf32>
    %194 = arith.mulf %188, %193 : vector<8x2688xf32>
    %c0_92 = arith.constant 0 : index
    %c0_93 = arith.constant 0 : index
    %c0_94 = arith.constant 0 : index
    %195 = vector.load %arg4[%c0_92, %c0_93, %c0_94] : memref<1x8x2688xf32, #tpu.memory_space<vmem>>, vector<1x8x2688xf32>
    %196 = vector.shape_cast %195 : vector<1x8x2688xf32> to vector<8x2688xf32>
    %197 = vector.shape_cast %194 : vector<8x2688xf32> to vector<1x8x2688xf32>
    tpu.vector_store %arg4[%c0_92, %c0_93, %c0_94], %197 {strides = array<i32>} : memref<1x8x2688xf32, #tpu.memory_space<vmem>>, vector<1x8x2688xf32>,
    return
  }
  func.func @transform_0(%arg0: i32) -> (i32, i32, i32) {
    %c0_i32 = arith.constant 0 : i32
    %c0_i32_0 = arith.constant 0 : i32
    %c0_i32_1 = arith.constant 0 : i32
    return %arg0, %c0_i32, %c0_i32_0 : i32, i32, i32
  }
  func.func @transform_1(%arg0: i32) -> (i32, i32, i32) {
    %c0_i32 = arith.constant 0 : i32
    %c0_i32_0 = arith.constant 0 : i32
    %c0_i32_1 = arith.constant 0 : i32
    %c0_i32_2 = arith.constant 0 : i32
    return %c0_i32, %c0_i32_0, %c0_i32_1 : i32, i32, i32
  }
  func.func @transform_2(%arg0: i32) -> (i32, i32) {
    %c0_i32 = arith.constant 0 : i32
    %c0_i32_0 = arith.constant 0 : i32
    %c0_i32_1 = arith.constant 0 : i32
    return %c0_i32, %c0_i32_0 : i32, i32
  }
  func.func @transform_3(%arg0: i32) -> (i32, i32, i32) {
    %c0_i32 = arith.constant 0 : i32
    %c0_i32_0 = arith.constant 0 : i32
    %c0_i32_1 = arith.constant 0 : i32
    return %arg0, %c0_i32, %c0_i32_0 : i32, i32, i32
  }
}

</mosaic_0001>

<bundles_post_ra>
// kernel: conv_block2.1
= control target key start
LH: loop header
LB: loop body
LE: loop exit
PB: predicated region body
PF: predicated region fallthrough
CT: control target
= control target key end

     0   :  { %s19186_s12 = smov 0   ;;  %s24929_s0 = inlined_call_operand.vmem [shape: f32[2,4,3456], index: 0, kind: input, shape index: {}]   ;;  %s24930_s1 = inlined_call_operand.vmem [shape: f32[27,8,4], index: 1, kind: input, shape index: {}]   ;;  %s24931_s2 = inlined_call_operand.vmem [shape: f32[1,2688], index: 2, kind: input, shape index: {}]   ;;  %s24932_s3 = inlined_call_operand.vmem [shape: f32[2,8,2688], index: 3, kind: output, shape index: {}]  }
   0x1 LB: > { %s17021_s13 = sadd.s32 4294967295, %s19135_s12   ;;  %p17025_p0 = scmp.ge.s32.totalorder %s19135_s12, 1  ;;  %s19135_s12 = sphi %s19186_s12, %s13_s12  }
   0x2   : > { %p137_p1 = scmp.lt.s32.totalorder %s19135_s12, 3 }
   0x4   : > { %p138_p2 = pnand %p17025_p0, %p137_p1 }
   0x6   : > { %141 = sbr.rel (%p138_p2) target bundleno = 1971 (0x7b3), region = 32 }
   0xd   : > { %p161_p3 = scmp.lt.s32.totalorder %s17021_s13, 1  ;;  %s19137_s18 = smov 126   ;;  %v24935_v14 = vmov 0   ;;  %vm1426_vm0 = vcmask 1031168   ;;  %vm349_vm1 = vcmask 1041408   ;;  %v17071_v53 = vld [vmem:[%s24930_s1 + $0x10] sm:$0xff] }
   0xe   : > { %s19138_s19 = smov 127   ;;  %1628 = vmatprep.mubr.bf16.mxu0 %v24935_v14  ;;  %445 = vmatprep.mubr.bf16.mxu1 %v24935_v14  ;;  %s19140_s20 = smov 110   ;;  %vm323_vm2 = vcmask 1039360   ;;  %v19402_v57 = vpack.c.bf16 %v17071_v53, %v17071_v53  ;;  %vm345_vm3 = vcmask 31744   ;;  %v17028_v60 = vld [vmem:[%s24930_s1 + $0x8] sm:$0xff]  ;;  %vm19144_vm4 = vmmov 0  }
   0xf   : > { %s25213_s13 = smov (!%p161_p3, %s17021_s13), 1  ;;  %s19141_s21 = smov 109   ;;  %vm2032_vm5 = vcmask 900096   ;;  %vm2638_vm6 = vcmask 891904   ;;  %vm3244_vm7 = vcmask 883712   ;;  %vm3850_vm8 = vcmask 752640  }
  0x10   : > { %s18991_s14 = smul.u32 108, %s25213_s13  ;;  %s19142_s26 = smov 108   ;;  %vm4456_vm9 = vcmask 744448   ;;  %vm5062_vm10 = vcmask 736256   ;;  %vm5670_vm11 = vcmask 490496   ;;  %vm6276_vm12 = vcmask 482304  }
  0x11   : > { %s19145_s29 = smov 92   ;;  %s19146_s5 = smov 91   ;;  %vm6882_vm13 = vcmask 474112   ;;  %vm7488_vm14 = vcmask 343040   ;;  %vm8094_vm15 = vcmask 334848  }
  0x12   : > { %s19200_s17 = scalar_lea.vmem %s24929_s0, %s18991_s14  ;;  %s19147_s10 = smov 90  }
  0x13   : > { %v175_v0 = vld [vmem:[%s19200_s17 + $0x18] sm:$0xff]  ;;  %v174_v1 = vld [vmem:[%s19200_s17 + $0x10] sm:$0xff]  ;;  %v176_v2 = vld [vmem:[%s19200_s17 + $0x20] sm:$0xff]  ;;  %s19148_s11 = smov 60   ;;  %s19149_s16 = smov 59  }
  0x14   : > { %v19205_v3 = vpack.c.bf16 %v175_v0, %v175_v0  ;;  %v19207_v4 = vpack.c.bf16 %v174_v1, %v174_v1  ;;  %v172_v5 = vld [vmem:[%s19200_s17] sm:$0xff]  ;;  %v201_v6 = vcombine.high %v174_v1, %v174_v1  ;;  %v19214_v7 = vpack.c.bf16 %v176_v2, %v176_v2  ;;  %v173_v9 = vld [vmem:[%s19200_s17 + $0x8] sm:$0xff]  ;;  %v178_v21 = vld [vmem:[%s19200_s17 + $0x30] sm:$0xff]  ;;  %s19151_s23 = smov 42   ;;  %s19155_s8 = smov 23  }
  0x15   : > { %v19216_v8 = vpack.c.bf16 %v172_v5, %v172_v5  ;;  %v19219_v10 = vpack.c.bf16 %v173_v9, %v173_v9  ;;  %v203_v12 = vcombine.high %v176_v2, %v176_v2  ;;  %v199_v13 = vcombine.high %v172_v5, %v172_v5  ;;  %v177_v18 = vld [vmem:[%s19200_s17 + $0x28] sm:$0xff]  ;;  %v179_v24 = vld [vmem:[%s19200_s17 + $0x38] sm:$0xff]  ;;  %v180_v27 = vld [vmem:[%s19200_s17 + $0x40] sm:$0xff]  ;;  %s19159_s22 = smov 118   ;;  %s19160_s25 = smov 102  }
  0x16   : > { %1394 = vrot.lane.b32.xlu1 %v19205_v3, %s19137_s18  ;;  %1390 = vrot.lane.b32.xlu0 %v19207_v4, %s19137_s18  ;;  %25026 = vst [vmem:[#allocation2_spill] sm:$0xff] %v19214_v7  ;;  %v19221_v11 = vpack.c.bf16 %v201_v6, %v201_v6  ;;  %v200_v17 = vcombine.high %v173_v9, %v173_v9  ;;  %v181_v32 = vld [vmem:[%s19200_s17 + $0x48] sm:$0xff]  ;;  %v182_v35 = vld [vmem:[%s19200_s17 + $0x50] sm:$0xff]  ;;  %s19161_s28 = smov 101   ;;  %s19162_s4 = smov 100  }
  0x17   : > { %v19233_v15 = vpack.c.bf16 %v203_v12, %v203_v12  ;;  %v19235_v16 = vpack.c.bf16 %v199_v13, %v199_v13  ;;  %v19244_v20 = vpack.c.bf16 %v177_v18, %v177_v18  ;;  %v19251_v22 = vpack.c.bf16 %v178_v21, %v178_v21  ;;  %s19163_s7 = smov 84   ;;  %s19165_s15 = smov 82  }
  0x18   : > { %25027 = vst [vmem:[#allocation3_spill] sm:$0xff] %v19221_v11  ;;  %v19242_v19 = vpack.c.bf16 %v200_v17, %v200_v17  ;;  %v205_v23 = vcombine.high %v178_v21, %v178_v21  ;;  %v19258_v25 = vpack.c.bf16 %v179_v24, %v179_v24  ;;  %v207_v28 = vcombine.high %v180_v27, %v180_v27  ;;  %s18992_s30 = smul.u32 168, %s25213_s13 }
  0x19   : > { %25028 = vst [vmem:[#allocation4_spill] sm:$0xff] %v19233_v15  ;;  %25029 = vst [vmem:[#allocation5_spill] sm:$0xff] %v19251_v22  ;;  %v19273_v30 = vpack.c.bf16 %v180_v27, %v180_v27  ;;  %v202_v31 = vcombine.high %v175_v0, %v175_v0  ;;  %v19282_v34 = vpack.c.bf16 %v181_v32, %v181_v32 }
  0x1a   : > { %1398 = vrot.lane.b32.xlu0 %v19214_v7, %s19137_s18  ;;  %279 = vrot.lane.b32.xlu1 %v19216_v8, %s19138_s19  ;;  %v19260_v26 = vpack.c.bf16 %v205_v23, %v205_v23  ;;  %v19271_v29 = vpack.c.bf16 %v207_v28, %v207_v28  ;;  %v19289_v36 = vpack.c.bf16 %v182_v35, %v182_v35  ;;  %s24882_s6 = scalar_lea.vmem %s24932_s3, %s18992_s30 }
  0x1b   : > { %25032 = vst [vmem:[#allocation8_spill] sm:$0xff] %v19273_v30  ;;  %v19280_v33 = vpack.c.bf16 %v202_v31, %v202_v31  ;;  %v209_v37 = vcombine.high %v182_v35, %v182_v35  ;;  %v204_v39 = vcombine.high %v177_v18, %v177_v18  ;;  %v206_v41 = vcombine.high %v179_v24, %v179_v24 }
  0x1c   : > { %25030 = vst [vmem:[#allocation6_spill] sm:$0xff] %v19260_v26  ;;  %25031 = vst [vmem:[#allocation7_spill] sm:$0xff] %v19271_v29  ;;  %v208_v43 = vcombine.high %v181_v32, %v181_v32  ;;  %v19421_v1 = vpack.c.bf16 %v17028_v60, %v17028_v60 }
  0x1d   : > { %v19295_v38 = vpack.c.bf16 %v209_v37, %v209_v37  ;;  %v19309_v40 = vpack.c.bf16 %v204_v39, %v204_v39  ;;  %v19331_v42 = vpack.c.bf16 %v206_v41, %v206_v41 }
  0x1e   : > { %1392 = vrot.lane.b32.xlu0 %v19221_v11, %s19137_s18  ;;  %283 = vrot.lane.b32.xlu1 %v19219_v10, %s19138_s19  ;;  %v19353_v44 = vpack.c.bf16 %v208_v43, %v208_v43 }
  0x22   : > { %1400 = vrot.lane.b32.xlu1 %v19233_v15, %s19137_s18  ;;  %281 = vrot.lane.b32.xlu0 %v19235_v16, %s19138_s19 }
  0x26   : > { %285 = vrot.lane.b32.xlu1 %v19242_v19, %s19138_s19  ;;  %1402 = vrot.lane.b32.xlu0 %v19244_v20, %s19137_s18 }
  0x2a   : > { %1406 = vrot.lane.b32.xlu1 %v19251_v22, %s19137_s18  ;;  %287 = vrot.lane.b32.xlu0 %v19207_v4, %s19138_s19 }
  0x2e   : > { %1410 = vrot.lane.b32.xlu1 %v19258_v25, %s19137_s18  ;;  %1408 = vrot.lane.b32.xlu0 %v19260_v26, %s19137_s18 }
  0x32   : > { %291 = vrot.lane.b32.xlu1 %v19205_v3, %s19138_s19  ;;  %289 = vrot.lane.b32.xlu0 %v19221_v11, %s19138_s19 }
  0x36   : > { %1416 = vrot.lane.b32.xlu1 %v19271_v29, %s19137_s18  ;;  %1414 = vrot.lane.b32.xlu0 %v19273_v30, %s19137_s18 }
  0x3a   : > { %293 = vrot.lane.b32.xlu1 %v19280_v33, %s19138_s19  ;;  %1418 = vrot.lane.b32.xlu0 %v19282_v34, %s19137_s18 }
  0x3e   : > { %1422 = vrot.lane.b32.xlu1 %v19289_v36, %s19137_s18  ;;  %295 = vrot.lane.b32.xlu0 %v19214_v7, %s19138_s19 }
  0x42   : > { %297 = vrot.lane.b32.xlu1 %v19233_v15, %s19138_s19  ;;  %1424 = vrot.lane.b32.xlu0 %v19295_v38, %s19137_s18 }
  0x46   : > { %1988 = vrot.lane.b32.xlu1 %v19216_v8, %s19140_s20  ;;  %299 = vrot.lane.b32.xlu0 %v19244_v20, %s19138_s19 }
  0x4a   : > { %1992 = vrot.lane.b32.xlu1 %v19219_v10, %s19140_s20  ;;  %1990 = vrot.lane.b32.xlu0 %v19235_v16, %s19140_s20 }
  0x4e   : > { %303 = vrot.lane.b32.xlu1 %v19251_v22, %s19138_s19  ;;  %301 = vrot.lane.b32.xlu0 %v19309_v40, %s19138_s19 }
  0x52   : > { %1998 = vrot.lane.b32.xlu1 %v19221_v11, %s19140_s20  ;;  %1996 = vrot.lane.b32.xlu0 %v19207_v4, %s19140_s20 }
  0x56   : > { %305 = vrot.lane.b32.xlu1 %v19260_v26, %s19138_s19  ;;  %2000 = vrot.lane.b32.xlu0 %v19205_v3, %s19140_s20 }
  0x5a   : > { %2004 = vrot.lane.b32.xlu1 %v19214_v7, %s19140_s20  ;;  %307 = vrot.lane.b32.xlu0 %v19258_v25, %s19138_s19 }
  0x5e   : > { %2008 = vrot.lane.b32.xlu1 %v19244_v20, %s19140_s20  ;;  %2006 = vrot.lane.b32.xlu0 %v19233_v15, %s19140_s20 }
  0x62   : > { %311 = vrot.lane.b32.xlu1 %v19273_v30, %s19138_s19  ;;  %309 = vrot.lane.b32.xlu0 %v19331_v42, %s19138_s19 }
  0x66   : > { %2014 = vrot.lane.b32.xlu1 %v19260_v26, %s19140_s20  ;;  %2012 = vrot.lane.b32.xlu0 %v19251_v22, %s19140_s20 }
  0x6a   : > { %313 = vrot.lane.b32.xlu1 %v19271_v29, %s19138_s19  ;;  %2016 = vrot.lane.b32.xlu0 %v19258_v25, %s19140_s20 }
  0x6e   : > { %2020 = vrot.lane.b32.xlu1 %v19273_v30, %s19140_s20  ;;  %315 = vrot.lane.b32.xlu0 %v19282_v34, %s19138_s19 }
  0x72   : > { %2024 = vrot.lane.b32.xlu1 %v19282_v34, %s19140_s20  ;;  %2022 = vrot.lane.b32.xlu0 %v19271_v29, %s19140_s20 }
  0x76   : > { %319 = vrot.lane.b32.xlu1 %v19289_v36, %s19138_s19  ;;  %317 = vrot.lane.b32.xlu0 %v19353_v44, %s19138_s19 }
  0x7a   : > { %2030 = vrot.lane.b32.xlu1 %v19295_v38, %s19140_s20  ;;  %2028 = vrot.lane.b32.xlu0 %v19289_v36, %s19140_s20 }
  0x7e   : > { %2594 = vrot.lane.b32.xlu1 %v19216_v8, %s19141_s21  ;;  %321 = vrot.lane.b32.xlu0 %v19295_v38, %s19138_s19 }
  0x82   : > { %2598 = vrot.lane.b32.xlu1 %v19219_v10, %s19141_s21  ;;  %2596 = vrot.lane.b32.xlu0 %v19235_v16, %s19141_s21 }
  0x86   : > { %2604 = vrot.lane.b32.xlu1 %v19221_v11, %s19141_s21  ;;  %2602 = vrot.lane.b32.xlu0 %v19207_v4, %s19141_s21 }
  0x88   : > { %v19375_v45 = vpop.permute.xlu1 %1394  ;;  %v19377_v46 = vpop.permute.xlu0 %1390 }
  0x8a   : > { %2610 = vrot.lane.b32.xlu1 %v19214_v7, %s19141_s21  ;;  %2606 = vrot.lane.b32.xlu0 %v19205_v3, %s19141_s21 }
  0x8c   : > { %v19383_v47 = vpop.permute.xlu0 %1398  ;;  %v280_v48 = vpop.permute.xlu1 %279 }
  0x8e   : > { %2614 = vrot.lane.b32.xlu1 %v19244_v20, %s19141_s21  ;;  %2612 = vrot.lane.b32.xlu0 %v19233_v15, %s19141_s21 }
  0x90   : > { %v1393_v49 = vpop.permute.xlu0 %1392  ;;  %v284_v50 = vpop.permute.xlu1 %283 }
  0x91   : > { %v1432_v51 = vsel %vm1426_vm0, %v1393_v49, %v19375_v45  ;;  %v1431_v52 = vsel %vm1426_vm0, %v19377_v46, %v1393_v49 }
  0x92   : > { %17076 = vmatprep.subr.msk.bf16.mxu0 %vm349_vm1, %v1432_v51  ;;  %2620 = vrot.lane.b32.xlu1 %v19260_v26, %s19141_s21  ;;  %v1464_v54 = vsel %vm349_vm1, %v1431_v52, 0 }
  0x93   : > { %2618 = vrot.lane.b32.xlu0 %v19251_v22, %s19141_s21  ;;  %1597 = vmatpush1.bf16.msra.mxu0 %v1464_v54 }
  0x94   : > { %v1401_v55 = vpop.permute.xlu1 %1400  ;;  %v282_v56 = vpop.permute.xlu0 %281 }
  0x95   : > { %v325_v58 = vsel %vm323_vm2, %v282_v56, %v284_v50  ;;  %v324_v59 = vsel %vm323_vm2, %v280_v48, %v282_v56  ;;  %v1435_v62 = vsel %vm1426_vm0, %v19383_v47, %v1401_v55 }
  0x96   : > { %2626 = vrot.lane.b32.xlu1 %v19273_v30, %s19141_s21  ;;  %17029 = vmatprep.subr.msk.bf16.mxu1 %vm349_vm1, %v325_v58  ;;  %v351_v61 = vsel %vm349_vm1, %v324_v59, 0  ;;  %v1476_v5 = vsel %vm349_vm1, %v1435_v62, 0 }
  0x97   : > { %2622 = vrot.lane.b32.xlu0 %v19258_v25, %s19141_s21  ;;  %414 = vmatpush1.bf16.msra.mxu1 %v351_v61 }
  0x98   : > { %v286_v63 = vpop.permute.xlu1 %285  ;;  %v19417_v0 = vpop.permute.xlu0 %1402  ;;  %17077 = vmatmul.mubr.msk.bf16.vlgmr.msra.gmra.mrb[0].mxu0 %vm345_vm3, %v19402_v57 }
  0x99   : > { %v1436_v2 = vsel %vm1426_vm0, %v1401_v55, %v19417_v0  ;;  %1710 = vmatprep.mubr.bf16.mxu0 %v24935_v14  ;;  %v326_v6 = vsel %vm323_vm2, %v284_v50, %v286_v63  ;;  %v24933_v55 = vmov 0.0  }
  0x9a   : > { %2630 = vrot.lane.b32.xlu1 %v19282_v34, %s19141_s21  ;;  %17080 = vmatprep.subr.msk.bf16.mxu0 %vm349_vm1, %v1436_v2  ;;  %v357_v17 = vsel %vm349_vm1, %v326_v6, 0 }
  0x9b   : > { %2628 = vrot.lane.b32.xlu0 %v19271_v29, %s19141_s21  ;;  %1679 = vmatpush1.bf16.msra.mxu0 %v1476_v5 }
  0x9c   : > { %v19433_v9 = vpop.permute.xlu1 %1406  ;;  %v288_v12 = vpop.permute.xlu0 %287  ;;  %17030 = vmatmul.mubr.msk.bf16.vlgmr.msra.gmra.mrb[0].mxu1 %vm345_vm3, %v19421_v1 }
  0x9d   : > { %v327_v13 = vsel %vm323_vm2, %v286_v63, %v288_v12  ;;  %486 = vmatprep.mubr.bf16.mxu1 %v24935_v14 }
  0x9e   : > { %2636 = vrot.lane.b32.xlu1 %v19295_v38, %s19141_s21  ;;  %17031 = vmatprep.subr.msk.bf16.mxu1 %vm349_vm1, %v327_v13 }
  0x9f   : > { %2634 = vrot.lane.b32.xlu0 %v19289_v36, %s19141_s21  ;;  %455 = vmatpush1.bf16.msra.mxu1 %v357_v17 }
  0xa0   : > { %v19445_v18 = vpop.permute.xlu1 %1410  ;;  %v1409_v21 = vpop.permute.xlu0 %1408  ;;  %17081 = vmatmul.mubr.msk.bf16.vlgmr.msra.gmra.mrb[4].mxu0 %vm345_vm3, %v19402_v57 }
  0xa1   : > { %v1439_v23 = vsel %vm1426_vm0, %v19433_v9, %v1409_v21  ;;  %v1440_v24 = vsel %vm1426_vm0, %v1409_v21, %v19445_v18  ;;  %1792 = vmatprep.mubr.bf16.mxu0 %v24935_v14 }
  0xa2   : > { %3202 = vrot.lane.b32.xlu1 %v19235_v16, %s19142_s26  ;;  %17084 = vmatprep.subr.msk.bf16.mxu0 %vm349_vm1, %v1440_v24  ;;  %v1488_v27 = vsel %vm349_vm1, %v1439_v23, 0  ;;  %v17093_v24 = vld [vmem:[%s24930_s1 + $0x18] sm:$0xff] }
  0xa3   : > { %3200 = vrot.lane.b32.xlu0 %v19216_v8, %s19142_s26  ;;  %1761 = vmatpush1.bf16.msra.mxu0 %v1488_v27 }
  0xa4   : > { %v292_v28 = vpop.permute.xlu1 %291  ;;  %v290_v31 = vpop.permute.xlu0 %289  ;;  %17032 = vmatmul.mubr.msk.bf16.vlgmr.msra.gmra.mrb[4].mxu1 %vm345_vm3, %v19421_v1 }
  0xa5   : > { %v328_v32 = vsel %vm323_vm2, %v288_v12, %v290_v31  ;;  %v329_v35 = vsel %vm323_vm2, %v290_v31, %v292_v28  ;;  %527 = vmatprep.mubr.bf16.mxu1 %v24935_v14 }
  0xa6   : > { %3208 = vrot.lane.b32.xlu1 %v19207_v4, %s19142_s26  ;;  %17033 = vmatprep.subr.msk.bf16.mxu1 %vm349_vm1, %v329_v35  ;;  %v363_v37 = vsel %vm349_vm1, %v328_v32, 0  ;;  %v19547_v32 = vpack.c.bf16 %v17093_v24, %v17093_v24 }
  0xa7   : > { %3204 = vrot.lane.b32.xlu0 %v19219_v10, %s19142_s26  ;;  %496 = vmatpush1.bf16.msra.mxu1 %v363_v37 }
  0xa8   : > { %v1417_v39 = vpop.permute.xlu1 %1416  ;;  %v19471_v41 = vpop.permute.xlu0 %1414  ;;  %17085 = vmatmul.mubr.msk.bf16.vlgmr.msra.gmra.mrb[8].mxu0 %vm345_vm3, %v19402_v57 }
  0xa9   : > { %1874 = vmatprep.mubr.bf16.mxu0 %v24935_v14  ;;  %v1443_v43 = vsel %vm1426_vm0, %v19471_v41, %v1417_v39 }
  0xaa   : > { %3212 = vrot.lane.b32.xlu1 %v19205_v3, %s19142_s26  ;;  %v1500_v51 = vsel %vm349_vm1, %v1443_v43, 0 }
  0xab   : > { %3210 = vrot.lane.b32.xlu0 %v19221_v11, %s19142_s26 }
  0xac   : > { %v294_v48 = vpop.permute.xlu1 %293  ;;  %v19482_v49 = vpop.permute.xlu0 %1418  ;;  %17034 = vmatmul.mubr.msk.bf16.vlgmr.msra.gmra.mrb[8].mxu1 %vm345_vm3, %v19421_v1 }
  0xad   : > { %v1444_v50 = vsel %vm1426_vm0, %v1417_v39, %v19482_v49  ;;  %568 = vmatprep.mubr.bf16.mxu1 %v24935_v14  ;;  %v330_v52 = vsel %vm323_vm2, %v292_v28, %v294_v48 }
  0xae   : > { %3218 = vrot.lane.b32.xlu1 %v19233_v15, %s19142_s26  ;;  %17088 = vmatprep.subr.msk.bf16.mxu0 %vm349_vm1, %v1444_v50  ;;  %v369_v58 = vsel %vm349_vm1, %v330_v52, 0 }
  0xaf   : > { %3216 = vrot.lane.b32.xlu0 %v19214_v7, %s19142_s26  ;;  %1843 = vmatpush1.bf16.msra.mxu0 %v1500_v51 }
  0xb0   : > { %v19496_v53 = vpop.permute.xlu1 %1422  ;;  %v296_v54 = vpop.permute.xlu0 %295  ;;  %17710 = vmatprep.subr.bf16.mxu0 %v24933_v55 }
  0xb1   : > { %v331_v56 = vsel %vm323_vm2, %v294_v48, %v296_v54 }
  0xb2   : > { %3224 = vrot.lane.b32.xlu1 %v19251_v22, %s19142_s26  ;;  %17035 = vmatprep.subr.msk.bf16.mxu1 %vm349_vm1, %v331_v56 }
  0xb3   : > { %3220 = vrot.lane.b32.xlu0 %v19244_v20, %s19142_s26  ;;  %537 = vmatpush1.bf16.msra.mxu1 %v369_v58 }
  0xb4   : > { %v298_v59 = vpop.permute.xlu1 %297  ;;  %v1425_v60 = vpop.permute.xlu0 %1424  ;;  %17089 = vmatmul.mubr.msk.bf16.vlgmr.msra.gmra.mrb[12].mxu0 %vm345_vm3, %v19402_v57 }
  0xb5   : > { %v1447_v61 = vsel %vm1426_vm0, %v19496_v53, %v1425_v60  ;;  %17712 = vmatprep.mubr.msk.bf16.mxu0 %vm19144_vm4, %v24933_v55  ;;  %v332_v63 = vsel %vm323_vm2, %v296_v54, %v298_v59 }
  0xb6   : > { %v1512_v62 = vsel %vm349_vm1, %v1447_v61, 0  ;;  %3228 = vrot.lane.b32.xlu1 %v19258_v25, %s19142_s26  ;;  %17036 = vmatmul.mubr.msk.bf16.vlgmr.msra.gmra.mrb[12].mxu1 %vm345_vm3, %v19421_v1  ;;  %v375_v12 = vsel %vm349_vm1, %v332_v63, 0 }
  0xb7   : > { %3226 = vrot.lane.b32.xlu0 %v19260_v26, %s19142_s26  ;;  %17711 = vmatpush3.bf16.msra.mxu0 %v1512_v62 }
  0xb8   : > { %v1989_v2 = vpop.permute.xlu1 %1988  ;;  %v300_v5 = vpop.permute.xlu0 %299  ;;  %609 = vmatprep.mubr.bf16.mxu1 %v24935_v14 }
  0xb9   : > { %v333_v6 = vsel %vm323_vm2, %v298_v59, %v300_v5 }
  0xba   : > { %3234 = vrot.lane.b32.xlu1 %v19271_v29, %s19142_s26  ;;  %17037 = vmatprep.subr.msk.bf16.mxu1 %vm349_vm1, %v333_v6 }
  0xbb   : > { %3232 = vrot.lane.b32.xlu0 %v19273_v30, %s19142_s26  ;;  %578 = vmatpush1.bf16.msra.mxu1 %v375_v12 }
  0xbc   : > { %v19528_v13 = vpop.permute.xlu1 %1992  ;;  %v1991_v17 = vpop.permute.xlu0 %1990  ;;  %17713 = vmatmul.mubr.msk.bf16.vlgmr.msra.gmra.mrb[16].mxu0 %vm345_vm3, %v19402_v57 }
  0xbd   : > { %v2033_v21 = vsel %vm2032_vm5, %v1989_v2, %v1991_v17  ;;  %v2034_v23 = vsel %vm2032_vm5, %v1991_v17, %v19528_v13  ;;  %2152 = vmatprep.mubr.bf16.mxu0 %v24935_v14 }
  0xbe   : > { %3240 = vrot.lane.b32.xlu1 %v19289_v36, %s19142_s26  ;;  %17094 = vmatprep.subr.msk.bf16.mxu0 %vm349_vm1, %v2034_v23  ;;  %v2058_v27 = vsel %vm349_vm1, %v2033_v21, 0 }
  0xbf   : > { %3236 = vrot.lane.b32.xlu0 %v19282_v34, %s19142_s26  ;;  %2121 = vmatpush1.bf16.msra.mxu0 %v2058_v27 }
  0xc0   : > { %v304_v28 = vpop.permute.xlu1 %303  ;;  %v302_v31 = vpop.permute.xlu0 %301  ;;  %17038 = vmatmul.mubr.msk.bf16.vlgmr.msra.gmra.mrb[16].mxu1 %vm345_vm3, %v19421_v1 }
  0xc1   : > { %v334_v35 = vsel %vm323_vm2, %v300_v5, %v302_v31  ;;  %v335_v37 = vsel %vm323_vm2, %v302_v31, %v304_v28  ;;  %650 = vmatprep.mubr.bf16.mxu1 %v24935_v14 }
  0xc2   : > { %1382 = vrot.lane.b32.xlu1 %v19216_v8, %s19137_s18  ;;  %17039 = vmatprep.subr.msk.bf16.mxu1 %vm349_vm1, %v335_v37  ;;  %v381_v39 = vsel %vm349_vm1, %v334_v35, 0 }
  0xc3   : > { %3242 = vrot.lane.b32.xlu0 %v19295_v38, %s19142_s26  ;;  %619 = vmatpush1.bf16.msra.mxu1 %v381_v39 }
  0xc4   : > { %v1999_v43 = vpop.permute.xlu1 %1998  ;;  %v19558_v48 = vpop.permute.xlu0 %1996  ;;  %17095 = vmatmul.mubr.msk.bf16.vlgmr.msra.gmra.mrb[20].mxu0 %vm345_vm3, %v19547_v32 }
  0xc5   : > { %2234 = vmatprep.mubr.bf16.mxu0 %v24935_v14  ;;  %v2037_v50 = vsel %vm2032_vm5, %v19558_v48, %v1999_v43 }
  0xc6   : > { %1386 = vrot.lane.b32.xlu1 %v19219_v10, %s19137_s18  ;;  %v2070_v56 = vsel %vm349_vm1, %v2037_v50, 0 }
  0xc7   : > { %1384 = vrot.lane.b32.xlu0 %v19235_v16, %s19137_s18 }
  0xc8   : > { %v306_v51 = vpop.permute.xlu1 %305  ;;  %v19569_v52 = vpop.permute.xlu0 %2000  ;;  %17040 = vmatmul.mubr.msk.bf16.vlgmr.msra.gmra.mrb[20].mxu1 %vm345_vm3, %v19421_v1 }
  0xc9   : > { %v2038_v54 = vsel %vm2032_vm5, %v1999_v43, %v19569_v52  ;;  %691 = vmatprep.mubr.bf16.mxu1 %v24935_v14  ;;  %v336_v58 = vsel %vm323_vm2, %v304_v28, %v306_v51 }
  0xca   : > { %3808 = vrot.lane.b32.xlu1 %v19235_v16, %s19145_s29  ;;  %17098 = vmatprep.subr.msk.bf16.mxu0 %vm349_vm1, %v2038_v54  ;;  %v387_v62 = vsel %vm349_vm1, %v336_v58, 0 }
  0xcb   : > { %3806 = vrot.lane.b32.xlu0 %v19216_v8, %s19145_s29  ;;  %2203 = vmatpush1.bf16.msra.mxu0 %v2070_v56 }
  0xcc   : > { %v19583_v59 = vpop.permute.xlu1 %2004  ;;  %v308_v60 = vpop.permute.xlu0 %307 }
  0xcd   : > { %v337_v61 = vsel %vm323_vm2, %v306_v51, %v308_v60 }
  0xce   : > { %1388 = vrot.lane.b32.xlu1 %v19242_v19, %s19137_s18  ;;  %17041 = vmatprep.subr.msk.bf16.mxu1 %vm349_vm1, %v337_v61 }
  0xcf   : > { %3810 = vrot.lane.b32.xlu0 %v19219_v10, %s19145_s29  ;;  %660 = vmatpush1.bf16.msra.mxu1 %v387_v62 }
  0xd0   : > { %v19592_v63 = vpop.permute.xlu1 %2008  ;;  %v2007_v2 = vpop.permute.xlu0 %2006  ;;  %17099 = vmatmul.mubr.msk.bf16.vlgmr.msra.gmra.mrb[0].mxu0 %vm345_vm3, %v19547_v32 }
  0xd1   : > { %v2041_v5 = vsel %vm2032_vm5, %v19583_v59, %v2007_v2  ;;  %v2042_v6 = vsel %vm2032_vm5, %v2007_v2, %v19592_v63  ;;  %2316 = vmatprep.mubr.bf16.mxu0 %v24935_v14 }
  0xd2   : > { %3816 = vrot.lane.b32.xlu1 %v19221_v11, %s19145_s29  ;;  %17102 = vmatprep.subr.msk.bf16.mxu0 %vm349_vm1, %v2042_v6  ;;  %v2082_v12 = vsel %vm349_vm1, %v2041_v5, 0 }
  0xd3   : > { %3814 = vrot.lane.b32.xlu0 %v19207_v4, %s19145_s29  ;;  %2285 = vmatpush1.bf16.msra.mxu0 %v2082_v12 }
  0xd4   : > { %v312_v17 = vpop.permute.xlu1 %311  ;;  %v310_v21 = vpop.permute.xlu0 %309  ;;  %17042 = vmatmul.mubr.msk.bf16.vlgmr.msra.gmra.mrb[24].mxu1 %vm345_vm3, %v19421_v1 }
  0xd5   : > { %v338_v23 = vsel %vm323_vm2, %v308_v60, %v310_v21  ;;  %v339_v24 = vsel %vm323_vm2, %v310_v21, %v312_v17  ;;  %732 = vmatprep.mubr.bf16.mxu1 %v24935_v14 }
  0xd6   : > { %1396 = vrot.lane.b32.xlu1 %v19280_v33, %s19137_s18  ;;  %17043 = vmatprep.subr.msk.bf16.mxu1 %vm349_vm1, %v339_v24  ;;  %v393_v27 = vsel %vm349_vm1, %v338_v23, 0 }
  0xd7   : > { %3818 = vrot.lane.b32.xlu0 %v19205_v3, %s19145_s29  ;;  %701 = vmatpush1.bf16.msra.mxu1 %v393_v27 }
  0xd8   : > { %v2015_v28 = vpop.permute.xlu1 %2014  ;;  %v19618_v31 = vpop.permute.xlu0 %2012  ;;  %17103 = vmatmul.mubr.msk.bf16.vlgmr.msra.gmra.mrb[4].mxu0 %vm345_vm3, %v19547_v32 }
  0xd9   : > { %2398 = vmatprep.mubr.bf16.mxu0 %v24935_v14  ;;  %v2045_v35 = vsel %vm2032_vm5, %v19618_v31, %v2015_v28 }
  0xda   : > { %3824 = vrot.lane.b32.xlu1 %v19233_v15, %s19145_s29  ;;  %v2094_v50 = vsel %vm349_vm1, %v2045_v35, 0 }
  0xdb   : > { %3822 = vrot.lane.b32.xlu0 %v19214_v7, %s19145_s29 }
  0xdc   : > { %v314_v37 = vpop.permute.xlu1 %313  ;;  %v19629_v39 = vpop.permute.xlu0 %2016  ;;  %17044 = vmatmul.mubr.msk.bf16.vlgmr.msra.gmra.mrb[28].mxu1 %vm345_vm3, %v19421_v1 }
  0xdd   : > { %v2046_v43 = vsel %vm2032_vm5, %v2015_v28, %v19629_v39  ;;  %773 = vmatprep.mubr.bf16.mxu1 %v24935_v14  ;;  %v340_v51 = vsel %vm323_vm2, %v312_v17, %v314_v37 }
  0xde   : > { %1404 = vrot.lane.b32.xlu1 %v19309_v40, %s19137_s18  ;;  %17106 = vmatprep.subr.msk.bf16.mxu0 %vm349_vm1, %v2046_v43  ;;  %v399_v60 = vsel %vm349_vm1, %v340_v51, 0 }
  0xdf   : > { %3826 = vrot.lane.b32.xlu0 %v19244_v20, %s19145_s29  ;;  %2367 = vmatpush1.bf16.msra.mxu0 %v2094_v50 }
  0xe0   : > { %v19643_v54 = vpop.permute.xlu1 %2020  ;;  %v316_v56 = vpop.permute.xlu0 %315 }
  0xe1   : > { %v341_v58 = vsel %vm323_vm2, %v314_v37, %v316_v56 }
  0xe2   : > { %3832 = vrot.lane.b32.xlu1 %v19260_v26, %s19145_s29  ;;  %17045 = vmatprep.subr.msk.bf16.mxu1 %vm349_vm1, %v341_v58 }
  0xe3   : > { %3830 = vrot.lane.b32.xlu0 %v19251_v22, %s19145_s29  ;;  %17107 = vmatmul.mubr.msk.bf16.vlgmr.msra.gmra.mrb[8].mxu0 %vm345_vm3, %v19547_v32 }
  0xe4   : > { %742 = vmatpush1.bf16.msra.mxu1 %v399_v60  ;;  %v19654_v61 = vpop.permute.xlu1 %2024  ;;  %v2023_v62 = vpop.permute.xlu0 %2022  ;;  %2480 = vmatprep.mubr.bf16.mxu0 %v24935_v14 }
  0xe5   : > { %v2049_v2 = vsel %vm2032_vm5, %v19643_v54, %v2023_v62  ;;  %v2050_v5 = vsel %vm2032_vm5, %v2023_v62, %v19654_v61  ;;  %v17115_v62 = vld [vmem:[%s24930_s1 + $0x20] sm:$0xff] }
  0xe6   : > { %1412 = vrot.lane.b32.xlu1 %v19331_v42, %s19137_s18  ;;  %17110 = vmatprep.subr.msk.bf16.mxu0 %vm349_vm1, %v2050_v5  ;;  %v2106_v6 = vsel %vm349_vm1, %v2049_v2, 0 }
  0xe7   : > { %3834 = vrot.lane.b32.xlu0 %v19258_v25, %s19145_s29  ;;  %17046 = vmatmul.mubr.msk.bf16.vlgmr.msra.gmra.mrb[32].mxu1 %vm345_vm3, %v19421_v1 }
  0xe8   : > { %2449 = vmatpush1.bf16.msra.mxu0 %v2106_v6  ;;  %v320_v12 = vpop.permute.xlu1 %319  ;;  %v318_v17 = vpop.permute.xlu0 %317  ;;  %814 = vmatprep.mubr.bf16.mxu1 %v24935_v14  ;;  %v867_v6 = vsel %vm349_vm1, %v19216_v8, 0 }
  0xe9   : > { %v342_v21 = vsel %vm323_vm2, %v316_v56, %v318_v17  ;;  %v343_v23 = vsel %vm323_vm2, %v318_v17, %v320_v12  ;;  %17716 = vmatprep.subr.bf16.mxu0 %v24933_v55  ;;  %v19726_v17 = vpack.c.bf16 %v17115_v62, %v17115_v62 }
  0xea   : > { %3840 = vrot.lane.b32.xlu1 %v19271_v29, %s19145_s29  ;;  %17047 = vmatprep.subr.msk.bf16.mxu1 %vm349_vm1, %v343_v23  ;;  %v405_v24 = vsel %vm349_vm1, %v342_v21, 0 }
  0xeb   : > { %3838 = vrot.lane.b32.xlu0 %v19273_v30, %s19145_s29  ;;  %17111 = vmatmul.mubr.msk.bf16.vlgmr.msra.gmra.mrb[12].mxu0 %vm345_vm3, %v19547_v32 }
  0xec   : > { %783 = vmatpush1.bf16.msra.mxu1 %v405_v24  ;;  %v2031_v27 = vpop.permute.xlu1 %2030  ;;  %v19681_v28 = vpop.permute.xlu0 %2028  ;;  %17718 = vmatprep.mubr.msk.bf16.mxu0 %vm19144_vm4, %v24933_v55  ;;  %v252_v24 = vld [vmem:[%s24930_s1] sm:$0xff] }
  0xed   : > { %v2053_v35 = vsel %vm2032_vm5, %v19681_v28, %v2031_v27  ;;  %17698 = vmatprep.subr.bf16.mxu1 %v24933_v55 }
  0xee   : > { %1420 = vrot.lane.b32.xlu1 %v19353_v44, %s19137_s18  ;;  %v2118_v37 = vsel %vm349_vm1, %v2053_v35, 0 }
  0xef   : > { %3842 = vrot.lane.b32.xlu0 %v19282_v34, %s19145_s29  ;;  %17048 = vmatmul.mubr.msk.bf16.vlgmr.msra.gmra.mrb[36].mxu1 %vm345_vm3, %v19421_v1 }
  0xf0   : > { %17717 = vmatpush3.bf16.msra.mxu0 %v2118_v37  ;;  %v2595_v43 = vpop.permute.xlu1 %2594  ;;  %v322_v50 = vpop.permute.xlu0 %321  ;;  %17700 = vmatprep.mubr.msk.bf16.mxu1 %vm19144_vm4, %v24933_v55 }
  0xf1   : > { %v344_v51 = vsel %vm323_vm2, %v320_v12, %v322_v50  ;;  %v873_v50 = vsel %vm349_vm1, %v19219_v10, 0  ;;  %vm9306_vm2 = vcmask 195584  }
  0xf2   : > { %v411_v56 = vsel %vm349_vm1, %v344_v51, 0  ;;  %3848 = vrot.lane.b32.xlu1 %v19295_v38, %s19145_s29 }
  0xf3   : > { %3846 = vrot.lane.b32.xlu0 %v19289_v36, %s19145_s29  ;;  %17719 = vmatmul.mubr.msk.bf16.vlgmr.msra.gmra.mrb[16].mxu0 %vm345_vm3, %v19547_v32 }
  0xf4   : > { %17699 = vmatpush3.bf16.msra.mxu1 %v411_v56  ;;  %v19705_v58 = vpop.permute.xlu1 %2598  ;;  %v2597_v60 = vpop.permute.xlu0 %2596  ;;  %2758 = vmatprep.mubr.bf16.mxu0 %v24935_v14 }
  0xf5   : > { %v2639_v2 = vsel %vm2638_vm6, %v2595_v43, %v2597_v60  ;;  %v2640_v5 = vsel %vm2638_vm6, %v2597_v60, %v19705_v58  ;;  %17050 = vmatprep.subr.msk.bf16.mxu1 %vm349_vm1, %v19235_v16 }
  0xf6   : > { %4412 = vrot.lane.b32.xlu1 %v19216_v8, %s19146_s5  ;;  %17116 = vmatprep.subr.msk.bf16.mxu0 %vm349_vm1, %v2640_v5  ;;  %v2664_v12 = vsel %vm349_vm1, %v2639_v2, 0 }
  0xf7   : > { %1994 = vrot.lane.b32.xlu0 %v19242_v19, %s19140_s20  ;;  %17701 = vmatmul.mubr.msk.bf16.vlgmr.msra.gmra.mrb[40].mxu1 %vm345_vm3, %v19421_v1  ;;  %v19742_v1 = vpack.c.bf16 %v252_v24, %v252_v24 }
  0xf8   : > { %2727 = vmatpush1.bf16.msra.mxu0 %v2664_v12  ;;  %v2605_v21 = vpop.permute.xlu1 %2604  ;;  %v19728_v23 = vpop.permute.xlu0 %2602  ;;  %930 = vmatpush1.bf16.msra.mxu1 %v867_v6 }
  0xf9   : > { %961 = vmatprep.mubr.bf16.mxu1 %v24935_v14  ;;  %17052 = vmatprep.subr.msk.bf16.mxu1 %vm349_vm1, %v19242_v19  ;;  %v2643_v27 = vsel %vm2638_vm6, %v19728_v23, %v2605_v21 }
  0xfa   : > { %4416 = vrot.lane.b32.xlu1 %v19219_v10, %s19146_s5  ;;  %v2676_v51 = vsel %vm349_vm1, %v2643_v27, 0 }
  0xfb   : > { %4414 = vrot.lane.b32.xlu0 %v19235_v16, %s19146_s5  ;;  %17117 = vmatmul.mubr.msk.bf16.vlgmr.msra.gmra.mrb[20].mxu0 %vm345_vm3, %v19726_v17 }
  0xfc   : > { %v19746_v35 = vpop.permute.xlu1 %2610  ;;  %v19748_v37 = vpop.permute.xlu0 %2606  ;;  %2840 = vmatprep.mubr.bf16.mxu0 %v24935_v14 }
  0xfd   : > { %v2644_v43 = vsel %vm2638_vm6, %v2605_v21, %v19748_v37  ;;  %v879_v21 = vsel %vm349_vm1, %v19207_v4, 0 }
  0xfe   : > { %4420 = vrot.lane.b32.xlu1 %v19207_v4, %s19146_s5  ;;  %17120 = vmatprep.subr.msk.bf16.mxu0 %vm349_vm1, %v2644_v43 }
  0xff   : > { %2002 = vrot.lane.b32.xlu0 %v19280_v33, %s19140_s20  ;;  %17051 = vmatmul.mubr.msk.bf16.vlgmr.msra.gmra.mrb[0].mxu1 %vm345_vm3, %v19742_v1 }
 0x100   : > { %2809 = vmatpush1.bf16.msra.mxu0 %v2676_v51  ;;  %v19763_v56 = vpop.permute.xlu1 %2614  ;;  %v2613_v60 = vpop.permute.xlu0 %2612  ;;  %971 = vmatpush1.bf16.msra.mxu1 %v873_v50 }
 0x101   : > { %25033 = vst [vmem:[#allocation9_spill] sm:$0xff] %v19763_v56  ;;  %v2647_v62 = vsel %vm2638_vm6, %v19746_v35, %v2613_v60  ;;  %v2648_v2 = vsel %vm2638_vm6, %v2613_v60, %v19763_v56  ;;  %1002 = vmatprep.mubr.bf16.mxu1 %v24935_v14  ;;  %17054 = vmatprep.subr.msk.bf16.mxu1 %vm349_vm1, %v19221_v11 }
 0x102   : > { %4424 = vrot.lane.b32.xlu1 %v19205_v3, %s19146_s5  ;;  %17124 = vmatprep.subr.msk.bf16.mxu0 %vm349_vm1, %v2648_v2  ;;  %v2688_v5 = vsel %vm349_vm1, %v2647_v62, 0  ;;  %v885_v2 = vsel %vm349_vm1, %v19205_v3, 0 }
 0x103   : > { %4422 = vrot.lane.b32.xlu0 %v19221_v11, %s19146_s5  ;;  %17121 = vmatmul.mubr.msk.bf16.vlgmr.msra.gmra.mrb[0].mxu0 %vm345_vm3, %v19726_v17 }
 0x104   : > { %2891 = vmatpush1.bf16.msra.mxu0 %v2688_v5  ;;  %v2621_v6 = vpop.permute.xlu1 %2620  ;;  %2922 = vmatprep.mubr.bf16.mxu0 %v24935_v14 }
 0x105   : > { %v19781_v12 = vpop.permute.xlu0 %2618 }
 0x106   : > { %4428 = vrot.lane.b32.xlu1 %v19214_v7, %s19146_s5  ;;  %v2651_v24 = vsel %vm2638_vm6, %v19781_v12, %v2621_v6 }
 0x107   : > { %2010 = vrot.lane.b32.xlu0 %v19309_v40, %s19140_s20  ;;  %17053 = vmatmul.mubr.msk.bf16.vlgmr.msra.gmra.mrb[4].mxu1 %vm345_vm3, %v19742_v1  ;;  %v2700_v51 = vsel %vm349_vm1, %v2651_v24, 0 }
 0x108   : > { %v19793_v27 = vpop.permute.xlu1 %2626  ;;  %1012 = vmatpush1.bf16.msra.mxu1 %v879_v21  ;;  %1043 = vmatprep.mubr.bf16.mxu1 %v24935_v14 }
 0x109   : > { %25034 = vst [vmem:[#allocation10_spill] sm:$0xff] %v19793_v27  ;;  %v19796_v43 = vpop.permute.xlu0 %2622  ;;  %17056 = vmatprep.subr.msk.bf16.mxu1 %vm349_vm1, %v19280_v33 }
 0x10a   : > { %25035 = vst [vmem:[#allocation11_spill] sm:$0xff] %v19796_v43  ;;  %4432 = vrot.lane.b32.xlu1 %v19244_v20, %s19146_s5  ;;  %v2652_v50 = vsel %vm2638_vm6, %v2621_v6, %v19796_v43 }
 0x10b   : > { %4430 = vrot.lane.b32.xlu0 %v19233_v15, %s19146_s5  ;;  %17125 = vmatmul.mubr.msk.bf16.vlgmr.msra.gmra.mrb[4].mxu0 %vm345_vm3, %v19726_v17 }
 0x10c   : > { %17128 = vmatprep.subr.msk.bf16.mxu0 %vm349_vm1, %v2652_v50  ;;  %v19810_v60 = vpop.permute.xlu1 %2630  ;;  %3004 = vmatprep.mubr.bf16.mxu0 %v24935_v14 }
 0x10d   : > { %25036 = vst [vmem:[#allocation12_spill] sm:$0xff] %v19810_v60  ;;  %2973 = vmatpush1.bf16.msra.mxu0 %v2700_v51  ;;  %v2629_v62 = vpop.permute.xlu0 %2628 }
 0x10e   : > { %v2655_v5 = vsel %vm2638_vm6, %v19793_v27, %v2629_v62  ;;  %4436 = vrot.lane.b32.xlu1 %v19251_v22, %s19146_s5  ;;  %v2656_v6 = vsel %vm2638_vm6, %v2629_v62, %v19810_v60  ;;  %v897_v60 = vsel %vm349_vm1, %v19244_v20, 0 }
 0x10f   : > { %2018 = vrot.lane.b32.xlu0 %v19331_v42, %s19140_s20  ;;  %17055 = vmatmul.mubr.msk.bf16.vlgmr.msra.gmra.mrb[8].mxu1 %vm345_vm3, %v19742_v1  ;;  %v2712_v50 = vsel %vm349_vm1, %v2655_v5, 0 }
 0x110   : > { %v2637_v21 = vpop.permute.xlu1 %2636  ;;  %17132 = vmatprep.subr.msk.bf16.mxu0 %vm349_vm1, %v2656_v6  ;;  %1053 = vmatpush1.bf16.msra.mxu1 %v885_v2  ;;  %v891_v2 = vsel %vm349_vm1, %v19214_v7, 0 }
 0x111   : > { %v19826_v24 = vpop.permute.xlu0 %2634  ;;  %1084 = vmatprep.mubr.bf16.mxu1 %v24935_v14  ;;  %17058 = vmatprep.subr.msk.bf16.mxu1 %vm349_vm1, %v19233_v15 }
 0x112   : > { %25037 = vst [vmem:[#allocation13_spill] sm:$0xff] %v19826_v24  ;;  %4440 = vrot.lane.b32.xlu1 %v19258_v25, %s19146_s5  ;;  %v2659_v5 = vsel %vm2638_vm6, %v19826_v24, %v2637_v21  ;;  %v25042_v24 = vmov 0  }
 0x113   : > { %4438 = vrot.lane.b32.xlu0 %v19260_v26, %s19146_s5  ;;  %17129 = vmatmul.mubr.msk.bf16.vlgmr.msra.gmra.mrb[8].mxu0 %vm345_vm3, %v19726_v17 }
 0x114   : > { %3055 = vmatpush1.bf16.msra.mxu0 %v2712_v50  ;;  %v3203_v51 = vpop.permute.xlu1 %3202  ;;  %3086 = vmatprep.mubr.bf16.mxu0 %v24935_v14 }
 0x115   : > { %v3201_v62 = vpop.permute.xlu0 %3200  ;;  %17722 = vmatprep.subr.bf16.mxu0 %v24933_v55  ;;  %v2724_v55 = vsel %vm349_vm1, %v2659_v5, 0 }
 0x116   : > { %4444 = vrot.lane.b32.xlu1 %v19273_v30, %s19146_s5 }
 0x117   : > { %2026 = vrot.lane.b32.xlu0 %v19353_v44, %s19140_s20  ;;  %17057 = vmatmul.mubr.msk.bf16.vlgmr.msra.gmra.mrb[12].mxu1 %vm345_vm3, %v19742_v1  ;;  %s19150_s20 = smov 58  }
 0x118   : > { %v19850_v6 = vpop.permute.xlu1 %3208  ;;  %1094 = vmatpush1.bf16.msra.mxu1 %v891_v2  ;;  %1125 = vmatprep.mubr.bf16.mxu1 %v24935_v14  ;;  %v25041_v14 = vmov 0.0  }
 0x119   : > { %25038 = vst [vmem:[#allocation14_spill] sm:$0xff] %v19850_v6  ;;  %v19853_v50 = vpop.permute.xlu0 %3204  ;;  %17060 = vmatprep.subr.msk.bf16.mxu1 %vm349_vm1, %v19309_v40 }
 0x11a   : > { %25039 = vst [vmem:[#allocation15_spill] sm:$0xff] %v19853_v50  ;;  %4448 = vrot.lane.b32.xlu1 %v19282_v34, %s19146_s5  ;;  %v3246_v21 = vsel %vm3244_vm7, %v3203_v51, %v19853_v50  ;;  %v3245_v50 = vsel %vm3244_vm7, %v3201_v62, %v3203_v51  ;;  %v17137_v62 = vld [vmem:[%s24930_s1 + $0x28] sm:$0xff] }
 0x11b   : > { %4446 = vrot.lane.b32.xlu0 %v19271_v29, %s19146_s5  ;;  %17133 = vmatmul.mubr.msk.bf16.vlgmr.msra.gmra.mrb[12].mxu0 %vm345_vm3, %v19726_v17 }
 0x11c   : > { %v19866_v2 = vpop.permute.xlu1 %3212  ;;  %17723 = vmatpush3.bf16.msra.mxu0 %v2724_v55  ;;  %17724 = vmatprep.mubr.msk.bf16.mxu0 %vm19144_vm4, %v25041_v14 }
 0x11d   : > { %25040 = vst [vmem:[#allocation16_spill] sm:$0xff] %v19866_v2  ;;  %v3211_v5 = vpop.permute.xlu0 %3210  ;;  %17138 = vmatprep.subr.msk.bf16.mxu0 %vm349_vm1, %v3246_v21  ;;  %v3270_v21 = vsel %vm349_vm1, %v3245_v50, 0 }
 0x11e   : > { %4452 = vrot.lane.b32.xlu1 %v19289_v36, %s19146_s5  ;;  %v3250_v51 = vsel %vm3244_vm7, %v3211_v5, %v19866_v2  ;;  %v903_v2 = vsel %vm349_vm1, %v19251_v22, 0  ;;  %v3249_v27 = vsel %vm3244_vm7, %v19850_v6, %v3211_v5 }
 0x11f   : > { %2600 = vrot.lane.b32.xlu0 %v19242_v19, %s19141_s21  ;;  %17059 = vmatmul.mubr.msk.bf16.vlgmr.msra.gmra.mrb[16].mxu1 %vm345_vm3, %v19742_v1  ;;  %v3282_v5 = vsel %vm349_vm1, %v3249_v27, 0 }
 0x120   : > { %v3219_v55 = vpop.permute.xlu1 %3218  ;;  %1135 = vmatpush1.bf16.msra.mxu1 %v897_v60  ;;  %1166 = vmatprep.mubr.bf16.mxu1 %v25042_v24 }
 0x121   : > { %v19882_v43 = vpop.permute.xlu0 %3216  ;;  %17062 = vmatprep.subr.msk.bf16.mxu1 %vm349_vm1, %v19260_v26 }
 0x122   : > { %25043 = vst [vmem:[#allocation17_spill] sm:$0xff] %v19882_v43  ;;  %2608 = vrot.lane.b32.xlu1 %v19280_v33, %s19141_s21 }
 0x123   : > { %4454 = vrot.lane.b32.xlu0 %v19295_v38, %s19146_s5  ;;  %17725 = vmatmul.mubr.msk.bf16.vlgmr.msra.gmra.mrb[16].mxu0 %vm345_vm3, %v19726_v17 }
 0x124   : > { %3333 = vmatpush1.bf16.msra.mxu0 %v3270_v21  ;;  %v19894_v60 = vpop.permute.xlu1 %3224  ;;  %3364 = vmatprep.mubr.bf16.mxu0 %v25042_v24  ;;  %v19913_v21 = vpack.c.bf16 %v17137_v62, %v17137_v62  ;;  %v3253_v62 = vsel %vm3244_vm7, %v19882_v43, %v3219_v55 }
 0x125   : > { %25044 = vst [vmem:[#allocation18_spill] sm:$0xff] %v19894_v60  ;;  %v19900_v50 = vpop.permute.xlu0 %3220  ;;  %17142 = vmatprep.subr.msk.bf16.mxu0 %vm349_vm1, %v3250_v51 }
 0x126   : > { %25045 = vst [vmem:[#allocation19_spill] sm:$0xff] %v19900_v50  ;;  %5020 = vrot.lane.b32.xlu1 %v19235_v16, %s19147_s10 }
 0x127   : > { %5018 = vrot.lane.b32.xlu0 %v19216_v8, %s19147_s10  ;;  %17061 = vmatmul.mubr.msk.bf16.vlgmr.msra.gmra.mrb[20].mxu1 %vm345_vm3, %v19742_v1  ;;  %v3254_v8 = vsel %vm3244_vm7, %v3219_v55, %v19900_v50  ;;  %v3294_v50 = vsel %vm349_vm1, %v3253_v62, 0 }
 0x128   : > { %v19915_v56 = vpop.permute.xlu1 %3228  ;;  %1176 = vmatpush1.bf16.msra.mxu1 %v903_v2  ;;  %1207 = vmatprep.mubr.bf16.mxu1 %v25042_v24  ;;  %v909_v2 = vsel %vm349_vm1, %v19258_v25, 0 }
 0x129   : > { %25046 = vst [vmem:[#allocation20_spill] sm:$0xff] %v19915_v56  ;;  %v3227_v51 = vpop.permute.xlu0 %3226  ;;  %17064 = vmatprep.subr.msk.bf16.mxu1 %vm349_vm1, %v19331_v42 }
 0x12a   : > { %2616 = vrot.lane.b32.xlu1 %v19309_v40, %s19141_s21  ;;  %v3258_v55 = vsel %vm3244_vm7, %v3227_v51, %v19915_v56  ;;  %v3257_v43 = vsel %vm3244_vm7, %v19894_v60, %v3227_v51 }
 0x12b   : > { %5022 = vrot.lane.b32.xlu0 %v19219_v10, %s19147_s10  ;;  %17139 = vmatmul.mubr.msk.bf16.vlgmr.msra.gmra.mrb[20].mxu0 %vm345_vm3, %v19913_v21  ;;  %v3306_v56 = vsel %vm349_vm1, %v3257_v43, 0 }
 0x12c   : > { %3415 = vmatpush1.bf16.msra.mxu0 %v3282_v5  ;;  %v3235_v16 = vpop.permute.xlu1 %3234  ;;  %3446 = vmatprep.mubr.bf16.mxu0 %v25042_v24 }
 0x12d   : > { %v19930_v27 = vpop.permute.xlu0 %3232  ;;  %17146 = vmatprep.subr.msk.bf16.mxu0 %vm349_vm1, %v3254_v8 }
 0x12e   : > { %25047 = vst [vmem:[#allocation21_spill] sm:$0xff] %v19930_v27  ;;  %5028 = vrot.lane.b32.xlu1 %v19221_v11, %s19147_s10  ;;  %v915_v11 = vsel %vm349_vm1, %v19273_v30, 0  ;;  %v3261_v60 = vsel %vm3244_vm7, %v19930_v27, %v3235_v16 }
 0x12f   : > { %5026 = vrot.lane.b32.xlu0 %v19207_v4, %s19147_s10  ;;  %17063 = vmatmul.mubr.msk.bf16.vlgmr.msra.gmra.mrb[24].mxu1 %vm345_vm3, %v19742_v1 }
 0x130   : > { %v19943_v5 = vpop.permute.xlu1 %3240  ;;  %1217 = vmatpush1.bf16.msra.mxu1 %v909_v2  ;;  %1248 = vmatprep.mubr.bf16.mxu1 %v25042_v24 }
 0x131   : > { %25048 = vst [vmem:[#allocation22_spill] sm:$0xff] %v19943_v5  ;;  %v19946_v8 = vpop.permute.xlu0 %3236  ;;  %17066 = vmatprep.subr.msk.bf16.mxu1 %vm349_vm1, %v19271_v29 }
 0x132   : > { %25049 = vst [vmem:[#allocation23_spill] sm:$0xff] %v19946_v8  ;;  %2624 = vrot.lane.b32.xlu1 %v19331_v42, %s19141_s21  ;;  %v3262_v51 = vsel %vm3244_vm7, %v3235_v16, %v19946_v8  ;;  %v3318_v8 = vsel %vm349_vm1, %v3261_v60, 0  ;;  %v927_v60 = vsel %vm349_vm1, %v19289_v36, 0 }
 0x133   : > { %5030 = vrot.lane.b32.xlu0 %v19205_v3, %s19147_s10  ;;  %17143 = vmatmul.mubr.msk.bf16.vlgmr.msra.gmra.mrb[0].mxu0 %vm345_vm3, %v19913_v21 }
 0x134   : > { %3497 = vmatpush1.bf16.msra.mxu0 %v3294_v50  ;;  %v1383_v2 = vpop.permute.xlu1 %1382  ;;  %3528 = vmatprep.mubr.bf16.mxu0 %v25042_v24 }
 0x135   : > { %v3243_v62 = vpop.permute.xlu0 %3242  ;;  %17150 = vmatprep.subr.msk.bf16.mxu0 %vm349_vm1, %v3258_v55 }
 0x136   : > { %5036 = vrot.lane.b32.xlu1 %v19233_v15, %s19147_s10  ;;  %v921_v15 = vsel %vm349_vm1, %v19282_v34, 0 }
 0x137   : > { %5034 = vrot.lane.b32.xlu0 %v19214_v7, %s19147_s10  ;;  %17065 = vmatmul.mubr.msk.bf16.vlgmr.msra.gmra.mrb[28].mxu1 %vm345_vm3, %v19742_v1 }
 0x138   : > { %v19971_v50 = vpop.permute.xlu1 %1386  ;;  %1258 = vmatpush1.bf16.msra.mxu1 %v915_v11  ;;  %1289 = vmatprep.mubr.bf16.mxu1 %v25042_v24 }
 0x139   : > { %v1385_v55 = vpop.permute.xlu0 %1384  ;;  %17068 = vmatprep.subr.msk.bf16.mxu1 %vm349_vm1, %v19353_v44 }
 0x13a   : > { %2632 = vrot.lane.b32.xlu1 %v19353_v44, %s19141_s21  ;;  %v1428_v27 = vsel %vm1426_vm0, %v1385_v55, %v19971_v50 }
 0x13b   : > { %5038 = vrot.lane.b32.xlu0 %v19244_v20, %s19147_s10  ;;  %17147 = vmatmul.mubr.msk.bf16.vlgmr.msra.gmra.mrb[4].mxu0 %vm345_vm3, %v19913_v21 }
 0x13c   : > { %3579 = vmatpush1.bf16.msra.mxu0 %v3306_v56  ;;  %v3809_v11 = vpop.permute.xlu1 %3808  ;;  %3610 = vmatprep.mubr.bf16.mxu0 %v25042_v24 }
 0x13d   : > { %v3807_v43 = vpop.permute.xlu0 %3806  ;;  %17154 = vmatprep.subr.msk.bf16.mxu0 %vm349_vm1, %v3262_v51 }
 0x13e   : > { %5044 = vrot.lane.b32.xlu1 %v19260_v26, %s19147_s10  ;;  %v3265_v26 = vsel %vm3244_vm7, %v19943_v5, %v3243_v62 }
 0x13f   : > { %5042 = vrot.lane.b32.xlu0 %v19251_v22, %s19147_s10  ;;  %17067 = vmatmul.mubr.msk.bf16.vlgmr.msra.gmra.mrb[32].mxu1 %vm345_vm3, %v19742_v1  ;;  %v3330_v62 = vsel %vm349_vm1, %v3265_v26, 0 }
 0x140   : > { %v1389_v56 = vpop.permute.xlu1 %1388  ;;  %1299 = vmatpush1.bf16.msra.mxu1 %v921_v15  ;;  %1330 = vmatprep.mubr.bf16.mxu1 %v25042_v24 }
 0x141   : > { %v19998_v51 = vpop.permute.xlu0 %3810  ;;  %17704 = vmatprep.subr.bf16.mxu1 %v25041_v14 }
 0x142   : > { %3206 = vrot.lane.b32.xlu1 %v19242_v19, %s19142_s26  ;;  %v3852_v6 = vsel %vm3850_vm8, %v3809_v11, %v19998_v51 }
 0x143   : > { %5046 = vrot.lane.b32.xlu0 %v19258_v25, %s19147_s10  ;;  %17151 = vmatmul.mubr.msk.bf16.vlgmr.msra.gmra.mrb[8].mxu0 %vm345_vm3, %v19913_v21 }
 0x144   : > { %3661 = vmatpush1.bf16.msra.mxu0 %v3318_v8  ;;  %v3817_v16 = vpop.permute.xlu1 %3816  ;;  %3692 = vmatprep.mubr.bf16.mxu0 %v25042_v24 }
 0x145   : > { %v20009_v15 = vpop.permute.xlu0 %3814  ;;  %17728 = vmatprep.subr.bf16.mxu0 %v25041_v14 }
 0x146   : > { %5052 = vrot.lane.b32.xlu1 %v19271_v29, %s19147_s10  ;;  %v1427_v29 = vsel %vm1426_vm0, %v1383_v2, %v1385_v55  ;;  %v3851_v55 = vsel %vm3850_vm8, %v3807_v43, %v3809_v11  ;;  %v17159_v43 = vld [vmem:[%s24930_s1 + $0x30] sm:$0xff] }
 0x147   : > { %17069 = vmatmul.mubr.msk.bf16.vlgmr.msra.gmra.mrb[36].mxu1 %vm345_vm3, %v19742_v1  ;;  %5050 = vrot.lane.b32.xlu0 %v19273_v30, %s19147_s10  ;;  %v1452_v2 = vsel %vm349_vm1, %v1427_v29, 0  ;;  %v3876_v29 = vsel %vm349_vm1, %v3851_v55, 0  ;;  %v3855_v55 = vsel %vm3850_vm8, %v20009_v15, %v3817_v16 }
 0x148   : > { %v1397_v8 = vpop.permute.xlu1 %1396  ;;  %17705 = vmatpush3.bf16.msra.mxu1 %v927_v60  ;;  %17706 = vmatprep.mubr.msk.bf16.mxu1 %vm19144_vm4, %v25041_v14  ;;  %v1430_v60 = vsel %vm1426_vm0, %v1389_v56, %v19377_v46  ;;  %v1429_v46 = vsel %vm1426_vm0, %v19971_v50, %v1389_v56  ;;  %v20085_v56 = vpack.c.bf16 %v17159_v43, %v17159_v43 }
 0x149   : > { %v20027_v5 = vpop.permute.xlu0 %3818  ;;  %17072 = vmatprep.subr.msk.bf16.mxu1 %vm349_vm1, %v1428_v27  ;;  %v1458_v50 = vsel %vm349_vm1, %v1429_v46, 0 }
 0x14a   : > { %3214 = vrot.lane.b32.xlu1 %v19280_v33, %s19142_s26 }
 0x14b   : > { %5054 = vrot.lane.b32.xlu0 %v19282_v34, %s19147_s10  ;;  %17155 = vmatmul.mubr.msk.bf16.vlgmr.msra.gmra.mrb[12].mxu0 %vm345_vm3, %v19913_v21 }
 0x14c   : > { %17729 = vmatpush3.bf16.msra.mxu0 %v3330_v62  ;;  %v3825_v26 = vpop.permute.xlu1 %3824  ;;  %17730 = vmatprep.mubr.msk.bf16.mxu0 %vm19144_vm4, %v25041_v14 }
 0x14d   : > { %v20041_v27 = vpop.permute.xlu0 %3822  ;;  %17160 = vmatprep.subr.msk.bf16.mxu0 %vm349_vm1, %v3852_v6 }
 0x14e   : > { %5060 = vrot.lane.b32.xlu1 %v19295_v38, %s19147_s10 }
 0x14f   : > { %17707 = vmatmul.mubr.msk.bf16.vlgmr.msra.gmra.mrb[40].mxu1 %vm345_vm3, %v19742_v1  ;;  %5058 = vrot.lane.b32.xlu0 %v19289_v36, %s19147_s10  ;;  %v3856_v1 = vsel %vm3850_vm8, %v3817_v16, %v20027_v5 }
 0x150   : > { %1515 = vmatpush1.bf16.msra.mxu1 %v1452_v2  ;;  %v1405_v62 = vpop.permute.xlu1 %1404  ;;  %1546 = vmatprep.mubr.bf16.mxu1 %v25042_v24 }
 0x151   : > { %17074 = vmatprep.subr.msk.bf16.mxu1 %vm349_vm1, %v1430_v60  ;;  %v20057_v6 = vpop.permute.xlu0 %3826  ;;  %v1434_v60 = vsel %vm1426_vm0, %v1397_v8, %v19383_v47  ;;  %v1433_v47 = vsel %vm1426_vm0, %v19375_v45, %v1397_v8  ;;  %v1438_v8 = vsel %vm1426_vm0, %v1405_v62, %v19433_v9  ;;  %v1437_v9 = vsel %vm1426_vm0, %v19417_v0, %v1405_v62 }
 0x152   : > { %5626 = vrot.lane.b32.xlu1 %v19219_v10, %s19148_s11  ;;  %v3860_v46 = vsel %vm3850_vm8, %v3825_v26, %v20057_v6  ;;  %v1470_v45 = vsel %vm349_vm1, %v1433_v47, 0  ;;  %v1482_v0 = vsel %vm349_vm1, %v1437_v9, 0 }
 0x153   : > { %3222 = vrot.lane.b32.xlu0 %v19309_v40, %s19142_s26  ;;  %17731 = vmatmul.mubr.msk.bf16.vlgmr.msra.gmra.mrb[16].mxu0 %vm345_vm3, %v19913_v21 }
 0x154   : > { %3939 = vmatpush1.bf16.msra.mxu0 %v3876_v29  ;;  %v3833_v11 = vpop.permute.xlu1 %3832  ;;  %3970 = vmatprep.mubr.bf16.mxu0 %v25042_v24 }
 0x155   : > { %v20073_v2 = vpop.permute.xlu0 %3830  ;;  %17164 = vmatprep.subr.msk.bf16.mxu0 %vm349_vm1, %v3856_v1  ;;  %v3888_v1 = vsel %vm349_vm1, %v3855_v55, 0 }
 0x156   : > { %5630 = vrot.lane.b32.xlu1 %v19207_v4, %s19148_s11 }
 0x157   : > { %5628 = vrot.lane.b32.xlu0 %v19242_v19, %s19148_s11  ;;  %17073 = vmatmul.mubr.msk.bf16.vlgmr.msra.gmra.mrb[0].mxu1 %vm345_vm3, %v19402_v57 }
 0x158   : > { %1556 = vmatpush1.bf16.msra.mxu1 %v1458_v50  ;;  %v1413_v29 = vpop.permute.xlu1 %1412  ;;  %1587 = vmatprep.mubr.bf16.mxu1 %v25042_v24  ;;  %v3859_v50 = vsel %vm3850_vm8, %v20041_v27, %v3825_v26 }
 0x159   : > { %17078 = vmatprep.subr.msk.bf16.mxu1 %vm349_vm1, %v1434_v60  ;;  %v20091_v16 = vpop.permute.xlu0 %3834  ;;  %v1442_v62 = vsel %vm1426_vm0, %v1413_v29, %v19471_v41  ;;  %v1441_v41 = vsel %vm1426_vm0, %v19445_v18, %v1413_v29 }
 0x15a   : > { %5634 = vrot.lane.b32.xlu1 %v19205_v3, %s19148_s11  ;;  %v1494_v18 = vsel %vm349_vm1, %v1441_v41, 0 }
 0x15b   : > { %3230 = vrot.lane.b32.xlu0 %v19331_v42, %s19142_s26  ;;  %17161 = vmatmul.mubr.msk.bf16.vlgmr.msra.gmra.mrb[20].mxu0 %vm345_vm3, %v20085_v56 }
 0x15c   : > { %4021 = vmatpush1.bf16.msra.mxu0 %v3888_v1  ;;  %v3841_v43 = vpop.permute.xlu1 %3840  ;;  %4052 = vmatprep.mubr.bf16.mxu0 %v25042_v24  ;;  %v3900_v1 = vsel %vm349_vm1, %v3859_v50, 0 }
 0x15d   : > { %v20105_v55 = vpop.permute.xlu0 %3838  ;;  %17168 = vmatprep.subr.msk.bf16.mxu0 %vm349_vm1, %v3860_v46  ;;  %v3864_v46 = vsel %vm3850_vm8, %v3833_v11, %v20091_v16 }
 0x15e   : > { %5638 = vrot.lane.b32.xlu1 %v19214_v7, %s19148_s11 }
 0x15f   : > { %5636 = vrot.lane.b32.xlu0 %v19280_v33, %s19148_s11  ;;  %17075 = vmatmul.mubr.msk.bf16.vlgmr.msra.gmra.mrb[4].mxu1 %vm345_vm3, %v19402_v57 }
 0x160   : > { %1638 = vmatpush1.bf16.msra.mxu1 %v1470_v45  ;;  %v1421_v60 = vpop.permute.xlu1 %1420  ;;  %1669 = vmatprep.mubr.bf16.mxu1 %v25042_v24  ;;  %v3863_v45 = vsel %vm3850_vm8, %v20073_v2, %v3833_v11 }
 0x161   : > { %17082 = vmatprep.subr.msk.bf16.mxu1 %vm349_vm1, %v1438_v8  ;;  %v20121_v26 = vpop.permute.xlu0 %3842  ;;  %v1446_v29 = vsel %vm1426_vm0, %v1421_v60, %v19496_v53  ;;  %v1445_v53 = vsel %vm1426_vm0, %v19482_v49, %v1421_v60  ;;  %vm8700_vm0 = vcmask 326656  }
 0x162   : > { %25050 = vst [vmem:[#allocation24_spill] sm:$0xff] %v20121_v26  ;;  %5642 = vrot.lane.b32.xlu1 %v19244_v20, %s19148_s11  ;;  %v1506_v49 = vsel %vm349_vm1, %v1445_v53, 0 }
 0x163   : > { %3238 = vrot.lane.b32.xlu0 %v19353_v44, %s19142_s26  ;;  %17165 = vmatmul.mubr.msk.bf16.vlgmr.msra.gmra.mrb[0].mxu0 %vm345_vm3, %v20085_v56  ;;  %s19152_s26 = smov 41  }
 0x164   : > { %4103 = vmatpush1.bf16.msra.mxu0 %v3900_v1  ;;  %v3849_v47 = vpop.permute.xlu1 %3848  ;;  %4134 = vmatprep.mubr.bf16.mxu0 %v25042_v24  ;;  %v3912_v1 = vsel %vm349_vm1, %v3863_v45, 0 }
 0x165   : > { %v20135_v50 = vpop.permute.xlu0 %3846  ;;  %17172 = vmatprep.subr.msk.bf16.mxu0 %vm349_vm1, %v3864_v46  ;;  %v3868_v46 = vsel %vm3850_vm8, %v3841_v43, %v20121_v26 }
 0x166   : > { %25051 = vst [vmem:[#allocation25_spill] sm:$0xff] %v20135_v50  ;;  %5646 = vrot.lane.b32.xlu1 %v19251_v22, %s19148_s11 }
 0x167   : > { %5644 = vrot.lane.b32.xlu0 %v19309_v40, %s19148_s11  ;;  %17079 = vmatmul.mubr.msk.bf16.vlgmr.msra.gmra.mrb[12].mxu1 %vm345_vm3, %v19402_v57 }
 0x168   : > { %1720 = vmatpush1.bf16.msra.mxu1 %v1482_v0  ;;  %v20149_v8 = vpop.permute.xlu1 %4412  ;;  %1751 = vmatprep.mubr.bf16.mxu1 %v25042_v24  ;;  %v3867_v0 = vsel %vm3850_vm8, %v20105_v55, %v3841_v43 }
 0x169   : > { %17086 = vmatprep.subr.msk.bf16.mxu1 %vm349_vm1, %v1442_v62  ;;  %v1995_v11 = vpop.permute.xlu0 %1994 }
 0x16a   : > { %5650 = vrot.lane.b32.xlu1 %v19258_v25, %s19148_s11 }
 0x16b   : > { %3812 = vrot.lane.b32.xlu0 %v19242_v19, %s19145_s29  ;;  %17169 = vmatmul.mubr.msk.bf16.vlgmr.msra.gmra.mrb[4].mxu0 %vm345_vm3, %v20085_v56 }
 0x16c   : > { %4185 = vmatpush1.bf16.msra.mxu0 %v3912_v1  ;;  %v20164_v9 = vpop.permute.xlu1 %4416  ;;  %4216 = vmatprep.mubr.bf16.mxu0 %v25042_v24  ;;  %v3924_v1 = vsel %vm349_vm1, %v3867_v0, 0  ;;  %v3871_v0 = vsel %vm3850_vm8, %v20135_v50, %v3849_v47 }
 0x16d   : > { %v4415_v45 = vpop.permute.xlu0 %4414  ;;  %17176 = vmatprep.subr.msk.bf16.mxu0 %vm349_vm1, %v3868_v46  ;;  %v183_v46 = vld [vmem:[%s19200_s17 + $0x58] sm:$0xff]  ;;  %v3936_v50 = vsel %vm349_vm1, %v3871_v0, 0 }
 0x16e   : > { %5654 = vrot.lane.b32.xlu1 %v19273_v30, %s19148_s11  ;;  %v210_v60 = vcombine.high %v183_v46, %v183_v46  ;;  %v4458_v53 = vsel %vm4456_vm9, %v4415_v45, %v20164_v9 }
 0x16f   : > { %5652 = vrot.lane.b32.xlu0 %v19331_v42, %s19148_s11  ;;  %17083 = vmatmul.mubr.msk.bf16.vlgmr.msra.gmra.mrb[20].mxu1 %vm345_vm3, %v19402_v57 }
 0x170   : > { %1802 = vmatpush1.bf16.msra.mxu1 %v1494_v18  ;;  %v20179_v62 = vpop.permute.xlu1 %4420  ;;  %1833 = vmatprep.mubr.bf16.mxu1 %v25042_v24 }
 0x171   : > { %17090 = vmatprep.subr.msk.bf16.mxu1 %vm349_vm1, %v1446_v29  ;;  %v2003_v43 = vpop.permute.xlu0 %2002  ;;  %v20201_v29 = vpack.c.bf16 %v183_v46, %v183_v46  ;;  %v2035_v46 = vsel %vm2032_vm5, %v19528_v13, %v1995_v11 }
 0x172   : > { %5658 = vrot.lane.b32.xlu1 %v19282_v34, %s19148_s11  ;;  %v2064_v13 = vsel %vm349_vm1, %v2035_v46, 0 }
 0x173   : > { %3820 = vrot.lane.b32.xlu0 %v19280_v33, %s19145_s29  ;;  %17173 = vmatmul.mubr.msk.bf16.vlgmr.msra.gmra.mrb[8].mxu0 %vm345_vm3, %v20085_v56 }
 0x174   : > { %4267 = vmatpush1.bf16.msra.mxu0 %v3924_v1  ;;  %v20193_v41 = vpop.permute.xlu1 %4424  ;;  %4298 = vmatprep.mubr.bf16.mxu0 %v25042_v24  ;;  %v2036_v1 = vsel %vm2032_vm5, %v1995_v11, %v19558_v48  ;;  %v20223_v48 = vpack.c.bf16 %v210_v60, %v210_v60 }
 0x175   : > { %v4423_v18 = vpop.permute.xlu0 %4422  ;;  %17734 = vmatprep.subr.bf16.mxu0 %v25041_v14 }
 0x176   : > { %5662 = vrot.lane.b32.xlu1 %v19289_v36, %s19148_s11  ;;  %25052 = vst [vmem:[#allocation26_spill] sm:$0xff] %v20223_v48 }
 0x177   : > { %5660 = vrot.lane.b32.xlu0 %v19353_v44, %s19148_s11  ;;  %17087 = vmatmul.mubr.msk.bf16.vlgmr.msra.gmra.mrb[28].mxu1 %vm345_vm3, %v19402_v57 }
 0x178   : > { %1884 = vmatpush1.bf16.msra.mxu1 %v1506_v49  ;;  %v20210_v47 = vpop.permute.xlu1 %4428  ;;  %1915 = vmatprep.mubr.bf16.mxu1 %v25042_v24 }
 0x179   : > { %17096 = vmatprep.subr.msk.bf16.mxu1 %vm349_vm1, %v2036_v1  ;;  %v2011_v26 = vpop.permute.xlu0 %2010  ;;  %v4457_v1 = vsel %vm4456_vm9, %v20149_v8, %v4415_v45 }
 0x17a   : > { %5666 = vrot.lane.b32.xlu1 %v20201_v29, %s19148_s11  ;;  %v4482_v45 = vsel %vm349_vm1, %v4457_v1, 0  ;;  %v4461_v1 = vsel %vm4456_vm9, %v20179_v62, %v4423_v18 }
 0x17b   : > { %3828 = vrot.lane.b32.xlu0 %v19309_v40, %s19145_s29  ;;  %17177 = vmatmul.mubr.msk.bf16.vlgmr.msra.gmra.mrb[12].mxu0 %vm345_vm3, %v20085_v56 }
 0x17c   : > { %v20227_v49 = vpop.permute.xlu1 %4432  ;;  %17735 = vmatpush3.bf16.msra.mxu0 %v3936_v50  ;;  %17736 = vmatprep.mubr.msk.bf16.mxu0 %vm19144_vm4, %v25041_v14  ;;  %v2040_v50 = vsel %vm2032_vm5, %v2003_v43, %v19583_v59  ;;  %v2039_v59 = vsel %vm2032_vm5, %v19569_v52, %v2003_v43 }
 0x17d   : > { %v4431_v0 = vpop.permute.xlu0 %4430  ;;  %17182 = vmatprep.subr.msk.bf16.mxu0 %vm349_vm1, %v4458_v53  ;;  %v17181_v53 = vld [vmem:[%s24930_s1 + $0x38] sm:$0xff]  ;;  %v2076_v52 = vsel %vm349_vm1, %v2039_v59, 0 }
 0x17e   : > { %3836 = vrot.lane.b32.xlu1 %v19331_v42, %s19145_s29  ;;  %v20274_v43 = vpack.c.bf16 %v17181_v53, %v17181_v53 }
 0x17f   : > { %5668 = vrot.lane.b32.xlu0 %v20223_v48, %s19148_s11  ;;  %17091 = vmatmul.mubr.msk.bf16.vlgmr.msra.gmra.mrb[36].mxu1 %vm345_vm3, %v19402_v57  ;;  %v4462_v57 = vsel %vm4456_vm9, %v4423_v18, %v20193_v41 }
 0x180   : > { %2162 = vmatpush1.bf16.msra.mxu1 %v2064_v13  ;;  %v20243_v11 = vpop.permute.xlu1 %4436  ;;  %2193 = vmatprep.mubr.bf16.mxu1 %v25042_v24  ;;  %v2044_v13 = vsel %vm2032_vm5, %v2011_v26, %v19618_v31  ;;  %v2043_v31 = vsel %vm2032_vm5, %v19592_v63, %v2011_v26 }
 0x181   : > { %17100 = vmatprep.subr.msk.bf16.mxu1 %vm349_vm1, %v2040_v50  ;;  %v2019_v8 = vpop.permute.xlu0 %2018  ;;  %v2088_v63 = vsel %vm349_vm1, %v2043_v31, 0 }
 0x182   : > { %6234 = vrot.lane.b32.xlu1 %v19242_v19, %s19149_s16  ;;  %v2048_v26 = vsel %vm2032_vm5, %v2019_v8, %v19643_v54  ;;  %v2047_v54 = vsel %vm2032_vm5, %v19629_v39, %v2019_v8 }
 0x183   : > { %6232 = vrot.lane.b32.xlu0 %v19219_v10, %s19149_s16  ;;  %17737 = vmatmul.mubr.msk.bf16.vlgmr.msra.gmra.mrb[16].mxu0 %vm345_vm3, %v20085_v56  ;;  %v2100_v39 = vsel %vm349_vm1, %v2047_v54, 0 }
 0x184   : > { %4545 = vmatpush1.bf16.msra.mxu0 %v4482_v45  ;;  %v20258_v60 = vpop.permute.xlu1 %4440  ;;  %4576 = vmatprep.mubr.bf16.mxu0 %v25042_v24  ;;  %v4494_v45 = vsel %vm349_vm1, %v4461_v1, 0  ;;  %v4465_v1 = vsel %vm4456_vm9, %v20210_v47, %v4431_v0 }
 0x185   : > { %v4439_v46 = vpop.permute.xlu0 %4438  ;;  %17186 = vmatprep.subr.msk.bf16.mxu0 %vm349_vm1, %v4462_v57  ;;  %v4466_v57 = vsel %vm4456_vm9, %v4431_v0, %v20227_v49 }
 0x186   : > { %3844 = vrot.lane.b32.xlu1 %v19353_v44, %s19145_s29  ;;  %s19153_s29 = smov 40  }
 0x187   : > { %6236 = vrot.lane.b32.xlu0 %v19207_v4, %s19149_s16  ;;  %17097 = vmatmul.mubr.msk.bf16.vlgmr.msra.gmra.mrb[4].mxu1 %vm345_vm3, %v19547_v32 }
 0x188   : > { %2244 = vmatpush1.bf16.msra.mxu1 %v2076_v52  ;;  %v20278_v50 = vpop.permute.xlu1 %4444  ;;  %2275 = vmatprep.mubr.bf16.mxu1 %v25042_v24 }
 0x189   : > { %17104 = vmatprep.subr.msk.bf16.mxu1 %vm349_vm1, %v2044_v13  ;;  %v2027_v18 = vpop.permute.xlu0 %2026  ;;  %v4506_v13 = vsel %vm349_vm1, %v4465_v1, 0  ;;  %v4469_v1 = vsel %vm4456_vm9, %v20243_v11, %v4439_v46 }
 0x18a   : > { %6242 = vrot.lane.b32.xlu1 %v19280_v33, %s19149_s16  ;;  %v2052_v8 = vsel %vm2032_vm5, %v2027_v18, %v19681_v28  ;;  %v2051_v28 = vsel %vm2032_vm5, %v19654_v61, %v2027_v18  ;;  %vm9912_vm5 = vcmask 187392  }
 0x18b   : > { %6240 = vrot.lane.b32.xlu0 %v19205_v3, %s19149_s16  ;;  %17183 = vmatmul.mubr.msk.bf16.vlgmr.msra.gmra.mrb[20].mxu0 %vm345_vm3, %v20274_v43  ;;  %v2112_v61 = vsel %vm349_vm1, %v2051_v28, 0 }
 0x18c   : > { %4627 = vmatpush1.bf16.msra.mxu0 %v4494_v45  ;;  %v20293_v59 = vpop.permute.xlu1 %4448  ;;  %4658 = vmatprep.mubr.bf16.mxu0 %v25042_v24  ;;  %v4470_v45 = vsel %vm4456_vm9, %v4439_v46, %v20258_v60 }
 0x18d   : > { %v4447_v53 = vpop.permute.xlu0 %4446  ;;  %17190 = vmatprep.subr.msk.bf16.mxu0 %vm349_vm1, %v4466_v57 }
 0x18e   : > { %4418 = vrot.lane.b32.xlu1 %v19242_v19, %s19146_s5 }
 0x18f   : > { %6244 = vrot.lane.b32.xlu0 %v19214_v7, %s19149_s16  ;;  %17101 = vmatmul.mubr.msk.bf16.vlgmr.msra.gmra.mrb[12].mxu1 %vm345_vm3, %v19547_v32 }
 0x190   : > { %2326 = vmatpush1.bf16.msra.mxu1 %v2088_v63  ;;  %v20308_v52 = vpop.permute.xlu1 %4452  ;;  %2357 = vmatprep.mubr.bf16.mxu1 %v25042_v24 }
 0x191   : > { %17108 = vmatprep.subr.msk.bf16.mxu1 %vm349_vm1, %v2048_v26  ;;  %v2601_v0 = vpop.permute.xlu0 %2600  ;;  %v4518_v26 = vsel %vm349_vm1, %v4469_v1, 0  ;;  %v4473_v1 = vsel %vm4456_vm9, %v20278_v50, %v4447_v53 }
 0x192   : > { %6250 = vrot.lane.b32.xlu1 %v19309_v40, %s19149_s16  ;;  %v2642_v18 = vsel %vm2638_vm6, %v2601_v0, %v19728_v23  ;;  %v2641_v23 = vsel %vm2638_vm6, %v19705_v58, %v2601_v0 }
 0x193   : > { %6248 = vrot.lane.b32.xlu0 %v19244_v20, %s19149_s16  ;;  %17187 = vmatmul.mubr.msk.bf16.vlgmr.msra.gmra.mrb[0].mxu0 %vm345_vm3, %v20274_v43  ;;  %v2670_v58 = vsel %vm349_vm1, %v2641_v23, 0 }
 0x194   : > { %4709 = vmatpush1.bf16.msra.mxu0 %v4506_v13  ;;  %v20323_v57 = vpop.permute.xlu1 %2608  ;;  %4740 = vmatprep.mubr.bf16.mxu0 %v25042_v24  ;;  %v4474_v13 = vsel %vm4456_vm9, %v4447_v53, %v20293_v59 }
 0x195   : > { %v4455_v31 = vpop.permute.xlu0 %4454  ;;  %17194 = vmatprep.subr.msk.bf16.mxu0 %vm349_vm1, %v4470_v45  ;;  %v2646_v0 = vsel %vm2638_vm6, %v20323_v57, %v19746_v35  ;;  %v2645_v35 = vsel %vm2638_vm6, %v19748_v37, %v20323_v57 }
 0x196   : > { %4426 = vrot.lane.b32.xlu1 %v19280_v33, %s19146_s5  ;;  %v4477_v28 = vsel %vm4456_vm9, %v20308_v52, %v4455_v31  ;;  %v2682_v37 = vsel %vm349_vm1, %v2645_v35, 0 }
 0x197   : > { %6252 = vrot.lane.b32.xlu0 %v19251_v22, %s19149_s16  ;;  %17105 = vmatmul.mubr.msk.bf16.vlgmr.msra.gmra.mrb[20].mxu1 %vm345_vm3, %v19547_v32  ;;  %v4542_v31 = vsel %vm349_vm1, %v4477_v28, 0 }
 0x198   : > { %2408 = vmatpush1.bf16.msra.mxu1 %v2100_v39  ;;  %v5021_v63 = vpop.permute.xlu1 %5020  ;;  %2439 = vmatprep.mubr.bf16.mxu1 %v25042_v24 }
 0x199   : > { %17112 = vmatprep.subr.msk.bf16.mxu1 %vm349_vm1, %v2052_v8  ;;  %v5019_v46 = vpop.permute.xlu0 %5018  ;;  %v4530_v8 = vsel %vm349_vm1, %v4473_v1, 0 }
 0x19a   : > { %6258 = vrot.lane.b32.xlu1 %v19331_v42, %s19149_s16  ;;  %v5063_v23 = vsel %vm5062_vm10, %v5019_v46, %v5021_v63 }
 0x19b   : > { %6256 = vrot.lane.b32.xlu0 %v19258_v25, %s19149_s16  ;;  %17191 = vmatmul.mubr.msk.bf16.vlgmr.msra.gmra.mrb[4].mxu0 %vm345_vm3, %v20274_v43 }
 0x19c   : > { %4791 = vmatpush1.bf16.msra.mxu0 %v4518_v26  ;;  %v20351_v45 = vpop.permute.xlu1 %2616  ;;  %4822 = vmatprep.mubr.bf16.mxu0 %v25042_v24 }
 0x19d   : > { %v20354_v54 = vpop.permute.xlu0 %5022  ;;  %17198 = vmatprep.subr.msk.bf16.mxu0 %vm349_vm1, %v4474_v13  ;;  %v2650_v57 = vsel %vm2638_vm6, %v20351_v45, %v19781_v12  ;;  %v25059_v12 = vld [vmem:[#allocation9_spill] sm:$0xff] }
 0x19e   : > { %25053 = vst [vmem:[#allocation27_spill] sm:$0xff] %v20354_v54  ;;  %4434 = vrot.lane.b32.xlu1 %v19309_v40, %s19146_s5 }
 0x19f   : > { %6260 = vrot.lane.b32.xlu0 %v19273_v30, %s19149_s16  ;;  %17109 = vmatmul.mubr.msk.bf16.vlgmr.msra.gmra.mrb[28].mxu1 %vm345_vm3, %v19547_v32 }
 0x1a0   : > { %2490 = vmatpush1.bf16.msra.mxu1 %v2112_v61  ;;  %v5029_v39 = vpop.permute.xlu1 %5028  ;;  %2521 = vmatprep.mubr.bf16.mxu1 %v25042_v24 }
 0x1a1   : > { %17118 = vmatprep.subr.msk.bf16.mxu1 %vm349_vm1, %v2642_v18  ;;  %v20370_v53 = vpop.permute.xlu0 %5026 }
 0x1a2   : > { %25054 = vst [vmem:[#allocation28_spill] sm:$0xff] %v20370_v53  ;;  %6266 = vrot.lane.b32.xlu1 %v19353_v44, %s19149_s16 }
 0x1a3   : > { %6264 = vrot.lane.b32.xlu0 %v19282_v34, %s19149_s16  ;;  %17195 = vmatmul.mubr.msk.bf16.vlgmr.msra.gmra.mrb[8].mxu0 %vm345_vm3, %v20274_v43 }
 0x1a4   : > { %4873 = vmatpush1.bf16.msra.mxu0 %v4530_v8  ;;  %v20381_v26 = vpop.permute.xlu1 %2624  ;;  %4904 = vmatprep.mubr.bf16.mxu0 %v25042_v24 }
 0x1a5   : > { %v20384_v13 = vpop.permute.xlu0 %5030  ;;  %17740 = vmatprep.subr.bf16.mxu0 %v25041_v14 }
 0x1a6   : > { %25055 = vst [vmem:[#allocation29_spill] sm:$0xff] %v20384_v13  ;;  %4442 = vrot.lane.b32.xlu1 %v19331_v42, %s19146_s5 }
 0x1a7   : > { %6268 = vrot.lane.b32.xlu0 %v19289_v36, %s19149_s16  ;;  %17113 = vmatmul.mubr.msk.bf16.vlgmr.msra.gmra.mrb[36].mxu1 %vm345_vm3, %v19547_v32  ;;  %v5064_v32 = vsel %vm5062_vm10, %v5021_v63, %v20354_v54  ;;  %v5088_v63 = vsel %vm349_vm1, %v5063_v23, 0  ;;  %v5067_v23 = vsel %vm5062_vm10, %v20370_v53, %v5029_v39  ;;  %v25084_v54 = vld [vmem:[#allocation4_spill] sm:$0xff] }
 0x1a8   : > { %2768 = vmatpush1.bf16.msra.mxu1 %v2670_v58  ;;  %v20399_v1 = vpop.permute.xlu1 %5036  ;;  %2799 = vmatprep.mubr.bf16.mxu1 %v25042_v24  ;;  %v5068_v58 = vsel %vm5062_vm10, %v5029_v39, %v20384_v13  ;;  %v25079_v13 = vld [vmem:[#allocation3_spill] sm:$0xff] }
 0x1a9   : > { %17122 = vmatprep.subr.msk.bf16.mxu1 %vm349_vm1, %v2646_v0  ;;  %v20404_v61 = vpop.permute.xlu0 %5034  ;;  %v2649_v0 = vsel %vm2638_vm6, %v25059_v12, %v20351_v45  ;;  %v5100_v12 = vsel %vm349_vm1, %v5067_v23, 0 }
 0x1aa   : > { %25056 = vst [vmem:[#allocation30_spill] sm:$0xff] %v20404_v61  ;;  %6274 = vrot.lane.b32.xlu1 %v20223_v48, %s19149_s16  ;;  %v2694_v45 = vsel %vm349_vm1, %v2649_v0, 0 }
 0x1ab   : > { %6272 = vrot.lane.b32.xlu0 %v20201_v29, %s19149_s16  ;;  %17199 = vmatmul.mubr.msk.bf16.vlgmr.msra.gmra.mrb[12].mxu0 %vm345_vm3, %v20274_v43 }
 0x1ac   : > { %v20417_v18 = vpop.permute.xlu1 %2632  ;;  %17741 = vmatpush3.bf16.msra.mxu0 %v4542_v31  ;;  %17742 = vmatprep.mubr.msk.bf16.mxu0 %vm19144_vm4, %v25041_v14 }
 0x1ad   : > { %v20421_v8 = vpop.permute.xlu0 %5038  ;;  %17204 = vmatprep.subr.msk.bf16.mxu0 %vm349_vm1, %v5064_v32  ;;  %v17203_v32 = vld [vmem:[%s24930_s1 + $0x40] sm:$0xff] }
 0x1ae   : > { %25057 = vst [vmem:[#allocation31_spill] sm:$0xff] %v20421_v8  ;;  %6838 = vrot.lane.b32.xlu1 %v19219_v10, %s19150_s20  ;;  %v5072_v0 = vsel %vm5062_vm10, %v20399_v1, %v20421_v8 }
 0x1af   : > { %4450 = vrot.lane.b32.xlu0 %v19353_v44, %s19146_s5  ;;  %17119 = vmatmul.mubr.msk.bf16.vlgmr.msra.gmra.mrb[4].mxu1 %vm345_vm3, %v19726_v17  ;;  %s19154_s5 = smov 24  }
 0x1b0   : > { %2850 = vmatpush1.bf16.msra.mxu1 %v2682_v37  ;;  %v5045_v28 = vpop.permute.xlu1 %5044  ;;  %2881 = vmatprep.mubr.bf16.mxu1 %v25042_v24  ;;  %v20469_v37 = vpack.c.bf16 %v17203_v32, %v17203_v32  ;;  %v25064_v32 = vld [vmem:[#allocation11_spill] sm:$0xff] }
 0x1b1   : > { %17126 = vmatprep.subr.msk.bf16.mxu1 %vm349_vm1, %v2650_v57  ;;  %v20438_v46 = vpop.permute.xlu0 %5042  ;;  %v25062_v57 = vld [vmem:[#allocation10_spill] sm:$0xff] }
 0x1b2   : > { %25058 = vst [vmem:[#allocation32_spill] sm:$0xff] %v20438_v46  ;;  %6842 = vrot.lane.b32.xlu1 %v19207_v4, %s19150_s20  ;;  %25061 = vst [vmem:[#allocation33_spill] sm:$0xff] %v20469_v37 }
 0x1b3   : > { %6840 = vrot.lane.b32.xlu0 %v19242_v19, %s19150_s20  ;;  %17743 = vmatmul.mubr.msk.bf16.vlgmr.msra.gmra.mrb[16].mxu0 %vm345_vm3, %v20274_v43 }
 0x1b4   : > { %5151 = vmatpush1.bf16.msra.mxu0 %v5088_v63  ;;  %v20451_v31 = vpop.permute.xlu1 %3206  ;;  %5182 = vmatprep.mubr.bf16.mxu0 %v25042_v24  ;;  %v2654_v63 = vsel %vm2638_vm6, %v20381_v26, %v25062_v57 }
 0x1b5   : > { %v20457_v35 = vpop.permute.xlu0 %5046  ;;  %17208 = vmatprep.subr.msk.bf16.mxu0 %vm349_vm1, %v5068_v58 }
 0x1b6   : > { %25060 = vst [vmem:[#allocation9_spill] sm:$0xff] %v20457_v35  ;;  %6846 = vrot.lane.b32.xlu1 %v19205_v3, %s19150_s20 }
 0x1b7   : > { %5024 = vrot.lane.b32.xlu0 %v19242_v19, %s19147_s10  ;;  %17123 = vmatmul.mubr.msk.bf16.vlgmr.msra.gmra.mrb[12].mxu1 %vm345_vm3, %v19726_v17 }
 0x1b8   : > { %2932 = vmatpush1.bf16.msra.mxu1 %v2694_v45  ;;  %v5053_v58 = vpop.permute.xlu1 %5052  ;;  %2963 = vmatprep.mubr.bf16.mxu1 %v25042_v24  ;;  %v2653_v45 = vsel %vm2638_vm6, %v25064_v32, %v20381_v26 }
 0x1b9   : > { %17130 = vmatprep.subr.msk.bf16.mxu1 %vm349_vm1, %v2654_v63  ;;  %v20476_v39 = vpop.permute.xlu0 %5050  ;;  %v5071_v63 = vsel %vm5062_vm10, %v20404_v61, %v20399_v1  ;;  %v2706_v26 = vsel %vm349_vm1, %v2653_v45, 0  ;;  %v5076_v45 = vsel %vm5062_vm10, %v5045_v28, %v20457_v35  ;;  %v5075_v35 = vsel %vm5062_vm10, %v20438_v46, %v5045_v28 }
 0x1ba   : > { %25063 = vst [vmem:[#allocation10_spill] sm:$0xff] %v20476_v39  ;;  %6850 = vrot.lane.b32.xlu1 %v19214_v7, %s19150_s20  ;;  %v5112_v8 = vsel %vm349_vm1, %v5071_v63, 0  ;;  %v5124_v46 = vsel %vm349_vm1, %v5075_v35, 0 }
 0x1bb   : > { %6848 = vrot.lane.b32.xlu0 %v19280_v33, %s19150_s20  ;;  %17205 = vmatmul.mubr.msk.bf16.vlgmr.msra.gmra.mrb[20].mxu0 %vm345_vm3, %v20469_v37 }
 0x1bc   : > { %5233 = vmatpush1.bf16.msra.mxu0 %v5100_v12  ;;  %v20491_v57 = vpop.permute.xlu1 %3214  ;;  %5264 = vmatprep.mubr.bf16.mxu0 %v25042_v24  ;;  %v25066_v12 = vld [vmem:[#allocation13_spill] sm:$0xff] }
 0x1bd   : > { %v20494_v23 = vpop.permute.xlu0 %5054  ;;  %17212 = vmatprep.subr.msk.bf16.mxu0 %vm349_vm1, %v5072_v0  ;;  %v2658_v0 = vsel %vm2638_vm6, %v20417_v18, %v25066_v12 }
 0x1be   : > { %25065 = vst [vmem:[#allocation11_spill] sm:$0xff] %v20494_v23  ;;  %6854 = vrot.lane.b32.xlu1 %v19244_v20, %s19150_s20 }
 0x1bf   : > { %5032 = vrot.lane.b32.xlu0 %v19280_v33, %s19147_s10  ;;  %17127 = vmatmul.mubr.msk.bf16.vlgmr.msra.gmra.mrb[20].mxu1 %vm345_vm3, %v19726_v17 }
 0x1c0   : > { %3014 = vmatpush1.bf16.msra.mxu1 %v2706_v26  ;;  %v5061_v32 = vpop.permute.xlu1 %5060  ;;  %3045 = vmatprep.mubr.bf16.mxu1 %v25042_v24  ;;  %v25068_v26 = vld [vmem:[#allocation12_spill] sm:$0xff] }
 0x1c1   : > { %17134 = vmatprep.subr.msk.bf16.mxu1 %vm349_vm1, %v2658_v0  ;;  %v20512_v1 = vpop.permute.xlu0 %5058  ;;  %v2657_v12 = vsel %vm2638_vm6, %v25068_v26, %v20417_v18  ;;  %vm10518_vm6 = vcmask 179200  }
 0x1c2   : > { %25067 = vst [vmem:[#allocation13_spill] sm:$0xff] %v20512_v1  ;;  %6858 = vrot.lane.b32.xlu1 %v19251_v22, %s19150_s20  ;;  %v2718_v18 = vsel %vm349_vm1, %v2657_v12, 0  ;;  %v5080_v12 = vsel %vm5062_vm10, %v5053_v58, %v20494_v23  ;;  %v5079_v23 = vsel %vm5062_vm10, %v20476_v39, %v5053_v58 }
 0x1c3   : > { %6856 = vrot.lane.b32.xlu0 %v19309_v40, %s19150_s20  ;;  %17209 = vmatmul.mubr.msk.bf16.vlgmr.msra.gmra.mrb[0].mxu0 %vm345_vm3, %v20469_v37  ;;  %v5136_v39 = vsel %vm349_vm1, %v5079_v23, 0  ;;  %v5083_v23 = vsel %vm5062_vm10, %v20512_v1, %v5061_v32 }
 0x1c4   : > { %5315 = vmatpush1.bf16.msra.mxu0 %v5112_v8  ;;  %v20526_v0 = vpop.permute.xlu1 %5626  ;;  %5346 = vmatprep.mubr.bf16.mxu0 %v25042_v24  ;;  %v25069_v8 = vld [vmem:[#allocation14_spill] sm:$0xff]  ;;  %v5148_v1 = vsel %vm349_vm1, %v5083_v23, 0 }
 0x1c5   : > { %v20529_v63 = vpop.permute.xlu0 %3222  ;;  %17216 = vmatprep.subr.msk.bf16.mxu0 %vm349_vm1, %v5076_v45  ;;  %v3248_v26 = vsel %vm3244_vm7, %v20451_v31, %v25069_v8 }
 0x1c6   : > { %6862 = vrot.lane.b32.xlu1 %v19258_v25, %s19150_s20 }
 0x1c7   : > { %5040 = vrot.lane.b32.xlu0 %v19309_v40, %s19147_s10  ;;  %17131 = vmatmul.mubr.msk.bf16.vlgmr.msra.gmra.mrb[28].mxu1 %vm345_vm3, %v19726_v17 }
 0x1c8   : > { %3096 = vmatpush1.bf16.msra.mxu1 %v2718_v18  ;;  %v20544_v45 = vpop.permute.xlu1 %5630  ;;  %3127 = vmatprep.mubr.bf16.mxu1 %v25042_v24  ;;  %v25071_v18 = vld [vmem:[#allocation15_spill] sm:$0xff] }
 0x1c9   : > { %25070 = vst [vmem:[#allocation12_spill] sm:$0xff] %v20544_v45  ;;  %17140 = vmatprep.subr.msk.bf16.mxu1 %vm349_vm1, %v3248_v26  ;;  %v5629_v28 = vpop.permute.xlu0 %5628  ;;  %v3247_v8 = vsel %vm3244_vm7, %v25071_v18, %v20451_v31  ;;  %v25073_v31 = vld [vmem:[#allocation17_spill] sm:$0xff] }
 0x1ca   : > { %6866 = vrot.lane.b32.xlu1 %v19273_v30, %s19150_s20  ;;  %v3252_v18 = vsel %vm3244_vm7, %v20491_v57, %v25073_v31 }
 0x1cb   : > { %6864 = vrot.lane.b32.xlu0 %v19331_v42, %s19150_s20  ;;  %17213 = vmatmul.mubr.msk.bf16.vlgmr.msra.gmra.mrb[4].mxu0 %vm345_vm3, %v20469_v37 }
 0x1cc   : > { %5397 = vmatpush1.bf16.msra.mxu0 %v5124_v46  ;;  %v20560_v26 = vpop.permute.xlu1 %5634  ;;  %5428 = vmatprep.mubr.bf16.mxu0 %v25042_v24  ;;  %v3276_v46 = vsel %vm349_vm1, %v3247_v8, 0 }
 0x1cd   : > { %25072 = vst [vmem:[#allocation14_spill] sm:$0xff] %v20560_v26  ;;  %v20563_v35 = vpop.permute.xlu0 %3230  ;;  %17220 = vmatprep.subr.msk.bf16.mxu0 %vm349_vm1, %v5080_v12 }
 0x1ce   : > { %6870 = vrot.lane.b32.xlu1 %v19282_v34, %s19150_s20 }
 0x1cf   : > { %5048 = vrot.lane.b32.xlu0 %v19331_v42, %s19147_s10  ;;  %17135 = vmatmul.mubr.msk.bf16.vlgmr.msra.gmra.mrb[36].mxu1 %vm345_vm3, %v19726_v17  ;;  %v25075_v17 = vld [vmem:[#allocation16_spill] sm:$0xff] }
 0x1d0   : > { %3374 = vmatpush1.bf16.msra.mxu1 %v3276_v46  ;;  %v20578_v12 = vpop.permute.xlu1 %5638  ;;  %3405 = vmatprep.mubr.bf16.mxu1 %v25042_v24  ;;  %v3251_v8 = vsel %vm3244_vm7, %v25075_v17, %v20491_v57  ;;  %v25077_v57 = vld [vmem:[#allocation18_spill] sm:$0xff] }
 0x1d1   : > { %25074 = vst [vmem:[#allocation15_spill] sm:$0xff] %v20578_v12  ;;  %17144 = vmatprep.subr.msk.bf16.mxu1 %vm349_vm1, %v3252_v18  ;;  %v20582_v58 = vpop.permute.xlu0 %5636  ;;  %v3256_v18 = vsel %vm3244_vm7, %v20529_v63, %v25077_v57 }
 0x1d2   : > { %6874 = vrot.lane.b32.xlu1 %v19289_v36, %s19150_s20 }
 0x1d3   : > { %6872 = vrot.lane.b32.xlu0 %v19353_v44, %s19150_s20  ;;  %17217 = vmatmul.mubr.msk.bf16.vlgmr.msra.gmra.mrb[8].mxu0 %vm345_vm3, %v20469_v37 }
 0x1d4   : > { %5479 = vmatpush1.bf16.msra.mxu0 %v5136_v39  ;;  %v20594_v46 = vpop.permute.xlu1 %5642  ;;  %5510 = vmatprep.mubr.bf16.mxu0 %v25042_v24  ;;  %v3288_v39 = vsel %vm349_vm1, %v3251_v8, 0  ;;  %v5672_v8 = vsel %vm5670_vm11, %v5629_v28, %v20544_v45  ;;  %v5671_v45 = vsel %vm5670_vm11, %v20526_v0, %v5629_v28 }
 0x1d5   : > { %25076 = vst [vmem:[#allocation17_spill] sm:$0xff] %v20594_v46  ;;  %v20597_v31 = vpop.permute.xlu0 %3238  ;;  %17746 = vmatprep.subr.bf16.mxu0 %v25041_v14  ;;  %v5696_v28 = vsel %vm349_vm1, %v5671_v45, 0 }
 0x1d6   : > { %6878 = vrot.lane.b32.xlu1 %v20201_v29, %s19150_s20 }
 0x1d7   : > { %5056 = vrot.lane.b32.xlu0 %v19353_v44, %s19147_s10  ;;  %17141 = vmatmul.mubr.msk.bf16.vlgmr.msra.gmra.mrb[4].mxu1 %vm345_vm3, %v19913_v21  ;;  %s19164_s10 = smov 83  }
 0x1d8   : > { %3456 = vmatpush1.bf16.msra.mxu1 %v3288_v39  ;;  %v20612_v17 = vpop.permute.xlu1 %5646  ;;  %3487 = vmatprep.mubr.bf16.mxu1 %v25042_v24  ;;  %v25080_v39 = vld [vmem:[#allocation19_spill] sm:$0xff] }
 0x1d9   : > { %25078 = vst [vmem:[#allocation16_spill] sm:$0xff] %v20612_v17  ;;  %17148 = vmatprep.subr.msk.bf16.mxu1 %vm349_vm1, %v3256_v18  ;;  %v20616_v32 = vpop.permute.xlu0 %5644  ;;  %v3255_v57 = vsel %vm3244_vm7, %v25080_v39, %v20529_v63  ;;  %v25081_v63 = vld [vmem:[#allocation21_spill] sm:$0xff] }
 0x1da   : > { %5632 = vrot.lane.b32.xlu1 %v25079_v13, %s19148_s11 }
 0x1db   : > { %6880 = vrot.lane.b32.xlu0 %v20223_v48, %s19150_s20  ;;  %17221 = vmatmul.mubr.msk.bf16.vlgmr.msra.gmra.mrb[12].mxu0 %vm345_vm3, %v20469_v37 }
 0x1dc   : > { %v20630_v18 = vpop.permute.xlu1 %5650  ;;  %17747 = vmatpush3.bf16.msra.mxu0 %v5148_v1  ;;  %17748 = vmatprep.mubr.msk.bf16.mxu0 %vm19144_vm4, %v25041_v14  ;;  %v3300_v1 = vsel %vm349_vm1, %v3255_v57, 0  ;;  %v5676_v57 = vsel %vm5670_vm11, %v20582_v58, %v20578_v12 }
 0x1dd   : > { %v20634_v23 = vpop.permute.xlu0 %3812  ;;  %17226 = vmatprep.subr.msk.bf16.mxu0 %vm349_vm1, %v5672_v8  ;;  %v3260_v8 = vsel %vm3244_vm7, %v20563_v35, %v25081_v63  ;;  %v25086_v63 = vld [vmem:[#allocation20_spill] sm:$0xff] }
 0x1de   : > { %7446 = vrot.lane.b32.xlu1 %v19242_v19, %s19151_s23  ;;  %v3259_v45 = vsel %vm3244_vm7, %v25086_v63, %v20563_v35 }
 0x1df   : > { %7444 = vrot.lane.b32.xlu0 %v19219_v10, %s19151_s23  ;;  %17145 = vmatmul.mubr.msk.bf16.vlgmr.msra.gmra.mrb[12].mxu1 %vm345_vm3, %v19913_v21  ;;  %v3312_v35 = vsel %vm349_vm1, %v3259_v45, 0  ;;  %v25089_v45 = vld [vmem:[#allocation23_spill] sm:$0xff] }
 0x1e0   : > { %3538 = vmatpush1.bf16.msra.mxu1 %v3300_v1  ;;  %v20649_v39 = vpop.permute.xlu1 %5654  ;;  %3569 = vmatprep.mubr.bf16.mxu1 %v25042_v24 }
 0x1e1   : > { %25082 = vst [vmem:[#allocation18_spill] sm:$0xff] %v20649_v39  ;;  %17152 = vmatprep.subr.msk.bf16.mxu1 %vm349_vm1, %v3260_v8  ;;  %v20653_v0 = vpop.permute.xlu0 %5652 }
 0x1e2   : > { %v20656_v61 = vpop.f32.mrb[8].mxu1  ;;  %5640 = vrot.lane.b32.xlu1 %v25084_v54, %s19148_s11 }
 0x1e3   : > { %25083 = vst [vmem:[#allocation3_spill] sm:$0xff] %v20656_v61  ;;  %v20663_v1 = vpop.f32.mrb[9].mxu1  ;;  %7448 = vrot.lane.b32.xlu0 %v19207_v4, %s19151_s23  ;;  %17749 = vmatmul.mubr.msk.bf16.vlgmr.msra.gmra.mrb[16].mxu0 %vm345_vm3, %v20469_v37  ;;  %v5675_v37 = vsel %vm5670_vm11, %v20560_v26, %v20582_v58  ;;  %v25088_v26 = vld [vmem:[#allocation6_spill] sm:$0xff] }
 0x1e4   : > { %25085 = vst [vmem:[#allocation19_spill] sm:$0xff] %v20663_v1  ;;  %v1049_v8 = vpop.f32.mrb[10].mxu1  ;;  %5759 = vmatpush1.bf16.msra.mxu0 %v5696_v28  ;;  %v20672_v61 = vpop.permute.xlu1 %5658  ;;  %5790 = vmatprep.mubr.bf16.mxu0 %v25042_v24  ;;  %v17225_v1 = vld [vmem:[%s24930_s1 + $0x48] sm:$0xff]  ;;  %v25087_v28 = vld [vmem:[#allocation22_spill] sm:$0xff] }
 0x1e5   : > { %v1050_v12 = vpop.f32.mrb[11].mxu1  ;;  %v20678_v53 = vpop.permute.xlu0 %3820  ;;  %17230 = vmatprep.subr.msk.bf16.mxu0 %vm349_vm1, %v5676_v57  ;;  %v3264_v57 = vsel %vm3244_vm7, %v20597_v31, %v25087_v28  ;;  %v5708_v8 = vsel %vm349_vm1, %v5675_v37, 0 }
 0x1e6   : > { %7454 = vrot.lane.b32.xlu1 %v19280_v33, %s19151_s23  ;;  %v20691_v12 = vpack.c.bf16 %v17225_v1, %v17225_v1  ;;  %v5680_v1 = vsel %vm5670_vm11, %v20616_v32, %v20612_v17 }
 0x1e7   : > { %7452 = vrot.lane.b32.xlu0 %v19205_v3, %s19151_s23  ;;  %17149 = vmatmul.mubr.msk.bf16.vlgmr.msra.gmra.mrb[20].mxu1 %vm345_vm3, %v19913_v21 }
 0x1e8   : > { %3620 = vmatpush1.bf16.msra.mxu1 %v3312_v35  ;;  %v20696_v63 = vpop.permute.xlu1 %5662  ;;  %3651 = vmatprep.mubr.bf16.mxu1 %v25042_v24  ;;  %v3263_v35 = vsel %vm3244_vm7, %v25089_v45, %v20597_v31  ;;  %vm11127_vm7 = vcmask 982016  }
 0x1e9   : > { %17156 = vmatprep.subr.msk.bf16.mxu1 %vm349_vm1, %v3264_v57  ;;  %v5661_v58 = vpop.permute.xlu0 %5660  ;;  %v5679_v57 = vsel %vm5670_vm11, %v20594_v46, %v20616_v32  ;;  %v3324_v31 = vsel %vm349_vm1, %v3263_v35, 0  ;;  %v25091_v46 = vld [vmem:[#allocation7_spill] sm:$0xff]  ;;  %v5684_v35 = vsel %vm5670_vm11, %v20653_v0, %v20649_v39 }
 0x1ea   : > { %5648 = vrot.lane.b32.xlu1 %v25088_v26, %s19148_s11  ;;  %v5720_v45 = vsel %vm349_vm1, %v5679_v57, 0  ;;  %v3853_v57 = vsel %vm3850_vm8, %v19998_v51, %v20634_v23 }
 0x1eb   : > { %7456 = vrot.lane.b32.xlu0 %v19214_v7, %s19151_s23  ;;  %17227 = vmatmul.mubr.msk.bf16.vlgmr.msra.gmra.mrb[20].mxu0 %vm345_vm3, %v20691_v12  ;;  %v3882_v51 = vsel %vm349_vm1, %v3853_v57, 0  ;;  %v5687_v57 = vsel %vm5670_vm11, %v20672_v61, %v5661_v58 }
 0x1ec   : > { %5841 = vmatpush1.bf16.msra.mxu0 %v5708_v8  ;;  %v20713_v28 = vpop.permute.xlu1 %5666  ;;  %5872 = vmatprep.mubr.bf16.mxu0 %v25042_v24  ;;  %v3854_v8 = vsel %vm3850_vm8, %v20634_v23, %v20009_v15 }
 0x1ed   : > { %v20716_v37 = vpop.permute.xlu0 %3828  ;;  %17234 = vmatprep.subr.msk.bf16.mxu0 %vm349_vm1, %v5680_v1 }
 0x1ee   : > { %7462 = vrot.lane.b32.xlu1 %v19309_v40, %s19151_s23 }
 0x1ef   : > { %7460 = vrot.lane.b32.xlu0 %v19244_v20, %s19151_s23  ;;  %17153 = vmatmul.mubr.msk.bf16.vlgmr.msra.gmra.mrb[28].mxu1 %vm345_vm3, %v19913_v21 }
 0x1f0   : > { %3702 = vmatpush1.bf16.msra.mxu1 %v3324_v31  ;;  %v20732_v1 = vpop.permute.xlu1 %3836  ;;  %3733 = vmatprep.mubr.bf16.mxu1 %v25042_v24 }
 0x1f1   : > { %17162 = vmatprep.subr.msk.bf16.mxu1 %vm349_vm1, %v3854_v8  ;;  %v20736_v32 = vpop.permute.xlu0 %5668 }
 0x1f2   : > { %v20739_v17 = vpop.f32.mrb[16].mxu1  ;;  %5656 = vrot.lane.b32.xlu1 %v25091_v46, %s19148_s11 }
 0x1f3   : > { %25090 = vst [vmem:[#allocation21_spill] sm:$0xff] %v20739_v17  ;;  %v20746_v15 = vpop.f32.mrb[17].mxu1  ;;  %7464 = vrot.lane.b32.xlu0 %v19251_v22, %s19151_s23  ;;  %17231 = vmatmul.mubr.msk.bf16.vlgmr.msra.gmra.mrb[0].mxu0 %vm345_vm3, %v20691_v12 }
 0x1f4   : > { %25092 = vst [vmem:[#allocation4_spill] sm:$0xff] %v20746_v15  ;;  %v1131_v31 = vpop.f32.mrb[18].mxu1  ;;  %5923 = vmatpush1.bf16.msra.mxu0 %v5720_v45  ;;  %v20755_v8 = vpop.permute.xlu1 %6234  ;;  %5954 = vmatprep.mubr.bf16.mxu0 %v25042_v24  ;;  %v5683_v15 = vsel %vm5670_vm11, %v20630_v18, %v20653_v0 }
 0x1f5   : > { %v1132_v17 = vpop.f32.mrb[19].mxu1  ;;  %v20758_v39 = vpop.permute.xlu0 %6232  ;;  %17238 = vmatprep.subr.msk.bf16.mxu0 %vm349_vm1, %v5684_v35  ;;  %v5732_v45 = vsel %vm349_vm1, %v5683_v15, 0 }
 0x1f6   : > { %7470 = vrot.lane.b32.xlu1 %v19331_v42, %s19151_s23  ;;  %v3858_v17 = vsel %vm3850_vm8, %v20678_v53, %v20041_v27  ;;  %v3857_v27 = vsel %vm3850_vm8, %v20027_v5, %v20678_v53  ;;  %v3862_v53 = vsel %vm3850_vm8, %v20716_v37, %v20073_v2  ;;  %v3861_v2 = vsel %vm3850_vm8, %v20057_v6, %v20716_v37 }
 0x1f7   : > { %7468 = vrot.lane.b32.xlu0 %v19258_v25, %s19151_s23  ;;  %17157 = vmatmul.mubr.msk.bf16.vlgmr.msra.gmra.mrb[36].mxu1 %vm345_vm3, %v19913_v21  ;;  %v5688_v21 = vsel %vm5670_vm11, %v5661_v58, %v20696_v63  ;;  %v3894_v5 = vsel %vm349_vm1, %v3857_v27, 0  ;;  %v3906_v6 = vsel %vm349_vm1, %v3861_v2, 0  ;;  %v3866_v37 = vsel %vm3850_vm8, %v20732_v1, %v20105_v55 }
 0x1f8   : > { %3980 = vmatpush1.bf16.msra.mxu1 %v3882_v51  ;;  %v20774_v23 = vpop.permute.xlu1 %3844  ;;  %4011 = vmatprep.mubr.bf16.mxu1 %v25042_v24  ;;  %v5744_v51 = vsel %vm349_vm1, %v5687_v57, 0  ;;  %v3865_v55 = vsel %vm3850_vm8, %v20091_v16, %v20732_v1  ;;  %v25096_v1 = vld [vmem:[#allocation25_spill] sm:$0xff] }
 0x1f9   : > { %17166 = vmatprep.subr.msk.bf16.mxu1 %vm349_vm1, %v3858_v17  ;;  %v20778_v0 = vpop.permute.xlu0 %6236  ;;  %v3918_v16 = vsel %vm349_vm1, %v3865_v55, 0 }
 0x1fa   : > { %5664 = vrot.lane.b32.xlu1 %v19295_v38, %s19148_s11  ;;  %v6278_v2 = vsel %vm6276_vm12, %v20755_v8, %v20778_v0  ;;  %s19156_s11 = smov 22  }
 0x1fb   : > { %7472 = vrot.lane.b32.xlu0 %v19273_v30, %s19151_s23  ;;  %17235 = vmatmul.mubr.msk.bf16.vlgmr.msra.gmra.mrb[4].mxu0 %vm345_vm3, %v20691_v12 }
 0x1fc   : > { %6005 = vmatpush1.bf16.msra.mxu0 %v5732_v45  ;;  %v20792_v35 = vpop.permute.xlu1 %6242  ;;  %6036 = vmatprep.mubr.bf16.mxu0 %v25042_v24 }
 0x1fd   : > { %v20795_v15 = vpop.permute.xlu0 %6240  ;;  %17242 = vmatprep.subr.msk.bf16.mxu0 %vm349_vm1, %v5688_v21 }
 0x1fe   : > { %7478 = vrot.lane.b32.xlu1 %v19353_v44, %s19151_s23 }
 0x1ff   : > { %7476 = vrot.lane.b32.xlu0 %v19282_v34, %s19151_s23  ;;  %17163 = vmatmul.mubr.msk.bf16.vlgmr.msra.gmra.mrb[4].mxu1 %vm345_vm3, %v20085_v56 }
 0x200   : > { %4062 = vmatpush1.bf16.msra.mxu1 %v3894_v5  ;;  %v20810_v31 = vpop.permute.xlu1 %4418  ;;  %4093 = vmatprep.mubr.bf16.mxu1 %v25042_v24 }
 0x201   : > { %17170 = vmatprep.subr.msk.bf16.mxu1 %vm349_vm1, %v3862_v53  ;;  %v20814_v58 = vpop.permute.xlu0 %6244  ;;  %v5691_v53 = vsel %vm5670_vm11, %v20713_v28, %v20736_v32 }
 0x202   : > { %25093 = vst [vmem:[#allocation20_spill] sm:$0xff] %v20814_v58  ;;  %v20817_v17 = vpop.f32.mrb[24].mxu1  ;;  %6238 = vrot.lane.b32.xlu1 %v25079_v13, %s19149_s16  ;;  %v5756_v32 = vsel %vm349_vm1, %v5691_v53, 0  ;;  %v6282_v55 = vsel %vm6276_vm12, %v20792_v35, %v20814_v58  ;;  %v6281_v58 = vsel %vm6276_vm12, %v20795_v15, %v20792_v35 }
 0x203   : > { %25094 = vst [vmem:[#allocation22_spill] sm:$0xff] %v20817_v17  ;;  %v20821_v45 = vpop.f32.mrb[25].mxu1  ;;  %7480 = vrot.lane.b32.xlu0 %v19289_v36, %s19151_s23  ;;  %17239 = vmatmul.mubr.msk.bf16.vlgmr.msra.gmra.mrb[8].mxu0 %vm345_vm3, %v20691_v12 }
 0x204   : > { %25095 = vst [vmem:[#allocation6_spill] sm:$0xff] %v20821_v45  ;;  %v1213_v21 = vpop.f32.mrb[26].mxu1  ;;  %6087 = vmatpush1.bf16.msra.mxu0 %v5744_v51  ;;  %v20830_v27 = vpop.permute.xlu1 %6250  ;;  %6118 = vmatprep.mubr.bf16.mxu0 %v25042_v24 }
 0x205   : > { %v1214_v57 = vpop.f32.mrb[27].mxu1  ;;  %v20833_v5 = vpop.permute.xlu0 %6248  ;;  %17752 = vmatprep.subr.bf16.mxu0 %v25041_v14 }
 0x206   : > { %7486 = vrot.lane.b32.xlu1 %v20223_v48, %s19151_s23 }
 0x207   : > { %7484 = vrot.lane.b32.xlu0 %v20201_v29, %s19151_s23  ;;  %17167 = vmatmul.mubr.msk.bf16.vlgmr.msra.gmra.mrb[12].mxu1 %vm345_vm3, %v20085_v56 }
 0x208   : > { %4144 = vmatpush1.bf16.msra.mxu1 %v3906_v6  ;;  %v20849_v51 = vpop.permute.xlu1 %4426  ;;  %4175 = vmatprep.mubr.bf16.mxu1 %v25042_v24  ;;  %v6277_v6 = vsel %vm6276_vm12, %v20758_v39, %v20755_v8 }
 0x209   : > { %17174 = vmatprep.subr.msk.bf16.mxu1 %vm349_vm1, %v3866_v37  ;;  %v20854_v21 = vpop.permute.xlu0 %6252  ;;  %v3870_v37 = vsel %vm3850_vm8, %v20774_v23, %v25096_v1  ;;  %v6302_v39 = vsel %vm349_vm1, %v6277_v6, 0  ;;  %v25099_v6 = vld [vmem:[#allocation24_spill] sm:$0xff] }
 0x20a   : > { %8050 = vrot.lane.b32.xlu1 %v19219_v10, %s19152_s26  ;;  %v3869_v1 = vsel %vm3850_vm8, %v25099_v6, %v20774_v23  ;;  %v6314_v6 = vsel %vm349_vm1, %v6281_v58, 0  ;;  %vm11733_vm8 = vcmask 973824  }
 0x20b   : > { %6246 = vrot.lane.b32.xlu0 %v25084_v54, %s19149_s16  ;;  %17243 = vmatmul.mubr.msk.bf16.vlgmr.msra.gmra.mrb[12].mxu0 %vm345_vm3, %v20691_v12  ;;  %v3930_v23 = vsel %vm349_vm1, %v3869_v1, 0 }
 0x20c   : > { %v20868_v57 = vpop.permute.xlu1 %6258  ;;  %17753 = vmatpush3.bf16.msra.mxu0 %v5756_v32  ;;  %17754 = vmatprep.mubr.msk.bf16.mxu0 %vm19144_vm4, %v25041_v14 }
 0x20d   : > { %v20872_v53 = vpop.permute.xlu0 %6256  ;;  %17248 = vmatprep.subr.msk.bf16.mxu0 %vm349_vm1, %v6278_v2 }
 0x20e   : > { %8054 = vrot.lane.b32.xlu1 %v19207_v4, %s19152_s26 }
 0x20f   : > { %8052 = vrot.lane.b32.xlu0 %v19242_v19, %s19152_s26  ;;  %17171 = vmatmul.mubr.msk.bf16.vlgmr.msra.gmra.mrb[20].mxu1 %vm345_vm3, %v20085_v56 }
 0x210   : > { %4226 = vmatpush1.bf16.msra.mxu1 %v3918_v16  ;;  %v20888_v32 = vpop.permute.xlu1 %4434  ;;  %4257 = vmatprep.mubr.bf16.mxu1 %v25042_v24 }
 0x211   : > { %17178 = vmatprep.subr.msk.bf16.mxu1 %vm349_vm1, %v3870_v37  ;;  %v20893_v8 = vpop.permute.xlu0 %6260 }
 0x212   : > { %v20895_v2 = vpop.f32.mrb[32].mxu1  ;;  %8058 = vrot.lane.b32.xlu1 %v19205_v3, %s19152_s26 }
 0x213   : > { %25097 = vst [vmem:[#allocation23_spill] sm:$0xff] %v20895_v2  ;;  %v20902_v16 = vpop.f32.mrb[33].mxu1  ;;  %6254 = vrot.lane.b32.xlu0 %v25088_v26, %s19149_s16  ;;  %17755 = vmatmul.mubr.msk.bf16.vlgmr.msra.gmra.mrb[16].mxu0 %vm345_vm3, %v20691_v12 }
 0x214   : > { %25098 = vst [vmem:[#allocation7_spill] sm:$0xff] %v20902_v16  ;;  %v1295_v37 = vpop.f32.mrb[34].mxu1  ;;  %6365 = vmatpush1.bf16.msra.mxu0 %v6302_v39  ;;  %v20911_v2 = vpop.permute.xlu1 %6266  ;;  %6396 = vmatprep.mubr.bf16.mxu0 %v25042_v24  ;;  %v17247_v16 = vld [vmem:[%s24930_s1 + $0x50] sm:$0xff]  ;;  %v4460_v39 = vsel %vm4456_vm9, %v20810_v31, %v20179_v62  ;;  %v4459_v62 = vsel %vm4456_vm9, %v20164_v9, %v20810_v31 }
 0x215   : > { %v1296_v45 = vpop.f32.mrb[35].mxu1  ;;  %v20917_v17 = vpop.permute.xlu0 %6264  ;;  %17252 = vmatprep.subr.msk.bf16.mxu0 %vm349_vm1, %v6282_v55  ;;  %v6285_v37 = vsel %vm6276_vm12, %v20833_v5, %v20830_v27  ;;  %v4488_v9 = vsel %vm349_vm1, %v4459_v62, 0  ;;  %v4464_v31 = vsel %vm4456_vm9, %v20849_v51, %v20210_v47 }
 0x216   : > { %8062 = vrot.lane.b32.xlu1 %v19214_v7, %s19152_s26  ;;  %v20930_v45 = vpack.c.bf16 %v17247_v16, %v17247_v16  ;;  %v6286_v16 = vsel %vm6276_vm12, %v20830_v27, %v20854_v21 }
 0x217   : > { %8060 = vrot.lane.b32.xlu0 %v19280_v33, %s19152_s26  ;;  %17175 = vmatmul.mubr.msk.bf16.vlgmr.msra.gmra.mrb[28].mxu1 %vm345_vm3, %v20085_v56 }
 0x218   : > { %4308 = vmatpush1.bf16.msra.mxu1 %v3930_v23  ;;  %v20935_v55 = vpop.permute.xlu1 %4442  ;;  %4339 = vmatprep.mubr.bf16.mxu1 %v25042_v24 }
 0x219   : > { %17184 = vmatprep.subr.msk.bf16.mxu1 %vm349_vm1, %v4460_v39  ;;  %v20939_v35 = vpop.permute.xlu0 %6268  ;;  %v6326_v39 = vsel %vm349_vm1, %v6285_v37, 0 }
 0x21a   : > { %8066 = vrot.lane.b32.xlu1 %v19244_v20, %s19152_s26 }
 0x21b   : > { %6262 = vrot.lane.b32.xlu0 %v25091_v46, %s19149_s16  ;;  %17249 = vmatmul.mubr.msk.bf16.vlgmr.msra.gmra.mrb[20].mxu0 %vm345_vm3, %v20930_v45 }
 0x21c   : > { %6447 = vmatpush1.bf16.msra.mxu0 %v6314_v6  ;;  %v20954_v1 = vpop.permute.xlu1 %6274  ;;  %6478 = vmatprep.mubr.bf16.mxu0 %v25042_v24 }
 0x21d   : > { %v20957_v58 = vpop.permute.xlu0 %6272  ;;  %17256 = vmatprep.subr.msk.bf16.mxu0 %vm349_vm1, %v6286_v16  ;;  %v4463_v16 = vsel %vm4456_vm9, %v20193_v41, %v20849_v51  ;;  %v4468_v51 = vsel %vm4456_vm9, %v20888_v32, %v20243_v11 }
 0x21e   : > { %8070 = vrot.lane.b32.xlu1 %v19251_v22, %s19152_s26  ;;  %v4500_v41 = vsel %vm349_vm1, %v4463_v16, 0  ;;  %v6294_v16 = vsel %vm6276_vm12, %v20911_v2, %v20939_v35 }
 0x21f   : > { %8068 = vrot.lane.b32.xlu0 %v19309_v40, %s19152_s26  ;;  %17179 = vmatmul.mubr.msk.bf16.vlgmr.msra.gmra.mrb[36].mxu1 %vm345_vm3, %v20085_v56  ;;  %v6290_v56 = vsel %vm6276_vm12, %v20868_v57, %v20893_v8 }
 0x220   : > { %4586 = vmatpush1.bf16.msra.mxu1 %v4488_v9  ;;  %v20973_v23 = vpop.permute.xlu1 %6838  ;;  %4617 = vmatprep.mubr.bf16.mxu1 %v25042_v24 }
 0x221   : > { %17188 = vmatprep.subr.msk.bf16.mxu1 %vm349_vm1, %v4464_v31  ;;  %v20977_v27 = vpop.permute.xlu0 %4450 }
 0x222   : > { %v20980_v6 = vpop.f32.mrb[40].mxu1  ;;  %8074 = vrot.lane.b32.xlu1 %v19258_v25, %s19152_s26 }
 0x223   : > { %25100 = vst [vmem:[#allocation25_spill] sm:$0xff] %v20980_v6  ;;  %v17708_v47 = vpop.f32.mrb[41].mxu1  ;;  %6270 = vrot.lane.b32.xlu0 %v19295_v38, %s19149_s16  ;;  %17253 = vmatmul.mubr.msk.bf16.vlgmr.msra.gmra.mrb[0].mxu0 %vm345_vm3, %v20930_v45  ;;  %s19157_s16 = smov 120  }
 0x224   : > { %v1376_v62 = vpop.f32.mrb[42].mxu1  ;;  %6529 = vmatpush1.bf16.msra.mxu0 %v6326_v39  ;;  %v20994_v37 = vpop.permute.xlu1 %6842  ;;  %6560 = vmatprep.mubr.bf16.mxu0 %v25042_v24  ;;  %v6289_v47 = vsel %vm6276_vm12, %v20872_v53, %v20868_v57 }
 0x225   : > { %v17709_v9 = vpop.f32.mrb[43].mxu1  ;;  %v20997_v31 = vpop.permute.xlu0 %6840  ;;  %17260 = vmatprep.subr.msk.bf16.mxu0 %vm349_vm1, %v6290_v56  ;;  %v6338_v56 = vsel %vm349_vm1, %v6289_v47, 0 }
 0x226   : > { %8078 = vrot.lane.b32.xlu1 %v19273_v30, %s19152_s26  ;;  %v4467_v9 = vsel %vm4456_vm9, %v20227_v49, %v20888_v32  ;;  %v4472_v32 = vsel %vm4456_vm9, %v20935_v55, %v20278_v50  ;;  %v4471_v50 = vsel %vm4456_vm9, %v20258_v60, %v20935_v55  ;;  %v4476_v55 = vsel %vm4456_vm9, %v20977_v27, %v20308_v52 }
 0x227   : > { %8076 = vrot.lane.b32.xlu0 %v19331_v42, %s19152_s26  ;;  %17185 = vmatmul.mubr.msk.bf16.vlgmr.msra.gmra.mrb[4].mxu1 %vm345_vm3, %v20274_v43  ;;  %v4512_v49 = vsel %vm349_vm1, %v4467_v9, 0  ;;  %v4524_v60 = vsel %vm349_vm1, %v4471_v50, 0  ;;  %v4475_v52 = vsel %vm4456_vm9, %v20293_v59, %v20977_v27  ;;  %v25108_v27 = vld [vmem:[#allocation28_spill] sm:$0xff]  ;;  %vm12339_vm9 = vcmask 965632  }
 0x228   : > { %4668 = vmatpush1.bf16.msra.mxu1 %v4500_v41  ;;  %v21013_v39 = vpop.permute.xlu1 %6846  ;;  %4699 = vmatprep.mubr.bf16.mxu1 %v25042_v24  ;;  %v4536_v59 = vsel %vm349_vm1, %v4475_v52, 0 }
 0x229   : > { %17192 = vmatprep.subr.msk.bf16.mxu1 %vm349_vm1, %v4468_v51  ;;  %v21017_v57 = vpop.permute.xlu0 %5024 }
 0x22a   : > { %v21020_v62 = vpop.f32.mrb[0].mxu1  ;;  %8082 = vrot.lane.b32.xlu1 %v19282_v34, %s19152_s26 }
 0x22b   : > { %25101 = vst [vmem:[#allocation24_spill] sm:$0xff] %v21020_v62  ;;  %v21027_v11 = vpop.f32.mrb[1].mxu1  ;;  %6844 = vrot.lane.b32.xlu0 %v25079_v13, %s19150_s20  ;;  %17257 = vmatmul.mubr.msk.bf16.vlgmr.msra.gmra.mrb[4].mxu0 %vm345_vm3, %v20930_v45 }
 0x22c   : > { %25102 = vst [vmem:[#allocation34_spill] sm:$0xff] %v21027_v11  ;;  %v1552_v47 = vpop.f32.mrb[2].mxu1  ;;  %6611 = vmatpush1.bf16.msra.mxu0 %v6338_v56  ;;  %v21036_v41 = vpop.permute.xlu1 %6850  ;;  %6642 = vmatprep.mubr.bf16.mxu0 %v25042_v24  ;;  %v6293_v11 = vsel %vm6276_vm12, %v20917_v17, %v20911_v2 }
 0x22d   : > { %25103 = vst [vmem:[#allocation35_spill] sm:$0xff] %v21036_v41  ;;  %v1553_v51 = vpop.f32.mrb[3].mxu1  ;;  %v21039_v6 = vpop.permute.xlu0 %6848  ;;  %17264 = vmatprep.subr.msk.bf16.mxu0 %vm349_vm1, %v6294_v16  ;;  %v6350_v16 = vsel %vm349_vm1, %v6293_v11, 0  ;;  %v6297_v11 = vsel %vm6276_vm12, %v20957_v58, %v20954_v1 }
 0x22e   : > { %8086 = vrot.lane.b32.xlu1 %v19289_v36, %s19152_s26 }
 0x22f   : > { %8084 = vrot.lane.b32.xlu0 %v19353_v44, %s19152_s26  ;;  %17189 = vmatmul.mubr.msk.bf16.vlgmr.msra.gmra.mrb[12].mxu1 %vm345_vm3, %v20274_v43 }
 0x230   : > { %4750 = vmatpush1.bf16.msra.mxu1 %v4512_v49  ;;  %v21055_v56 = vpop.permute.xlu1 %6854  ;;  %4781 = vmatprep.mubr.bf16.mxu1 %v25042_v24  ;;  %v6362_v49 = vsel %vm349_vm1, %v6297_v11, 0  ;;  %v6883_v11 = vsel %vm6882_vm13, %v20973_v23, %v20997_v31 }
 0x231   : > { %25104 = vst [vmem:[#allocation36_spill] sm:$0xff] %v21055_v56  ;;  %17196 = vmatprep.subr.msk.bf16.mxu1 %vm349_vm1, %v4472_v32  ;;  %v21059_v2 = vpop.permute.xlu0 %5032  ;;  %v6884_v32 = vsel %vm6882_vm13, %v20997_v31, %v20994_v37  ;;  %v6908_v31 = vsel %vm349_vm1, %v6883_v11, 0  ;;  %v17269_v11 = vld [vmem:[%s24930_s1 + $0x58] sm:$0xff] }
 0x232   : > { %8090 = vrot.lane.b32.xlu1 %v20201_v29, %s19152_s26 }
 0x233   : > { %6852 = vrot.lane.b32.xlu0 %v25084_v54, %s19150_s20  ;;  %17261 = vmatmul.mubr.msk.bf16.vlgmr.msra.gmra.mrb[8].mxu0 %vm345_vm3, %v20930_v45 }
 0x234   : > { %6693 = vmatpush1.bf16.msra.mxu0 %v6350_v16  ;;  %v21071_v9 = vpop.permute.xlu1 %6858  ;;  %6724 = vmatprep.mubr.bf16.mxu0 %v25042_v24 }
 0x235   : > { %25105 = vst [vmem:[#allocation37_spill] sm:$0xff] %v21071_v9  ;;  %v21074_v47 = vpop.permute.xlu0 %6856  ;;  %17758 = vmatprep.subr.bf16.mxu0 %v25041_v14 }
 0x236   : > { %6860 = vrot.lane.b32.xlu1 %v25088_v26, %s19150_s20 }
 0x237   : > { %8092 = vrot.lane.b32.xlu0 %v20223_v48, %s19152_s26  ;;  %17193 = vmatmul.mubr.msk.bf16.vlgmr.msra.gmra.mrb[20].mxu1 %vm345_vm3, %v20274_v43 }
 0x238   : > { %4832 = vmatpush1.bf16.msra.mxu1 %v4524_v60  ;;  %v21090_v51 = vpop.permute.xlu1 %6862  ;;  %4863 = vmatprep.mubr.bf16.mxu1 %v25042_v24  ;;  %v5066_v60 = vsel %vm5062_vm10, %v21017_v57, %v25108_v27 }
 0x239   : > { %25106 = vst [vmem:[#allocation38_spill] sm:$0xff] %v21090_v51  ;;  %17200 = vmatprep.subr.msk.bf16.mxu1 %vm349_vm1, %v4476_v55  ;;  %v21094_v1 = vpop.permute.xlu0 %5040 }
 0x23a   : > { %8658 = vrot.lane.b32.xlu1 %v19242_v19, %s19153_s29 }
 0x23b   : > { %8656 = vrot.lane.b32.xlu0 %v19219_v10, %s19153_s29  ;;  %17265 = vmatmul.mubr.msk.bf16.vlgmr.msra.gmra.mrb[12].mxu0 %vm345_vm3, %v20930_v45 }
 0x23c   : > { %v21109_v16 = vpop.permute.xlu1 %6866  ;;  %17759 = vmatpush3.bf16.msra.mxu0 %v6362_v49  ;;  %17760 = vmatprep.mubr.msk.bf16.mxu0 %vm19144_vm4, %v25041_v14  ;;  %v6888_v49 = vsel %vm6882_vm13, %v21039_v6, %v21036_v41 }
 0x23d   : > { %25107 = vst [vmem:[#allocation39_spill] sm:$0xff] %v21109_v16  ;;  %v21113_v50 = vpop.permute.xlu0 %6864  ;;  %17270 = vmatprep.subr.msk.bf16.mxu0 %vm349_vm1, %v6884_v32  ;;  %v25110_v32 = vld [vmem:[#allocation27_spill] sm:$0xff] }
 0x23e   : > { %6868 = vrot.lane.b32.xlu1 %v25091_v46, %s19150_s20  ;;  %v5065_v52 = vsel %vm5062_vm10, %v25110_v32, %v21017_v57  ;;  %v25112_v32 = vld [vmem:[#allocation30_spill] sm:$0xff] }
 0x23f   : > { %17197 = vmatmul.mubr.msk.bf16.vlgmr.msra.gmra.mrb[28].mxu1 %vm345_vm3, %v20274_v43  ;;  %8660 = vrot.lane.b32.xlu0 %v19207_v4, %s19153_s29  ;;  %v5094_v57 = vsel %vm349_vm1, %v5065_v52, 0  ;;  %v25114_v52 = vld [vmem:[#allocation29_spill] sm:$0xff] }
 0x240   : > { %4914 = vmatpush1.bf16.msra.mxu1 %v4536_v59  ;;  %v21129_v55 = vpop.permute.xlu1 %6870  ;;  %4945 = vmatprep.mubr.bf16.mxu1 %v25042_v24 }
 0x241   : > { %25109 = vst [vmem:[#allocation28_spill] sm:$0xff] %v21129_v55  ;;  %17206 = vmatprep.subr.msk.bf16.mxu1 %vm349_vm1, %v5066_v60  ;;  %v21133_v23 = vpop.permute.xlu0 %5048  ;;  %v6887_v60 = vsel %vm6882_vm13, %v21013_v39, %v21039_v6 }
 0x242   : > { %8666 = vrot.lane.b32.xlu1 %v19280_v33, %s19153_s29  ;;  %v6920_v41 = vsel %vm349_vm1, %v6887_v60, 0 }
 0x243   : > { %8664 = vrot.lane.b32.xlu0 %v19205_v3, %s19153_s29  ;;  %17761 = vmatmul.mubr.msk.bf16.vlgmr.msra.gmra.mrb[16].mxu0 %vm345_vm3, %v20930_v45 }
 0x244   : > { %6971 = vmatpush1.bf16.msra.mxu0 %v6908_v31  ;;  %v21148_v59 = vpop.permute.xlu1 %6874  ;;  %7002 = vmatprep.mubr.bf16.mxu0 %v25042_v24  ;;  %v21167_v31 = vpack.c.bf16 %v17269_v11, %v17269_v11  ;;  %v5069_v11 = vsel %vm5062_vm10, %v25114_v52, %v21059_v2 }
 0x245   : > { %25111 = vst [vmem:[#allocation27_spill] sm:$0xff] %v21148_v59  ;;  %v21154_v27 = vpop.permute.xlu0 %6872  ;;  %17274 = vmatprep.subr.msk.bf16.mxu0 %vm349_vm1, %v6888_v49  ;;  %v5070_v49 = vsel %vm5062_vm10, %v21059_v2, %v25112_v32  ;;  %v6891_v32 = vsel %vm6882_vm13, %v21055_v56, %v21074_v47  ;;  %v25115_v2 = vld [vmem:[#allocation33_spill] sm:$0xff] }
 0x246   : > { %6876 = vrot.lane.b32.xlu1 %v19295_v38, %s19150_s20 }
 0x247   : > { %8668 = vrot.lane.b32.xlu0 %v19214_v7, %s19153_s29  ;;  %17201 = vmatmul.mubr.msk.bf16.vlgmr.msra.gmra.mrb[36].mxu1 %vm345_vm3, %v20274_v43  ;;  %v6892_v43 = vsel %vm6882_vm13, %v21074_v47, %v21071_v9  ;;  %v6932_v9 = vsel %vm349_vm1, %v6891_v32, 0 }
 0x248   : > { %5192 = vmatpush1.bf16.msra.mxu1 %v5094_v57  ;;  %v21172_v62 = vpop.permute.xlu1 %6878  ;;  %5223 = vmatprep.mubr.bf16.mxu1 %v25042_v24 }
 0x249   : > { %25113 = vst [vmem:[#allocation30_spill] sm:$0xff] %v21172_v62  ;;  %17210 = vmatprep.subr.msk.bf16.mxu1 %vm349_vm1, %v5070_v49  ;;  %v21176_v6 = vpop.permute.xlu0 %5056  ;;  %v25116_v49 = vld [vmem:[#allocation32_spill] sm:$0xff] }
 0x24a   : > { %8674 = vrot.lane.b32.xlu1 %v19309_v40, %s19153_s29 }
 0x24b   : > { %8672 = vrot.lane.b32.xlu0 %v19244_v20, %s19153_s29  ;;  %17271 = vmatmul.mubr.msk.bf16.vlgmr.msra.gmra.mrb[20].mxu0 %vm345_vm3, %v21167_v31 }
 0x24c   : > { %7053 = vmatpush1.bf16.msra.mxu0 %v6920_v41  ;;  %v21191_v57 = vpop.permute.xlu1 %5632  ;;  %7084 = vmatprep.mubr.bf16.mxu0 %v25042_v24  ;;  %v5106_v41 = vsel %vm349_vm1, %v5069_v11, 0  ;;  %v6896_v11 = vsel %vm6882_vm13, %v21113_v50, %v21109_v16  ;;  %v6895_v16 = vsel %vm6882_vm13, %v21090_v51, %v21113_v50 }
 0x24d   : > { %v21194_v60 = vpop.permute.xlu0 %6880  ;;  %17278 = vmatprep.subr.msk.bf16.mxu0 %vm349_vm1, %v6892_v43  ;;  %v5074_v43 = vsel %vm5062_vm10, %v21094_v1, %v25116_v49  ;;  %v6944_v51 = vsel %vm349_vm1, %v6895_v16, 0 }
 0x24e   : > { %7450 = vrot.lane.b32.xlu1 %v25079_v13, %s19151_s23 }
 0x24f   : > { %8676 = vrot.lane.b32.xlu0 %v19251_v22, %s19153_s29  ;;  %17207 = vmatmul.mubr.msk.bf16.vlgmr.msra.gmra.mrb[4].mxu1 %vm345_vm3, %v25115_v2 }
 0x250   : > { %5274 = vmatpush1.bf16.msra.mxu1 %v5106_v41  ;;  %v21210_v52 = vpop.permute.xlu1 %7446  ;;  %5305 = vmatprep.mubr.bf16.mxu1 %v25042_v24  ;;  %v25117_v41 = vld [vmem:[#allocation31_spill] sm:$0xff] }
 0x251   : > { %17214 = vmatprep.subr.msk.bf16.mxu1 %vm349_vm1, %v5074_v43  ;;  %v21214_v47 = vpop.permute.xlu0 %7444  ;;  %v5073_v49 = vsel %vm5062_vm10, %v25117_v41, %v21094_v1  ;;  %v25119_v1 = vld [vmem:[#allocation10_spill] sm:$0xff] }
 0x252   : > { %8682 = vrot.lane.b32.xlu1 %v19331_v42, %s19153_s29 }
 0x253   : > { %8680 = vrot.lane.b32.xlu0 %v19258_v25, %s19153_s29  ;;  %17275 = vmatmul.mubr.msk.bf16.vlgmr.msra.gmra.mrb[0].mxu0 %vm345_vm3, %v21167_v31 }
 0x254   : > { %7135 = vmatpush1.bf16.msra.mxu0 %v6932_v9  ;;  %v21229_v43 = vpop.permute.xlu1 %5640  ;;  %7166 = vmatprep.mubr.bf16.mxu0 %v25042_v24  ;;  %v5118_v9 = vsel %vm349_vm1, %v5073_v49, 0  ;;  %v6900_v49 = vsel %vm6882_vm13, %v21154_v27, %v21148_v59  ;;  %v6899_v59 = vsel %vm6882_vm13, %v21129_v55, %v21154_v27 }
 0x255   : > { %v21232_v32 = vpop.permute.xlu0 %7448  ;;  %17282 = vmatprep.subr.msk.bf16.mxu0 %vm349_vm1, %v6896_v11  ;;  %v5078_v11 = vsel %vm5062_vm10, %v21133_v23, %v25119_v1  ;;  %v6956_v55 = vsel %vm349_vm1, %v6899_v59, 0  ;;  %v6903_v59 = vsel %vm6882_vm13, %v21172_v62, %v21194_v60 }
 0x256   : > { %25118 = vst [vmem:[#allocation29_spill] sm:$0xff] %v21232_v32  ;;  %7458 = vrot.lane.b32.xlu1 %v25084_v54, %s19151_s23  ;;  %v6968_v60 = vsel %vm349_vm1, %v6903_v59, 0 }
 0x257   : > { %8684 = vrot.lane.b32.xlu0 %v19273_v30, %s19153_s29  ;;  %17211 = vmatmul.mubr.msk.bf16.vlgmr.msra.gmra.mrb[12].mxu1 %vm345_vm3, %v25115_v2 }
 0x258   : > { %5356 = vmatpush1.bf16.msra.mxu1 %v5118_v9  ;;  %v21248_v41 = vpop.permute.xlu1 %7454  ;;  %5387 = vmatprep.mubr.bf16.mxu1 %v25042_v24  ;;  %v25121_v9 = vld [vmem:[#allocation9_spill] sm:$0xff] }
 0x259   : > { %17218 = vmatprep.subr.msk.bf16.mxu1 %vm349_vm1, %v5078_v11  ;;  %v21252_v50 = vpop.permute.xlu0 %7452  ;;  %v5077_v1 = vsel %vm5062_vm10, %v25121_v9, %v21133_v23  ;;  %v25123_v23 = vld [vmem:[#allocation13_spill] sm:$0xff] }
 0x25a   : > { %25120 = vst [vmem:[#allocation33_spill] sm:$0xff] %v21252_v50  ;;  %8690 = vrot.lane.b32.xlu1 %v19353_v44, %s19153_s29 }
 0x25b   : > { %8688 = vrot.lane.b32.xlu0 %v19282_v34, %s19153_s29  ;;  %17279 = vmatmul.mubr.msk.bf16.vlgmr.msra.gmra.mrb[4].mxu0 %vm345_vm3, %v21167_v31 }
 0x25c   : > { %7217 = vmatpush1.bf16.msra.mxu0 %v6944_v51  ;;  %v21267_v11 = vpop.permute.xlu1 %5648  ;;  %7248 = vmatprep.mubr.bf16.mxu0 %v25042_v24  ;;  %v5130_v51 = vsel %vm349_vm1, %v5077_v1, 0  ;;  %v25124_v1 = vld [vmem:[#allocation11_spill] sm:$0xff] }
 0x25d   : > { %v21270_v16 = vpop.permute.xlu0 %7456  ;;  %17286 = vmatprep.subr.msk.bf16.mxu0 %vm349_vm1, %v6900_v49  ;;  %v5082_v49 = vsel %vm5062_vm10, %v21176_v6, %v25123_v23 }
 0x25e   : > { %25122 = vst [vmem:[#allocation32_spill] sm:$0xff] %v21270_v16  ;;  %7466 = vrot.lane.b32.xlu1 %v25088_v26, %s19151_s23 }
 0x25f   : > { %8692 = vrot.lane.b32.xlu0 %v19289_v36, %s19153_s29  ;;  %17215 = vmatmul.mubr.msk.bf16.vlgmr.msra.gmra.mrb[20].mxu1 %vm345_vm3, %v25115_v2 }
 0x260   : > { %5438 = vmatpush1.bf16.msra.mxu1 %v5130_v51  ;;  %v21286_v9 = vpop.permute.xlu1 %7462  ;;  %5469 = vmatprep.mubr.bf16.mxu1 %v25042_v24  ;;  %v5081_v51 = vsel %vm5062_vm10, %v25124_v1, %v21176_v6  ;;  %v25125_v6 = vld [vmem:[#allocation14_spill] sm:$0xff]  ;;  %vm12945_vm10 = vcmask 834560  }
 0x261   : > { %17222 = vmatprep.subr.msk.bf16.mxu1 %vm349_vm1, %v5082_v49  ;;  %v21290_v27 = vpop.permute.xlu0 %7460  ;;  %v5674_v1 = vsel %vm5670_vm11, %v21191_v57, %v25125_v6 }
 0x262   : > { %8698 = vrot.lane.b32.xlu1 %v20223_v48, %s19153_s29 }
 0x263   : > { %8696 = vrot.lane.b32.xlu0 %v20201_v29, %s19153_s29  ;;  %17283 = vmatmul.mubr.msk.bf16.vlgmr.msra.gmra.mrb[8].mxu0 %vm345_vm3, %v21167_v31 }
 0x264   : > { %7299 = vmatpush1.bf16.msra.mxu0 %v6956_v55  ;;  %v21302_v23 = vpop.permute.xlu1 %5656  ;;  %7330 = vmatprep.mubr.bf16.mxu0 %v25042_v24  ;;  %v5142_v55 = vsel %vm349_vm1, %v5081_v51, 0  ;;  %v7490_v51 = vsel %vm7488_vm14, %v21210_v52, %v21232_v32  ;;  %v7489_v32 = vsel %vm7488_vm14, %v21214_v47, %v21210_v52 }
 0x265   : > { %v21305_v49 = vpop.permute.xlu0 %7464  ;;  %17764 = vmatprep.subr.bf16.mxu0 %v25041_v14  ;;  %v7514_v52 = vsel %vm349_vm1, %v7489_v32, 0 }
 0x266   : > { %9262 = vrot.lane.b32.xlu1 %v19219_v10, %s19154_s5 }
 0x267   : > { %7474 = vrot.lane.b32.xlu0 %v25091_v46, %s19151_s23  ;;  %17219 = vmatmul.mubr.msk.bf16.vlgmr.msra.gmra.mrb[28].mxu1 %vm345_vm3, %v25115_v2 }
 0x268   : > { %5520 = vmatpush1.bf16.msra.mxu1 %v5142_v55  ;;  %v21321_v56 = vpop.permute.xlu1 %7470  ;;  %5551 = vmatprep.mubr.bf16.mxu1 %v25042_v24  ;;  %v25126_v55 = vld [vmem:[#allocation12_spill] sm:$0xff] }
 0x269   : > { %17228 = vmatprep.subr.msk.bf16.mxu1 %vm349_vm1, %v5674_v1  ;;  %v21326_v62 = vpop.permute.xlu0 %7468  ;;  %v5673_v59 = vsel %vm5670_vm11, %v25126_v55, %v21191_v57 }
 0x26a   : > { %9266 = vrot.lane.b32.xlu1 %v19207_v4, %s19154_s5  ;;  %v5702_v57 = vsel %vm349_vm1, %v5673_v59, 0  ;;  %v25129_v59 = vld [vmem:[#allocation15_spill] sm:$0xff] }
 0x26b   : > { %9264 = vrot.lane.b32.xlu0 %v19242_v19, %s19154_s5  ;;  %17287 = vmatmul.mubr.msk.bf16.vlgmr.msra.gmra.mrb[12].mxu0 %vm345_vm3, %v21167_v31  ;;  %v5677_v32 = vsel %vm5670_vm11, %v25129_v59, %v21229_v43 }
 0x26c   : > { %v21340_v6 = vpop.permute.xlu1 %5664  ;;  %17765 = vmatpush3.bf16.msra.mxu0 %v6968_v60  ;;  %17766 = vmatprep.mubr.msk.bf16.mxu0 %vm19144_vm4, %v25041_v14  ;;  %v25128_v60 = vld [vmem:[#allocation17_spill] sm:$0xff] }
 0x26d   : > { %v21344_v1 = vpop.permute.xlu0 %7472  ;;  %17292 = vmatprep.subr.msk.bf16.mxu0 %vm349_vm1, %v7490_v51  ;;  %v5678_v51 = vsel %vm5670_vm11, %v21229_v43, %v25128_v60  ;;  %v17291_v60 = vld [vmem:[%s24930_s1 + $0x60] sm:$0xff]  ;;  %v5714_v43 = vsel %vm349_vm1, %v5677_v32, 0  ;;  %v7498_v32 = vsel %vm7488_vm14, %v21286_v9, %v21305_v49 }
 0x26e   : > { %25127 = vst [vmem:[#allocation31_spill] sm:$0xff] %v21344_v1  ;;  %9270 = vrot.lane.b32.xlu1 %v19205_v3, %s19154_s5 }
 0x26f   : > { %7482 = vrot.lane.b32.xlu0 %v19295_v38, %s19151_s23  ;;  %17223 = vmatmul.mubr.msk.bf16.vlgmr.msra.gmra.mrb[36].mxu1 %vm345_vm3, %v25115_v2  ;;  %v7494_v2 = vsel %vm7488_vm14, %v21248_v41, %v21270_v16  ;;  %v7493_v16 = vsel %vm7488_vm14, %v21252_v50, %v21248_v41 }
 0x270   : > { %5800 = vmatpush1.bf16.msra.mxu1 %v5702_v57  ;;  %v21360_v55 = vpop.permute.xlu1 %7478  ;;  %5831 = vmatprep.mubr.bf16.mxu1 %v25042_v24  ;;  %v7526_v50 = vsel %vm349_vm1, %v7493_v16, 0 }
 0x271   : > { %17232 = vmatprep.subr.msk.bf16.mxu1 %vm349_vm1, %v5678_v51  ;;  %v21365_v47 = vpop.permute.xlu0 %7476 }
 0x272   : > { %9274 = vrot.lane.b32.xlu1 %v19214_v7, %s19154_s5 }
 0x273   : > { %9272 = vrot.lane.b32.xlu0 %v19280_v33, %s19154_s5  ;;  %17767 = vmatmul.mubr.msk.bf16.vlgmr.msra.gmra.mrb[16].mxu0 %vm345_vm3, %v21167_v31 }
 0x274   : > { %7577 = vmatpush1.bf16.msra.mxu0 %v7514_v52  ;;  %v21379_v57 = vpop.permute.xlu1 %6238  ;;  %7608 = vmatprep.mubr.bf16.mxu0 %v25042_v24  ;;  %v21398_v52 = vpack.c.bf16 %v17291_v60, %v17291_v60 }
 0x275   : > { %v21385_v51 = vpop.permute.xlu0 %7480  ;;  %17296 = vmatprep.subr.msk.bf16.mxu0 %vm349_vm1, %v7494_v2  ;;  %v5682_v2 = vsel %vm5670_vm11, %v21267_v11, %v20630_v18  ;;  %v25130_v18 = vld [vmem:[#allocation16_spill] sm:$0xff] }
 0x276   : > { %9278 = vrot.lane.b32.xlu1 %v19244_v20, %s19154_s5  ;;  %v5681_v60 = vsel %vm5670_vm11, %v25130_v18, %v21267_v11  ;;  %v5686_v11 = vsel %vm5670_vm11, %v21302_v23, %v20672_v61  ;;  %v25131_v61 = vld [vmem:[#allocation18_spill] sm:$0xff] }
 0x277   : > { %8056 = vrot.lane.b32.xlu0 %v25079_v13, %s19152_s26  ;;  %17229 = vmatmul.mubr.msk.bf16.vlgmr.msra.gmra.mrb[4].mxu1 %vm345_vm3, %v20691_v12 }
 0x278   : > { %5882 = vmatpush1.bf16.msra.mxu1 %v5714_v43  ;;  %v21403_v59 = vpop.permute.xlu1 %7486  ;;  %5913 = vmatprep.mubr.bf16.mxu1 %v25042_v24 }
 0x279   : > { %17236 = vmatprep.subr.msk.bf16.mxu1 %vm349_vm1, %v5682_v2  ;;  %v21407_v41 = vpop.permute.xlu0 %7484  ;;  %v7497_v2 = vsel %vm7488_vm14, %v21290_v27, %v21286_v9 }
 0x27a   : > { %9282 = vrot.lane.b32.xlu1 %v19251_v22, %s19154_s5  ;;  %v7538_v18 = vsel %vm349_vm1, %v7497_v2, 0 }
 0x27b   : > { %9280 = vrot.lane.b32.xlu0 %v19309_v40, %s19154_s5  ;;  %17293 = vmatmul.mubr.msk.bf16.vlgmr.msra.gmra.mrb[20].mxu0 %vm345_vm3, %v21398_v52 }
 0x27c   : > { %7659 = vmatpush1.bf16.msra.mxu0 %v7526_v50  ;;  %v21422_v43 = vpop.permute.xlu1 %8050  ;;  %7690 = vmatprep.mubr.bf16.mxu0 %v25042_v24  ;;  %v5726_v50 = vsel %vm349_vm1, %v5681_v60, 0  ;;  %v7502_v60 = vsel %vm7488_vm14, %v21321_v56, %v21344_v1  ;;  %v7501_v1 = vsel %vm7488_vm14, %v21326_v62, %v21321_v56 }
 0x27d   : > { %v21425_v16 = vpop.permute.xlu0 %6246  ;;  %17300 = vmatprep.subr.msk.bf16.mxu0 %vm349_vm1, %v7498_v32 }
 0x27e   : > { %9286 = vrot.lane.b32.xlu1 %v19258_v25, %s19154_s5 }
 0x27f   : > { %8064 = vrot.lane.b32.xlu0 %v25084_v54, %s19152_s26  ;;  %17233 = vmatmul.mubr.msk.bf16.vlgmr.msra.gmra.mrb[12].mxu1 %vm345_vm3, %v20691_v12 }
 0x280   : > { %5964 = vmatpush1.bf16.msra.mxu1 %v5726_v50  ;;  %v21441_v32 = vpop.permute.xlu1 %8054  ;;  %5995 = vmatprep.mubr.bf16.mxu1 %v25042_v24  ;;  %v5685_v50 = vsel %vm5670_vm11, %v25131_v61, %v21302_v23  ;;  %v7550_v61 = vsel %vm349_vm1, %v7501_v1, 0 }
 0x281   : > { %17240 = vmatprep.subr.msk.bf16.mxu1 %vm349_vm1, %v5686_v11  ;;  %v21445_v9 = vpop.permute.xlu0 %8052  ;;  %v5738_v23 = vsel %vm349_vm1, %v5685_v50, 0  ;;  %v7506_v50 = vsel %vm7488_vm14, %v21360_v55, %v21385_v51 }
 0x282   : > { %9290 = vrot.lane.b32.xlu1 %v19273_v30, %s19154_s5 }
 0x283   : > { %9288 = vrot.lane.b32.xlu0 %v19331_v42, %s19154_s5  ;;  %17297 = vmatmul.mubr.msk.bf16.vlgmr.msra.gmra.mrb[0].mxu0 %vm345_vm3, %v21398_v52 }
 0x284   : > { %7741 = vmatpush1.bf16.msra.mxu0 %v7538_v18  ;;  %v21460_v11 = vpop.permute.xlu1 %8058  ;;  %7772 = vmatprep.mubr.bf16.mxu0 %v25042_v24  ;;  %v5690_v18 = vsel %vm5670_vm11, %v21340_v6, %v20713_v28  ;;  %v5689_v28 = vsel %vm5670_vm11, %v20696_v63, %v21340_v6  ;;  %v6280_v6 = vsel %vm6276_vm12, %v21379_v57, %v20795_v15  ;;  %vm13551_vm11 = vcmask 826368  }
 0x285   : > { %v21463_v2 = vpop.permute.xlu0 %6254  ;;  %17304 = vmatprep.subr.msk.bf16.mxu0 %vm349_vm1, %v7502_v60  ;;  %v5750_v63 = vsel %vm349_vm1, %v5689_v28, 0  ;;  %v6279_v15 = vsel %vm6276_vm12, %v20778_v0, %v21379_v57  ;;  %v6284_v57 = vsel %vm6276_vm12, %v21425_v16, %v20833_v5  ;;  %v25133_v5 = vld [vmem:[#allocation20_spill] sm:$0xff] }
 0x286   : > { %9294 = vrot.lane.b32.xlu1 %v19282_v34, %s19154_s5  ;;  %v6308_v0 = vsel %vm349_vm1, %v6279_v15, 0  ;;  %v6283_v15 = vsel %vm6276_vm12, %v25133_v5, %v21425_v16 }
 0x287   : > { %8072 = vrot.lane.b32.xlu0 %v25088_v26, %s19152_s26  ;;  %17237 = vmatmul.mubr.msk.bf16.vlgmr.msra.gmra.mrb[20].mxu1 %vm345_vm3, %v20691_v12  ;;  %v6320_v16 = vsel %vm349_vm1, %v6283_v15, 0 }
 0x288   : > { %6046 = vmatpush1.bf16.msra.mxu1 %v5738_v23  ;;  %v21479_v60 = vpop.permute.xlu1 %8062  ;;  %6077 = vmatprep.mubr.bf16.mxu1 %v25042_v24 }
 0x289   : > { %25132 = vst [vmem:[#allocation10_spill] sm:$0xff] %v21479_v60  ;;  %17244 = vmatprep.subr.msk.bf16.mxu1 %vm349_vm1, %v5690_v18  ;;  %v21483_v56 = vpop.permute.xlu0 %8060  ;;  %v7505_v18 = vsel %vm7488_vm14, %v21365_v47, %v21360_v55 }
 0x28a   : > { %9298 = vrot.lane.b32.xlu1 %v19289_v36, %s19154_s5  ;;  %v8100_v5 = vsel %vm8094_vm15, %v21483_v56, %v21479_v60 }
 0x28b   : > { %9296 = vrot.lane.b32.xlu0 %v19353_v44, %s19154_s5  ;;  %17301 = vmatmul.mubr.msk.bf16.vlgmr.msra.gmra.mrb[4].mxu0 %vm345_vm3, %v21398_v52 }
 0x28c   : > { %7823 = vmatpush1.bf16.msra.mxu0 %v7550_v61  ;;  %v21498_v23 = vpop.permute.xlu1 %8066  ;;  %7854 = vmatprep.mubr.bf16.mxu0 %v25042_v24 }
 0x28d   : > { %v21501_v1 = vpop.permute.xlu0 %6262  ;;  %17308 = vmatprep.subr.msk.bf16.mxu0 %vm349_vm1, %v7506_v50  ;;  %v7562_v50 = vsel %vm349_vm1, %v7505_v18, 0  ;;  %v7509_v18 = vsel %vm7488_vm14, %v21407_v41, %v21403_v59 }
 0x28e   : > { %9302 = vrot.lane.b32.xlu1 %v20201_v29, %s19154_s5 }
 0x28f   : > { %8080 = vrot.lane.b32.xlu0 %v25091_v46, %s19152_s26  ;;  %17241 = vmatmul.mubr.msk.bf16.vlgmr.msra.gmra.mrb[28].mxu1 %vm345_vm3, %v20691_v12 }
 0x290   : > { %6128 = vmatpush1.bf16.msra.mxu1 %v5750_v63  ;;  %v21517_v61 = vpop.permute.xlu1 %8070  ;;  %6159 = vmatprep.mubr.bf16.mxu1 %v25042_v24 }
 0x291   : > { %17250 = vmatprep.subr.msk.bf16.mxu1 %vm349_vm1, %v6280_v6  ;;  %v21521_v55 = vpop.permute.xlu0 %8068 }
 0x292   : > { %8088 = vrot.lane.b32.xlu1 %v19295_v38, %s19152_s26 }
 0x293   : > { %9304 = vrot.lane.b32.xlu0 %v20223_v48, %s19154_s5  ;;  %17305 = vmatmul.mubr.msk.bf16.vlgmr.msra.gmra.mrb[8].mxu0 %vm345_vm3, %v21398_v52 }
 0x294   : > { %7905 = vmatpush1.bf16.msra.mxu0 %v7562_v50  ;;  %v21533_v28 = vpop.permute.xlu1 %8074  ;;  %7936 = vmatprep.mubr.bf16.mxu0 %v25042_v24  ;;  %v7574_v50 = vsel %vm349_vm1, %v7509_v18, 0 }
 0x295   : > { %v21536_v63 = vpop.permute.xlu0 %6270  ;;  %17770 = vmatprep.subr.bf16.mxu0 %v25041_v14 }
 0x296   : > { %9870 = vrot.lane.b32.xlu1 %v19242_v19, %s19155_s8 }
 0x297   : > { %9868 = vrot.lane.b32.xlu0 %v19219_v10, %s19155_s8  ;;  %17245 = vmatmul.mubr.msk.bf16.vlgmr.msra.gmra.mrb[36].mxu1 %vm345_vm3, %v20691_v12  ;;  %v8096_v12 = vsel %vm8094_vm15, %v21445_v9, %v21441_v32 }
 0x298   : > { %6406 = vmatpush1.bf16.msra.mxu1 %v6308_v0  ;;  %v21552_v6 = vpop.permute.xlu1 %8078  ;;  %6437 = vmatprep.mubr.bf16.mxu1 %v25042_v24 }
 0x299   : > { %17254 = vmatprep.subr.msk.bf16.mxu1 %vm349_vm1, %v6284_v57  ;;  %v21556_v59 = vpop.permute.xlu0 %8076  ;;  %v8095_v57 = vsel %vm8094_vm15, %v21422_v43, %v21445_v9 }
 0x29a   : > { %8662 = vrot.lane.b32.xlu1 %v25079_v13, %s19153_s29  ;;  %v8120_v9 = vsel %vm349_vm1, %v8095_v57, 0  ;;  %v17313_v57 = vld [vmem:[%s24930_s1 + $0x68] sm:$0xff] }
 0x29b   : > { %9872 = vrot.lane.b32.xlu0 %v19207_v4, %s19155_s8  ;;  %17309 = vmatmul.mubr.msk.bf16.vlgmr.msra.gmra.mrb[12].mxu0 %vm345_vm3, %v21398_v52 }
 0x29c   : > { %v21571_v0 = vpop.permute.xlu1 %8082  ;;  %17771 = vmatpush3.bf16.msra.mxu0 %v7574_v50  ;;  %17772 = vmatprep.mubr.msk.bf16.mxu0 %vm19144_vm4, %v25041_v14  ;;  %v6288_v50 = vsel %vm6276_vm12, %v21463_v2, %v20872_v53  ;;  %v6287_v53 = vsel %vm6276_vm12, %v20854_v21, %v21463_v2  ;;  %v21629_v2 = vpack.c.bf16 %v17313_v57, %v17313_v57 }
 0x29d   : > { %v21575_v18 = vpop.permute.xlu0 %6844  ;;  %17314 = vmatprep.subr.msk.bf16.mxu0 %vm349_vm1, %v8096_v12  ;;  %v6332_v21 = vsel %vm349_vm1, %v6287_v53, 0  ;;  %v8104_v53 = vsel %vm8094_vm15, %v21521_v55, %v21517_v61 }
 0x29e   : > { %9878 = vrot.lane.b32.xlu1 %v19280_v33, %s19155_s8 }
 0x29f   : > { %17251 = vmatmul.mubr.msk.bf16.vlgmr.msra.gmra.mrb[4].mxu1 %vm345_vm3, %v20930_v45  ;;  %9876 = vrot.lane.b32.xlu0 %v19205_v3, %s19155_s8 }
 0x2a0   : > { %6488 = vmatpush1.bf16.msra.mxu1 %v6320_v16  ;;  %v21591_v12 = vpop.permute.xlu1 %8086  ;;  %6519 = vmatprep.mubr.bf16.mxu1 %v25042_v24 }
 0x2a1   : > { %17258 = vmatprep.subr.msk.bf16.mxu1 %vm349_vm1, %v6288_v50  ;;  %v21595_v43 = vpop.permute.xlu0 %8084  ;;  %v8099_v50 = vsel %vm8094_vm15, %v21460_v11, %v21483_v56 }
 0x2a2   : > { %8670 = vrot.lane.b32.xlu1 %v25084_v54, %s19153_s29  ;;  %v8132_v60 = vsel %vm349_vm1, %v8099_v50, 0 }
 0x2a3   : > { %9880 = vrot.lane.b32.xlu0 %v19214_v7, %s19155_s8  ;;  %17773 = vmatmul.mubr.msk.bf16.vlgmr.msra.gmra.mrb[16].mxu0 %vm345_vm3, %v21398_v52 }
 0x2a4   : > { %8183 = vmatpush1.bf16.msra.mxu0 %v8120_v9  ;;  %v21610_v15 = vpop.permute.xlu1 %8090  ;;  %8214 = vmatprep.mubr.bf16.mxu0 %v25042_v24  ;;  %v6292_v9 = vsel %vm6276_vm12, %v21501_v1, %v20917_v17  ;;  %v6291_v17 = vsel %vm6276_vm12, %v20893_v8, %v21501_v1 }
 0x2a5   : > { %v21616_v16 = vpop.permute.xlu0 %6852  ;;  %17318 = vmatprep.subr.msk.bf16.mxu0 %vm349_vm1, %v8100_v5  ;;  %v6344_v8 = vsel %vm349_vm1, %v6291_v17, 0 }
 0x2a6   : > { %9886 = vrot.lane.b32.xlu1 %v19309_v40, %s19155_s8 }
 0x2a7   : > { %9884 = vrot.lane.b32.xlu0 %v19244_v20, %s19155_s8  ;;  %17255 = vmatmul.mubr.msk.bf16.vlgmr.msra.gmra.mrb[12].mxu1 %vm345_vm3, %v20930_v45 }
 0x2a8   : > { %6570 = vmatpush1.bf16.msra.mxu1 %v6332_v21  ;;  %v21634_v5 = vpop.permute.xlu1 %6860  ;;  %6601 = vmatprep.mubr.bf16.mxu1 %v25042_v24  ;;  %v8103_v21 = vsel %vm8094_vm15, %v21498_v23, %v21521_v55 }
 0x2a9   : > { %17262 = vmatprep.subr.msk.bf16.mxu1 %vm349_vm1, %v6292_v9  ;;  %v21638_v56 = vpop.permute.xlu0 %8092  ;;  %v8144_v9 = vsel %vm349_vm1, %v8103_v21, 0 }
 0x2aa   : > { %8678 = vrot.lane.b32.xlu1 %v25088_v26, %s19153_s29 }
 0x2ab   : > { %9888 = vrot.lane.b32.xlu0 %v19251_v22, %s19155_s8  ;;  %17315 = vmatmul.mubr.msk.bf16.vlgmr.msra.gmra.mrb[20].mxu0 %vm345_vm3, %v21629_v2 }
 0x2ac   : > { %8265 = vmatpush1.bf16.msra.mxu0 %v8132_v60  ;;  %v21653_v57 = vpop.permute.xlu1 %8658  ;;  %8296 = vmatprep.mubr.bf16.mxu0 %v25042_v24  ;;  %v6296_v60 = vsel %vm6276_vm12, %v21536_v63, %v20957_v58  ;;  %v6295_v58 = vsel %vm6276_vm12, %v20939_v35, %v21536_v63  ;;  %v6886_v63 = vsel %vm6882_vm13, %v21575_v18, %v21013_v39  ;;  %vm14157_vm12 = vcmask 818176  }
 0x2ad   : > { %v21656_v50 = vpop.permute.xlu0 %8656  ;;  %17322 = vmatprep.subr.msk.bf16.mxu0 %vm349_vm1, %v8104_v53  ;;  %v8108_v53 = vsel %vm8094_vm15, %v21556_v59, %v21552_v6  ;;  %v6356_v35 = vsel %vm349_vm1, %v6295_v58, 0  ;;  %v6885_v39 = vsel %vm6882_vm13, %v20994_v37, %v21575_v18  ;;  %v25135_v18 = vld [vmem:[#allocation36_spill] sm:$0xff] }
 0x2ae   : > { %9894 = vrot.lane.b32.xlu1 %v19331_v42, %s19155_s8  ;;  %v6914_v37 = vsel %vm349_vm1, %v6885_v39, 0 }
 0x2af   : > { %9892 = vrot.lane.b32.xlu0 %v19258_v25, %s19155_s8  ;;  %17259 = vmatmul.mubr.msk.bf16.vlgmr.msra.gmra.mrb[20].mxu1 %vm345_vm3, %v20930_v45 }
 0x2b0   : > { %6652 = vmatpush1.bf16.msra.mxu1 %v6344_v8  ;;  %v21672_v1 = vpop.permute.xlu1 %6868  ;;  %6683 = vmatprep.mubr.bf16.mxu1 %v25042_v24  ;;  %v8107_v8 = vsel %vm8094_vm15, %v21533_v28, %v21556_v59 }
 0x2b1   : > { %17266 = vmatprep.subr.msk.bf16.mxu1 %vm349_vm1, %v6296_v60  ;;  %v21676_v55 = vpop.permute.xlu0 %8660 }
 0x2b2   : > { %8686 = vrot.lane.b32.xlu1 %v25091_v46, %s19153_s29 }
 0x2b3   : > { %9896 = vrot.lane.b32.xlu0 %v19273_v30, %s19155_s8  ;;  %17319 = vmatmul.mubr.msk.bf16.vlgmr.msra.gmra.mrb[0].mxu0 %vm345_vm3, %v21629_v2 }
 0x2b4   : > { %8347 = vmatpush1.bf16.msra.mxu0 %v8144_v9  ;;  %v21691_v17 = vpop.permute.xlu1 %8666  ;;  %8378 = vmatprep.mubr.bf16.mxu0 %v25042_v24  ;;  %v8156_v9 = vsel %vm349_vm1, %v8107_v8, 0 }
 0x2b5   : > { %v21694_v21 = vpop.permute.xlu0 %8664  ;;  %17326 = vmatprep.subr.msk.bf16.mxu0 %vm349_vm1, %v8108_v53  ;;  %v8112_v53 = vsel %vm8094_vm15, %v21595_v43, %v21591_v12 }
 0x2b6   : > { %9902 = vrot.lane.b32.xlu1 %v19353_v44, %s19155_s8 }
 0x2b7   : > { %9900 = vrot.lane.b32.xlu0 %v19282_v34, %s19155_s8  ;;  %17263 = vmatmul.mubr.msk.bf16.vlgmr.msra.gmra.mrb[28].mxu1 %vm345_vm3, %v20930_v45 }
 0x2b8   : > { %6734 = vmatpush1.bf16.msra.mxu1 %v6356_v35  ;;  %v21710_v60 = vpop.permute.xlu1 %6876  ;;  %6765 = vmatprep.mubr.bf16.mxu1 %v25042_v24  ;;  %v8111_v35 = vsel %vm8094_vm15, %v21571_v0, %v21595_v43 }
 0x2b9   : > { %17272 = vmatprep.subr.msk.bf16.mxu1 %vm349_vm1, %v6886_v63  ;;  %v21714_v59 = vpop.permute.xlu0 %8668  ;;  %v6890_v63 = vsel %vm6882_vm13, %v21616_v16, %v25135_v18  ;;  %v25137_v18 = vld [vmem:[#allocation38_spill] sm:$0xff] }
 0x2ba   : > { %25134 = vst [vmem:[#allocation9_spill] sm:$0xff] %v21714_v59  ;;  %8694 = vrot.lane.b32.xlu1 %v19295_v38, %s19153_s29 }
 0x2bb   : > { %9904 = vrot.lane.b32.xlu0 %v19289_v36, %s19155_s8  ;;  %17323 = vmatmul.mubr.msk.bf16.vlgmr.msra.gmra.mrb[4].mxu0 %vm345_vm3, %v21629_v2 }
 0x2bc   : > { %8429 = vmatpush1.bf16.msra.mxu0 %v8156_v9  ;;  %v21729_v58 = vpop.permute.xlu1 %8674  ;;  %8460 = vmatprep.mubr.bf16.mxu0 %v25042_v24 }
 0x2bd   : > { %v21732_v8 = vpop.permute.xlu0 %8672  ;;  %17330 = vmatprep.subr.msk.bf16.mxu0 %vm349_vm1, %v8112_v53  ;;  %v8168_v53 = vsel %vm349_vm1, %v8111_v35, 0 }
 0x2be   : > { %9910 = vrot.lane.b32.xlu1 %v20223_v48, %s19155_s8 }
 0x2bf   : > { %9908 = vrot.lane.b32.xlu0 %v20201_v29, %s19155_s8  ;;  %17267 = vmatmul.mubr.msk.bf16.vlgmr.msra.gmra.mrb[36].mxu1 %vm345_vm3, %v20930_v45  ;;  %v25136_v45 = vld [vmem:[#allocation35_spill] sm:$0xff] }
 0x2c0   : > { %7012 = vmatpush1.bf16.msra.mxu1 %v6914_v37  ;;  %v21748_v9 = vpop.permute.xlu1 %7450  ;;  %7043 = vmatprep.mubr.bf16.mxu1 %v25042_v24  ;;  %v6889_v39 = vsel %vm6882_vm13, %v25136_v45, %v21616_v16  ;;  %v25139_v45 = vld [vmem:[#allocation37_spill] sm:$0xff] }
 0x2c1   : > { %17276 = vmatprep.subr.msk.bf16.mxu1 %vm349_vm1, %v6890_v63  ;;  %v21752_v43 = vpop.permute.xlu0 %8676  ;;  %v6926_v16 = vsel %vm349_vm1, %v6889_v39, 0  ;;  %v6894_v63 = vsel %vm6882_vm13, %v21634_v5, %v25137_v18  ;;  %v6893_v39 = vsel %vm6882_vm13, %v25139_v45, %v21634_v5  ;;  %v8701_v18 = vsel %vm8700_vm0, %v21656_v50, %v21653_v57 }
 0x2c2   : > { %10474 = vrot.lane.b32.xlu1 %v19219_v10, %s19156_s11  ;;  %v8115_v10 = vsel %vm8094_vm15, %v21610_v15, %v21638_v56  ;;  %v6938_v5 = vsel %vm349_vm1, %v6893_v39, 0  ;;  %v8706_v45 = vsel %vm8700_vm0, %v21691_v17, %v21714_v59  ;;  %v25141_v39 = vld [vmem:[#allocation39_spill] sm:$0xff]  ;;  %v8705_v59 = vsel %vm8700_vm0, %v21694_v21, %v21691_v17 }
 0x2c3   : > { %9268 = vrot.lane.b32.xlu0 %v25079_v13, %s19154_s5  ;;  %17327 = vmatmul.mubr.msk.bf16.vlgmr.msra.gmra.mrb[8].mxu0 %vm345_vm3, %v21629_v2 }
 0x2c4   : > { %8511 = vmatpush1.bf16.msra.mxu0 %v8168_v53  ;;  %v21764_v37 = vpop.permute.xlu1 %8682  ;;  %8542 = vmatprep.mubr.bf16.mxu0 %v25042_v24 }
 0x2c5   : > { %v21767_v35 = vpop.permute.xlu0 %8680  ;;  %17776 = vmatprep.subr.bf16.mxu0 %v25041_v14 }
 0x2c6   : > { %10478 = vrot.lane.b32.xlu1 %v19207_v4, %s19156_s11  ;;  %v8180_v4 = vsel %vm349_vm1, %v8115_v10, 0 }
 0x2c7   : > { %10476 = vrot.lane.b32.xlu0 %v19242_v19, %s19156_s11  ;;  %17273 = vmatmul.mubr.msk.bf16.vlgmr.msra.gmra.mrb[4].mxu1 %vm345_vm3, %v21167_v31  ;;  %v8702_v19 = vsel %vm8700_vm0, %v21653_v57, %v21676_v55  ;;  %v8726_v57 = vsel %vm349_vm1, %v8701_v18, 0  ;;  %v6897_v18 = vsel %vm6882_vm13, %v25141_v39, %v21672_v1  ;;  %v25142_v39 = vld [vmem:[#allocation30_spill] sm:$0xff] }
 0x2c8   : > { %7094 = vmatpush1.bf16.msra.mxu1 %v6926_v16  ;;  %v21783_v53 = vpop.permute.xlu1 %7458  ;;  %7125 = vmatprep.mubr.bf16.mxu1 %v25042_v24 }
 0x2c9   : > { %17280 = vmatprep.subr.msk.bf16.mxu1 %vm349_vm1, %v6894_v63  ;;  %v21788_v56 = vpop.permute.xlu0 %8684  ;;  %v25140_v63 = vld [vmem:[#allocation28_spill] sm:$0xff] }
 0x2ca   : > { %25138 = vst [vmem:[#allocation13_spill] sm:$0xff] %v21788_v56  ;;  %10482 = vrot.lane.b32.xlu1 %v19205_v3, %s19156_s11 }
 0x2cb   : > { %9276 = vrot.lane.b32.xlu0 %v25084_v54, %s19154_s5  ;;  %17331 = vmatmul.mubr.msk.bf16.vlgmr.msra.gmra.mrb[12].mxu0 %vm345_vm3, %v21629_v2 }
 0x2cc   : > { %v21802_v10 = vpop.permute.xlu1 %8690  ;;  %17777 = vmatpush3.bf16.msra.mxu0 %v8180_v4  ;;  %17778 = vmatprep.mubr.msk.bf16.mxu0 %vm19144_vm4, %v25041_v14  ;;  %v6898_v4 = vsel %vm6882_vm13, %v21672_v1, %v25140_v63  ;;  %v17335_v63 = vld [vmem:[%s24930_s1 + $0x70] sm:$0xff]  ;;  %v6950_v1 = vsel %vm349_vm1, %v6897_v18, 0  ;;  %v8710_v18 = vsel %vm8700_vm0, %v21729_v58, %v21752_v43 }
 0x2cd   : > { %v21806_v16 = vpop.permute.xlu0 %8688  ;;  %17336 = vmatprep.subr.msk.bf16.mxu0 %vm349_vm1, %v8702_v19 }
 0x2ce   : > { %10486 = vrot.lane.b32.xlu1 %v19214_v7, %s19156_s11 }
 0x2cf   : > { %10484 = vrot.lane.b32.xlu0 %v19280_v33, %s19156_s11  ;;  %17277 = vmatmul.mubr.msk.bf16.vlgmr.msra.gmra.mrb[12].mxu1 %vm345_vm3, %v21167_v31 }
 0x2d0   : > { %7176 = vmatpush1.bf16.msra.mxu1 %v6938_v5  ;;  %v21822_v19 = vpop.permute.xlu1 %7466  ;;  %7207 = vmatprep.mubr.bf16.mxu1 %v25042_v24 }
 0x2d1   : > { %17284 = vmatprep.subr.msk.bf16.mxu1 %vm349_vm1, %v6898_v4  ;;  %v21827_v50 = vpop.permute.xlu0 %8692 }
 0x2d2   : > { %10490 = vrot.lane.b32.xlu1 %v19244_v20, %s19156_s11 }
 0x2d3   : > { %9284 = vrot.lane.b32.xlu0 %v25088_v26, %s19154_s5  ;;  %17779 = vmatmul.mubr.msk.bf16.vlgmr.msra.gmra.mrb[16].mxu0 %vm345_vm3, %v21629_v2 }
 0x2d4   : > { %8789 = vmatpush1.bf16.msra.mxu0 %v8726_v57  ;;  %v21841_v5 = vpop.permute.xlu1 %8698  ;;  %8820 = vmatprep.mubr.bf16.mxu0 %v25042_v24  ;;  %v21860_v57 = vpack.c.bf16 %v17335_v63, %v17335_v63  ;;  %v25143_v63 = vld [vmem:[#allocation27_spill] sm:$0xff] }
 0x2d5   : > { %v21847_v4 = vpop.permute.xlu0 %8696  ;;  %17340 = vmatprep.subr.msk.bf16.mxu0 %vm349_vm1, %v8706_v45  ;;  %v6902_v45 = vsel %vm6882_vm13, %v21710_v60, %v25142_v39 }
 0x2d6   : > { %10494 = vrot.lane.b32.xlu1 %v19251_v22, %s19156_s11  ;;  %v8738_v22 = vsel %vm349_vm1, %v8705_v59, 0 }
 0x2d7   : > { %10492 = vrot.lane.b32.xlu0 %v19309_v40, %s19156_s11  ;;  %17281 = vmatmul.mubr.msk.bf16.vlgmr.msra.gmra.mrb[20].mxu1 %vm345_vm3, %v21167_v31 }
 0x2d8   : > { %7258 = vmatpush1.bf16.msra.mxu1 %v6950_v1  ;;  %v21865_v7 = vpop.permute.xlu1 %9262  ;;  %7289 = vmatprep.mubr.bf16.mxu1 %v25042_v24  ;;  %v6901_v1 = vsel %vm6882_vm13, %v25143_v63, %v21710_v60  ;;  %v25145_v60 = vld [vmem:[#allocation33_spill] sm:$0xff]  ;;  %vm14763_vm13 = vcmask 687104  }
 0x2d9   : > { %17288 = vmatprep.subr.msk.bf16.mxu1 %vm349_vm1, %v6902_v45  ;;  %v21869_v17 = vpop.permute.xlu0 %7474  ;;  %v8709_v45 = vsel %vm8700_vm0, %v21732_v8, %v21729_v58 }
 0x2da   : > { %10498 = vrot.lane.b32.xlu1 %v19258_v25, %s19156_s11 }
 0x2db   : > { %9292 = vrot.lane.b32.xlu0 %v25091_v46, %s19154_s5  ;;  %17337 = vmatmul.mubr.msk.bf16.vlgmr.msra.gmra.mrb[20].mxu0 %vm345_vm3, %v21860_v57 }
 0x2dc   : > { %8871 = vmatpush1.bf16.msra.mxu0 %v8738_v22  ;;  %v21884_v39 = vpop.permute.xlu1 %9266  ;;  %8902 = vmatprep.mubr.bf16.mxu0 %v25042_v24  ;;  %v6962_v22 = vsel %vm349_vm1, %v6901_v1, 0  ;;  %v8714_v1 = vsel %vm8700_vm0, %v21764_v37, %v21788_v56  ;;  %v8713_v56 = vsel %vm8700_vm0, %v21767_v35, %v21764_v37 }
 0x2dd   : > { %25144 = vst [vmem:[#allocation11_spill] sm:$0xff] %v21884_v39  ;;  %v21887_v59 = vpop.permute.xlu0 %9264  ;;  %17344 = vmatprep.subr.msk.bf16.mxu0 %vm349_vm1, %v8710_v18  ;;  %v7492_v18 = vsel %vm7488_vm14, %v21748_v9, %v25145_v60 }
 0x2de   : > { %10502 = vrot.lane.b32.xlu1 %v19273_v30, %s19156_s11  ;;  %v8750_v30 = vsel %vm349_vm1, %v8709_v45, 0 }
 0x2df   : > { %10500 = vrot.lane.b32.xlu0 %v19331_v42, %s19156_s11  ;;  %17285 = vmatmul.mubr.msk.bf16.vlgmr.msra.gmra.mrb[28].mxu1 %vm345_vm3, %v21167_v31 }
 0x2e0   : > { %7340 = vmatpush1.bf16.msra.mxu1 %v6962_v22  ;;  %v21903_v63 = vpop.permute.xlu1 %9270  ;;  %7371 = vmatprep.mubr.bf16.mxu1 %v25042_v24  ;;  %v25146_v22 = vld [vmem:[#allocation29_spill] sm:$0xff] }
 0x2e1   : > { %17294 = vmatprep.subr.msk.bf16.mxu1 %vm349_vm1, %v7492_v18  ;;  %v21907_v58 = vpop.permute.xlu0 %7482  ;;  %v7491_v60 = vsel %vm7488_vm14, %v25146_v22, %v21748_v9  ;;  %v7496_v9 = vsel %vm7488_vm14, %v21783_v53, %v21290_v27  ;;  %v8762_v22 = vsel %vm349_vm1, %v8713_v56, 0  ;;  %v25149_v27 = vld [vmem:[#allocation32_spill] sm:$0xff] }
 0x2e2   : > { %10506 = vrot.lane.b32.xlu1 %v19282_v34, %s19156_s11 }
 0x2e3   : > { %9300 = vrot.lane.b32.xlu0 %v19295_v38, %s19154_s5  ;;  %17341 = vmatmul.mubr.msk.bf16.vlgmr.msra.gmra.mrb[0].mxu0 %vm345_vm3, %v21860_v57 }
 0x2e4   : > { %8953 = vmatpush1.bf16.msra.mxu0 %v8750_v30  ;;  %v21922_v18 = vpop.permute.xlu1 %9274  ;;  %8984 = vmatprep.mubr.bf16.mxu0 %v25042_v24  ;;  %v7520_v30 = vsel %vm349_vm1, %v7491_v60, 0  ;;  %v7495_v60 = vsel %vm7488_vm14, %v25149_v27, %v21783_v53 }
 0x2e5   : > { %25147 = vst [vmem:[#allocation14_spill] sm:$0xff] %v21922_v18  ;;  %v21925_v45 = vpop.permute.xlu0 %9272  ;;  %17348 = vmatprep.subr.msk.bf16.mxu0 %vm349_vm1, %v8714_v1  ;;  %v7532_v53 = vsel %vm349_vm1, %v7495_v60, 0 }
 0x2e6   : > { %10510 = vrot.lane.b32.xlu1 %v19289_v36, %s19156_s11 }
 0x2e7   : > { %10508 = vrot.lane.b32.xlu0 %v19353_v44, %s19156_s11  ;;  %17289 = vmatmul.mubr.msk.bf16.vlgmr.msra.gmra.mrb[36].mxu1 %vm345_vm3, %v21167_v31  ;;  %v8718_v31 = vsel %vm8700_vm0, %v21802_v10, %v21827_v50 }
 0x2e8   : > { %7618 = vmatpush1.bf16.msra.mxu1 %v7520_v30  ;;  %v21941_v1 = vpop.permute.xlu1 %9278  ;;  %7649 = vmatprep.mubr.bf16.mxu1 %v25042_v24 }
 0x2e9   : > { %25148 = vst [vmem:[#allocation12_spill] sm:$0xff] %v21941_v1  ;;  %17298 = vmatprep.subr.msk.bf16.mxu1 %vm349_vm1, %v7496_v9  ;;  %v21945_v37 = vpop.permute.xlu0 %8056  ;;  %v8717_v9 = vsel %vm8700_vm0, %v21806_v16, %v21802_v10 }
 0x2ea   : > { %10514 = vrot.lane.b32.xlu1 %v20201_v29, %s19156_s11  ;;  %v8774_v27 = vsel %vm349_vm1, %v8717_v9, 0 }
 0x2eb   : > { %9874 = vrot.lane.b32.xlu0 %v25079_v13, %s19155_s8  ;;  %17345 = vmatmul.mubr.msk.bf16.vlgmr.msra.gmra.mrb[4].mxu0 %vm345_vm3, %v21860_v57 }
 0x2ec   : > { %9035 = vmatpush1.bf16.msra.mxu0 %v8762_v22  ;;  %v21960_v30 = vpop.permute.xlu1 %9282  ;;  %9066 = vmatprep.mubr.bf16.mxu0 %v25042_v24  ;;  %v7500_v22 = vsel %vm7488_vm14, %v21822_v19, %v21326_v62  ;;  %v7499_v62 = vsel %vm7488_vm14, %v21305_v49, %v21822_v19  ;;  %v7504_v19 = vsel %vm7488_vm14, %v21869_v17, %v21365_v47  ;;  %v25152_v47 = vld [vmem:[#allocation31_spill] sm:$0xff] }
 0x2ed   : > { %25150 = vst [vmem:[#allocation17_spill] sm:$0xff] %v21960_v30  ;;  %v21963_v56 = vpop.permute.xlu0 %9280  ;;  %17352 = vmatprep.subr.msk.bf16.mxu0 %vm349_vm1, %v8718_v31  ;;  %v7544_v49 = vsel %vm349_vm1, %v7499_v62, 0  ;;  %v9308_v62 = vsel %vm9306_vm2, %v21887_v59, %v21884_v39  ;;  %v9307_v39 = vsel %vm9306_vm2, %v21865_v7, %v21887_v59 }
 0x2ee   : > { %9882 = vrot.lane.b32.xlu1 %v25084_v54, %s19155_s8  ;;  %v9332_v59 = vsel %vm349_vm1, %v9307_v39, 0  ;;  %v17357_v39 = vld [vmem:[%s24930_s1 + $0x78] sm:$0xff] }
 0x2ef   : > { %10516 = vrot.lane.b32.xlu0 %v20223_v48, %s19156_s11  ;;  %17295 = vmatmul.mubr.msk.bf16.vlgmr.msra.gmra.mrb[4].mxu1 %vm345_vm3, %v21398_v52 }
 0x2f0   : > { %7700 = vmatpush1.bf16.msra.mxu1 %v7532_v53  ;;  %v21979_v31 = vpop.permute.xlu1 %9286  ;;  %7731 = vmatprep.mubr.bf16.mxu1 %v25042_v24  ;;  %v8721_v53 = vsel %vm8700_vm0, %v21847_v4, %v21841_v5 }
 0x2f1   : > { %17302 = vmatprep.subr.msk.bf16.mxu1 %vm349_vm1, %v7500_v22  ;;  %v21983_v10 = vpop.permute.xlu0 %8064 }
 0x2f2   : > { %11085 = vrot.lane.b32.xlu1 %v19205_v3, %s19157_s16 }
 0x2f3   : > { %11083 = vrot.lane.b32.xlu0 %v25079_v13, %s19157_s16  ;;  %17349 = vmatmul.mubr.msk.bf16.vlgmr.msra.gmra.mrb[8].mxu0 %vm345_vm3, %v21860_v57 }
 0x2f4   : > { %9117 = vmatpush1.bf16.msra.mxu0 %v8774_v27  ;;  %v21995_v60 = vpop.permute.xlu1 %9290  ;;  %9148 = vmatprep.mubr.bf16.mxu0 %v25042_v24  ;;  %v8786_v27 = vsel %vm349_vm1, %v8721_v53, 0 }
 0x2f5   : > { %25151 = vst [vmem:[#allocation15_spill] sm:$0xff] %v21995_v60  ;;  %v21998_v9 = vpop.permute.xlu0 %9288  ;;  %17782 = vmatprep.subr.bf16.mxu0 %v25041_v14 }
 0x2f6   : > { %9890 = vrot.lane.b32.xlu1 %v25088_v26, %s19155_s8 }
 0x2f7   : > { %17299 = vmatmul.mubr.msk.bf16.vlgmr.msra.gmra.mrb[12].mxu1 %vm345_vm3, %v21398_v52  ;;  %11087 = vrot.lane.b32.xlu0 %v19280_v33, %s19157_s16 }
 0x2f8   : > { %7782 = vmatpush1.bf16.msra.mxu1 %v7544_v49  ;;  %v22014_v22 = vpop.permute.xlu1 %9294  ;;  %7813 = vmatprep.mubr.bf16.mxu1 %v25042_v24  ;;  %v7503_v49 = vsel %vm7488_vm14, %v25152_v47, %v21869_v17  ;;  %v9312_v47 = vsel %vm9306_vm2, %v21925_v45, %v21922_v18 }
 0x2f9   : > { %17306 = vmatprep.subr.msk.bf16.mxu1 %vm349_vm1, %v7504_v19  ;;  %v22018_v5 = vpop.permute.xlu0 %8072  ;;  %v7556_v17 = vsel %vm349_vm1, %v7503_v49, 0 }
 0x2fa   : > { %11093 = vrot.lane.b32.xlu1 %v19244_v20, %s19157_s16 }
 0x2fb   : > { %11091 = vrot.lane.b32.xlu0 %v25084_v54, %s19157_s16  ;;  %17353 = vmatmul.mubr.msk.bf16.vlgmr.msra.gmra.mrb[12].mxu0 %vm345_vm3, %v21860_v57 }
 0x2fc   : > { %v22033_v19 = vpop.permute.xlu1 %9298  ;;  %17783 = vmatpush3.bf16.msra.mxu0 %v8786_v27  ;;  %17784 = vmatprep.mubr.msk.bf16.mxu0 %vm19144_vm4, %v25041_v14  ;;  %v7508_v27 = vsel %vm7488_vm14, %v21907_v58, %v21407_v41  ;;  %v7507_v41 = vsel %vm7488_vm14, %v21385_v51, %v21907_v58  ;;  %v22091_v58 = vpack.c.bf16 %v17357_v39, %v17357_v39  ;;  %vm15369_vm14 = vcmask 678912  }
 0x2fd   : > { %v22037_v53 = vpop.permute.xlu0 %9296  ;;  %17358 = vmatprep.subr.msk.bf16.mxu0 %vm349_vm1, %v9308_v62  ;;  %v7568_v51 = vsel %vm349_vm1, %v7507_v41, 0  ;;  %v9316_v41 = vsel %vm9306_vm2, %v21963_v56, %v21960_v30  ;;  %v9319_v30 = vsel %vm9306_vm2, %v21979_v31, %v21998_v9 }
 0x2fe   : > { %9898 = vrot.lane.b32.xlu1 %v25091_v46, %s19155_s8 }
 0x2ff   : > { %17303 = vmatmul.mubr.msk.bf16.vlgmr.msra.gmra.mrb[20].mxu1 %vm345_vm3, %v21398_v52  ;;  %11095 = vrot.lane.b32.xlu0 %v19309_v40, %s19157_s16 }
 0x300   : > { %7864 = vmatpush1.bf16.msra.mxu1 %v7556_v17  ;;  %v22053_v62 = vpop.permute.xlu1 %9302  ;;  %7895 = vmatprep.mubr.bf16.mxu1 %v25042_v24 }
 0x301   : > { %17310 = vmatprep.subr.msk.bf16.mxu1 %vm349_vm1, %v7508_v27  ;;  %v22057_v7 = vpop.permute.xlu0 %8080  ;;  %v9311_v27 = vsel %vm9306_vm2, %v21903_v63, %v21925_v45 }
 0x302   : > { %11101 = vrot.lane.b32.xlu1 %v19258_v25, %s19157_s16  ;;  %v9344_v18 = vsel %vm349_vm1, %v9311_v27, 0 }
 0x303   : > { %11099 = vrot.lane.b32.xlu0 %v25088_v26, %s19157_s16  ;;  %17785 = vmatmul.mubr.msk.bf16.vlgmr.msra.gmra.mrb[16].mxu0 %vm345_vm3, %v21860_v57 }
 0x304   : > { %9395 = vmatpush1.bf16.msra.mxu0 %v9332_v59  ;;  %v22072_v49 = vpop.permute.xlu1 %8088  ;;  %9426 = vmatprep.mubr.bf16.mxu0 %v25042_v24  ;;  %v8098_v59 = vsel %vm8094_vm15, %v21945_v37, %v21460_v11  ;;  %v8097_v11 = vsel %vm8094_vm15, %v21441_v32, %v21945_v37 }
 0x305   : > { %v22078_v17 = vpop.permute.xlu0 %9304  ;;  %17362 = vmatprep.subr.msk.bf16.mxu0 %vm349_vm1, %v9312_v47  ;;  %v8126_v32 = vsel %vm349_vm1, %v8097_v11, 0 }
 0x306   : > { %9906 = vrot.lane.b32.xlu1 %v19295_v38, %s19155_s8 }
 0x307   : > { %11103 = vrot.lane.b32.xlu0 %v19331_v42, %s19157_s16  ;;  %17307 = vmatmul.mubr.msk.bf16.vlgmr.msra.gmra.mrb[28].mxu1 %vm345_vm3, %v21398_v52 }
 0x308   : > { %7946 = vmatpush1.bf16.msra.mxu1 %v7568_v51  ;;  %v22096_v47 = vpop.permute.xlu1 %9870  ;;  %7977 = vmatprep.mubr.bf16.mxu1 %v25042_v24  ;;  %v9315_v51 = vsel %vm9306_vm2, %v21941_v1, %v21963_v56  ;;  %v22138_v56 = vld [vmem:[%s19200_s17 + $0x60] sm:$0xff] }
 0x309   : > { %17316 = vmatprep.subr.msk.bf16.mxu1 %vm349_vm1, %v8098_v59  ;;  %v22100_v45 = vpop.permute.xlu0 %9868  ;;  %v211_v11 = vcombine.high %v22138_v56, %v22138_v56 }
 0x30a   : > { %11109 = vrot.lane.b32.xlu1 %v19282_v34, %s19157_s16 }
 0x30b   : > { %11107 = vrot.lane.b32.xlu0 %v25091_v46, %s19157_s16  ;;  %17359 = vmatmul.mubr.msk.bf16.vlgmr.msra.gmra.mrb[20].mxu0 %vm345_vm3, %v22091_v58 }
 0x30c   : > { %9477 = vmatpush1.bf16.msra.mxu0 %v9344_v18  ;;  %v22115_v39 = vpop.permute.xlu1 %8662  ;;  %9508 = vmatprep.mubr.bf16.mxu0 %v25042_v24  ;;  %v8102_v18 = vsel %vm8094_vm15, %v21983_v10, %v21498_v23  ;;  %v185_v23 = vld [vmem:[%s19200_s17 + $0x68] sm:$0xf]  ;;  %s19158_s17 = smov 119  }
 0x30d   : > { %v22118_v27 = vpop.permute.xlu0 %9872  ;;  %17366 = vmatprep.subr.msk.bf16.mxu0 %vm349_vm1, %v9316_v41  ;;  %v9356_v41 = vsel %vm349_vm1, %v9315_v51, 0  ;;  %v22170_v1 = vpack.c.bf16 %v185_v23, %v185_v23 }
 0x30e   : > { %10480 = vrot.lane.b32.xlu1 %v25079_v13, %s19156_s11 }
 0x30f   : > { %11111 = vrot.lane.b32.xlu0 %v19353_v44, %s19157_s16  ;;  %17311 = vmatmul.mubr.msk.bf16.vlgmr.msra.gmra.mrb[36].mxu1 %vm345_vm3, %v21398_v52  ;;  %v9320_v52 = vsel %vm9306_vm2, %v21998_v9, %v21995_v60  ;;  %v8106_v9 = vsel %vm8094_vm15, %v22018_v5, %v21533_v28  ;;  %v8105_v28 = vsel %vm8094_vm15, %v21517_v61, %v22018_v5 }
 0x310   : > { %8224 = vmatpush1.bf16.msra.mxu1 %v8126_v32  ;;  %v22134_v37 = vpop.permute.xlu1 %9878  ;;  %8255 = vmatprep.mubr.bf16.mxu1 %v25042_v24  ;;  %v25153_v32 = vld [vmem:[#allocation10_spill] sm:$0xff]  ;;  %v8150_v61 = vsel %vm349_vm1, %v8105_v28, 0  ;;  %v8110_v5 = vsel %vm8094_vm15, %v22057_v7, %v21571_v0  ;;  %v8109_v0 = vsel %vm8094_vm15, %v21552_v6, %v22057_v7  ;;  %v8114_v7 = vsel %vm8094_vm15, %v22072_v49, %v21610_v15 }
 0x311   : > { %17320 = vmatprep.subr.msk.bf16.mxu1 %vm349_vm1, %v8102_v18  ;;  %v22141_v59 = vpop.permute.xlu0 %9876  ;;  %v8101_v51 = vsel %vm8094_vm15, %v25153_v32, %v21983_v10  ;;  %v9368_v32 = vsel %vm349_vm1, %v9319_v30, 0  ;;  %v8162_v6 = vsel %vm349_vm1, %v8109_v0, 0  ;;  %v8113_v15 = vsel %vm8094_vm15, %v21591_v12, %v22072_v49 }
 0x312   : > { %11117 = vrot.lane.b32.xlu1 %v20201_v29, %s19157_s16  ;;  %v8138_v10 = vsel %vm349_vm1, %v8101_v51, 0  ;;  %v8174_v12 = vsel %vm349_vm1, %v8113_v15, 0  ;;  %v8704_v49 = vsel %vm8700_vm0, %v22115_v39, %v21694_v21  ;;  %v8703_v21 = vsel %vm8700_vm0, %v21676_v55, %v22115_v39  ;;  %v17379_v15 = vld [vmem:[%s24930_s1 + $0x80] sm:$0xff] }
 0x313   : > { %11115 = vrot.lane.b32.xlu0 %v19295_v38, %s19157_s16  ;;  %17363 = vmatmul.mubr.msk.bf16.vlgmr.msra.gmra.mrb[0].mxu0 %vm345_vm3, %v22091_v58  ;;  %v25157_v55 = vld [vmem:[#allocation2_spill] sm:$0xff]  ;;  %v8732_v39 = vsel %vm349_vm1, %v8703_v21, 0  ;;  %vm15975_vm15 = vcmask 670720  }
 0x314   : > { %9559 = vmatpush1.bf16.msra.mxu0 %v9356_v41  ;;  %v22159_v18 = vpop.permute.xlu1 %8670  ;;  %9590 = vmatprep.mubr.bf16.mxu0 %v25042_v24  ;;  %v22177_v41 = vpack.c.bf16 %v211_v11, %v211_v11  ;;  %v9324_v11 = vsel %vm9306_vm2, %v22037_v53, %v22033_v19 }
 0x315   : > { %v22162_v60 = vpop.permute.xlu0 %9880  ;;  %17370 = vmatprep.subr.msk.bf16.mxu0 %vm349_vm1, %v9320_v52 }
 0x316   : > { %25154 = vst [vmem:[#allocation16_spill] sm:$0xff] %v22162_v60  ;;  %10488 = vrot.lane.b32.xlu1 %v25084_v54, %s19156_s11 }
 0x317   : > { %11119 = vrot.lane.b32.xlu0 %v20223_v48, %s19157_s16  ;;  %17317 = vmatmul.mubr.msk.bf16.vlgmr.msra.gmra.mrb[4].mxu1 %vm345_vm3, %v21629_v2 }
 0x318   : > { %8306 = vmatpush1.bf16.msra.mxu1 %v8138_v10  ;;  %v22182_v52 = vpop.permute.xlu1 %9886  ;;  %8337 = vmatprep.mubr.bf16.mxu1 %v25042_v24  ;;  %v9323_v10 = vsel %vm9306_vm2, %v22014_v22, %v22037_v53 }
 0x319   : > { %17324 = vmatprep.subr.msk.bf16.mxu1 %vm349_vm1, %v8106_v9  ;;  %v22186_v23 = vpop.permute.xlu0 %9884 }
 0x31a   : > { %11125 = vrot.lane.b32.xlu1 %v22170_v1, %s19157_s16 }
 0x31b   : > { %11123 = vrot.lane.b32.xlu0 %v22177_v41, %s19157_s16  ;;  %17367 = vmatmul.mubr.msk.bf16.vlgmr.msra.gmra.mrb[4].mxu0 %vm345_vm3, %v22091_v58 }
 0x31c   : > { %9641 = vmatpush1.bf16.msra.mxu0 %v9368_v32  ;;  %v22201_v51 = vpop.permute.xlu1 %8678  ;;  %9672 = vmatprep.mubr.bf16.mxu0 %v25042_v24  ;;  %v9380_v32 = vsel %vm349_vm1, %v9323_v10, 0  ;;  %v9327_v10 = vsel %vm9306_vm2, %v22053_v62, %v22078_v17 }
 0x31d   : > { %v22204_v30 = vpop.permute.xlu0 %9888  ;;  %17374 = vmatprep.subr.msk.bf16.mxu0 %vm349_vm1, %v9324_v11  ;;  %v9392_v17 = vsel %vm349_vm1, %v9327_v10, 0 }
 0x31e   : > { %11689 = vrot.lane.b32.xlu1 %v25079_v13, %s19158_s17 }
 0x31f   : > { %10496 = vrot.lane.b32.xlu0 %v25088_v26, %s19156_s11  ;;  %17321 = vmatmul.mubr.msk.bf16.vlgmr.msra.gmra.mrb[12].mxu1 %vm345_vm3, %v21629_v2 }
 0x320   : > { %8388 = vmatpush1.bf16.msra.mxu1 %v8150_v61  ;;  %v22220_v9 = vpop.permute.xlu1 %9894  ;;  %8419 = vmatprep.mubr.bf16.mxu1 %v25042_v24 }
 0x321   : > { %17328 = vmatprep.subr.msk.bf16.mxu1 %vm349_vm1, %v8110_v5  ;;  %v22224_v53 = vpop.permute.xlu0 %9892 }
 0x322   : > { %11693 = vrot.lane.b32.xlu1 %v19280_v33, %s19158_s17 }
 0x323   : > { %11691 = vrot.lane.b32.xlu0 %v19205_v3, %s19158_s17  ;;  %17371 = vmatmul.mubr.msk.bf16.vlgmr.msra.gmra.mrb[8].mxu0 %vm345_vm3, %v22091_v58 }
 0x324   : > { %9723 = vmatpush1.bf16.msra.mxu0 %v9380_v32  ;;  %v22236_v11 = vpop.permute.xlu1 %8686  ;;  %9754 = vmatprep.mubr.bf16.mxu0 %v25042_v24  ;;  %v9914_v32 = vsel %vm9912_vm5, %v22096_v47, %v22118_v27 }
 0x325   : > { %v22239_v28 = vpop.permute.xlu0 %9896  ;;  %17788 = vmatprep.subr.bf16.mxu0 %v25041_v14 }
 0x326   : > { %25155 = vst [vmem:[#allocation18_spill] sm:$0xff] %v22239_v28  ;;  %11697 = vrot.lane.b32.xlu1 %v25084_v54, %s19158_s17 }
 0x327   : > { %10504 = vrot.lane.b32.xlu0 %v25091_v46, %s19156_s11  ;;  %17325 = vmatmul.mubr.msk.bf16.vlgmr.msra.gmra.mrb[20].mxu1 %vm345_vm3, %v21629_v2 }
 0x328   : > { %8470 = vmatpush1.bf16.msra.mxu1 %v8162_v6  ;;  %v22255_v61 = vpop.permute.xlu1 %9902  ;;  %8501 = vmatprep.mubr.bf16.mxu1 %v25042_v24  ;;  %v9913_v6 = vsel %vm9912_vm5, %v22100_v45, %v22096_v47 }
 0x329   : > { %17332 = vmatprep.subr.msk.bf16.mxu1 %vm349_vm1, %v8114_v7  ;;  %v22260_v5 = vpop.permute.xlu0 %9900  ;;  %v9938_v47 = vsel %vm349_vm1, %v9913_v6, 0 }
 0x32a   : > { %11701 = vrot.lane.b32.xlu1 %v19309_v40, %s19158_s17 }
 0x32b   : > { %11699 = vrot.lane.b32.xlu0 %v19244_v20, %s19158_s17  ;;  %17375 = vmatmul.mubr.msk.bf16.vlgmr.msra.gmra.mrb[12].mxu0 %vm345_vm3, %v22091_v58 }
 0x32c   : > { %v22274_v0 = vpop.permute.xlu1 %8694  ;;  %17789 = vmatpush3.bf16.msra.mxu0 %v9392_v17  ;;  %17790 = vmatprep.mubr.msk.bf16.mxu0 %vm19144_vm4, %v25041_v14  ;;  %v9918_v17 = vsel %vm9912_vm5, %v22134_v37, %v22162_v60 }
 0x32d   : > { %v22278_v10 = vpop.permute.xlu0 %9904  ;;  %17380 = vmatprep.subr.msk.bf16.mxu0 %vm349_vm1, %v9914_v32 }
 0x32e   : > { %25156 = vst [vmem:[#allocation20_spill] sm:$0xff] %v22278_v10  ;;  %11705 = vrot.lane.b32.xlu1 %v25088_v26, %s19158_s17 }
 0x32f   : > { %10512 = vrot.lane.b32.xlu0 %v19295_v38, %s19156_s11  ;;  %17329 = vmatmul.mubr.msk.bf16.vlgmr.msra.gmra.mrb[28].mxu1 %vm345_vm3, %v21629_v2 }
 0x330   : > { %8552 = vmatpush1.bf16.msra.mxu1 %v8174_v12  ;;  %v22294_v7 = vpop.permute.xlu1 %9910  ;;  %8583 = vmatprep.mubr.bf16.mxu1 %v25042_v24  ;;  %v9917_v12 = vsel %vm9912_vm5, %v22141_v59, %v22134_v37 }
 0x331   : > { %17338 = vmatprep.subr.msk.bf16.mxu1 %vm349_vm1, %v8704_v49  ;;  %v22299_v45 = vpop.permute.xlu0 %9908  ;;  %v22332_v49 = vpack.c.bf16 %v17379_v15, %v17379_v15  ;;  %v9950_v60 = vsel %vm349_vm1, %v9917_v12, 0 }
 0x332   : > { %11709 = vrot.lane.b32.xlu1 %v19331_v42, %s19158_s17 }
 0x333   : > { %11707 = vrot.lane.b32.xlu0 %v19258_v25, %s19158_s17  ;;  %17791 = vmatmul.mubr.msk.bf16.vlgmr.msra.gmra.mrb[16].mxu0 %vm345_vm3, %v22091_v58 }
 0x334   : > { %10001 = vmatpush1.bf16.msra.mxu0 %v9938_v47  ;;  %v22313_v32 = vpop.permute.xlu1 %10474  ;;  %10032 = vmatprep.mubr.bf16.mxu0 %v25042_v24  ;;  %v8708_v47 = vsel %vm8700_vm0, %v22159_v18, %v21732_v8  ;;  %v25159_v8 = vld [vmem:[#allocation9_spill] sm:$0xff] }
 0x335   : > { %v22319_v6 = vpop.permute.xlu0 %9268  ;;  %17384 = vmatprep.subr.msk.bf16.mxu0 %vm349_vm1, %v9918_v17  ;;  %v8707_v21 = vsel %vm8700_vm0, %v25159_v8, %v22159_v18  ;;  %v8712_v18 = vsel %vm8700_vm0, %v22201_v51, %v21767_v35  ;;  %v8711_v35 = vsel %vm8700_vm0, %v21752_v43, %v22201_v51  ;;  %v8716_v51 = vsel %vm8700_vm0, %v22236_v11, %v21806_v16  ;;  %v25165_v16 = vld [vmem:[#allocation13_spill] sm:$0xff] }
 0x336   : > { %11713 = vrot.lane.b32.xlu1 %v25091_v46, %s19158_s17  ;;  %v8756_v43 = vsel %vm349_vm1, %v8711_v35, 0  ;;  %v9930_v35 = vsel %vm9912_vm5, %v22255_v61, %v22278_v10  ;;  %v9929_v10 = vsel %vm9912_vm5, %v22260_v5, %v22255_v61  ;;  %v8720_v61 = vsel %vm8700_vm0, %v22274_v0, %v21847_v4 }
 0x337   : > { %11089 = vrot.lane.b32.xlu0 %v25157_v55, %s19157_s16  ;;  %17333 = vmatmul.mubr.msk.bf16.vlgmr.msra.gmra.mrb[36].mxu1 %vm345_vm3, %v21629_v2  ;;  %v9922_v2 = vsel %vm9912_vm5, %v22182_v52, %v22204_v30  ;;  %v8719_v4 = vsel %vm8700_vm0, %v21827_v50, %v22274_v0  ;;  %v9310_v0 = vsel %vm9306_vm2, %v22319_v6, %v21903_v63  ;;  %v25167_v63 = vld [vmem:[#allocation11_spill] sm:$0xff] }
 0x338   : > { %8830 = vmatpush1.bf16.msra.mxu1 %v8732_v39  ;;  %v22337_v17 = vpop.permute.xlu1 %10478  ;;  %8861 = vmatprep.mubr.bf16.mxu1 %v25042_v24  ;;  %v9921_v39 = vsel %vm9912_vm5, %v22186_v23, %v22182_v52  ;;  %v8780_v50 = vsel %vm349_vm1, %v8719_v4, 0 }
 0x339   : > { %25158 = vst [vmem:[#allocation36_spill] sm:$0xff] %v22337_v17  ;;  %17342 = vmatprep.subr.msk.bf16.mxu1 %vm349_vm1, %v8708_v47  ;;  %v22341_v37 = vpop.permute.xlu0 %10476  ;;  %v25161_v47 = vld [vmem:[#allocation5_spill] sm:$0xff]  ;;  %v9962_v8 = vsel %vm349_vm1, %v9921_v39, 0 }
 0x33a   : > { %11717 = vrot.lane.b32.xlu1 %v19353_v44, %s19158_s17  ;;  %v10520_v4 = vsel %vm10518_vm6, %v22341_v37, %v22337_v17  ;;  %v10519_v17 = vsel %vm10518_vm6, %v22313_v32, %v22341_v37 }
 0x33b   : > { %11715 = vrot.lane.b32.xlu0 %v19282_v34, %s19158_s17  ;;  %17381 = vmatmul.mubr.msk.bf16.vlgmr.msra.gmra.mrb[20].mxu0 %vm345_vm3, %v22332_v49 }
 0x33c   : > { %10083 = vmatpush1.bf16.msra.mxu0 %v9950_v60  ;;  %v22356_v15 = vpop.permute.xlu1 %10482  ;;  %10114 = vmatprep.mubr.bf16.mxu0 %v25042_v24  ;;  %v8744_v60 = vsel %vm349_vm1, %v8707_v21, 0  ;;  %v9926_v21 = vsel %vm9912_vm5, %v22220_v9, %v22239_v28  ;;  %v25163_v28 = vld [vmem:[#allocation8_spill] sm:$0xff] }
 0x33d   : > { %25160 = vst [vmem:[#allocation35_spill] sm:$0xff] %v22356_v15  ;;  %v22359_v12 = vpop.permute.xlu0 %9276  ;;  %17388 = vmatprep.subr.msk.bf16.mxu0 %vm349_vm1, %v9922_v2 }
 0x33e   : > { %11721 = vrot.lane.b32.xlu1 %v19295_v38, %s19158_s17 }
 0x33f   : > { %11097 = vrot.lane.b32.xlu0 %v25161_v47, %s19157_s16  ;;  %17339 = vmatmul.mubr.msk.bf16.vlgmr.msra.gmra.mrb[4].mxu1 %vm345_vm3, %v21860_v57 }
 0x340   : > { %8912 = vmatpush1.bf16.msra.mxu1 %v8744_v60  ;;  %v22375_v2 = vpop.permute.xlu1 %10486  ;;  %8943 = vmatprep.mubr.bf16.mxu1 %v25042_v24 }
 0x341   : > { %25162 = vst [vmem:[#allocation38_spill] sm:$0xff] %v22375_v2  ;;  %17346 = vmatprep.subr.msk.bf16.mxu1 %vm349_vm1, %v8712_v18  ;;  %v22379_v52 = vpop.permute.xlu0 %10484  ;;  %v9925_v18 = vsel %vm9912_vm5, %v22224_v53, %v22220_v9 }
 0x342   : > { %11725 = vrot.lane.b32.xlu1 %v20223_v48, %s19158_s17  ;;  %v10524_v37 = vsel %vm10518_vm6, %v22379_v52, %v22375_v2  ;;  %v10523_v2 = vsel %vm10518_vm6, %v22356_v15, %v22379_v52 }
 0x343   : > { %11723 = vrot.lane.b32.xlu0 %v20201_v29, %s19158_s17  ;;  %17385 = vmatmul.mubr.msk.bf16.vlgmr.msra.gmra.mrb[0].mxu0 %vm345_vm3, %v22332_v49  ;;  %v10556_v15 = vsel %vm349_vm1, %v10523_v2, 0 }
 0x344   : > { %10165 = vmatpush1.bf16.msra.mxu0 %v9962_v8  ;;  %v22394_v60 = vpop.permute.xlu1 %10490  ;;  %10196 = vmatprep.mubr.bf16.mxu0 %v25042_v24 }
 0x345   : > { %v22397_v39 = vpop.permute.xlu0 %9284  ;;  %17392 = vmatprep.subr.msk.bf16.mxu0 %vm349_vm1, %v9926_v21  ;;  %v9974_v21 = vsel %vm349_vm1, %v9925_v18, 0 }
 0x346   : > { %11729 = vrot.lane.b32.xlu1 %v22177_v41, %s19158_s17 }
 0x347   : > { %11105 = vrot.lane.b32.xlu0 %v25163_v28, %s19157_s16  ;;  %17343 = vmatmul.mubr.msk.bf16.vlgmr.msra.gmra.mrb[12].mxu1 %vm345_vm3, %v21860_v57 }
 0x348   : > { %8994 = vmatpush1.bf16.msra.mxu1 %v8756_v43  ;;  %v22413_v8 = vpop.permute.xlu1 %10494  ;;  %9025 = vmatprep.mubr.bf16.mxu1 %v25042_v24  ;;  %v8715_v43 = vsel %vm8700_vm0, %v25165_v16, %v22236_v11  ;;  %v22445_v11 = vpack.c.bf16 %v22138_v56, %v22138_v56  ;;  %v9986_v16 = vsel %vm349_vm1, %v9929_v10, 0  ;;  %v9933_v10 = vsel %vm9912_vm5, %v22299_v45, %v22294_v7 }
 0x349   : > { %25164 = vst [vmem:[#allocation37_spill] sm:$0xff] %v22413_v8  ;;  %17350 = vmatprep.subr.msk.bf16.mxu1 %vm349_vm1, %v8716_v51  ;;  %v22417_v9 = vpop.permute.xlu0 %10492 }
 0x34a   : > { %11113 = vrot.lane.b32.xlu1 %v19289_v36, %s19157_s16 }
 0x34b   : > { %11731 = vrot.lane.b32.xlu0 %v22170_v1, %s19158_s17  ;;  %17389 = vmatmul.mubr.msk.bf16.vlgmr.msra.gmra.mrb[4].mxu0 %vm345_vm3, %v22332_v49 }
 0x34c   : > { %10247 = vmatpush1.bf16.msra.mxu0 %v9974_v21  ;;  %v22432_v51 = vpop.permute.xlu1 %10498  ;;  %10278 = vmatprep.mubr.bf16.mxu0 %v25042_v24  ;;  %v8768_v21 = vsel %vm349_vm1, %v8715_v43, 0 }
 0x34d   : > { %v22435_v18 = vpop.permute.xlu0 %9292  ;;  %17396 = vmatprep.subr.msk.bf16.mxu0 %vm349_vm1, %v9930_v35 }
 0x34e   : > { %12297 = vrot.lane.b32.xlu1 %v19205_v3, %s19159_s22 }
 0x34f   : > { %12295 = vrot.lane.b32.xlu0 %v25079_v13, %s19159_s22  ;;  %17347 = vmatmul.mubr.msk.bf16.vlgmr.msra.gmra.mrb[20].mxu1 %vm345_vm3, %v21860_v57 }
 0x350   : > { %9076 = vmatpush1.bf16.msra.mxu1 %v8768_v21  ;;  %v22455_v35 = vpop.permute.xlu1 %10502  ;;  %9107 = vmatprep.mubr.bf16.mxu1 %v25042_v24 }
 0x351   : > { %25166 = vst [vmem:[#allocation28_spill] sm:$0xff] %v22455_v35  ;;  %17354 = vmatprep.subr.msk.bf16.mxu1 %vm349_vm1, %v8720_v61  ;;  %v22459_v56 = vpop.permute.xlu0 %10500 }
 0x352   : > { %11121 = vrot.lane.b32.xlu1 %v22445_v11, %s19157_s16 }
 0x353   : > { %12299 = vrot.lane.b32.xlu0 %v19280_v33, %s19159_s22  ;;  %17393 = vmatmul.mubr.msk.bf16.vlgmr.msra.gmra.mrb[8].mxu0 %vm345_vm3, %v22332_v49 }
 0x354   : > { %10329 = vmatpush1.bf16.msra.mxu0 %v9986_v16  ;;  %v22471_v43 = vpop.permute.xlu1 %10506  ;;  %10360 = vmatprep.mubr.bf16.mxu0 %v25042_v24  ;;  %v9998_v16 = vsel %vm349_vm1, %v9933_v10, 0 }
 0x355   : > { %v22474_v21 = vpop.permute.xlu0 %9300  ;;  %17794 = vmatprep.subr.bf16.mxu0 %v25041_v14 }
 0x356   : > { %12305 = vrot.lane.b32.xlu1 %v19244_v20, %s19159_s22 }
 0x357   : > { %17351 = vmatmul.mubr.msk.bf16.vlgmr.msra.gmra.mrb[28].mxu1 %vm345_vm3, %v21860_v57  ;;  %12303 = vrot.lane.b32.xlu0 %v25084_v54, %s19159_s22 }
 0x358   : > { %9158 = vmatpush1.bf16.msra.mxu1 %v8780_v50  ;;  %v22490_v61 = vpop.permute.xlu1 %10510  ;;  %9189 = vmatprep.mubr.bf16.mxu1 %v25042_v24  ;;  %v9309_v50 = vsel %vm9306_vm2, %v25167_v63, %v22319_v6 }
 0x359   : > { %17360 = vmatprep.subr.msk.bf16.mxu1 %vm349_vm1, %v9310_v0  ;;  %v22494_v7 = vpop.permute.xlu0 %10508  ;;  %v9338_v6 = vsel %vm349_vm1, %v9309_v50, 0  ;;  %v25169_v50 = vld [vmem:[#allocation14_spill] sm:$0xff] }
 0x35a   : > { %11695 = vrot.lane.b32.xlu1 %v25157_v55, %s19158_s17 }
 0x35b   : > { %12307 = vrot.lane.b32.xlu0 %v19309_v40, %s19159_s22  ;;  %17397 = vmatmul.mubr.msk.bf16.vlgmr.msra.gmra.mrb[12].mxu0 %vm345_vm3, %v22332_v49 }
 0x35c   : > { %v22509_v0 = vpop.permute.xlu1 %10514  ;;  %17795 = vmatpush3.bf16.msra.mxu0 %v9998_v16  ;;  %17796 = vmatprep.mubr.msk.bf16.mxu0 %vm19144_vm4, %v25041_v14  ;;  %v25168_v16 = vld [vmem:[#allocation12_spill] sm:$0xff] }
 0x35d   : > { %v22513_v10 = vpop.permute.xlu0 %9874  ;;  %17402 = vmatprep.subr.msk.bf16.mxu0 %vm349_vm1, %v10520_v4  ;;  %v9314_v4 = vsel %vm9306_vm2, %v22359_v12, %v25168_v16 }
 0x35e   : > { %12313 = vrot.lane.b32.xlu1 %v19258_v25, %s19159_s22 }
 0x35f   : > { %17355 = vmatmul.mubr.msk.bf16.vlgmr.msra.gmra.mrb[36].mxu1 %vm345_vm3, %v21860_v57  ;;  %12311 = vrot.lane.b32.xlu0 %v25088_v26, %s19159_s22  ;;  %v10544_v57 = vsel %vm349_vm1, %v10519_v17, 0  ;;  %v17401_v17 = vld [vmem:[%s24930_s1 + $0x88] sm:$0xff] }
 0x360   : > { %9436 = vmatpush1.bf16.msra.mxu1 %v9338_v6  ;;  %v22529_v63 = vpop.permute.xlu1 %9882  ;;  %9467 = vmatprep.mubr.bf16.mxu1 %v25042_v24  ;;  %v9313_v6 = vsel %vm9306_vm2, %v25169_v50, %v22359_v12 }
 0x361   : > { %17364 = vmatprep.subr.msk.bf16.mxu1 %vm349_vm1, %v9314_v4  ;;  %v22533_v32 = vpop.permute.xlu0 %10516  ;;  %v9350_v12 = vsel %vm349_vm1, %v9313_v6, 0  ;;  %v10528_v6 = vsel %vm10518_vm6, %v22417_v9, %v22413_v8  ;;  %v10536_v8 = vsel %vm10518_vm6, %v22494_v7, %v22490_v61 }
 0x362   : > { %11703 = vrot.lane.b32.xlu1 %v25161_v47, %s19158_s17 }
 0x363   : > { %12315 = vrot.lane.b32.xlu0 %v19331_v42, %s19159_s22  ;;  %17797 = vmatmul.mubr.msk.bf16.vlgmr.msra.gmra.mrb[16].mxu0 %vm345_vm3, %v22332_v49 }
 0x364   : > { %10607 = vmatpush1.bf16.msra.mxu0 %v10544_v57  ;;  %v22548_v16 = vpop.permute.xlu1 %11085  ;;  %10638 = vmatprep.mubr.bf16.mxu0 %v25042_v24  ;;  %v22567_v57 = vpack.c.bf16 %v17401_v17, %v17401_v17 }
 0x365   : > { %v22554_v4 = vpop.permute.xlu0 %11083  ;;  %17406 = vmatprep.subr.msk.bf16.mxu0 %vm349_vm1, %v10524_v37  ;;  %v9318_v37 = vsel %vm9306_vm2, %v22397_v39, %v21979_v31  ;;  %v25170_v31 = vld [vmem:[#allocation17_spill] sm:$0xff] }
 0x366   : > { %12321 = vrot.lane.b32.xlu1 %v19282_v34, %s19159_s22  ;;  %v9317_v17 = vsel %vm9306_vm2, %v25170_v31, %v22397_v39  ;;  %v9322_v39 = vsel %vm9306_vm2, %v22435_v18, %v22014_v22  ;;  %v25171_v22 = vld [vmem:[#allocation15_spill] sm:$0xff] }
 0x367   : > { %12319 = vrot.lane.b32.xlu0 %v25091_v46, %s19159_s22  ;;  %17361 = vmatmul.mubr.msk.bf16.vlgmr.msra.gmra.mrb[4].mxu1 %vm345_vm3, %v22091_v58 }
 0x368   : > { %9518 = vmatpush1.bf16.msra.mxu1 %v9350_v12  ;;  %v22572_v50 = vpop.permute.xlu1 %9890  ;;  %9549 = vmatprep.mubr.bf16.mxu1 %v25042_v24 }
 0x369   : > { %17368 = vmatprep.subr.msk.bf16.mxu1 %vm349_vm1, %v9318_v37  ;;  %v22576_v52 = vpop.permute.xlu0 %11087  ;;  %v10527_v37 = vsel %vm10518_vm6, %v22394_v60, %v22417_v9 }
 0x36a   : > { %11711 = vrot.lane.b32.xlu1 %v25163_v28, %s19158_s17  ;;  %v10568_v31 = vsel %vm349_vm1, %v10527_v37, 0 }
 0x36b   : > { %12323 = vrot.lane.b32.xlu0 %v19353_v44, %s19159_s22  ;;  %17403 = vmatmul.mubr.msk.bf16.vlgmr.msra.gmra.mrb[20].mxu0 %vm345_vm3, %v22567_v57 }
 0x36c   : > { %10689 = vmatpush1.bf16.msra.mxu0 %v10556_v15  ;;  %v22591_v12 = vpop.permute.xlu1 %11093  ;;  %10720 = vmatprep.mubr.bf16.mxu0 %v25042_v24  ;;  %v9362_v15 = vsel %vm349_vm1, %v9317_v17, 0  ;;  %v10532_v17 = vsel %vm10518_vm6, %v22459_v56, %v22455_v35  ;;  %v10531_v35 = vsel %vm10518_vm6, %v22432_v51, %v22459_v56 }
 0x36d   : > { %v22594_v2 = vpop.permute.xlu0 %11091  ;;  %17410 = vmatprep.subr.msk.bf16.mxu0 %vm349_vm1, %v10528_v6 }
 0x36e   : > { %12329 = vrot.lane.b32.xlu1 %v20201_v29, %s19159_s22 }
 0x36f   : > { %12327 = vrot.lane.b32.xlu0 %v19295_v38, %s19159_s22  ;;  %17365 = vmatmul.mubr.msk.bf16.vlgmr.msra.gmra.mrb[12].mxu1 %vm345_vm3, %v22091_v58 }
 0x370   : > { %9600 = vmatpush1.bf16.msra.mxu1 %v9362_v15  ;;  %v22610_v6 = vpop.permute.xlu1 %9898  ;;  %9631 = vmatprep.mubr.bf16.mxu1 %v25042_v24  ;;  %v9321_v15 = vsel %vm9306_vm2, %v25171_v22, %v22435_v18  ;;  %v10580_v22 = vsel %vm349_vm1, %v10531_v35, 0 }
 0x371   : > { %17372 = vmatprep.subr.msk.bf16.mxu1 %vm349_vm1, %v9322_v39  ;;  %v22614_v9 = vpop.permute.xlu0 %11095  ;;  %v9374_v18 = vsel %vm349_vm1, %v9321_v15, 0 }
 0x372   : > { %11719 = vrot.lane.b32.xlu1 %v19289_v36, %s19158_s17 }
 0x373   : > { %12331 = vrot.lane.b32.xlu0 %v20223_v48, %s19159_s22  ;;  %17407 = vmatmul.mubr.msk.bf16.vlgmr.msra.gmra.mrb[0].mxu0 %vm345_vm3, %v22567_v57 }
 0x374   : > { %10771 = vmatpush1.bf16.msra.mxu0 %v10568_v31  ;;  %v22629_v39 = vpop.permute.xlu1 %11101  ;;  %10802 = vmatprep.mubr.bf16.mxu0 %v25042_v24  ;;  %v9326_v31 = vsel %vm9306_vm2, %v22474_v21, %v22053_v62  ;;  %v9325_v62 = vsel %vm9306_vm2, %v22033_v19, %v22474_v21 }
 0x375   : > { %v22632_v37 = vpop.permute.xlu0 %11099  ;;  %17414 = vmatprep.subr.msk.bf16.mxu0 %vm349_vm1, %v10532_v17  ;;  %v9386_v19 = vsel %vm349_vm1, %v9325_v62, 0 }
 0x376   : > { %12337 = vrot.lane.b32.xlu1 %v22170_v1, %s19159_s22 }
 0x377   : > { %12335 = vrot.lane.b32.xlu0 %v22177_v41, %s19159_s22  ;;  %17369 = vmatmul.mubr.msk.bf16.vlgmr.msra.gmra.mrb[20].mxu1 %vm345_vm3, %v22091_v58 }
 0x378   : > { %9682 = vmatpush1.bf16.msra.mxu1 %v9374_v18  ;;  %v22648_v17 = vpop.permute.xlu1 %9906  ;;  %9713 = vmatprep.mubr.bf16.mxu1 %v25042_v24  ;;  %v10535_v18 = vsel %vm10518_vm6, %v22471_v43, %v22494_v7 }
 0x379   : > { %17376 = vmatprep.subr.msk.bf16.mxu1 %vm349_vm1, %v9326_v31  ;;  %v22652_v56 = vpop.permute.xlu0 %11103  ;;  %v10592_v31 = vsel %vm349_vm1, %v10535_v18, 0  ;;  %v10539_v18 = vsel %vm10518_vm6, %v22509_v0, %v22533_v32 }
 0x37a   : > { %25172 = vst [vmem:[#allocation39_spill] sm:$0xff] %v22652_v56  ;;  %12901 = vrot.lane.b32.xlu1 %v25079_v13, %s19160_s25  ;;  %v10604_v32 = vsel %vm349_vm1, %v10539_v18, 0 }
 0x37b   : > { %11727 = vrot.lane.b32.xlu0 %v22445_v11, %s19158_s17  ;;  %17411 = vmatmul.mubr.msk.bf16.vlgmr.msra.gmra.mrb[4].mxu0 %vm345_vm3, %v22567_v57 }
 0x37c   : > { %10853 = vmatpush1.bf16.msra.mxu0 %v10580_v22  ;;  %v22667_v35 = vpop.permute.xlu1 %11109  ;;  %10884 = vmatprep.mubr.bf16.mxu0 %v25042_v24 }
 0x37d   : > { %v22670_v15 = vpop.permute.xlu0 %11107  ;;  %17418 = vmatprep.subr.msk.bf16.mxu0 %vm349_vm1, %v10536_v8  ;;  %v9916_v8 = vsel %vm9912_vm5, %v22513_v10, %v22141_v59  ;;  %v9915_v59 = vsel %vm9912_vm5, %v22118_v27, %v22513_v10  ;;  %v9920_v10 = vsel %vm9912_vm5, %v22529_v63, %v22186_v23  ;;  %v25175_v23 = vld [vmem:[#allocation16_spill] sm:$0xff] }
 0x37e   : > { %12905 = vrot.lane.b32.xlu1 %v19280_v33, %s19160_s25  ;;  %v9944_v27 = vsel %vm349_vm1, %v9915_v59, 0 }
 0x37f   : > { %12903 = vrot.lane.b32.xlu0 %v19205_v3, %s19160_s25  ;;  %17373 = vmatmul.mubr.msk.bf16.vlgmr.msra.gmra.mrb[28].mxu1 %vm345_vm3, %v22091_v58 }
 0x380   : > { %9764 = vmatpush1.bf16.msra.mxu1 %v9386_v19  ;;  %v22686_v21 = vpop.permute.xlu1 %10480  ;;  %9795 = vmatprep.mubr.bf16.mxu1 %v25042_v24 }
 0x381   : > { %17382 = vmatprep.subr.msk.bf16.mxu1 %vm349_vm1, %v9916_v8  ;;  %v22690_v7 = vpop.permute.xlu0 %11111 }
 0x382   : > { %25173 = vst [vmem:[#allocation30_spill] sm:$0xff] %v22690_v7  ;;  %12909 = vrot.lane.b32.xlu1 %v25084_v54, %s19160_s25 }
 0x383   : > { %12301 = vrot.lane.b32.xlu0 %v25157_v55, %s19159_s22  ;;  %17415 = vmatmul.mubr.msk.bf16.vlgmr.msra.gmra.mrb[8].mxu0 %vm345_vm3, %v22567_v57 }
 0x384   : > { %10935 = vmatpush1.bf16.msra.mxu0 %v10592_v31  ;;  %v22702_v22 = vpop.permute.xlu1 %11117  ;;  %10966 = vmatprep.mubr.bf16.mxu0 %v25042_v24  ;;  %v9919_v31 = vsel %vm9912_vm5, %v25175_v23, %v22529_v63 }
 0x385   : > { %v22705_v62 = vpop.permute.xlu0 %11115  ;;  %17800 = vmatprep.subr.bf16.mxu0 %v25041_v14  ;;  %v9956_v63 = vsel %vm349_vm1, %v9919_v31, 0  ;;  %v17423_v31 = vld [vmem:[%s24930_s1 + $0x90] sm:$0xff] }
 0x386   : > { %12913 = vrot.lane.b32.xlu1 %v19309_v40, %s19160_s25 }
 0x387   : > { %12911 = vrot.lane.b32.xlu0 %v19244_v20, %s19160_s25  ;;  %17377 = vmatmul.mubr.msk.bf16.vlgmr.msra.gmra.mrb[36].mxu1 %vm345_vm3, %v22091_v58  ;;  %v11129_v58 = vsel %vm11127_vm7, %v22548_v16, %v22576_v52 }
 0x388   : > { %10042 = vmatpush1.bf16.msra.mxu1 %v9944_v27  ;;  %v22721_v19 = vpop.permute.xlu1 %10488  ;;  %10073 = vmatprep.mubr.bf16.mxu1 %v25042_v24  ;;  %v11128_v27 = vsel %vm11127_vm7, %v22554_v4, %v22548_v16 }
 0x389   : > { %17386 = vmatprep.subr.msk.bf16.mxu1 %vm349_vm1, %v9920_v10  ;;  %v22726_v8 = vpop.permute.xlu0 %11119  ;;  %v9924_v10 = vsel %vm9912_vm5, %v22572_v50, %v22224_v53  ;;  %v11153_v16 = vsel %vm349_vm1, %v11128_v27, 0  ;;  %v9923_v53 = vsel %vm9912_vm5, %v22204_v30, %v22572_v50  ;;  %v22798_v50 = vpack.c.bf16 %v17423_v31, %v17423_v31 }
 0x38a   : > { %25174 = vst [vmem:[#allocation27_spill] sm:$0xff] %v22726_v8  ;;  %12917 = vrot.lane.b32.xlu1 %v25088_v26, %s19160_s25  ;;  %v9968_v30 = vsel %vm349_vm1, %v9923_v53, 0  ;;  %v11137_v53 = vsel %vm11127_vm7, %v22629_v39, %v22652_v56  ;;  %v11141_v56 = vsel %vm11127_vm7, %v22667_v35, %v22690_v7 }
 0x38b   : > { %12309 = vrot.lane.b32.xlu0 %v25161_v47, %s19159_s22  ;;  %17419 = vmatmul.mubr.msk.bf16.vlgmr.msra.gmra.mrb[12].mxu0 %vm345_vm3, %v22567_v57 }
 0x38c   : > { %v22740_v59 = vpop.permute.xlu1 %11125  ;;  %17801 = vmatpush3.bf16.msra.mxu0 %v10604_v32  ;;  %17802 = vmatprep.mubr.msk.bf16.mxu0 %vm19144_vm4, %v25041_v14 }
 0x38d   : > { %v22744_v18 = vpop.permute.xlu0 %11123  ;;  %17424 = vmatprep.subr.msk.bf16.mxu0 %vm349_vm1, %v11129_v58  ;;  %v11133_v58 = vsel %vm11127_vm7, %v22591_v12, %v22614_v9 }
 0x38e   : > { %12921 = vrot.lane.b32.xlu1 %v19331_v42, %s19160_s25 }
 0x38f   : > { %12919 = vrot.lane.b32.xlu0 %v19258_v25, %s19160_s25  ;;  %17383 = vmatmul.mubr.msk.bf16.vlgmr.msra.gmra.mrb[4].mxu1 %vm345_vm3, %v22332_v49 }
 0x390   : > { %10124 = vmatpush1.bf16.msra.mxu1 %v9956_v63  ;;  %v22760_v32 = vpop.permute.xlu1 %11689  ;;  %10155 = vmatprep.mubr.bf16.mxu1 %v25042_v24  ;;  %v11132_v63 = vsel %vm11127_vm7, %v22594_v2, %v22591_v12 }
 0x391   : > { %17390 = vmatprep.subr.msk.bf16.mxu1 %vm349_vm1, %v9924_v10  ;;  %v22765_v4 = vpop.permute.xlu0 %10496  ;;  %v9928_v10 = vsel %vm9912_vm5, %v22610_v6, %v22260_v5  ;;  %v25177_v5 = vld [vmem:[#allocation18_spill] sm:$0xff] }
 0x392   : > { %12925 = vrot.lane.b32.xlu1 %v25091_v46, %s19160_s25  ;;  %v9927_v31 = vsel %vm9912_vm5, %v25177_v5, %v22610_v6 }
 0x393   : > { %12317 = vrot.lane.b32.xlu0 %v25163_v28, %s19159_s22  ;;  %17803 = vmatmul.mubr.msk.bf16.vlgmr.msra.gmra.mrb[16].mxu0 %vm345_vm3, %v22567_v57  ;;  %v9980_v6 = vsel %vm349_vm1, %v9927_v31, 0 }
 0x394   : > { %11216 = vmatpush1.bf16.msra.mxu0 %v11153_v16  ;;  %v22779_v23 = vpop.permute.xlu1 %11693  ;;  %11247 = vmatprep.mubr.bf16.mxu0 %v25042_v24 }
 0x395   : > { %25176 = vst [vmem:[#allocation33_spill] sm:$0xff] %v22779_v23  ;;  %v22785_v27 = vpop.permute.xlu0 %11691  ;;  %17428 = vmatprep.subr.msk.bf16.mxu0 %vm349_vm1, %v11133_v58  ;;  %v11165_v58 = vsel %vm349_vm1, %v11132_v63, 0 }
 0x396   : > { %12929 = vrot.lane.b32.xlu1 %v19353_v44, %s19160_s25 }
 0x397   : > { %12927 = vrot.lane.b32.xlu0 %v19282_v34, %s19160_s25  ;;  %17387 = vmatmul.mubr.msk.bf16.vlgmr.msra.gmra.mrb[12].mxu1 %vm345_vm3, %v22332_v49 }
 0x398   : > { %10206 = vmatpush1.bf16.msra.mxu1 %v9968_v30  ;;  %v22803_v16 = vpop.permute.xlu1 %11697  ;;  %10237 = vmatprep.mubr.bf16.mxu1 %v25042_v24 }
 0x399   : > { %17394 = vmatprep.subr.msk.bf16.mxu1 %vm349_vm1, %v9928_v10  ;;  %v22807_v12 = vpop.permute.xlu0 %10504  ;;  %v11136_v10 = vsel %vm11127_vm7, %v22632_v37, %v22629_v39 }
 0x39a   : > { %12933 = vrot.lane.b32.xlu1 %v19295_v38, %s19160_s25  ;;  %v11177_v5 = vsel %vm349_vm1, %v11136_v10, 0 }
 0x39b   : > { %12325 = vrot.lane.b32.xlu0 %v19289_v36, %s19159_s22  ;;  %17425 = vmatmul.mubr.msk.bf16.vlgmr.msra.gmra.mrb[20].mxu0 %vm345_vm3, %v22798_v50 }
 0x39c   : > { %11298 = vmatpush1.bf16.msra.mxu0 %v11165_v58  ;;  %v22822_v30 = vpop.permute.xlu1 %11701  ;;  %11329 = vmatprep.mubr.bf16.mxu0 %v25042_v24  ;;  %v9932_v58 = vsel %vm9912_vm5, %v22648_v17, %v22299_v45  ;;  %v25179_v45 = vld [vmem:[#allocation20_spill] sm:$0xff] }
 0x39d   : > { %25178 = vst [vmem:[#allocation29_spill] sm:$0xff] %v22822_v30  ;;  %v22825_v63 = vpop.permute.xlu0 %11699  ;;  %17432 = vmatprep.subr.msk.bf16.mxu0 %vm349_vm1, %v11137_v53  ;;  %v9931_v31 = vsel %vm9912_vm5, %v25179_v45, %v22648_v17 }
 0x39e   : > { %12937 = vrot.lane.b32.xlu1 %v20223_v48, %s19160_s25  ;;  %v9992_v17 = vsel %vm349_vm1, %v9931_v31, 0  ;;  %v11145_v31 = vsel %vm11127_vm7, %v22702_v22, %v22726_v8  ;;  %v11144_v8 = vsel %vm11127_vm7, %v22705_v62, %v22702_v22 }
 0x39f   : > { %12935 = vrot.lane.b32.xlu0 %v20201_v29, %s19160_s25  ;;  %17391 = vmatmul.mubr.msk.bf16.vlgmr.msra.gmra.mrb[20].mxu1 %vm345_vm3, %v22332_v49 }
 0x3a0   : > { %10288 = vmatpush1.bf16.msra.mxu1 %v9980_v6  ;;  %v22841_v53 = vpop.permute.xlu1 %11705  ;;  %10319 = vmatprep.mubr.bf16.mxu1 %v25042_v24 }
 0x3a1   : > { %17398 = vmatprep.subr.msk.bf16.mxu1 %vm349_vm1, %v9932_v58  ;;  %v22845_v39 = vpop.permute.xlu0 %10512  ;;  %v11140_v58 = vsel %vm11127_vm7, %v22670_v15, %v22667_v35 }
 0x3a2   : > { %12941 = vrot.lane.b32.xlu1 %v22177_v41, %s19160_s25  ;;  %v11189_v7 = vsel %vm349_vm1, %v11140_v58, 0 }
 0x3a3   : > { %12333 = vrot.lane.b32.xlu0 %v22445_v11, %s19159_s22  ;;  %17429 = vmatmul.mubr.msk.bf16.vlgmr.msra.gmra.mrb[0].mxu0 %vm345_vm3, %v22798_v50 }
 0x3a4   : > { %11380 = vmatpush1.bf16.msra.mxu0 %v11177_v5  ;;  %v22860_v6 = vpop.permute.xlu1 %11709  ;;  %11411 = vmatprep.mubr.bf16.mxu0 %v25042_v24  ;;  %v25180_v5 = vld [vmem:[#allocation35_spill] sm:$0xff] }
 0x3a5   : > { %v22863_v10 = vpop.permute.xlu0 %11707  ;;  %17436 = vmatprep.subr.msk.bf16.mxu0 %vm349_vm1, %v11141_v56  ;;  %v10522_v56 = vsel %vm10518_vm6, %v22686_v21, %v25180_v5 }
 0x3a6   : > { %12907 = vrot.lane.b32.xlu1 %v25157_v55, %s19160_s25 }
 0x3a7   : > { %17395 = vmatmul.mubr.msk.bf16.vlgmr.msra.gmra.mrb[28].mxu1 %vm345_vm3, %v22332_v49  ;;  %12943 = vrot.lane.b32.xlu0 %v22170_v1, %s19160_s25 }
 0x3a8   : > { %10370 = vmatpush1.bf16.msra.mxu1 %v9992_v17  ;;  %v22879_v45 = vpop.permute.xlu1 %11713  ;;  %10401 = vmatprep.mubr.bf16.mxu1 %v25042_v24  ;;  %v25181_v17 = vld [vmem:[#allocation36_spill] sm:$0xff] }
 0x3a9   : > { %17404 = vmatprep.subr.msk.bf16.mxu1 %vm349_vm1, %v10522_v56  ;;  %v22883_v35 = vpop.permute.xlu0 %11089  ;;  %v10521_v5 = vsel %vm10518_vm6, %v25181_v17, %v22686_v21 }
 0x3aa   : > { %13509 = vrot.lane.b32.xlu1 %v19205_v3, %s19161_s28  ;;  %v10550_v21 = vsel %vm349_vm1, %v10521_v5, 0 }
 0x3ab   : > { %17433 = vmatmul.mubr.msk.bf16.vlgmr.msra.gmra.mrb[4].mxu0 %vm345_vm3, %v22798_v50  ;;  %13507 = vrot.lane.b32.xlu0 %v25079_v13, %s19161_s28 }
 0x3ac   : > { %11462 = vmatpush1.bf16.msra.mxu0 %v11189_v7  ;;  %v22898_v58 = vpop.permute.xlu1 %11717  ;;  %11493 = vmatprep.mubr.bf16.mxu0 %v25042_v24  ;;  %v10526_v7 = vsel %vm10518_vm6, %v22721_v19, %v22394_v60  ;;  %v25182_v60 = vld [vmem:[#allocation38_spill] sm:$0xff] }
 0x3ad   : > { %v22901_v56 = vpop.permute.xlu0 %11715  ;;  %17440 = vmatprep.subr.msk.bf16.mxu0 %vm349_vm1, %v11145_v31  ;;  %v10525_v17 = vsel %vm10518_vm6, %v25182_v60, %v22721_v19 }
 0x3ae   : > { %12915 = vrot.lane.b32.xlu1 %v25161_v47, %s19160_s25  ;;  %v10562_v19 = vsel %vm349_vm1, %v10525_v17, 0  ;;  %v11735_v17 = vsel %vm11733_vm8, %v22785_v27, %v22779_v23  ;;  %v11734_v23 = vsel %vm11733_vm8, %v22760_v32, %v22785_v27 }
 0x3af   : > { %17399 = vmatmul.mubr.msk.bf16.vlgmr.msra.gmra.mrb[36].mxu1 %vm345_vm3, %v22332_v49  ;;  %13511 = vrot.lane.b32.xlu0 %v19280_v33, %s19161_s28  ;;  %v11201_v49 = vsel %vm349_vm1, %v11144_v8, 0  ;;  %v11148_v8 = vsel %vm11127_vm7, %v22744_v18, %v22740_v59  ;;  %v11759_v27 = vsel %vm349_vm1, %v11734_v23, 0  ;;  %v17445_v23 = vld [vmem:[%s24930_s1 + $0x98] sm:$0xff] }
 0x3b0   : > { %10648 = vmatpush1.bf16.msra.mxu1 %v10550_v21  ;;  %v22917_v31 = vpop.permute.xlu1 %11721  ;;  %10679 = vmatprep.mubr.bf16.mxu1 %v25042_v24  ;;  %v11213_v60 = vsel %vm349_vm1, %v11148_v8, 0 }
 0x3b1   : > { %17408 = vmatprep.subr.msk.bf16.mxu1 %vm349_vm1, %v10526_v7  ;;  %v22921_v22 = vpop.permute.xlu0 %11097  ;;  %v10530_v7 = vsel %vm10518_vm6, %v22765_v4, %v22432_v51  ;;  %v25183_v51 = vld [vmem:[#allocation37_spill] sm:$0xff] }
 0x3b2   : > { %13517 = vrot.lane.b32.xlu1 %v19244_v20, %s19161_s28 }
 0x3b3   : > { %17437 = vmatmul.mubr.msk.bf16.vlgmr.msra.gmra.mrb[8].mxu0 %vm345_vm3, %v22798_v50  ;;  %13515 = vrot.lane.b32.xlu0 %v25084_v54, %s19161_s28 }
 0x3b4   : > { %11544 = vmatpush1.bf16.msra.mxu0 %v11201_v49  ;;  %v22933_v5 = vpop.permute.xlu1 %11725  ;;  %11575 = vmatprep.mubr.bf16.mxu0 %v25042_v24 }
 0x3b5   : > { %v22936_v21 = vpop.permute.xlu0 %11723  ;;  %17806 = vmatprep.subr.bf16.mxu0 %v25041_v14 }
 0x3b6   : > { %12923 = vrot.lane.b32.xlu1 %v25163_v28, %s19160_s25 }
 0x3b7   : > { %17405 = vmatmul.mubr.msk.bf16.vlgmr.msra.gmra.mrb[4].mxu1 %vm345_vm3, %v22567_v57  ;;  %13519 = vrot.lane.b32.xlu0 %v19309_v40, %s19161_s28 }
 0x3b8   : > { %10730 = vmatpush1.bf16.msra.mxu1 %v10562_v19  ;;  %v22952_v49 = vpop.permute.xlu1 %11729  ;;  %10761 = vmatprep.mubr.bf16.mxu1 %v25042_v24  ;;  %v10529_v19 = vsel %vm10518_vm6, %v25183_v51, %v22765_v4  ;;  %v11739_v51 = vsel %vm11733_vm8, %v22825_v63, %v22822_v30  ;;  %v11738_v30 = vsel %vm11733_vm8, %v22803_v16, %v22825_v63 }
 0x3b9   : > { %17412 = vmatprep.subr.msk.bf16.mxu1 %vm349_vm1, %v10530_v7  ;;  %v22956_v59 = vpop.permute.xlu0 %11105  ;;  %v10574_v4 = vsel %vm349_vm1, %v10529_v19, 0 }
 0x3ba   : > { %13525 = vrot.lane.b32.xlu1 %v19258_v25, %s19161_s28 }
 0x3bb   : > { %17441 = vmatmul.mubr.msk.bf16.vlgmr.msra.gmra.mrb[12].mxu0 %vm345_vm3, %v22798_v50  ;;  %13523 = vrot.lane.b32.xlu0 %v25088_v26, %s19161_s28 }
 0x3bc   : > { %v22971_v7 = vpop.permute.xlu1 %11113  ;;  %17807 = vmatpush3.bf16.msra.mxu0 %v11213_v60  ;;  %17808 = vmatprep.mubr.msk.bf16.mxu0 %vm19144_vm4, %v25041_v14  ;;  %v10534_v60 = vsel %vm10518_vm6, %v22807_v12, %v22471_v43  ;;  %v25184_v43 = vld [vmem:[#allocation28_spill] sm:$0xff] }
 0x3bd   : > { %v22975_v8 = vpop.permute.xlu0 %11731  ;;  %17446 = vmatprep.subr.msk.bf16.mxu0 %vm349_vm1, %v11735_v17  ;;  %v10533_v19 = vsel %vm10518_vm6, %v25184_v43, %v22807_v12 }
 0x3be   : > { %12931 = vrot.lane.b32.xlu1 %v19289_v36, %s19160_s25  ;;  %v10586_v12 = vsel %vm349_vm1, %v10533_v19, 0  ;;  %v11771_v19 = vsel %vm349_vm1, %v11738_v30, 0 }
 0x3bf   : > { %17409 = vmatmul.mubr.msk.bf16.vlgmr.msra.gmra.mrb[12].mxu1 %vm345_vm3, %v22567_v57  ;;  %13527 = vrot.lane.b32.xlu0 %v19331_v42, %s19161_s28 }
 0x3c0   : > { %10812 = vmatpush1.bf16.msra.mxu1 %v10574_v4  ;;  %v22991_v17 = vpop.permute.xlu1 %12297  ;;  %10843 = vmatprep.mubr.bf16.mxu1 %v25042_v24 }
 0x3c1   : > { %17416 = vmatprep.subr.msk.bf16.mxu1 %vm349_vm1, %v10534_v60  ;;  %v22995_v32 = vpop.permute.xlu0 %12295 }
 0x3c2   : > { %13533 = vrot.lane.b32.xlu1 %v19282_v34, %s19161_s28 }
 0x3c3   : > { %17809 = vmatmul.mubr.msk.bf16.vlgmr.msra.gmra.mrb[16].mxu0 %vm345_vm3, %v22798_v50  ;;  %13531 = vrot.lane.b32.xlu0 %v25091_v46, %s19161_s28 }
 0x3c4   : > { %11822 = vmatpush1.bf16.msra.mxu0 %v11759_v27  ;;  %v23010_v4 = vpop.permute.xlu1 %11121  ;;  %11853 = vmatprep.mubr.bf16.mxu0 %v25042_v24  ;;  %v23027_v27 = vpack.c.bf16 %v17445_v23, %v17445_v23  ;;  %v11743_v23 = vsel %vm11733_vm8, %v22863_v10, %v22860_v6 }
 0x3c5   : > { %v23016_v60 = vpop.permute.xlu0 %12299  ;;  %17450 = vmatprep.subr.msk.bf16.mxu0 %vm349_vm1, %v11739_v51  ;;  %v10538_v51 = vsel %vm10518_vm6, %v22845_v39, %v22509_v0  ;;  %v10537_v0 = vsel %vm10518_vm6, %v22490_v61, %v22845_v39  ;;  %v11131_v39 = vsel %vm11127_vm7, %v22883_v35, %v22594_v2  ;;  %v11130_v2 = vsel %vm11127_vm7, %v22576_v52, %v22883_v35 }
 0x3c6   : > { %25185 = vst [vmem:[#allocation32_spill] sm:$0xff] %v23016_v60  ;;  %12939 = vrot.lane.b32.xlu1 %v22445_v11, %s19160_s25  ;;  %v10598_v61 = vsel %vm349_vm1, %v10537_v0, 0  ;;  %v11747_v0 = vsel %vm11733_vm8, %v22901_v56, %v22898_v58  ;;  %v11159_v52 = vsel %vm349_vm1, %v11130_v2, 0  ;;  %v11135_v35 = vsel %vm11127_vm7, %v22921_v22, %v22632_v37 }
 0x3c7   : > { %17413 = vmatmul.mubr.msk.bf16.vlgmr.msra.gmra.mrb[20].mxu1 %vm345_vm3, %v22567_v57  ;;  %13535 = vrot.lane.b32.xlu0 %v19353_v44, %s19161_s28  ;;  %v11134_v37 = vsel %vm11127_vm7, %v22614_v9, %v22921_v22  ;;  %v11139_v22 = vsel %vm11127_vm7, %v22956_v59, %v22670_v15  ;;  %v25188_v15 = vld [vmem:[#allocation39_spill] sm:$0xff] }
 0x3c8   : > { %10894 = vmatpush1.bf16.msra.mxu1 %v10586_v12  ;;  %v23034_v43 = vpop.permute.xlu1 %12305  ;;  %10925 = vmatprep.mubr.bf16.mxu1 %v25042_v24  ;;  %v11171_v9 = vsel %vm349_vm1, %v11134_v37, 0 }
 0x3c9   : > { %17420 = vmatprep.subr.msk.bf16.mxu1 %vm349_vm1, %v10538_v51  ;;  %v23038_v63 = vpop.permute.xlu0 %12303  ;;  %v11742_v51 = vsel %vm11733_vm8, %v22841_v53, %v22863_v10 }
 0x3ca   : > { %13541 = vrot.lane.b32.xlu1 %v20201_v29, %s19161_s28 }
 0x3cb   : > { %17447 = vmatmul.mubr.msk.bf16.vlgmr.msra.gmra.mrb[20].mxu0 %vm345_vm3, %v23027_v27  ;;  %13539 = vrot.lane.b32.xlu0 %v19295_v38, %s19161_s28 }
 0x3cc   : > { %11904 = vmatpush1.bf16.msra.mxu0 %v11771_v19  ;;  %v23053_v12 = vpop.permute.xlu1 %11695  ;;  %11935 = vmatprep.mubr.bf16.mxu0 %v25042_v24 }
 0x3cd   : > { %v23056_v30 = vpop.permute.xlu0 %12307  ;;  %17454 = vmatprep.subr.msk.bf16.mxu0 %vm349_vm1, %v11743_v23  ;;  %v11783_v23 = vsel %vm349_vm1, %v11742_v51, 0 }
 0x3ce   : > { %25186 = vst [vmem:[#allocation31_spill] sm:$0xff] %v23056_v30  ;;  %13513 = vrot.lane.b32.xlu1 %v25157_v55, %s19161_s28 }
 0x3cf   : > { %17417 = vmatmul.mubr.msk.bf16.vlgmr.msra.gmra.mrb[28].mxu1 %vm345_vm3, %v22567_v57  ;;  %13543 = vrot.lane.b32.xlu0 %v20223_v48, %s19161_s28 }
 0x3d0   : > { %10976 = vmatpush1.bf16.msra.mxu1 %v10598_v61  ;;  %v23072_v19 = vpop.permute.xlu1 %12313  ;;  %11007 = vmatprep.mubr.bf16.mxu1 %v25042_v24 }
 0x3d1   : > { %17426 = vmatprep.subr.msk.bf16.mxu1 %vm349_vm1, %v11131_v39  ;;  %v23076_v10 = vpop.permute.xlu0 %12311  ;;  %v11746_v39 = vsel %vm11733_vm8, %v22879_v45, %v22901_v56 }
 0x3d2   : > { %13549 = vrot.lane.b32.xlu1 %v22170_v1, %s19161_s28 }
 0x3d3   : > { %17451 = vmatmul.mubr.msk.bf16.vlgmr.msra.gmra.mrb[0].mxu0 %vm345_vm3, %v23027_v27  ;;  %13547 = vrot.lane.b32.xlu0 %v22177_v41, %s19161_s28 }
 0x3d4   : > { %11986 = vmatpush1.bf16.msra.mxu0 %v11783_v23  ;;  %v23091_v61 = vpop.permute.xlu1 %11703  ;;  %12017 = vmatprep.mubr.bf16.mxu0 %v25042_v24 }
 0x3d5   : > { %v23094_v51 = vpop.permute.xlu0 %12315  ;;  %17458 = vmatprep.subr.msk.bf16.mxu0 %vm349_vm1, %v11747_v0  ;;  %v11751_v0 = vsel %vm11733_vm8, %v22936_v21, %v22933_v5 }
 0x3d6   : > { %25187 = vst [vmem:[#allocation10_spill] sm:$0xff] %v23094_v51  ;;  %14113 = vrot.lane.b32.xlu1 %v25079_v13, %s19162_s4 }
 0x3d7   : > { %17421 = vmatmul.mubr.msk.bf16.vlgmr.msra.gmra.mrb[36].mxu1 %vm345_vm3, %v22567_v57  ;;  %13521 = vrot.lane.b32.xlu0 %v25161_v47, %s19161_s28  ;;  %v11795_v57 = vsel %vm349_vm1, %v11746_v39, 0 }
 0x3d8   : > { %11257 = vmatpush1.bf16.msra.mxu1 %v11159_v52  ;;  %v23110_v23 = vpop.permute.xlu1 %12321  ;;  %11288 = vmatprep.mubr.bf16.mxu1 %v25042_v24  ;;  %v11750_v52 = vsel %vm11733_vm8, %v22917_v31, %v22936_v21 }
 0x3d9   : > { %17430 = vmatprep.subr.msk.bf16.mxu1 %vm349_vm1, %v11135_v35  ;;  %v23114_v56 = vpop.permute.xlu0 %12319 }
 0x3da   : > { %14117 = vrot.lane.b32.xlu1 %v19280_v33, %s19162_s4 }
 0x3db   : > { %17455 = vmatmul.mubr.msk.bf16.vlgmr.msra.gmra.mrb[4].mxu0 %vm345_vm3, %v23027_v27  ;;  %14115 = vrot.lane.b32.xlu0 %v19205_v3, %s19162_s4 }
 0x3dc   : > { %12068 = vmatpush1.bf16.msra.mxu0 %v11795_v57  ;;  %v23129_v2 = vpop.permute.xlu1 %11711  ;;  %12099 = vmatprep.mubr.bf16.mxu0 %v25042_v24  ;;  %v11807_v57 = vsel %vm349_vm1, %v11750_v52, 0  ;;  %v11754_v52 = vsel %vm11733_vm8, %v22952_v49, %v22975_v8 }
 0x3dd   : > { %v23132_v39 = vpop.permute.xlu0 %12323  ;;  %17462 = vmatprep.subr.msk.bf16.mxu0 %vm349_vm1, %v11751_v0  ;;  %v11138_v0 = vsel %vm11127_vm7, %v25188_v15, %v22956_v59 }
 0x3de   : > { %14121 = vrot.lane.b32.xlu1 %v25084_v54, %s19162_s4  ;;  %v11183_v59 = vsel %vm349_vm1, %v11138_v0, 0  ;;  %v12341_v0 = vsel %vm12339_vm9, %v22991_v17, %v23016_v60  ;;  %v12340_v60 = vsel %vm12339_vm9, %v22995_v32, %v22991_v17 }
 0x3df   : > { %17427 = vmatmul.mubr.msk.bf16.vlgmr.msra.gmra.mrb[4].mxu1 %vm345_vm3, %v22798_v50  ;;  %13529 = vrot.lane.b32.xlu0 %v25163_v28, %s19161_s28  ;;  %v12365_v17 = vsel %vm349_vm1, %v12340_v60, 0 }
 0x3e0   : > { %11339 = vmatpush1.bf16.msra.mxu1 %v11171_v9  ;;  %v23148_v35 = vpop.permute.xlu1 %12329  ;;  %11370 = vmatprep.mubr.bf16.mxu1 %v25042_v24 }
 0x3e1   : > { %17434 = vmatprep.subr.msk.bf16.mxu1 %vm349_vm1, %v11139_v22  ;;  %v23152_v21 = vpop.permute.xlu0 %12327  ;;  %v11143_v22 = vsel %vm11127_vm7, %v22971_v7, %v22705_v62  ;;  %v25189_v62 = vld [vmem:[#allocation30_spill] sm:$0xff] }
 0x3e2   : > { %14125 = vrot.lane.b32.xlu1 %v19309_v40, %s19162_s4 }
 0x3e3   : > { %17459 = vmatmul.mubr.msk.bf16.vlgmr.msra.gmra.mrb[8].mxu0 %vm345_vm3, %v23027_v27  ;;  %14123 = vrot.lane.b32.xlu0 %v19244_v20, %s19162_s4 }
 0x3e4   : > { %12150 = vmatpush1.bf16.msra.mxu0 %v11807_v57  ;;  %v23164_v37 = vpop.permute.xlu1 %11719  ;;  %12181 = vmatprep.mubr.bf16.mxu0 %v25042_v24  ;;  %v11819_v57 = vsel %vm349_vm1, %v11754_v52, 0  ;;  %v11142_v52 = vsel %vm11127_vm7, %v25189_v62, %v22971_v7  ;;  %v12345_v62 = vsel %vm12339_vm9, %v23034_v43, %v23056_v30  ;;  %v12344_v30 = vsel %vm12339_vm9, %v23038_v63, %v23034_v43 }
 0x3e5   : > { %v23167_v9 = vpop.permute.xlu0 %12331  ;;  %17812 = vmatprep.subr.bf16.mxu0 %v25041_v14  ;;  %v11195_v7 = vsel %vm349_vm1, %v11142_v52, 0  ;;  %v17467_v52 = vld [vmem:[%s24930_s1 + $0xa0] sm:$0xff] }
 0x3e6   : > { %14129 = vrot.lane.b32.xlu1 %v25088_v26, %s19162_s4 }
 0x3e7   : > { %17431 = vmatmul.mubr.msk.bf16.vlgmr.msra.gmra.mrb[12].mxu1 %vm345_vm3, %v22798_v50  ;;  %13537 = vrot.lane.b32.xlu0 %v19289_v36, %s19161_s28 }
 0x3e8   : > { %11421 = vmatpush1.bf16.msra.mxu1 %v11183_v59  ;;  %11452 = vmatprep.mubr.bf16.mxu1 %v25042_v24  ;;  %v23184_v8 = vpop.permute.xlu1 %12337 }
 0x3e9   : > { %17438 = vmatprep.subr.msk.bf16.mxu1 %vm349_vm1, %v11143_v22  ;;  %v23188_v15 = vpop.permute.xlu0 %12335 }
 0x3ea   : > { %14133 = vrot.lane.b32.xlu1 %v19331_v42, %s19162_s4 }
 0x3eb   : > { %17463 = vmatmul.mubr.msk.bf16.vlgmr.msra.gmra.mrb[12].mxu0 %vm345_vm3, %v23027_v27  ;;  %14131 = vrot.lane.b32.xlu0 %v19258_v25, %s19162_s4 }
 0x3ec   : > { %17813 = vmatpush3.bf16.msra.mxu0 %v11819_v57  ;;  %17814 = vmatprep.mubr.msk.bf16.mxu0 %vm19144_vm4, %v25041_v14  ;;  %v23204_v59 = vpop.permute.xlu1 %12901  ;;  %v11147_v57 = vsel %vm11127_vm7, %v23010_v4, %v22744_v18  ;;  %v25190_v18 = vld [vmem:[#allocation27_spill] sm:$0xff] }
 0x3ed   : > { %v23206_v22 = vpop.permute.xlu0 %11727  ;;  %17468 = vmatprep.subr.msk.bf16.mxu0 %vm349_vm1, %v12341_v0  ;;  %v11146_v60 = vsel %vm11127_vm7, %v25190_v18, %v23010_v4 }
 0x3ee   : > { %14137 = vrot.lane.b32.xlu1 %v25091_v46, %s19162_s4  ;;  %v11207_v4 = vsel %vm349_vm1, %v11146_v60, 0  ;;  %v12377_v60 = vsel %vm349_vm1, %v12344_v30, 0 }
 0x3ef   : > { %17435 = vmatmul.mubr.msk.bf16.vlgmr.msra.gmra.mrb[20].mxu1 %vm345_vm3, %v22798_v50  ;;  %13545 = vrot.lane.b32.xlu0 %v22445_v11, %s19161_s28 }
 0x3f0   : > { %11503 = vmatpush1.bf16.msra.mxu1 %v11195_v7  ;;  %11534 = vmatprep.mubr.bf16.mxu1 %v25042_v24  ;;  %v23223_v0 = vpop.permute.xlu1 %12905 }
 0x3f1   : > { %17442 = vmatprep.subr.msk.bf16.mxu1 %vm349_vm1, %v11147_v57  ;;  %v23227_v32 = vpop.permute.xlu0 %12903 }
 0x3f2   : > { %14141 = vrot.lane.b32.xlu1 %v19353_v44, %s19162_s4 }
 0x3f3   : > { %17815 = vmatmul.mubr.msk.bf16.vlgmr.msra.gmra.mrb[16].mxu0 %vm345_vm3, %v23027_v27  ;;  %14139 = vrot.lane.b32.xlu0 %v19282_v34, %s19162_s4 }
 0x3f4   : > { %12428 = vmatpush1.bf16.msra.mxu0 %v12365_v17  ;;  %12459 = vmatprep.mubr.bf16.mxu0 %v25042_v24  ;;  %v23245_v7 = vpop.permute.xlu1 %12909  ;;  %v23258_v17 = vpack.c.bf16 %v17467_v52, %v17467_v52  ;;  %v12349_v52 = vsel %vm12339_vm9, %v23072_v19, %v23094_v51  ;;  %v12348_v51 = vsel %vm12339_vm9, %v23076_v10, %v23072_v19 }
 0x3f5   : > { %v23247_v57 = vpop.permute.xlu0 %12301  ;;  %17472 = vmatprep.subr.msk.bf16.mxu0 %vm349_vm1, %v12345_v62  ;;  %v11737_v62 = vsel %vm11733_vm8, %v23053_v12, %v22803_v16  ;;  %v25192_v16 = vld [vmem:[#allocation33_spill] sm:$0xff] }
 0x3f6   : > { %14145 = vrot.lane.b32.xlu1 %v19295_v38, %s19162_s4 }
 0x3f7   : > { %17439 = vmatmul.mubr.msk.bf16.vlgmr.msra.gmra.mrb[28].mxu1 %vm345_vm3, %v22798_v50  ;;  %14119 = vrot.lane.b32.xlu0 %v25157_v55, %s19162_s4 }
 0x3f8   : > { %11585 = vmatpush1.bf16.msra.mxu1 %v11207_v4  ;;  %11616 = vmatprep.mubr.bf16.mxu1 %v25042_v24  ;;  %v23266_v43 = vpop.permute.xlu1 %12913  ;;  %v11736_v4 = vsel %vm11733_vm8, %v25192_v16, %v23053_v12  ;;  %v12353_v16 = vsel %vm12339_vm9, %v23110_v23, %v23132_v39 }
 0x3f9   : > { %25191 = vst [vmem:[#allocation2_spill] sm:$0xff] %v23266_v43  ;;  %17448 = vmatprep.subr.msk.bf16.mxu1 %vm349_vm1, %v11737_v62  ;;  %v23269_v18 = vpop.permute.xlu0 %12911  ;;  %v11765_v12 = vsel %vm349_vm1, %v11736_v4, 0 }
 0x3fa   : > { %14149 = vrot.lane.b32.xlu1 %v20223_v48, %s19162_s4 }
 0x3fb   : > { %17469 = vmatmul.mubr.msk.bf16.vlgmr.msra.gmra.mrb[20].mxu0 %vm345_vm3, %v23258_v17  ;;  %14147 = vrot.lane.b32.xlu0 %v20201_v29, %s19162_s4 }
 0x3fc   : > { %12510 = vmatpush1.bf16.msra.mxu0 %v12377_v60  ;;  %12541 = vmatprep.mubr.bf16.mxu0 %v25042_v24  ;;  %v23285_v30 = vpop.permute.xlu1 %12917  ;;  %v11741_v60 = vsel %vm11733_vm8, %v23091_v61, %v22841_v53  ;;  %v25193_v53 = vld [vmem:[#allocation29_spill] sm:$0xff] }
 0x3fd   : > { %v23287_v62 = vpop.permute.xlu0 %12309  ;;  %17476 = vmatprep.subr.msk.bf16.mxu0 %vm349_vm1, %v12349_v52  ;;  %v11740_v4 = vsel %vm11733_vm8, %v25193_v53, %v23091_v61 }
 0x3fe   : > { %14153 = vrot.lane.b32.xlu1 %v22177_v41, %s19162_s4  ;;  %v11777_v61 = vsel %vm349_vm1, %v11740_v4, 0  ;;  %v12357_v4 = vsel %vm12339_vm9, %v23148_v35, %v23167_v9 }
 0x3ff   : > { %17443 = vmatmul.mubr.msk.bf16.vlgmr.msra.gmra.mrb[36].mxu1 %vm345_vm3, %v22798_v50  ;;  %14127 = vrot.lane.b32.xlu0 %v25161_v47, %s19162_s4  ;;  %v12389_v50 = vsel %vm349_vm1, %v12348_v51, 0 }
 0x400   : > { %11863 = vmatpush1.bf16.msra.mxu1 %v11765_v12  ;;  %11894 = vmatprep.mubr.bf16.mxu1 %v25042_v24  ;;  %v23304_v52 = vpop.permute.xlu1 %12921 }
 0x401   : > { %17452 = vmatprep.subr.msk.bf16.mxu1 %vm349_vm1, %v11741_v60  ;;  %v23307_v19 = vpop.permute.xlu0 %12919  ;;  %v12352_v60 = vsel %vm12339_vm9, %v23114_v56, %v23110_v23 }
 0x402   : > { %14135 = vrot.lane.b32.xlu1 %v25163_v28, %s19162_s4  ;;  %v12401_v53 = vsel %vm349_vm1, %v12352_v60, 0 }
 0x403   : > { %17473 = vmatmul.mubr.msk.bf16.vlgmr.msra.gmra.mrb[0].mxu0 %vm345_vm3, %v23258_v17  ;;  %14155 = vrot.lane.b32.xlu0 %v22170_v1, %s19162_s4 }
 0x404   : > { %12592 = vmatpush1.bf16.msra.mxu0 %v12389_v50  ;;  %12623 = vmatprep.mubr.bf16.mxu0 %v25042_v24  ;;  %v23323_v51 = vpop.permute.xlu1 %12925  ;;  %v11745_v50 = vsel %vm11733_vm8, %v23129_v2, %v22879_v45  ;;  %v11744_v45 = vsel %vm11733_vm8, %v22860_v6, %v23129_v2  ;;  %v11749_v2 = vsel %vm11733_vm8, %v23164_v37, %v22917_v31 }
 0x405   : > { %v23325_v12 = vpop.permute.xlu0 %12317  ;;  %17480 = vmatprep.subr.msk.bf16.mxu0 %vm349_vm1, %v12353_v16  ;;  %v11789_v6 = vsel %vm349_vm1, %v11744_v45, 0  ;;  %v11748_v31 = vsel %vm11733_vm8, %v22898_v58, %v23164_v37  ;;  %v11753_v37 = vsel %vm11733_vm8, %v23206_v22, %v22952_v49  ;;  %v11752_v49 = vsel %vm11733_vm8, %v22933_v5, %v23206_v22 }
 0x406   : > { %14721 = vrot.lane.b32.xlu1 %v19205_v3, %s19163_s7  ;;  %v11801_v58 = vsel %vm349_vm1, %v11748_v31, 0  ;;  %v12947_v31 = vsel %vm12945_vm10, %v23227_v32, %v23223_v0  ;;  %v11813_v5 = vsel %vm349_vm1, %v11752_v49, 0  ;;  %v12343_v22 = vsel %vm12339_vm9, %v23247_v57, %v23038_v63  ;;  %v25195_v63 = vld [vmem:[#allocation32_spill] sm:$0xff] }
 0x407   : > { %17449 = vmatmul.mubr.msk.bf16.vlgmr.msra.gmra.mrb[4].mxu1 %vm345_vm3, %v23027_v27  ;;  %14719 = vrot.lane.b32.xlu0 %v25079_v13, %s19163_s7  ;;  %v12342_v49 = vsel %vm12339_vm9, %v25195_v63, %v23247_v57 }
 0x408   : > { %11945 = vmatpush1.bf16.msra.mxu1 %v11777_v61  ;;  %11976 = vmatprep.mubr.bf16.mxu1 %v25042_v24  ;;  %v23342_v23 = vpop.permute.xlu1 %12929  ;;  %v12371_v57 = vsel %vm349_vm1, %v12342_v49, 0  ;;  %v12955_v49 = vsel %vm12945_vm10, %v23307_v19, %v23304_v52 }
 0x409   : > { %25194 = vst [vmem:[#allocation9_spill] sm:$0xff] %v23342_v23  ;;  %17456 = vmatprep.subr.msk.bf16.mxu1 %vm349_vm1, %v11745_v50  ;;  %v23345_v16 = vpop.permute.xlu0 %12927  ;;  %v12356_v50 = vsel %vm12339_vm9, %v23152_v21, %v23148_v35 }
 0x40a   : > { %14143 = vrot.lane.b32.xlu1 %v19289_v36, %s19162_s4 }
 0x40b   : > { %17477 = vmatmul.mubr.msk.bf16.vlgmr.msra.gmra.mrb[4].mxu0 %vm345_vm3, %v23258_v17  ;;  %14723 = vrot.lane.b32.xlu0 %v19280_v33, %s19163_s7 }
 0x40c   : > { %12674 = vmatpush1.bf16.msra.mxu0 %v12401_v53  ;;  %12705 = vmatprep.mubr.bf16.mxu0 %v25042_v24  ;;  %v23361_v60 = vpop.permute.xlu1 %12933 }
 0x40d   : > { %v23363_v61 = vpop.permute.xlu0 %12325  ;;  %17484 = vmatprep.subr.msk.bf16.mxu0 %vm349_vm1, %v12357_v4  ;;  %v12413_v4 = vsel %vm349_vm1, %v12356_v50, 0  ;;  %v12360_v50 = vsel %vm12339_vm9, %v23188_v15, %v23184_v8 }
 0x40e   : > { %14729 = vrot.lane.b32.xlu1 %v19244_v20, %s19163_s7 }
 0x40f   : > { %17453 = vmatmul.mubr.msk.bf16.vlgmr.msra.gmra.mrb[12].mxu1 %vm345_vm3, %v23027_v27  ;;  %14727 = vrot.lane.b32.xlu0 %v25084_v54, %s19163_s7 }
 0x410   : > { %12027 = vmatpush1.bf16.msra.mxu1 %v11789_v6  ;;  %12058 = vmatprep.mubr.bf16.mxu1 %v25042_v24  ;;  %v23380_v53 = vpop.permute.xlu1 %12937 }
 0x411   : > { %17460 = vmatprep.subr.msk.bf16.mxu1 %vm349_vm1, %v11749_v2  ;;  %v23383_v35 = vpop.permute.xlu0 %12935  ;;  %v12425_v2 = vsel %vm349_vm1, %v12360_v50, 0 }
 0x412   : > { %14151 = vrot.lane.b32.xlu1 %v22445_v11, %s19162_s4 }
 0x413   : > { %17481 = vmatmul.mubr.msk.bf16.vlgmr.msra.gmra.mrb[8].mxu0 %vm345_vm3, %v23258_v17  ;;  %14731 = vrot.lane.b32.xlu0 %v19309_v40, %s19163_s7 }
 0x414   : > { %12756 = vmatpush1.bf16.msra.mxu0 %v12413_v4  ;;  %12787 = vmatprep.mubr.bf16.mxu0 %v25042_v24  ;;  %v23396_v45 = vpop.permute.xlu1 %12941 }
 0x415   : > { %v23398_v6 = vpop.permute.xlu0 %12333  ;;  %17818 = vmatprep.subr.bf16.mxu0 %v25041_v14 }
 0x416   : > { %14737 = vrot.lane.b32.xlu1 %v19258_v25, %s19163_s7 }
 0x417   : > { %17457 = vmatmul.mubr.msk.bf16.vlgmr.msra.gmra.mrb[20].mxu1 %vm345_vm3, %v23027_v27  ;;  %14735 = vrot.lane.b32.xlu0 %v25088_v26, %s19163_s7 }
 0x418   : > { %12109 = vmatpush1.bf16.msra.mxu1 %v11801_v58  ;;  %12140 = vmatprep.mubr.bf16.mxu1 %v25042_v24  ;;  %v23415_v8 = vpop.permute.xlu1 %12907 }
 0x419   : > { %17464 = vmatprep.subr.msk.bf16.mxu1 %vm349_vm1, %v11753_v37  ;;  %v23419_v4 = vpop.permute.xlu0 %12943  ;;  %v12946_v37 = vsel %vm12945_vm10, %v23204_v59, %v23227_v32 }
 0x41a   : > { %14725 = vrot.lane.b32.xlu1 %v25157_v55, %s19163_s7  ;;  %v12971_v59 = vsel %vm349_vm1, %v12946_v37, 0  ;;  %v17489_v37 = vld [vmem:[%s24930_s1 + $0xa8] sm:$0xff] }
 0x41b   : > { %17485 = vmatmul.mubr.msk.bf16.vlgmr.msra.gmra.mrb[12].mxu0 %vm345_vm3, %v23258_v17  ;;  %14739 = vrot.lane.b32.xlu0 %v19331_v42, %s19163_s7 }
 0x41c   : > { %17819 = vmatpush3.bf16.msra.mxu0 %v12425_v2  ;;  %17820 = vmatprep.mubr.msk.bf16.mxu0 %vm19144_vm4, %v25041_v14  ;;  %v23435_v50 = vpop.permute.xlu1 %13509 }
 0x41d   : > { %17490 = vmatprep.subr.msk.bf16.mxu0 %vm349_vm1, %v12947_v31  ;;  %v23438_v58 = vpop.permute.xlu0 %13507  ;;  %v12951_v31 = vsel %vm12945_vm10, %v23269_v18, %v23266_v43  ;;  %v12950_v43 = vsel %vm12945_vm10, %v23245_v7, %v23269_v18 }
 0x41e   : > { %14745 = vrot.lane.b32.xlu1 %v19282_v34, %s19163_s7 }
 0x41f   : > { %17461 = vmatmul.mubr.msk.bf16.vlgmr.msra.gmra.mrb[28].mxu1 %vm345_vm3, %v23027_v27  ;;  %14743 = vrot.lane.b32.xlu0 %v25091_v46, %s19163_s7 }
 0x420   : > { %12191 = vmatpush1.bf16.msra.mxu1 %v11813_v5  ;;  %12222 = vmatprep.mubr.bf16.mxu1 %v25042_v24  ;;  %v23454_v2 = vpop.permute.xlu1 %12915 }
 0x421   : > { %17470 = vmatprep.subr.msk.bf16.mxu1 %vm349_vm1, %v12343_v22  ;;  %v23458_v32 = vpop.permute.xlu0 %13511 }
 0x422   : > { %14733 = vrot.lane.b32.xlu1 %v25161_v47, %s19163_s7 }
 0x423   : > { %17821 = vmatmul.mubr.msk.bf16.vlgmr.msra.gmra.mrb[16].mxu0 %vm345_vm3, %v23258_v17  ;;  %14747 = vrot.lane.b32.xlu0 %v19353_v44, %s19163_s7 }
 0x424   : > { %13034 = vmatpush1.bf16.msra.mxu0 %v12971_v59  ;;  %13065 = vmatprep.mubr.bf16.mxu0 %v25042_v24  ;;  %v23476_v5 = vpop.permute.xlu1 %13517  ;;  %v23489_v59 = vpack.c.bf16 %v17489_v37, %v17489_v37 }
 0x425   : > { %17494 = vmatprep.subr.msk.bf16.mxu0 %vm349_vm1, %v12951_v31  ;;  %v23479_v22 = vpop.permute.xlu0 %13515  ;;  %v12347_v31 = vsel %vm12339_vm9, %v23287_v62, %v23076_v10  ;;  %v25196_v10 = vld [vmem:[#allocation31_spill] sm:$0xff] }
 0x426   : > { %14753 = vrot.lane.b32.xlu1 %v20201_v29, %s19163_s7  ;;  %v12346_v37 = vsel %vm12339_vm9, %v25196_v10, %v23287_v62 }
 0x427   : > { %17465 = vmatmul.mubr.msk.bf16.vlgmr.msra.gmra.mrb[36].mxu1 %vm345_vm3, %v23027_v27  ;;  %14751 = vrot.lane.b32.xlu0 %v19295_v38, %s19163_s7  ;;  %v12983_v27 = vsel %vm349_vm1, %v12950_v43, 0  ;;  %v12383_v62 = vsel %vm349_vm1, %v12346_v37, 0  ;;  %v12959_v37 = vsel %vm12945_vm10, %v23345_v16, %v23342_v23  ;;  %v12958_v23 = vsel %vm12945_vm10, %v23323_v51, %v23345_v16 }
 0x428   : > { %12469 = vmatpush1.bf16.msra.mxu1 %v12371_v57  ;;  %12500 = vmatprep.mubr.bf16.mxu1 %v25042_v24  ;;  %v23497_v18 = vpop.permute.xlu1 %12923  ;;  %v13007_v16 = vsel %vm349_vm1, %v12958_v23, 0 }
 0x429   : > { %17474 = vmatprep.subr.msk.bf16.mxu1 %vm349_vm1, %v12347_v31  ;;  %v23501_v63 = vpop.permute.xlu0 %13519  ;;  %v12954_v31 = vsel %vm12945_vm10, %v23285_v30, %v23307_v19 }
 0x42a   : > { %14741 = vrot.lane.b32.xlu1 %v25163_v28, %s19163_s7  ;;  %v12995_v19 = vsel %vm349_vm1, %v12954_v31, 0 }
 0x42b   : > { %17491 = vmatmul.mubr.msk.bf16.vlgmr.msra.gmra.mrb[20].mxu0 %vm345_vm3, %v23489_v59  ;;  %14755 = vrot.lane.b32.xlu0 %v20223_v48, %s19163_s7 }
 0x42c   : > { %13116 = vmatpush1.bf16.msra.mxu0 %v12983_v27  ;;  %13147 = vmatprep.mubr.bf16.mxu0 %v25042_v24  ;;  %v23516_v43 = vpop.permute.xlu1 %13525  ;;  %v12351_v27 = vsel %vm12339_vm9, %v23325_v12, %v23114_v56  ;;  %v25197_v56 = vld [vmem:[#allocation10_spill] sm:$0xff] }
 0x42d   : > { %17498 = vmatprep.subr.msk.bf16.mxu0 %vm349_vm1, %v12955_v49  ;;  %v23519_v57 = vpop.permute.xlu0 %13523  ;;  %v12350_v31 = vsel %vm12339_vm9, %v25197_v56, %v23325_v12 }
 0x42e   : > { %14761 = vrot.lane.b32.xlu1 %v22170_v1, %s19163_s7  ;;  %v12395_v12 = vsel %vm349_vm1, %v12350_v31, 0  ;;  %v12963_v31 = vsel %vm12945_vm10, %v23383_v35, %v23380_v53 }
 0x42f   : > { %17471 = vmatmul.mubr.msk.bf16.vlgmr.msra.gmra.mrb[4].mxu1 %vm345_vm3, %v23258_v17  ;;  %14759 = vrot.lane.b32.xlu0 %v22177_v41, %s19163_s7 }
 0x430   : > { %12551 = vmatpush1.bf16.msra.mxu1 %v12383_v62  ;;  %12582 = vmatprep.mubr.bf16.mxu1 %v25042_v24  ;;  %v23535_v49 = vpop.permute.xlu1 %12931 }
 0x431   : > { %17478 = vmatprep.subr.msk.bf16.mxu1 %vm349_vm1, %v12351_v27  ;;  %v23539_v10 = vpop.permute.xlu0 %13527 }
 0x432   : > { %15325 = vrot.lane.b32.xlu1 %v25079_v13, %s19164_s10 }
 0x433   : > { %17495 = vmatmul.mubr.msk.bf16.vlgmr.msra.gmra.mrb[0].mxu0 %vm345_vm3, %v23489_v59  ;;  %14749 = vrot.lane.b32.xlu0 %v19289_v36, %s19163_s7 }
 0x434   : > { %13198 = vmatpush1.bf16.msra.mxu0 %v12995_v19  ;;  %13229 = vmatprep.mubr.bf16.mxu0 %v25042_v24  ;;  %v23554_v62 = vpop.permute.xlu1 %13533  ;;  %v12355_v19 = vsel %vm12339_vm9, %v23363_v61, %v23152_v21  ;;  %v12354_v21 = vsel %vm12339_vm9, %v23132_v39, %v23363_v61  ;;  %v12359_v61 = vsel %vm12339_vm9, %v23398_v6, %v23188_v15 }
 0x435   : > { %17502 = vmatprep.subr.msk.bf16.mxu0 %vm349_vm1, %v12959_v37  ;;  %v23557_v27 = vpop.permute.xlu0 %13531  ;;  %v12407_v39 = vsel %vm349_vm1, %v12354_v21, 0  ;;  %v12358_v15 = vsel %vm12339_vm9, %v23167_v9, %v23398_v6  ;;  %v12949_v6 = vsel %vm12945_vm10, %v23415_v8, %v23245_v7  ;;  %v12948_v7 = vsel %vm12945_vm10, %v23223_v0, %v23415_v8 }
 0x436   : > { %15329 = vrot.lane.b32.xlu1 %v19280_v33, %s19164_s10  ;;  %v12419_v9 = vsel %vm349_vm1, %v12358_v15, 0  ;;  %v13553_v15 = vsel %vm13551_vm11, %v23435_v50, %v23458_v32  ;;  %v12977_v0 = vsel %vm349_vm1, %v12948_v7, 0  ;;  %v12953_v8 = vsel %vm12945_vm10, %v23454_v2, %v23285_v30  ;;  %v25198_v30 = vld [vmem:[#allocation2_spill] sm:$0xff]  ;;  %v17511_v7 = vld [vmem:[%s24930_s1 + $0xb0] sm:$0xff] }
 0x437   : > { %17475 = vmatmul.mubr.msk.bf16.vlgmr.msra.gmra.mrb[12].mxu1 %vm345_vm3, %v23258_v17  ;;  %15327 = vrot.lane.b32.xlu0 %v19205_v3, %s19164_s10 }
 0x438   : > { %12633 = vmatpush1.bf16.msra.mxu1 %v12395_v12  ;;  %12664 = vmatprep.mubr.bf16.mxu1 %v25042_v24  ;;  %v23573_v37 = vpop.permute.xlu1 %12939 }
 0x439   : > { %17482 = vmatprep.subr.msk.bf16.mxu1 %vm349_vm1, %v12355_v19  ;;  %v23577_v56 = vpop.permute.xlu0 %13535  ;;  %v12962_v19 = vsel %vm12945_vm10, %v23361_v60, %v23383_v35 }
 0x43a   : > { %15333 = vrot.lane.b32.xlu1 %v25084_v54, %s19164_s10  ;;  %v13019_v35 = vsel %vm349_vm1, %v12962_v19, 0 }
 0x43b   : > { %17499 = vmatmul.mubr.msk.bf16.vlgmr.msra.gmra.mrb[4].mxu0 %vm345_vm3, %v23489_v59  ;;  %14757 = vrot.lane.b32.xlu0 %v22445_v11, %s19163_s7 }
 0x43c   : > { %13280 = vmatpush1.bf16.msra.mxu0 %v13007_v16  ;;  %13311 = vmatprep.mubr.bf16.mxu0 %v25042_v24  ;;  %v23592_v23 = vpop.permute.xlu1 %13541 }
 0x43d   : > { %17506 = vmatprep.subr.msk.bf16.mxu0 %vm349_vm1, %v12963_v31  ;;  %v23595_v12 = vpop.permute.xlu0 %13539 }
 0x43e   : > { %15337 = vrot.lane.b32.xlu1 %v19309_v40, %s19164_s10 }
 0x43f   : > { %17479 = vmatmul.mubr.msk.bf16.vlgmr.msra.gmra.mrb[20].mxu1 %vm345_vm3, %v23258_v17  ;;  %15335 = vrot.lane.b32.xlu0 %v19244_v20, %s19164_s10 }
 0x440   : > { %12715 = vmatpush1.bf16.msra.mxu1 %v12407_v39  ;;  %12746 = vmatprep.mubr.bf16.mxu1 %v25042_v24  ;;  %v23611_v16 = vpop.permute.xlu1 %13513  ;;  %v12966_v39 = vsel %vm12945_vm10, %v23396_v45, %v23419_v4 }
 0x441   : > { %17486 = vmatprep.subr.msk.bf16.mxu1 %vm349_vm1, %v12359_v61  ;;  %v23615_v31 = vpop.permute.xlu0 %13543  ;;  %v13031_v61 = vsel %vm349_vm1, %v12966_v39, 0 }
 0x442   : > { %15341 = vrot.lane.b32.xlu1 %v25088_v26, %s19164_s10 }
 0x443   : > { %17503 = vmatmul.mubr.msk.bf16.vlgmr.msra.gmra.mrb[8].mxu0 %vm345_vm3, %v23489_v59  ;;  %15331 = vrot.lane.b32.xlu0 %v25157_v55, %s19164_s10 }
 0x444   : > { %13362 = vmatpush1.bf16.msra.mxu0 %v13019_v35  ;;  %13393 = vmatprep.mubr.bf16.mxu0 %v25042_v24  ;;  %v23627_v21 = vpop.permute.xlu1 %13549 }
 0x445   : > { %17824 = vmatprep.subr.bf16.mxu0 %v25041_v14  ;;  %v23630_v19 = vpop.permute.xlu0 %13547 }
 0x446   : > { %15345 = vrot.lane.b32.xlu1 %v19331_v42, %s19164_s10 }
 0x447   : > { %17483 = vmatmul.mubr.msk.bf16.vlgmr.msra.gmra.mrb[28].mxu1 %vm345_vm3, %v23258_v17  ;;  %15343 = vrot.lane.b32.xlu0 %v19258_v25, %s19164_s10 }
 0x448   : > { %12797 = vmatpush1.bf16.msra.mxu1 %v12419_v9  ;;  %12828 = vmatprep.mubr.bf16.mxu1 %v25042_v24  ;;  %v23646_v4 = vpop.permute.xlu1 %14113 }
 0x449   : > { %17492 = vmatprep.subr.msk.bf16.mxu1 %vm349_vm1, %v12949_v6  ;;  %v23650_v35 = vpop.permute.xlu0 %13521  ;;  %v13552_v6 = vsel %vm13551_vm11, %v23438_v58, %v23435_v50 }
 0x44a   : > { %15349 = vrot.lane.b32.xlu1 %v25091_v46, %s19164_s10  ;;  %v13577_v50 = vsel %vm349_vm1, %v13552_v6, 0 }
 0x44b   : > { %17507 = vmatmul.mubr.msk.bf16.vlgmr.msra.gmra.mrb[12].mxu0 %vm345_vm3, %v23489_v59  ;;  %15339 = vrot.lane.b32.xlu0 %v25161_v47, %s19164_s10 }
 0x44c   : > { %17825 = vmatpush3.bf16.msra.mxu0 %v13031_v61  ;;  %17826 = vmatprep.mubr.msk.bf16.mxu0 %vm19144_vm4, %v25041_v14  ;;  %v23666_v39 = vpop.permute.xlu1 %14117 }
 0x44d   : > { %17512 = vmatprep.subr.msk.bf16.mxu0 %vm349_vm1, %v13553_v15  ;;  %v23669_v9 = vpop.permute.xlu0 %14115  ;;  %v12952_v15 = vsel %vm12945_vm10, %v25198_v30, %v23454_v2 }
 0x44e   : > { %15353 = vrot.lane.b32.xlu1 %v19353_v44, %s19164_s10  ;;  %v12989_v2 = vsel %vm349_vm1, %v12952_v15, 0  ;;  %v13561_v15 = vsel %vm13551_vm11, %v23516_v43, %v23539_v10 }
 0x44f   : > { %17487 = vmatmul.mubr.msk.bf16.vlgmr.msra.gmra.mrb[36].mxu1 %vm345_vm3, %v23258_v17  ;;  %15351 = vrot.lane.b32.xlu0 %v19282_v34, %s19164_s10  ;;  %v13557_v17 = vsel %vm13551_vm11, %v23476_v5, %v23501_v63 }
 0x450   : > { %13075 = vmatpush1.bf16.msra.mxu1 %v12977_v0  ;;  %13106 = vmatprep.mubr.bf16.mxu1 %v25042_v24  ;;  %v23685_v61 = vpop.permute.xlu1 %14121 }
 0x451   : > { %17496 = vmatprep.subr.msk.bf16.mxu1 %vm349_vm1, %v12953_v8  ;;  %v23689_v58 = vpop.permute.xlu0 %13529  ;;  %v13556_v8 = vsel %vm13551_vm11, %v23479_v22, %v23476_v5 }
 0x452   : > { %15357 = vrot.lane.b32.xlu1 %v19295_v38, %s19164_s10  ;;  %v13589_v30 = vsel %vm349_vm1, %v13556_v8, 0 }
 0x453   : > { %17827 = vmatmul.mubr.msk.bf16.vlgmr.msra.gmra.mrb[16].mxu0 %vm345_vm3, %v23489_v59  ;;  %15347 = vrot.lane.b32.xlu0 %v25163_v28, %s19164_s10 }
 0x454   : > { %13640 = vmatpush1.bf16.msra.mxu0 %v13577_v50  ;;  %13671 = vmatprep.mubr.bf16.mxu0 %v25042_v24  ;;  %v23707_v6 = vpop.permute.xlu1 %14125  ;;  %v23720_v50 = vpack.c.bf16 %v17511_v7, %v17511_v7 }
 0x455   : > { %17516 = vmatprep.subr.msk.bf16.mxu0 %vm349_vm1, %v13557_v17  ;;  %v23710_v0 = vpop.permute.xlu0 %14123  ;;  %v12957_v17 = vsel %vm12945_vm10, %v23497_v18, %v23323_v51  ;;  %v12956_v51 = vsel %vm12945_vm10, %v23304_v52, %v23497_v18  ;;  %v12961_v18 = vsel %vm12945_vm10, %v23535_v49, %v23361_v60  ;;  %v25199_v60 = vld [vmem:[#allocation9_spill] sm:$0xff] }
 0x456   : > { %15361 = vrot.lane.b32.xlu1 %v20223_v48, %s19164_s10  ;;  %v13001_v52 = vsel %vm349_vm1, %v12956_v51, 0  ;;  %v12960_v51 = vsel %vm12945_vm10, %v25199_v60, %v23535_v49  ;;  %v12965_v49 = vsel %vm12945_vm10, %v23573_v37, %v23396_v45 }
 0x457   : > { %17493 = vmatmul.mubr.msk.bf16.vlgmr.msra.gmra.mrb[4].mxu1 %vm345_vm3, %v23489_v59  ;;  %15359 = vrot.lane.b32.xlu0 %v20201_v29, %s19164_s10 }
 0x458   : > { %13157 = vmatpush1.bf16.msra.mxu1 %v12989_v2  ;;  %13188 = vmatprep.mubr.bf16.mxu1 %v25042_v24  ;;  %v23728_v5 = vpop.permute.xlu1 %14129  ;;  %v13560_v2 = vsel %vm13551_vm11, %v23519_v57, %v23516_v43 }
 0x459   : > { %17500 = vmatprep.subr.msk.bf16.mxu1 %vm349_vm1, %v12957_v17  ;;  %v23732_v48 = vpop.permute.xlu0 %13537  ;;  %v13601_v43 = vsel %vm349_vm1, %v13560_v2, 0 }
 0x45a   : > { %15365 = vrot.lane.b32.xlu1 %v22177_v41, %s19164_s10 }
 0x45b   : > { %17513 = vmatmul.mubr.msk.bf16.vlgmr.msra.gmra.mrb[20].mxu0 %vm345_vm3, %v23720_v50  ;;  %15355 = vrot.lane.b32.xlu0 %v19289_v36, %s19164_s10 }
 0x45c   : > { %13722 = vmatpush1.bf16.msra.mxu0 %v13589_v30  ;;  %13753 = vmatprep.mubr.bf16.mxu0 %v25042_v24  ;;  %v23747_v7 = vpop.permute.xlu1 %14133 }
 0x45d   : > { %17520 = vmatprep.subr.msk.bf16.mxu0 %vm349_vm1, %v13561_v15  ;;  %v23750_v8 = vpop.permute.xlu0 %14131  ;;  %v13565_v15 = vsel %vm13551_vm11, %v23554_v62, %v23577_v56 }
 0x45e   : > { %15363 = vrot.lane.b32.xlu1 %v22445_v11, %s19164_s10 }
 0x45f   : > { %17497 = vmatmul.mubr.msk.bf16.vlgmr.msra.gmra.mrb[12].mxu1 %vm345_vm3, %v23489_v59  ;;  %15367 = vrot.lane.b32.xlu0 %v22170_v1, %s19164_s10 }
 0x460   : > { %13239 = vmatpush1.bf16.msra.mxu1 %v13001_v52  ;;  %13270 = vmatprep.mubr.bf16.mxu1 %v25042_v24  ;;  %v23766_v17 = vpop.permute.xlu1 %14137 }
 0x461   : > { %17504 = vmatprep.subr.msk.bf16.mxu1 %vm349_vm1, %v12961_v18  ;;  %v23770_v30 = vpop.permute.xlu0 %13545 }
 0x462   : > { %15933 = vrot.lane.b32.xlu1 %v19205_v3, %s19165_s15  ;;  %v13564_v3 = vsel %vm13551_vm11, %v23557_v27, %v23554_v62 }
 0x463   : > { %17517 = vmatmul.mubr.msk.bf16.vlgmr.msra.gmra.mrb[0].mxu0 %vm345_vm3, %v23720_v50  ;;  %15931 = vrot.lane.b32.xlu0 %v25079_v13, %s19165_s15  ;;  %v13013_v13 = vsel %vm349_vm1, %v12960_v51, 0 }
 0x464   : > { %13804 = vmatpush1.bf16.msra.mxu0 %v13601_v43  ;;  %13835 = vmatprep.mubr.bf16.mxu0 %v25042_v24  ;;  %v23785_v2 = vpop.permute.xlu1 %14141  ;;  %v13569_v43 = vsel %vm13551_vm11, %v23592_v23, %v23615_v31 }
 0x465   : > { %17524 = vmatprep.subr.msk.bf16.mxu0 %vm349_vm1, %v13565_v15  ;;  %v23788_v52 = vpop.permute.xlu0 %14139 }
 0x466   : > { %15937 = vrot.lane.b32.xlu1 %v25157_v55, %s19165_s15  ;;  %v13613_v55 = vsel %vm349_vm1, %v13564_v3, 0 }
 0x467   : > { %17501 = vmatmul.mubr.msk.bf16.vlgmr.msra.gmra.mrb[20].mxu1 %vm345_vm3, %v23489_v59  ;;  %15935 = vrot.lane.b32.xlu0 %v19280_v33, %s19165_s15  ;;  %v12964_v33 = vsel %vm12945_vm10, %v23380_v53, %v23573_v37  ;;  %v13555_v53 = vsel %vm13551_vm11, %v23611_v16, %v23479_v22 }
 0x468   : > { %13321 = vmatpush1.bf16.msra.mxu1 %v13013_v13  ;;  %13352 = vmatprep.mubr.bf16.mxu1 %v25042_v24  ;;  %v23804_v18 = vpop.permute.xlu1 %14145  ;;  %v25200_v13 = vld [vmem:[#allocation26_spill] sm:$0xff] }
 0x469   : > { %17508 = vmatprep.subr.msk.bf16.mxu1 %vm349_vm1, %v12965_v49  ;;  %v23808_v62 = vpop.permute.xlu0 %14119  ;;  %v13567_v49 = vsel %vm13551_vm11, %v23732_v48, %v23595_v12 }
 0x46a   : > { %15941 = vrot.lane.b32.xlu1 %v19244_v20, %s19165_s15  ;;  %v13568_v20 = vsel %vm13551_vm11, %v23595_v12, %v23592_v23  ;;  %v13566_v12 = vsel %vm13551_vm11, %v23577_v56, %v23732_v48  ;;  %v13571_v48 = vsel %vm13551_vm11, %v23770_v30, %v23630_v19 }
 0x46b   : > { %17521 = vmatmul.mubr.msk.bf16.vlgmr.msra.gmra.mrb[4].mxu0 %vm345_vm3, %v23720_v50  ;;  %15939 = vrot.lane.b32.xlu0 %v25084_v54, %s19165_s15  ;;  %v13025_v54 = vsel %vm349_vm1, %v12964_v33, 0 }
 0x46c   : > { %13886 = vmatpush1.bf16.msra.mxu0 %v13613_v55  ;;  %13917 = vmatprep.mubr.bf16.mxu0 %v25042_v24  ;;  %v23823_v45 = vpop.permute.xlu1 %14149 }
 0x46d   : > { %17528 = vmatprep.subr.msk.bf16.mxu0 %vm349_vm1, %v13569_v43  ;;  %v23826_v15 = vpop.permute.xlu0 %14147  ;;  %v14167_v43 = vsel %vm14157_vm12, %v23750_v8, %v23747_v7 }
 0x46e   : > { %15945 = vrot.lane.b32.xlu1 %v25161_v47, %s19165_s15  ;;  %v13625_v47 = vsel %vm349_vm1, %v13568_v20, 0 }
 0x46f   : > { %17505 = vmatmul.mubr.msk.bf16.vlgmr.msra.gmra.mrb[28].mxu1 %vm345_vm3, %v23489_v59  ;;  %15943 = vrot.lane.b32.xlu0 %v19309_v40, %s19165_s15  ;;  %v13554_v40 = vsel %vm13551_vm11, %v23458_v32, %v23611_v16  ;;  %v13559_v32 = vsel %vm13551_vm11, %v23650_v35, %v23519_v57 }
 0x470   : > { %13403 = vmatpush1.bf16.msra.mxu1 %v13025_v54  ;;  %13434 = vmatprep.mubr.bf16.mxu1 %v25042_v24  ;;  %v23842_v37 = vpop.permute.xlu1 %14153  ;;  %v13619_v54 = vsel %vm349_vm1, %v13566_v12, 0 }
 0x471   : > { %17514 = vmatprep.subr.msk.bf16.mxu1 %vm349_vm1, %v13555_v53  ;;  %v23846_v23 = vpop.permute.xlu0 %14127 }
 0x472   : > { %15949 = vrot.lane.b32.xlu1 %v19258_v25, %s19165_s15  ;;  %v13572_v25 = vsel %vm13551_vm11, %v23630_v19, %v23627_v21  ;;  %v13570_v19 = vsel %vm13551_vm11, %v23615_v31, %v23770_v30  ;;  %v14161_v31 = vsel %vm14157_vm12, %v23808_v62, %v23685_v61 }
 0x473   : > { %17525 = vmatmul.mubr.msk.bf16.vlgmr.msra.gmra.mrb[8].mxu0 %vm345_vm3, %v23720_v50  ;;  %15947 = vrot.lane.b32.xlu0 %v25088_v26, %s19165_s15  ;;  %v13583_v26 = vsel %vm349_vm1, %v13554_v40, 0  ;;  %v14170_v40 = vsel %vm14157_vm12, %v23766_v17, %v23788_v52 }
 0x474   : > { %13968 = vmatpush1.bf16.msra.mxu0 %v13625_v47  ;;  %13999 = vmatprep.mubr.bf16.mxu0 %v25042_v24  ;;  %v23858_v22 = vpop.permute.xlu1 %14135  ;;  %v14219_v30 = vsel %vm349_vm1, %v14170_v40, 0 }
 0x475   : > { %17830 = vmatprep.subr.bf16.mxu0 %v25041_v14  ;;  %v23861_v60 = vpop.permute.xlu0 %14155 }
 0x476   : > { %15953 = vrot.lane.b32.xlu1 %v25163_v28, %s19165_s15  ;;  %v13637_v28 = vsel %vm349_vm1, %v13572_v25, 0  ;;  %v13631_v25 = vsel %vm349_vm1, %v13570_v19, 0 }
 0x477   : > { %17509 = vmatmul.mubr.msk.bf16.vlgmr.msra.gmra.mrb[36].mxu1 %vm345_vm3, %v23489_v59  ;;  %15951 = vrot.lane.b32.xlu0 %v19331_v42, %s19165_s15  ;;  %v14159_v59 = vsel %vm14157_vm12, %v23669_v9, %v23666_v39  ;;  %v13558_v42 = vsel %vm13551_vm11, %v23501_v63, %v23650_v35  ;;  %v13563_v63 = vsel %vm13551_vm11, %v23689_v58, %v23557_v27  ;;  %v17533_v27 = vld [vmem:[%s24930_s1 + $0xb8] sm:$0xff] }
 0x478   : > { %13681 = vmatpush1.bf16.msra.mxu1 %v13583_v26  ;;  %13712 = vmatprep.mubr.bf16.mxu1 %v25042_v24  ;;  %v23877_v16 = vpop.permute.xlu1 %14721 }
 0x479   : > { %17518 = vmatprep.subr.msk.bf16.mxu1 %vm349_vm1, %v13559_v32  ;;  %v23881_v21 = vpop.permute.xlu0 %14719 }
 0x47a   : > { %15957 = vrot.lane.b32.xlu1 %v19282_v34, %s19165_s15  ;;  %v14158_v34 = vsel %vm14157_vm12, %v23646_v4, %v23669_v9  ;;  %v14163_v9 = vsel %vm14157_vm12, %v23710_v0, %v23707_v6 }
 0x47b   : > { %17529 = vmatmul.mubr.msk.bf16.vlgmr.msra.gmra.mrb[12].mxu0 %vm345_vm3, %v23720_v50  ;;  %15955 = vrot.lane.b32.xlu0 %v25091_v46, %s19165_s15  ;;  %v13595_v46 = vsel %vm349_vm1, %v13558_v42, 0  ;;  %v14183_v4 = vsel %vm349_vm1, %v14158_v34, 0 }
 0x47c   : > { %17831 = vmatpush3.bf16.msra.mxu0 %v13637_v28  ;;  %17832 = vmatprep.mubr.msk.bf16.mxu0 %vm19144_vm4, %v25041_v14  ;;  %v23897_v57 = vpop.permute.xlu1 %14143  ;;  %v14174_v28 = vsel %vm14157_vm12, %v23804_v18, %v23826_v15 }
 0x47d   : > { %17534 = vmatprep.subr.msk.bf16.mxu0 %vm349_vm1, %v14159_v59  ;;  %v23900_v51 = vpop.permute.xlu0 %14723 }
 0x47e   : > { %15961 = vrot.lane.b32.xlu1 %v19289_v36, %s19165_s15 }
 0x47f   : > { %17515 = vmatmul.mubr.msk.bf16.vlgmr.msra.gmra.mrb[4].mxu1 %vm345_vm3, %v23720_v50  ;;  %15959 = vrot.lane.b32.xlu0 %v19353_v44, %s19165_s15  ;;  %v13562_v44 = vsel %vm13551_vm11, %v23539_v10, %v23689_v58  ;;  %v23951_v58 = vpack.c.bf16 %v17533_v27, %v17533_v27 }
 0x480   : > { %13763 = vmatpush1.bf16.msra.mxu1 %v13595_v46  ;;  %13794 = vmatprep.mubr.bf16.mxu1 %v25042_v24  ;;  %v23916_v35 = vpop.permute.xlu1 %14729  ;;  %v13607_v10 = vsel %vm349_vm1, %v13562_v44, 0  ;;  %v14178_v46 = vsel %vm14157_vm12, %v23842_v37, %v23861_v60  ;;  %v14765_v60 = vsel %vm14763_vm13, %v23877_v16, %v23900_v51  ;;  %v14764_v44 = vsel %vm14763_vm13, %v23881_v21, %v23877_v16  ;;  %v17555_v21 = vld [vmem:[%s24930_s1 + $0xc0] sm:$0xff] }
 0x481   : > { %17522 = vmatprep.subr.msk.bf16.mxu1 %vm349_vm1, %v13563_v63  ;;  %v23920_v36 = vpop.permute.xlu0 %14727 }
 0x482   : > { %15965 = vrot.lane.b32.xlu1 %v20201_v29, %s19165_s15 }
 0x483   : > { %17833 = vmatmul.mubr.msk.bf16.vlgmr.msra.gmra.mrb[16].mxu0 %vm345_vm3, %v23720_v50  ;;  %15963 = vrot.lane.b32.xlu0 %v19295_v38, %s19165_s15  ;;  %v14162_v38 = vsel %vm14157_vm12, %v23685_v61, %v23710_v0  ;;  %v14160_v61 = vsel %vm14157_vm12, %v23666_v39, %v23808_v62  ;;  %v14165_v39 = vsel %vm14157_vm12, %v23846_v23, %v23728_v5  ;;  %v14231_v62 = vsel %vm349_vm1, %v14174_v28, 0 }
 0x484   : > { %14246 = vmatpush1.bf16.msra.mxu0 %v14183_v4  ;;  %14277 = vmatprep.mubr.bf16.mxu0 %v25042_v24  ;;  %v23938_v3 = vpop.permute.xlu1 %14151  ;;  %v14189_v59 = vsel %vm349_vm1, %v14160_v61, 0 }
 0x485   : > { %17538 = vmatprep.subr.msk.bf16.mxu0 %vm349_vm1, %v14163_v9  ;;  %v23941_v29 = vpop.permute.xlu0 %14731 }
 0x486   : > { %15969 = vrot.lane.b32.xlu1 %v22445_v11, %s19165_s15  ;;  %v14195_v11 = vsel %vm349_vm1, %v14162_v38, 0  ;;  %v14769_v16 = vsel %vm14763_vm13, %v23916_v35, %v23941_v29 }
 0x487   : > { %17519 = vmatmul.mubr.msk.bf16.vlgmr.msra.gmra.mrb[12].mxu1 %vm345_vm3, %v23720_v50  ;;  %15967 = vrot.lane.b32.xlu0 %v25200_v13, %s19165_s15 }
 0x488   : > { %13845 = vmatpush1.bf16.msra.mxu1 %v13607_v10  ;;  %13876 = vmatprep.mubr.bf16.mxu1 %v25042_v24  ;;  %v23959_v0 = vpop.permute.xlu1 %14737 }
 0x489   : > { %17526 = vmatprep.subr.msk.bf16.mxu1 %vm349_vm1, %v13567_v49  ;;  %v23963_v55 = vpop.permute.xlu0 %14735  ;;  %v14768_v49 = vsel %vm14763_vm13, %v23920_v36, %v23916_v35 }
 0x48a   : > { %15973 = vrot.lane.b32.xlu1 %v22170_v1, %s19165_s15  ;;  %v14166_v1 = vsel %vm14157_vm12, %v23728_v5, %v23750_v8  ;;  %v14171_v8 = vsel %vm14157_vm12, %v23788_v52, %v23785_v2  ;;  %v14175_v52 = vsel %vm14157_vm12, %v23826_v15, %v23823_v45  ;;  %v14801_v12 = vsel %vm349_vm1, %v14768_v49, 0 }
 0x48b   : > { %17535 = vmatmul.mubr.msk.bf16.vlgmr.msra.gmra.mrb[20].mxu0 %vm345_vm3, %v23951_v58  ;;  %15971 = vrot.lane.b32.xlu0 %v22177_v41, %s19165_s15  ;;  %v14207_v41 = vsel %vm349_vm1, %v14166_v1, 0 }
 0x48c   : > { %14328 = vmatpush1.bf16.msra.mxu0 %v14195_v11  ;;  %14359 = vmatprep.mubr.bf16.mxu0 %v25042_v24  ;;  %v23979_v33 = vpop.permute.xlu1 %14725 }
 0x48d   : > { %17542 = vmatprep.subr.msk.bf16.mxu0 %vm349_vm1, %v14167_v43  ;;  %v23981_v20 = vpop.permute.xlu0 %14739  ;;  %v14177_v43 = vsel %vm14157_vm12, %v23938_v3, %v23842_v37  ;;  %v14176_v37 = vsel %vm14157_vm12, %v23823_v45, %v23938_v3 }
 0x48e   : > { %v14773_v35 = vsel %vm14763_vm13, %v23959_v0, %v23981_v20 }
 0x48f   : > { %17523 = vmatmul.mubr.msk.bf16.vlgmr.msra.gmra.mrb[20].mxu1 %vm345_vm3, %v23720_v50 }
 0x490   : > { %13927 = vmatpush1.bf16.msra.mxu1 %v13619_v54  ;;  %13958 = vmatprep.mubr.bf16.mxu1 %v25042_v24  ;;  %v24002_v53 = vpop.permute.xlu1 %14745 }
 0x491   : > { %17530 = vmatprep.subr.msk.bf16.mxu1 %vm349_vm1, %v13571_v48  ;;  %v23995_v56 = vpop.permute.xlu0 %14743  ;;  %v14772_v48 = vsel %vm14763_vm13, %v23963_v55, %v23959_v0 }
 0x492   : > { %v14813_v45 = vsel %vm349_vm1, %v14772_v48, 0  ;;  %v14776_v40 = vsel %vm14763_vm13, %v23995_v56, %v24002_v53 }
 0x493   : > { %17539 = vmatmul.mubr.msk.bf16.vlgmr.msra.gmra.mrb[0].mxu0 %vm345_vm3, %v23951_v58 }
 0x494   : > { %14410 = vmatpush1.bf16.msra.mxu0 %v14207_v41  ;;  %14441 = vmatprep.mubr.bf16.mxu0 %v25042_v24  ;;  %v24023_v26 = vpop.permute.xlu1 %14733  ;;  %v14237_v41 = vsel %vm349_vm1, %v14176_v37, 0 }
 0x495   : > { %17546 = vmatprep.subr.msk.bf16.mxu0 %vm349_vm1, %v14171_v8  ;;  %v24009_v47 = vpop.permute.xlu0 %14747  ;;  %v14767_v8 = vsel %vm14763_vm13, %v23979_v33, %v23920_v36  ;;  %v14766_v36 = vsel %vm14763_vm13, %v23900_v51, %v23979_v33  ;;  %v14771_v51 = vsel %vm14763_vm13, %v24023_v26, %v23963_v55  ;;  %v14825_v33 = vsel %vm349_vm1, %v14776_v40, 0 }
 0x496   : > { %v14777_v0 = vsel %vm14763_vm13, %v24002_v53, %v24009_v47 }
 0x497   : > { %17527 = vmatmul.mubr.msk.bf16.vlgmr.msra.gmra.mrb[28].mxu1 %vm345_vm3, %v23720_v50 }
 0x498   : > { %14009 = vmatpush1.bf16.msra.mxu1 %v13631_v25  ;;  %14040 = vmatprep.mubr.bf16.mxu1 %v25042_v24  ;;  %v24043_v42 = vpop.permute.xlu1 %14753  ;;  %v14795_v25 = vsel %vm349_vm1, %v14766_v36, 0 }
 0x499   : > { %17536 = vmatprep.subr.msk.bf16.mxu1 %vm349_vm1, %v14161_v31  ;;  %v24025_v32 = vpop.permute.xlu0 %14751 }
 0x49a   : > { %v14780_v61 = vsel %vm14763_vm13, %v24025_v32, %v24043_v42 }
 0x49b   : > { %17543 = vmatmul.mubr.msk.bf16.vlgmr.msra.gmra.mrb[4].mxu0 %vm345_vm3, %v23951_v58 }
 0x49c   : > { %14492 = vmatpush1.bf16.msra.mxu0 %v14219_v30  ;;  %14523 = vmatprep.mubr.bf16.mxu0 %v25042_v24  ;;  %v24060_v5 = vpop.permute.xlu1 %14741 }
 0x49d   : > { %17550 = vmatprep.subr.msk.bf16.mxu0 %vm349_vm1, %v14175_v52  ;;  %v24045_v34 = vpop.permute.xlu0 %14755 }
 0x49e   : > { %v14781_v53 = vsel %vm14763_vm13, %v24043_v42, %v24045_v34 }
 0x49f   : > { %17531 = vmatmul.mubr.msk.bf16.vlgmr.msra.gmra.mrb[36].mxu1 %vm345_vm3, %v23720_v50  ;;  %v14164_v50 = vsel %vm14157_vm12, %v23707_v6, %v23846_v23  ;;  %v14169_v6 = vsel %vm14157_vm12, %v23858_v22, %v23766_v17  ;;  %v14243_v23 = vsel %vm349_vm1, %v14178_v46, 0  ;;  %v14168_v17 = vsel %vm14157_vm12, %v23747_v7, %v23858_v22 }
 0x4a0   : > { %14287 = vmatpush1.bf16.msra.mxu1 %v14189_v59  ;;  %14318 = vmatprep.mubr.bf16.mxu1 %v25042_v24  ;;  %v14201_v63 = vsel %vm349_vm1, %v14164_v50, 0  ;;  %v24076_v4 = vpop.permute.xlu1 %14761  ;;  %v14213_v27 = vsel %vm349_vm1, %v14168_v17, 0  ;;  %v14173_v7 = vsel %vm14157_vm12, %v23897_v57, %v23804_v18  ;;  %v14789_v22 = vsel %vm349_vm1, %v14764_v44, 0  ;;  %v17577_v44 = vld [vmem:[%s24930_s1 + $0xc8] sm:$0xff] }
 0x4a1   : > { %17540 = vmatprep.subr.msk.bf16.mxu1 %vm349_vm1, %v14165_v39  ;;  %v24062_v15 = vpop.permute.xlu0 %14759  ;;  %v14172_v18 = vsel %vm14157_vm12, %v23785_v2, %v23897_v57  ;;  %v24128_v2 = vpack.c.bf16 %v17555_v21, %v17555_v21  ;;  %v14774_v39 = vsel %vm14763_vm13, %v23981_v20, %v24060_v5 }
 0x4a2   : > { %v14225_v11 = vsel %vm349_vm1, %v14172_v18, 0 }
 0x4a3   : > { %17547 = vmatmul.mubr.msk.bf16.vlgmr.msra.gmra.mrb[8].mxu0 %vm345_vm3, %v23951_v58 }
 0x4a4   : > { %14574 = vmatpush1.bf16.msra.mxu0 %v14231_v62  ;;  %14605 = vmatprep.mubr.bf16.mxu0 %v25042_v24  ;;  %v24097_v38 = vpop.permute.xlu1 %15325  ;;  %v14819_v62 = vsel %vm349_vm1, %v14774_v39, 0 }
 0x4a5   : > { %17836 = vmatprep.subr.bf16.mxu0 %v25041_v14  ;;  %v24083_v9 = vpop.permute.xlu0 %14749 }
 0x4a6   : > { %v14779_v50 = vsel %vm14763_vm13, %v24083_v9, %v24025_v32  ;;  %v14778_v32 = vsel %vm14763_vm13, %v24009_v47, %v24083_v9 }
 0x4a7   : > { %17537 = vmatmul.mubr.msk.bf16.vlgmr.msra.gmra.mrb[4].mxu1 %vm345_vm3, %v23951_v58 }
 0x4a8   : > { %14369 = vmatpush1.bf16.msra.mxu1 %v14201_v63  ;;  %14400 = vmatprep.mubr.bf16.mxu1 %v25042_v24  ;;  %v24120_v13 = vpop.permute.xlu1 %15329 }
 0x4a9   : > { %17544 = vmatprep.subr.msk.bf16.mxu1 %vm349_vm1, %v14169_v6  ;;  %v24105_v10 = vpop.permute.xlu0 %15327 }
 0x4aa   : > { %v15371_v63 = vsel %vm15369_vm14, %v24105_v10, %v24120_v13 }
 0x4ab   : > { %17551 = vmatmul.mubr.msk.bf16.vlgmr.msra.gmra.mrb[12].mxu0 %vm345_vm3, %v23951_v58 }
 0x4ac   : > { %17837 = vmatpush3.bf16.msra.mxu0 %v14243_v23  ;;  %17838 = vmatprep.mubr.msk.bf16.mxu0 %vm19144_vm4, %v25041_v14  ;;  %v24143_v1 = vpop.permute.xlu1 %15333  ;;  %v15370_v23 = vsel %vm15369_vm14, %v24097_v38, %v24105_v10  ;;  %v24300_v10 = vpack.c.bf16 %v17577_v44, %v17577_v44 }
 0x4ad   : > { %17556 = vmatprep.subr.msk.bf16.mxu0 %vm349_vm1, %v14765_v60  ;;  %v24130_v57 = vpop.permute.xlu0 %14757  ;;  %v15395_v9 = vsel %vm349_vm1, %v15370_v23, 0  ;;  %v17599_v23 = vld [vmem:[%s24930_s1 + $0xd0] sm:$0xff] }
 0x4ae   : > { %v14783_v6 = vsel %vm14763_vm13, %v24130_v57, %v24062_v15  ;;  %v14782_v17 = vsel %vm14763_vm13, %v24045_v34, %v24130_v57 }
 0x4af   : > { %17541 = vmatmul.mubr.msk.bf16.vlgmr.msra.gmra.mrb[12].mxu1 %vm345_vm3, %v23951_v58 }
 0x4b0   : > { %14451 = vmatpush1.bf16.msra.mxu1 %v14213_v27  ;;  %14482 = vmatprep.mubr.bf16.mxu1 %v25042_v24  ;;  %v24164_v3 = vpop.permute.xlu1 %15337 }
 0x4b1   : > { %17548 = vmatprep.subr.msk.bf16.mxu1 %vm349_vm1, %v14173_v7  ;;  %v24145_v54 = vpop.permute.xlu0 %15335 }
 0x4b2   : > { %v15374_v7 = vsel %vm15369_vm14, %v24143_v1, %v24145_v54 }
 0x4b3   : > { %17839 = vmatmul.mubr.msk.bf16.vlgmr.msra.gmra.mrb[16].mxu0 %vm345_vm3, %v23951_v58 }
 0x4b4   : > { %14852 = vmatpush1.bf16.msra.mxu0 %v14789_v22  ;;  %14883 = vmatprep.mubr.bf16.mxu0 %v25042_v24  ;;  %v24184_v31 = vpop.permute.xlu1 %15341  ;;  %v14843_v22 = vsel %vm349_vm1, %v14782_v17, 0 }
 0x4b5   : > { %17560 = vmatprep.subr.msk.bf16.mxu0 %vm349_vm1, %v14769_v16  ;;  %v24166_v19 = vpop.permute.xlu0 %15331  ;;  %v15407_v16 = vsel %vm349_vm1, %v15374_v7, 0 }
 0x4b6   : > { %v15373_v34 = vsel %vm15369_vm14, %v24166_v19, %v24143_v1 }
 0x4b7   : > { %17545 = vmatmul.mubr.msk.bf16.vlgmr.msra.gmra.mrb[20].mxu1 %vm345_vm3, %v23951_v58 }
 0x4b8   : > { %14533 = vmatpush1.bf16.msra.mxu1 %v14225_v11  ;;  %14564 = vmatprep.mubr.bf16.mxu1 %v25042_v24  ;;  %v24204_v55 = vpop.permute.xlu1 %15345  ;;  %v15372_v11 = vsel %vm15369_vm14, %v24120_v13, %v24166_v19 }
 0x4b9   : > { %17552 = vmatprep.subr.msk.bf16.mxu1 %vm349_vm1, %v14177_v43  ;;  %v24186_v30 = vpop.permute.xlu0 %15343 }
 0x4ba   : > { %v15379_v21 = vsel %vm15369_vm14, %v24186_v30, %v24204_v55  ;;  %v15378_v57 = vsel %vm15369_vm14, %v24184_v31, %v24186_v30 }
 0x4bb   : > { %17557 = vmatmul.mubr.msk.bf16.vlgmr.msra.gmra.mrb[20].mxu0 %vm345_vm3, %v24128_v2  ;;  %v15419_v13 = vsel %vm349_vm1, %v15378_v57, 0 }
 0x4bc   : > { %14934 = vmatpush1.bf16.msra.mxu0 %v14801_v12  ;;  %14965 = vmatprep.mubr.bf16.mxu0 %v25042_v24  ;;  %v24222_v59 = vpop.permute.xlu1 %15349  ;;  %v15401_v12 = vsel %vm349_vm1, %v15372_v11, 0 }
 0x4bd   : > { %17564 = vmatprep.subr.msk.bf16.mxu0 %vm349_vm1, %v14773_v35  ;;  %v24206_v52 = vpop.permute.xlu0 %15339 }
 0x4be   : > { %v15377_v43 = vsel %vm15369_vm14, %v24206_v52, %v24184_v31 }
 0x4bf   : > { %17549 = vmatmul.mubr.msk.bf16.vlgmr.msra.gmra.mrb[28].mxu1 %vm345_vm3, %v23951_v58 }
 0x4c0   : > { %14615 = vmatpush1.bf16.msra.mxu1 %v14237_v41  ;;  %14646 = vmatprep.mubr.bf16.mxu1 %v25042_v24 }
 0x4c1   : > { %17558 = vmatprep.subr.msk.bf16.mxu1 %vm349_vm1, %v14767_v8  ;;  %v24224_v42 = vpop.permute.xlu0 %15351 }
 0x4c2   : > { %v15382_v41 = vsel %vm15369_vm14, %v24222_v59, %v24224_v42 }
 0x4c3   : > { %17561 = vmatmul.mubr.msk.bf16.vlgmr.msra.gmra.mrb[0].mxu0 %vm345_vm3, %v24128_v2 }
 0x4c4   : > { %15016 = vmatpush1.bf16.msra.mxu0 %v14813_v45  ;;  %15047 = vmatprep.mubr.bf16.mxu0 %v25042_v24 }
 0x4c5   : > { %17568 = vmatprep.subr.msk.bf16.mxu0 %vm349_vm1, %v14777_v0  ;;  %v24245_v46 = vpop.permute.xlu0 %15347 }
 0x4c6   : > { %v15381_v8 = vsel %vm15369_vm14, %v24245_v46, %v24222_v59  ;;  %v15380_v40 = vsel %vm15369_vm14, %v24204_v55, %v24245_v46 }
 0x4c7   : > { %17553 = vmatmul.mubr.msk.bf16.vlgmr.msra.gmra.mrb[36].mxu1 %vm345_vm3, %v23951_v58  ;;  %v14770_v58 = vsel %vm14763_vm13, %v23941_v29, %v24023_v26  ;;  %v14775_v29 = vsel %vm14763_vm13, %v24060_v5, %v23995_v56  ;;  %v14837_v26 = vsel %vm349_vm1, %v14780_v61, 0  ;;  %v14784_v56 = vsel %vm14763_vm13, %v24062_v15, %v24076_v4  ;;  %v24243_v5 = vpop.permute.xlu1 %15353 }
 0x4c8   : > { %14893 = vmatpush1.bf16.msra.mxu1 %v14795_v25  ;;  %14924 = vmatprep.mubr.bf16.mxu1 %v25042_v24  ;;  %v14807_v28 = vsel %vm349_vm1, %v14770_v58, 0  ;;  %v14849_v20 = vsel %vm349_vm1, %v14784_v56, 0  ;;  %v14831_v4 = vsel %vm349_vm1, %v14778_v32, 0  ;;  %v15375_v15 = vsel %vm15369_vm14, %v24145_v54, %v24164_v3 }
 0x4c9   : > { %17562 = vmatprep.subr.msk.bf16.mxu1 %vm349_vm1, %v14771_v51  ;;  %v24269_v60 = vpop.permute.xlu0 %15359  ;;  %v15383_v54 = vsel %vm15369_vm14, %v24224_v42, %v24243_v5  ;;  %v15425_v30 = vsel %vm349_vm1, %v15380_v40, 0 }
 0x4cb   : > { %17565 = vmatmul.mubr.msk.bf16.vlgmr.msra.gmra.mrb[4].mxu0 %vm345_vm3, %v24128_v2  ;;  %v24267_v47 = vpop.permute.xlu1 %15357 }
 0x4cc   : > { %15098 = vmatpush1.bf16.msra.mxu0 %v14825_v33  ;;  %15129 = vmatprep.mubr.bf16.mxu0 %v25042_v24  ;;  %v15386_v25 = vsel %vm15369_vm14, %v24267_v47, %v24269_v60 }
 0x4cd   : > { %17572 = vmatprep.subr.msk.bf16.mxu0 %vm349_vm1, %v14781_v53  ;;  %v24289_v38 = vpop.permute.xlu0 %15355  ;;  %v15443_v51 = vsel %vm349_vm1, %v15386_v25, 0  ;;  %v16540_v25 = vlaneseq }
 0x4ce   : > { %v15385_v31 = vsel %vm15369_vm14, %v24289_v38, %v24267_v47  ;;  %v15384_v58 = vsel %vm15369_vm14, %v24243_v5, %v24289_v38 }
 0x4cf   : > { %17559 = vmatmul.mubr.msk.bf16.vlgmr.msra.gmra.mrb[4].mxu1 %vm345_vm3, %v24128_v2  ;;  %v24287_v27 = vpop.permute.xlu1 %15361  ;;  %v15437_v61 = vsel %vm349_vm1, %v15384_v58, 0 }
 0x4d0   : > { %14975 = vmatpush1.bf16.msra.mxu1 %v14807_v28  ;;  %15006 = vmatprep.mubr.bf16.mxu1 %v25042_v24  ;;  %v15387_v19 = vsel %vm15369_vm14, %v24269_v60, %v24287_v27 }
 0x4d1   : > { %17566 = vmatprep.subr.msk.bf16.mxu1 %vm349_vm1, %v14775_v29  ;;  %v15368_v18 = vpop.permute.xlu0 %15367 }
 0x4d3   : > { %17569 = vmatmul.mubr.msk.bf16.vlgmr.msra.gmra.mrb[8].mxu0 %vm345_vm3, %v24128_v2  ;;  %v15366_v49 = vpop.permute.xlu1 %15365 }
 0x4d4   : > { %15180 = vmatpush1.bf16.msra.mxu0 %v14837_v26  ;;  %15211 = vmatprep.mubr.bf16.mxu0 %v25042_v24 }
 0x4d5   : > { %17842 = vmatprep.subr.bf16.mxu0 %v25041_v14  ;;  %v24324_v35 = vpop.permute.xlu0 %15931 }
 0x4d7   : > { %17563 = vmatmul.mubr.msk.bf16.vlgmr.msra.gmra.mrb[12].mxu1 %vm345_vm3, %v24128_v2  ;;  %v15364_v1 = vpop.permute.xlu1 %15363 }
 0x4d8   : > { %15057 = vmatpush1.bf16.msra.mxu1 %v14819_v62  ;;  %15088 = vmatprep.mubr.bf16.mxu1 %v25042_v24  ;;  %v15389_v55 = vsel %vm15369_vm14, %v15364_v1, %v15366_v49  ;;  %v15388_v42 = vsel %vm15369_vm14, %v24287_v27, %v15364_v1 }
 0x4d9   : > { %17570 = vmatprep.subr.msk.bf16.mxu1 %vm349_vm1, %v14779_v50  ;;  %v15936_v48 = vpop.permute.xlu0 %15935 }
 0x4db   : > { %17573 = vmatmul.mubr.msk.bf16.vlgmr.msra.gmra.mrb[12].mxu0 %vm345_vm3, %v24128_v2  ;;  %v15934_v37 = vpop.permute.xlu1 %15933 }
 0x4dc   : > { %17843 = vmatpush3.bf16.msra.mxu0 %v14849_v20  ;;  %17844 = vmatprep.mubr.msk.bf16.mxu0 %vm19144_vm4, %v25041_v14  ;;  %v15977_v59 = vsel %vm15975_vm15, %v15934_v37, %v15936_v48  ;;  %v15976_v62 = vsel %vm15975_vm15, %v24324_v35, %v15934_v37  ;;  %v15449_v20 = vsel %vm349_vm1, %v15388_v42, 0 }
 0x4dd   : > { %17578 = vmatprep.subr.msk.bf16.mxu0 %vm349_vm1, %v15371_v63  ;;  %v15940_v36 = vpop.permute.xlu0 %15939  ;;  %v16001_v5 = vsel %vm349_vm1, %v15976_v62, 0 }
 0x4df   : > { %17567 = vmatmul.mubr.msk.bf16.vlgmr.msra.gmra.mrb[20].mxu1 %vm345_vm3, %v24128_v2  ;;  %v15938_v0 = vpop.permute.xlu1 %15937 }
 0x4e0   : > { %15139 = vmatpush1.bf16.msra.mxu1 %v14831_v4  ;;  %15170 = vmatprep.mubr.bf16.mxu1 %v25042_v24  ;;  %v15979_v50 = vsel %vm15975_vm15, %v15938_v0, %v15940_v36  ;;  %v15978_v46 = vsel %vm15975_vm15, %v15936_v48, %v15938_v0 }
 0x4e1   : > { %17574 = vmatprep.subr.msk.bf16.mxu1 %vm349_vm1, %v14783_v6  ;;  %v15944_v53 = vpop.permute.xlu0 %15943  ;;  %v16007_v4 = vsel %vm349_vm1, %v15978_v46, 0 }
 0x4e3   : > { %17845 = vmatmul.mubr.msk.bf16.vlgmr.msra.gmra.mrb[16].mxu0 %vm345_vm3, %v24128_v2  ;;  %v15942_v33 = vpop.permute.xlu1 %15941 }
 0x4e4   : > { %15458 = vmatpush1.bf16.msra.mxu0 %v15395_v9  ;;  %15489 = vmatprep.mubr.bf16.mxu0 %v25042_v24  ;;  %v15981_v63 = vsel %vm15975_vm15, %v15942_v33, %v15944_v53  ;;  %v15980_v47 = vsel %vm15975_vm15, %v15940_v36, %v15942_v33  ;;  %v24419_v9 = vpack.c.bf16 %v17599_v23, %v17599_v23 }
 0x4e5   : > { %17582 = vmatprep.subr.msk.bf16.mxu0 %vm349_vm1, %v15375_v15  ;;  %v15948_v29 = vpop.permute.xlu0 %15947  ;;  %v16013_v15 = vsel %vm349_vm1, %v15980_v47, 0 }
 0x4e7   : > { %17571 = vmatmul.mubr.msk.bf16.vlgmr.msra.gmra.mrb[28].mxu1 %vm345_vm3, %v24128_v2  ;;  %v15946_v28 = vpop.permute.xlu1 %15945 }
 0x4e8   : > { %15221 = vmatpush1.bf16.msra.mxu1 %v14843_v22  ;;  %15252 = vmatprep.mubr.bf16.mxu1 %v25042_v24  ;;  %v15983_v60 = vsel %vm15975_vm15, %v15946_v28, %v15948_v29  ;;  %v15982_v27 = vsel %vm15975_vm15, %v15944_v53, %v15946_v28 }
 0x4e9   : > { %17580 = vmatprep.subr.msk.bf16.mxu1 %vm349_vm1, %v15373_v34  ;;  %v15952_v56 = vpop.permute.xlu0 %15951  ;;  %v16019_v7 = vsel %vm349_vm1, %v15982_v27, 0  ;;  %v25203_v27 = vld [vmem:[#allocation3_spill] sm:$0xff] }
 0x4eb   : > { %17579 = vmatmul.mubr.msk.bf16.vlgmr.msra.gmra.mrb[20].mxu0 %vm345_vm3, %v24300_v10  ;;  %v15950_v39 = vpop.permute.xlu1 %15949 }
 0x4ec   : > { %15540 = vmatpush1.bf16.msra.mxu0 %v15407_v16  ;;  %15571 = vmatprep.mubr.bf16.mxu0 %v25042_v24  ;;  %v15985_v38 = vsel %vm15975_vm15, %v15950_v39, %v15952_v56  ;;  %v15984_v34 = vsel %vm15975_vm15, %v15948_v29, %v15950_v39 }
 0x4ed   : > { %17586 = vmatprep.subr.msk.bf16.mxu0 %vm349_vm1, %v15379_v21  ;;  %v15956_v6 = vpop.permute.xlu0 %15955 }
 0x4ef   : > { %17575 = vmatmul.mubr.msk.bf16.vlgmr.msra.gmra.mrb[36].mxu1 %vm345_vm3, %v24128_v2  ;;  %v15376_v2 = vsel %vm15369_vm14, %v24164_v3, %v24206_v52  ;;  %v15431_v3 = vsel %vm349_vm1, %v15382_v41, 0  ;;  %v15390_v52 = vsel %vm15369_vm14, %v15366_v49, %v15368_v18  ;;  %v15954_v32 = vpop.permute.xlu1 %15953  ;;  %v16025_v18 = vsel %vm349_vm1, %v15984_v34, 0 }
 0x4f0   : > { %15499 = vmatpush1.bf16.msra.mxu1 %v15401_v12  ;;  %15530 = vmatprep.mubr.bf16.mxu1 %v25042_v24  ;;  %v15413_v45 = vsel %vm349_vm1, %v15376_v2, 0  ;;  %v15455_v26 = vsel %vm349_vm1, %v15390_v52, 0  ;;  %v15987_v22 = vsel %vm15975_vm15, %v15954_v32, %v15956_v6  ;;  %v15986_v21 = vsel %vm15975_vm15, %v15952_v56, %v15954_v32  ;;  %v25201_v52 = vld [vmem:[#allocation24_spill] sm:$0xff] }
 0x4f1   : > { %17584 = vmatprep.subr.msk.bf16.mxu1 %vm349_vm1, %v15377_v43  ;;  %v15960_v44 = vpop.permute.xlu0 %15959  ;;  %v16031_v11 = vsel %vm349_vm1, %v15986_v21, 0 }
 0x4f3   : > { %17583 = vmatmul.mubr.msk.bf16.vlgmr.msra.gmra.mrb[0].mxu0 %vm345_vm3, %v24300_v10  ;;  %v15958_v17 = vpop.permute.xlu1 %15957 }
 0x4f4   : > { %15622 = vmatpush1.bf16.msra.mxu0 %v15419_v13  ;;  %15653 = vmatprep.mubr.bf16.mxu0 %v25042_v24  ;;  %v15989_v49 = vsel %vm15975_vm15, %v15958_v17, %v15960_v44  ;;  %v15988_v12 = vsel %vm15975_vm15, %v15956_v6, %v15958_v17 }
 0x4f5   : > { %17590 = vmatprep.subr.msk.bf16.mxu0 %vm349_vm1, %v15383_v54  ;;  %v15964_v16 = vpop.permute.xlu0 %15963  ;;  %v16037_v13 = vsel %vm349_vm1, %v15988_v12, 0  ;;  %v16535_v12 = vld [vmem:[%s24931_s2 + $0x8] sm:$0xff] }
 0x4f7   : > { %17581 = vmatmul.mubr.msk.bf16.vlgmr.msra.gmra.mrb[4].mxu1 %vm345_vm3, %v24300_v10 }
 0x4f8   : > { %15581 = vmatpush1.bf16.msra.mxu1 %v15413_v45  ;;  %15612 = vmatprep.mubr.bf16.mxu1 %v25042_v24 }
 0x4f9   : > { %17588 = vmatprep.subr.msk.bf16.mxu1 %vm349_vm1, %v15381_v8  ;;  %v15968_v43 = vpop.permute.xlu0 %15967 }
 0x4fb   : > { %17587 = vmatmul.mubr.msk.bf16.vlgmr.msra.gmra.mrb[4].mxu0 %vm345_vm3, %v24300_v10 }
 0x4fc   : > { %15704 = vmatpush1.bf16.msra.mxu0 %v15431_v3  ;;  %15735 = vmatprep.mubr.bf16.mxu0 %v25042_v24 }
 0x4fd   : > { %17594 = vmatprep.subr.msk.bf16.mxu0 %vm349_vm1, %v15387_v19  ;;  %v15972_v37 = vpop.permute.xlu0 %15971 }
 0x4ff   : > { %17585 = vmatmul.mubr.msk.bf16.vlgmr.msra.gmra.mrb[12].mxu1 %vm345_vm3, %v24300_v10 }
 0x500   : > { %15663 = vmatpush1.bf16.msra.mxu1 %v15425_v30  ;;  %15694 = vmatprep.mubr.bf16.mxu1 %v25042_v24  ;;  %v16534_v30 = vld [vmem:[%s24931_s2] sm:$0xff] }
 0x501   : > { %17592 = vmatprep.subr.msk.bf16.mxu1 %vm349_vm1, %v15385_v31  ;;  %v24485_v31 = vshrl.u32 %v16540_v25, 7  ;;  %v25206_v25 = vld [vmem:[#allocation4_spill] sm:$0xff] }
 0x503   : > { %17591 = vmatmul.mubr.msk.bf16.vlgmr.msra.gmra.mrb[8].mxu0 %vm345_vm3, %v24300_v10  ;;  %v24520_v62 = vsub.s32 4, %v24485_v31  ;;  %v16562_v46 = vsub.s32 5, %v24485_v31  ;;  %v16570_v34 = vsub.s32 7, %v24485_v31 }
 0x504   : > { %15786 = vmatpush1.bf16.msra.mxu0 %v15443_v51  ;;  %15817 = vmatprep.mubr.bf16.mxu0 %v25042_v24  ;;  %v24494_v51 = vsub.s32 1, %v24485_v31 }
 0x505   : > { %17848 = vmatprep.subr.bf16.mxu0 %v25041_v14  ;;  %v24535_v47 = vrot.slane %v16534_v30, %v24520_v62 }
 0x506   : > { %v24503_v58 = vrot.slane %v16534_v30, %v24494_v51 }
 0x507   : > { %17589 = vmatmul.mubr.msk.bf16.vlgmr.msra.gmra.mrb[20].mxu1 %vm345_vm3, %v24300_v10 }
 0x508   : > { %15745 = vmatpush1.bf16.msra.mxu1 %v15437_v61  ;;  %15776 = vmatprep.mubr.bf16.mxu1 %v25042_v24 }
 0x509   : > { %17596 = vmatprep.subr.msk.bf16.mxu1 %vm349_vm1, %v15389_v55  ;;  %v24506_v55 = vsub.s32 3, %v24485_v31 }
 0x50b   : > { %17595 = vmatmul.mubr.msk.bf16.vlgmr.msra.gmra.mrb[12].mxu0 %vm345_vm3, %v24300_v10 }
 0x50c   : > { %17849 = vmatpush3.bf16.msra.mxu0 %v15455_v26  ;;  %17850 = vmatprep.mubr.msk.bf16.mxu0 %vm19144_vm4, %v25041_v14  ;;  %v25202_v26 = vld [vmem:[#allocation34_spill] sm:$0xff] }
 0x50d   : > { %17600 = vmatprep.subr.msk.bf16.mxu0 %vm349_vm1, %v15977_v59 }
 0x50f   : > { %17593 = vmatmul.mubr.msk.bf16.vlgmr.msra.gmra.mrb[28].mxu1 %vm345_vm3, %v24300_v10 }
 0x510   : > { %15827 = vmatpush1.bf16.msra.mxu1 %v15449_v20  ;;  %15858 = vmatprep.mubr.bf16.mxu1 %v25042_v24 }
 0x511   : > { %17602 = vmatprep.subr.msk.bf16.mxu1 %vm349_vm1, %v15979_v50 }
 0x513   : > { %17851 = vmatmul.mubr.msk.bf16.vlgmr.msra.gmra.mrb[16].mxu0 %vm345_vm3, %v24300_v10 }
 0x514   : > { %16064 = vmatpush1.bf16.msra.mxu0 %v16001_v5  ;;  %16095 = vmatprep.mubr.bf16.mxu0 %v25042_v24  ;;  %v24527_v5 = vrot.slane %v16534_v30, %v24506_v55 }
 0x515   : > { %17604 = vmatprep.subr.msk.bf16.mxu0 %vm349_vm1, %v15981_v63 }
 0x517   : > { %17597 = vmatmul.mubr.msk.bf16.vlgmr.msra.gmra.mrb[36].mxu1 %vm345_vm3, %v24300_v10  ;;  %v15962_v10 = vpop.permute.xlu1 %15961 }
 0x518   : > { %16105 = vmatpush1.bf16.msra.mxu1 %v16007_v4  ;;  %16136 = vmatprep.mubr.bf16.mxu1 %v25042_v24  ;;  %v15991_v35 = vsel %vm15975_vm15, %v15962_v10, %v15964_v16  ;;  %v15990_v1 = vsel %vm15975_vm15, %v15960_v44, %v15962_v10  ;;  %v24540_v44 = vrot.slane %v16534_v30, %v16562_v46  ;;  %v25204_v10 = vld [vmem:[#allocation19_spill] sm:$0xff] }
 0x519   : > { %17606 = vmatprep.subr.msk.bf16.mxu1 %vm349_vm1, %v15983_v60  ;;  %v16043_v48 = vsel %vm349_vm1, %v15990_v1, 0  ;;  %v16566_v60 = vsub.s32 6, %v24485_v31  ;;  %v24562_v1 = vrot.slane %v16534_v30, %v16570_v34 }
 0x51b   : > { %17601 = vmatmul.mubr.msk.bf16.vlgmr.msra.gmra.mrb[20].mxu0 %vm345_vm3, %v24419_v9  ;;  %v15966_v57 = vpop.permute.xlu1 %15965 }
 0x51c   : > { %16146 = vmatpush1.bf16.msra.mxu0 %v16013_v15  ;;  %16177 = vmatprep.mubr.bf16.mxu0 %v25042_v24  ;;  %v15993_v54 = vsel %vm15975_vm15, %v15966_v57, %v15968_v43  ;;  %v15992_v41 = vsel %vm15975_vm15, %v15964_v16, %v15966_v57 }
 0x51d   : > { %17608 = vmatprep.subr.msk.bf16.mxu0 %vm349_vm1, %v15985_v38  ;;  %v16049_v45 = vsel %vm349_vm1, %v15992_v41, 0 }
 0x51f   : > { %17603 = vmatmul.mubr.msk.bf16.vlgmr.msra.gmra.mrb[4].mxu1 %vm345_vm3, %v24419_v9  ;;  %v15970_v2 = vpop.permute.xlu1 %15969 }
 0x520   : > { %16187 = vmatpush1.bf16.msra.mxu1 %v16019_v7  ;;  %16218 = vmatprep.mubr.bf16.mxu1 %v25042_v24  ;;  %v15995_v8 = vsel %vm15975_vm15, %v15970_v2, %v15972_v37  ;;  %v15994_v3 = vsel %vm15975_vm15, %v15968_v43, %v15970_v2 }
 0x521   : > { %17610 = vmatprep.subr.msk.bf16.mxu1 %vm349_vm1, %v15987_v22  ;;  %v16055_v0 = vsel %vm349_vm1, %v15994_v3, 0 }
 0x523   : > { %17605 = vmatmul.mubr.msk.bf16.vlgmr.msra.gmra.mrb[0].mxu0 %vm345_vm3, %v24419_v9  ;;  %v15974_v19 = vpop.permute.xlu1 %15973 }
 0x524   : > { %16228 = vmatpush1.bf16.msra.mxu0 %v16025_v18  ;;  %16259 = vmatprep.mubr.bf16.mxu0 %v25042_v24  ;;  %v15996_v36 = vsel %vm15975_vm15, %v15972_v37, %v15974_v19 }
 0x525   : > { %17612 = vmatprep.subr.msk.bf16.mxu0 %vm349_vm1, %v15989_v49  ;;  %v16061_v40 = vsel %vm349_vm1, %v15996_v36, 0 }
 0x527   : > { %17607 = vmatmul.mubr.msk.bf16.vlgmr.msra.gmra.mrb[12].mxu1 %vm345_vm3, %v24419_v9 }
 0x528   : > { %16269 = vmatpush1.bf16.msra.mxu1 %v16031_v11  ;;  %16300 = vmatprep.mubr.bf16.mxu1 %v25042_v24  ;;  %v24551_v11 = vrot.slane %v16534_v30, %v16566_v60 }
 0x529   : > { %17614 = vmatprep.subr.msk.bf16.mxu1 %vm349_vm1, %v15991_v35 }
 0x52b   : > { %17609 = vmatmul.mubr.msk.bf16.vlgmr.msra.gmra.mrb[4].mxu0 %vm345_vm3, %v24419_v9 }
 0x52c   : > { %16310 = vmatpush1.bf16.msra.mxu0 %v16037_v13  ;;  %16341 = vmatprep.mubr.bf16.mxu0 %v25042_v24 }
 0x52d   : > { %17616 = vmatprep.subr.msk.bf16.mxu0 %vm349_vm1, %v15993_v54 }
 0x52f   : > { %17611 = vmatmul.mubr.msk.bf16.vlgmr.msra.gmra.mrb[20].mxu1 %vm345_vm3, %v24419_v9 }
 0x530   : > { %16351 = vmatpush1.bf16.msra.mxu1 %v16043_v48  ;;  %16382 = vmatprep.mubr.bf16.mxu1 %v25042_v24 }
 0x531   : > { %17618 = vmatprep.subr.msk.bf16.mxu1 %vm349_vm1, %v15995_v8 }
 0x533   : > { %17613 = vmatmul.mubr.msk.bf16.vlgmr.msra.gmra.mrb[8].mxu0 %vm345_vm3, %v24419_v9 }
 0x534   : > { %16392 = vmatpush1.bf16.msra.mxu0 %v16049_v45  ;;  %16423 = vmatprep.mubr.bf16.mxu0 %v25042_v24  ;;  %v24570_v45 = vrot.slane %v16535_v12, %v24494_v51 }
 0x535   : > { %17854 = vmatprep.subr.bf16.mxu0 %v25041_v14 }
 0x537   : > { %17615 = vmatmul.mubr.msk.bf16.vlgmr.msra.gmra.mrb[28].mxu1 %vm345_vm3, %v24419_v9 }
 0x538   : > { %16433 = vmatpush1.bf16.msra.mxu1 %v16055_v0  ;;  %16464 = vmatprep.mubr.bf16.mxu1 %v25042_v24  ;;  %v24488_v24 = vsub.s32 0, %v24485_v31  ;;  %v25205_v0 = vld [vmem:[#allocation21_spill] sm:$0xff] }
 0x53a   : > { %v24500_v33 = vrot.slane %v16534_v30, %v24488_v24  ;;  %v24567_v41 = vrot.slane %v16535_v12, %v24488_v24 }
 0x53b   : > { %17617 = vmatmul.mubr.msk.bf16.vlgmr.msra.gmra.mrb[12].mxu0 %vm345_vm3, %v24419_v9 }
 0x53c   : > { %17855 = vmatpush3.bf16.msra.mxu0 %v16061_v40  ;;  %17856 = vmatprep.mubr.msk.bf16.mxu0 %vm19144_vm4, %v25041_v14  ;;  %v24497_v14 = vsub.s32 2, %v24485_v31 }
 0x53e   : > { %v24512_v29 = vrot.slane %v16534_v30, %v24497_v14 }
 0x53f   : > { %17619 = vmatmul.mubr.msk.bf16.vlgmr.msra.gmra.mrb[36].mxu1 %vm345_vm3, %v24419_v9 }
 0x543   : > { %17857 = vmatmul.mubr.msk.bf16.vlgmr.msra.gmra.mrb[16].mxu0 %vm345_vm3, %v24419_v9 }
 0x5ee   : > { %v16097_v53 = vpop.f32.mrb[20].mxu0 }
 0x5ef   : > { %v24509_v61 = vadd.f32 %v16097_v53, %v25201_v52  ;;  %v16099_v28 = vpop.f32.mrb[21].mxu0 }
 0x5f0   : > { %v24515_v59 = vadd.f32 %v16099_v28, %v25202_v26  ;;  %v16101_v42 = vpop.f32.mrb[22].mxu0  ;;  %v24583_v26 = vrot.slane %v16535_v12, %v24497_v14 }
 0x5f1   : > { %v16645_v39 = vmul.f32 %v24509_v61, %v24500_v33  ;;  %v16102_v56 = vpop.f32.mrb[23].mxu0 }
 0x5f2   : > { %v16646_v50 = vmul.f32 %v24515_v59, %v24503_v58  ;;  %v24524_v20 = vpop.f32.mrb[4].mxu1 }
 0x5f3   : > { %v16647_v63 = vmul.f32 %v24512_v29, %v24524_v20  ;;  %v24532_v32 = vpop.f32.mrb[5].mxu1 }
 0x5f4   : > { %v16666_v6 = vadd.f32 %v16646_v50, %v16645_v39  ;;  %v16142_v23 = vpop.f32.mrb[6].mxu1  ;;  %v16648_v15 = vmul.f32 %v24527_v5, %v24532_v32 }
 0x5f5   : > { %v16143_v4 = vpop.f32.mrb[7].mxu1 }
 0x5f6   : > { %v16667_v9 = vadd.f32 %v16666_v6, %v16647_v63  ;;  %v16179_v17 = vpop.f32.mrb[0].mxu0  ;;  %v24592_v63 = vrot.slane %v16535_v12, %v24506_v55 }
 0x5f7   : > { %v24543_v38 = vadd.f32 %v16179_v17, %v25203_v27  ;;  %v16181_v7 = vpop.f32.mrb[1].mxu0  ;;  %v24599_v27 = vrot.slane %v16535_v12, %v16562_v46 }
 0x5f8   : > { %v16668_v22 = vadd.f32 %v16667_v9, %v16648_v15  ;;  %v24547_v16 = vadd.f32 %v16181_v7, %v25204_v10  ;;  %v16183_v18 = vpop.f32.mrb[2].mxu0  ;;  %v24597_v15 = vrot.slane %v16535_v12, %v24520_v62  ;;  %v25207_v10 = vld [vmem:[#allocation22_spill] sm:$0xff] }
 0x5f9   : > { %v16649_v21 = vmul.f32 %v24543_v38, %v24535_v47  ;;  %v16184_v49 = vpop.f32.mrb[3].mxu0 }
 0x5fa   : > { %v16650_v57 = vmul.f32 %v24547_v16, %v24540_v44  ;;  %v24555_v43 = vpop.f32.mrb[12].mxu1  ;;  %v25208_v49 = vld [vmem:[#allocation6_spill] sm:$0xff] }
 0x5fb   : > { %v16669_v35 = vadd.f32 %v16668_v22, %v16649_v21  ;;  %v24560_v13 = vpop.f32.mrb[13].mxu1  ;;  %v16651_v37 = vmul.f32 %v24551_v11, %v24555_v43 }
 0x5fc   : > { %v16224_v54 = vpop.f32.mrb[14].mxu1  ;;  %v16652_v19 = vmul.f32 %v24562_v1, %v24560_v13 }
 0x5fd   : > { %v16670_v2 = vadd.f32 %v16669_v35, %v16650_v57  ;;  %v16225_v48 = vpop.f32.mrb[15].mxu1 }
 0x5fe   : > { %v16261_v8 = vpop.f32.mrb[4].mxu0  ;;  %v24611_v48 = vrot.slane %v16535_v12, %v16566_v60 }
 0x5ff   : > { %v16671_v3 = vadd.f32 %v16670_v2, %v16651_v37  ;;  %v24575_v36 = vadd.f32 %v16261_v8, %v25205_v0  ;;  %v16263_v40 = vpop.f32.mrb[5].mxu0 }
 0x600   : > { %v24578_v31 = vadd.f32 %v16263_v40, %v25206_v25  ;;  %v16265_v30 = vpop.f32.mrb[6].mxu0  ;;  %v24622_v40 = vrot.slane %v16535_v12, %v16570_v34 }
 0x601   : > { %v16672_v53 = vadd.f32 %v16671_v3, %v16652_v19  ;;  %v16653_v52 = vmul.f32 %v24575_v36, %v24567_v41  ;;  %v16266_v28 = vpop.f32.mrb[7].mxu0  ;;  %v16536_v3 = vld [vmem:[%s24931_s2 + $0x10] sm:$0x1f] }
 0x602   : > { %v16654_v42 = vmul.f32 %v24578_v31, %v24570_v45  ;;  %v24587_v39 = vpop.f32.mrb[20].mxu1 }
 0x603   : > { %v16673_v56 = vadd.f32 %v16672_v53, %v16653_v52  ;;  %v24589_v50 = vpop.f32.mrb[21].mxu1  ;;  %v16655_v4 = vmul.f32 %v24583_v26, %v24587_v39  ;;  %v24627_v52 = vrot.slane %v16536_v3, %v24488_v24 }
 0x604   : > { %v16306_v6 = vpop.f32.mrb[22].mxu1  ;;  %v16656_v22 = vmul.f32 %v24592_v63, %v24589_v50 }
 0x605   : > { %v16674_v23 = vadd.f32 %v16673_v56, %v16654_v42  ;;  %v16307_v9 = vpop.f32.mrb[23].mxu1  ;;  %v24630_v42 = vrot.slane %v16536_v3, %v24494_v51  ;;  %v24643_v51 = vrot.slane %v16536_v3, %v24497_v14  ;;  %v24657_v14 = vrot.slane %v16536_v3, %v24520_v62 }
 0x606   : > { %v16343_v17 = vpop.f32.mrb[8].mxu0 }
 0x607   : > { %v16675_v7 = vadd.f32 %v16674_v23, %v16655_v4  ;;  %v24604_v18 = vadd.f32 %v16343_v17, %v25207_v10  ;;  %v16345_v21 = vpop.f32.mrb[9].mxu0  ;;  %v25209_v23 = vld [vmem:[#allocation23_spill] sm:$0xff] }
 0x608   : > { %v24607_v57 = vadd.f32 %v16345_v21, %v25208_v49  ;;  %v16347_v35 = vpop.f32.mrb[10].mxu0  ;;  %v25210_v4 = vld [vmem:[#allocation7_spill] sm:$0xff] }
 0x609   : > { %v16676_v54 = vadd.f32 %v16675_v7, %v16656_v22  ;;  %v16657_v2 = vmul.f32 %v24604_v18, %v24597_v15  ;;  %v16348_v37 = vpop.f32.mrb[11].mxu0 }
 0x60a   : > { %v16658_v46 = vmul.f32 %v24607_v57, %v24599_v27  ;;  %v24615_v8 = vpop.f32.mrb[28].mxu1 }
 0x60b   : > { %v16677_v19 = vadd.f32 %v16676_v54, %v16657_v2  ;;  %v24620_v0 = vpop.f32.mrb[29].mxu1  ;;  %v16659_v60 = vmul.f32 %v24611_v48, %v24615_v8  ;;  %v24652_v54 = vrot.slane %v16536_v3, %v24506_v55 }
 0x60c   : > { %v16388_v25 = vpop.f32.mrb[30].mxu1  ;;  %v16660_v6 = vmul.f32 %v24622_v40, %v24620_v0 }
 0x60d   : > { %v16678_v30 = vadd.f32 %v16677_v19, %v16658_v46  ;;  %v16389_v53 = vpop.f32.mrb[31].mxu1 }
 0x60e   : > { %v16425_v28 = vpop.f32.mrb[12].mxu0  ;;  %v25211_v53 = vld [vmem:[#allocation25_spill] sm:$0xff] }
 0x60f   : > { %v16679_v56 = vadd.f32 %v16678_v30, %v16659_v60  ;;  %v24635_v34 = vadd.f32 %v16425_v28, %v25209_v23  ;;  %v16427_v12 = vpop.f32.mrb[13].mxu0 }
 0x610   : > { %v24638_v9 = vadd.f32 %v16427_v12, %v25210_v4  ;;  %v16429_v17 = vpop.f32.mrb[14].mxu0 }
 0x611   : > { %v16680_v7 = vadd.f32 %v16679_v56, %v16660_v6  ;;  %v16661_v24 = vmul.f32 %v24635_v34, %v24627_v52  ;;  %v16430_v22 = vpop.f32.mrb[15].mxu0 }
 0x612   : > { %v16662_v10 = vmul.f32 %v24638_v9, %v24630_v42  ;;  %v24647_v21 = vpop.f32.mrb[36].mxu1 }
 0x613   : > { %v16681_v49 = vadd.f32 %v16680_v7, %v16661_v24  ;;  %v24649_v35 = vpop.f32.mrb[37].mxu1  ;;  %v16663_v46 = vmul.f32 %v24643_v51, %v24647_v21 }
 0x614   : > { %v16470_v2 = vpop.f32.mrb[38].mxu1  ;;  %v16664_v60 = vmul.f32 %v24652_v54, %v24649_v35 }
 0x615   : > { %v16682_v37 = vadd.f32 %v16681_v49, %v16662_v10  ;;  %v16471_v19 = vpop.f32.mrb[39].mxu1 }
 0x616   : > { %v16507_v25 = vpop.f32.mrb[16].mxu0 }
 0x617   : > { %v16683_v30 = vadd.f32 %v16682_v37, %v16663_v46  ;;  %v24662_v28 = vadd.f32 %v16507_v25, %v25211_v53  ;;  %v17858_v56 = vpop.f32.mrb[17].mxu0 }
 0x618   : > { %v16510_v55 = vpop.f32.mrb[18].mxu0 }
 0x619   : > { %v16684_v6 = vadd.f32 %v16683_v30, %v16664_v60  ;;  %v16665_v23 = vmul.f32 %v24662_v28, %v24657_v14  ;;  %v17859_v12 = vpop.f32.mrb[19].mxu0 }
 0x61b   : > { %v16685_v4 = vadd.f32 %v16684_v6, %v16665_v23 }
 0x61d   : > { %16686 = vadd.xlane.f32.xlu0 %v16685_v4 }
 0x6aa   : > { %v16687_v17 = vpop.xlane.xlu0 %16686 }
 0x6ab   : > { %v24666_v62 = vmul.f32 0.00048828125, %v16687_v17 }
 0x6ad   : > { %v24670_v3 = vsub.f32 %v24509_v61, %v24666_v62  ;;  %v24674_v7 = vsub.f32 %v24515_v59, %v24666_v62  ;;  %v24678_v24 = vsub.f32 %v24524_v20, %v24666_v62  ;;  %v24686_v49 = vsub.f32 %v24532_v32, %v24666_v62 }
 0x6ae   : > { %v24690_v61 = vsub.f32 %v24543_v38, %v24666_v62  ;;  %v24696_v37 = vsub.f32 %v24547_v16, %v24666_v62  ;;  %v24720_v60 = vsub.f32 %v24578_v31, %v24666_v62  ;;  %v24726_v56 = vsub.f32 %v24587_v39, %v24666_v62 }
 0x6af   : > { %v16710_v22 = vmul.f32 %v24670_v3, %v24500_v33  ;;  %v16711_v10 = vmul.f32 %v24674_v7, %v24503_v58  ;;  %v16712_v59 = vmul.f32 %v24678_v24, %v24512_v29  ;;  %v16713_v33 = vmul.f32 %v24686_v49, %v24527_v5 }
 0x6b0   : > { %v24702_v58 = vsub.f32 %v24555_v43, %v24666_v62  ;;  %v16714_v32 = vmul.f32 %v24690_v61, %v24535_v47  ;;  %v24708_v29 = vsub.f32 %v24560_v13, %v24666_v62  ;;  %v16715_v16 = vmul.f32 %v24696_v37, %v24540_v44 }
 0x6b1   : > { %v16731_v2 = vmul.f32 %v16710_v22, %v16710_v22  ;;  %v16732_v20 = vmul.f32 %v16711_v10, %v16711_v10  ;;  %v16733_v38 = vmul.f32 %v16712_v59, %v16712_v59  ;;  %v16734_v19 = vmul.f32 %v16713_v33, %v16713_v33 }
 0x6b2   : > { %v24714_v5 = vsub.f32 %v24575_v36, %v24666_v62  ;;  %v16716_v43 = vmul.f32 %v24702_v58, %v24551_v11  ;;  %v16735_v30 = vmul.f32 %v16714_v32, %v16714_v32  ;;  %v16717_v13 = vmul.f32 %v24708_v29, %v24562_v1 }
 0x6b3   : > { %v16752_v46 = vadd.f32 %v16732_v20, %v16731_v2  ;;  %v16736_v53 = vmul.f32 %v16715_v16, %v16715_v16  ;;  %v24732_v6 = vsub.f32 %v24589_v50, %v24666_v62  ;;  %v16719_v31 = vmul.f32 %v24720_v60, %v24570_v45 }
 0x6b4   : > { %v16718_v36 = vmul.f32 %v24714_v5, %v24567_v41  ;;  %v16737_v55 = vmul.f32 %v16716_v43, %v16716_v43  ;;  %v16738_v23 = vmul.f32 %v16717_v13, %v16717_v13  ;;  %v24738_v12 = vsub.f32 %v24604_v18, %v24666_v62 }
 0x6b5   : > { %v16753_v25 = vadd.f32 %v16752_v46, %v16733_v38  ;;  %v16720_v39 = vmul.f32 %v24726_v56, %v24583_v26  ;;  %v24744_v17 = vsub.f32 %v24607_v57, %v24666_v62  ;;  %v16721_v50 = vmul.f32 %v24732_v6, %v24592_v63 }
 0x6b6   : > { %v16739_v4 = vmul.f32 %v16718_v36, %v16718_v36  ;;  %v16740_v22 = vmul.f32 %v16719_v31, %v16719_v31  ;;  %v24750_v10 = vsub.f32 %v24615_v8, %v24666_v62  ;;  %v16722_v18 = vmul.f32 %v24738_v12, %v24597_v15 }
 0x6b7   : > { %v16754_v47 = vadd.f32 %v16753_v25, %v16734_v19  ;;  %v16741_v59 = vmul.f32 %v16720_v39, %v16720_v39  ;;  %v24756_v2 = vsub.f32 %v24620_v0, %v24666_v62  ;;  %v16723_v57 = vmul.f32 %v24744_v17, %v24599_v27 }
 0x6b8   : > { %v16742_v20 = vmul.f32 %v16721_v50, %v16721_v50  ;;  %v24762_v33 = vsub.f32 %v24635_v34, %v24666_v62  ;;  %v16724_v8 = vmul.f32 %v24750_v10, %v24611_v48  ;;  %v16743_v32 = vmul.f32 %v16722_v18, %v16722_v18 }
 0x6b9   : > { %v16755_v44 = vadd.f32 %v16754_v47, %v16735_v30  ;;  %v24768_v38 = vsub.f32 %v24638_v9, %v24666_v62  ;;  %v16725_v0 = vmul.f32 %v24756_v2, %v24622_v40  ;;  %v16744_v46 = vmul.f32 %v16723_v57, %v16723_v57 }
 0x6ba   : > { %v24774_v16 = vsub.f32 %v24647_v21, %v24666_v62  ;;  %v16726_v34 = vmul.f32 %v24762_v33, %v24627_v52  ;;  %v16745_v19 = vmul.f32 %v16724_v8, %v16724_v8  ;;  %v24780_v25 = vsub.f32 %v24649_v35, %v24666_v62 }
 0x6bb   : > { %v16756_v11 = vadd.f32 %v16755_v44, %v16736_v53  ;;  %v16727_v9 = vmul.f32 %v24768_v38, %v24630_v42  ;;  %v16746_v43 = vmul.f32 %v16725_v0, %v16725_v0  ;;  %v24786_v30 = vsub.f32 %v24662_v28, %v24666_v62 }
 0x6bc   : > { %v16728_v21 = vmul.f32 %v24774_v16, %v24643_v51  ;;  %v16747_v47 = vmul.f32 %v16726_v34, %v16726_v34  ;;  %v16729_v13 = vmul.f32 %v24780_v25, %v24652_v54 }
 0x6bd   : > { %v16757_v1 = vadd.f32 %v16756_v11, %v16737_v55  ;;  %v16748_v53 = vmul.f32 %v16727_v9, %v16727_v9  ;;  %v16730_v44 = vmul.f32 %v24786_v30, %v24657_v14 }
 0x6be   : > { %v16749_v42 = vmul.f32 %v16728_v21, %v16728_v21  ;;  %v16750_v55 = vmul.f32 %v16729_v13, %v16729_v13 }
 0x6bf   : > { %v16758_v41 = vadd.f32 %v16757_v1, %v16738_v23  ;;  %v16751_v31 = vmul.f32 %v16730_v44, %v16730_v44 }
 0x6c1   : > { %v16759_v45 = vadd.f32 %v16758_v41, %v16739_v4 }
 0x6c3   : > { %v16760_v26 = vadd.f32 %v16759_v45, %v16740_v22 }
 0x6c5   : > { %v16761_v63 = vadd.f32 %v16760_v26, %v16741_v59 }
 0x6c7   : > { %v16762_v15 = vadd.f32 %v16761_v63, %v16742_v20 }
 0x6c9   : > { %v16763_v27 = vadd.f32 %v16762_v15, %v16743_v32 }
 0x6cb   : > { %v16764_v48 = vadd.f32 %v16763_v27, %v16744_v46 }
 0x6cd   : > { %v16765_v40 = vadd.f32 %v16764_v48, %v16745_v19 }
 0x6cf   : > { %v16766_v52 = vadd.f32 %v16765_v40, %v16746_v43 }
 0x6d1   : > { %v16767_v35 = vadd.f32 %v16766_v52, %v16747_v47 }
 0x6d3   : > { %v16768_v36 = vadd.f32 %v16767_v35, %v16748_v53 }
 0x6d5   : > { %v16769_v11 = vadd.f32 %v16768_v36, %v16749_v42 }
 0x6d7   : > { %v16770_v28 = vadd.f32 %v16769_v11, %v16750_v55 }
 0x6d9   : > { %v16771_v62 = vadd.f32 %v16770_v28, %v16751_v31 }
 0x6db   : > { %16772 = vadd.xlane.f32.xlu1 %v16771_v62 }
 0x768   : > { %v16773_v23 = vpop.xlane.xlu1 %16772 }
 0x769   : > { %v16774_v51 = vmul.f32 0.00048828125, %v16773_v23 }
 0x76b   : > { %v16775_v1 = vadd.f32 1e-05, %v16774_v51 }
 0x76d   : > { %19043 = vrsqrt.f32 %v16775_v1 }
 0x777   : > { %v19044_v39 = vpop.eup %19043 }
 0x778   : > { %v24795_v54 = vmul.f32 %v19044_v39, %v24670_v3  ;;  %v24798_v4 = vmul.f32 %v19044_v39, %v24674_v7  ;;  %v24801_v14 = vmul.f32 %v19044_v39, %v24678_v24  ;;  %v24804_v41 = vmul.f32 %v19044_v39, %v24686_v49 }
 0x779   : > { %v24807_v50 = vmul.f32 %v19044_v39, %v24690_v61  ;;  %v24810_v22 = vmul.f32 %v19044_v39, %v24696_v37  ;;  %v24813_v45 = vmul.f32 %v19044_v39, %v24702_v58  ;;  %v24819_v24 = vmul.f32 %v19044_v39, %v24708_v29 }
 0x77a   : > { %v17621_v3 = vmul.f32 -1.442695, %v24795_v54  ;;  %v17622_v7 = vmul.f32 -1.442695, %v24798_v4  ;;  %v17623_v18 = vmul.f32 -1.442695, %v24801_v14  ;;  %v24823_v61 = vmul.f32 %v19044_v39, %v24714_v5 }
 0x77b   : > { %v17624_v49 = vmul.f32 -1.442695, %v24804_v41  ;;  %v17625_v37 = vmul.f32 -1.442695, %v24807_v50  ;;  %v24827_v58 = vmul.f32 %v19044_v39, %v24720_v60  ;;  %v17626_v59 = vmul.f32 -1.442695, %v24810_v22 }
 0x77c   : > { %19045 = vpow2.f32 %v17621_v3  ;;  %v24831_v26 = vmul.f32 %v19044_v39, %v24726_v56  ;;  %v17627_v29 = vmul.f32 -1.442695, %v24813_v45  ;;  %v24835_v57 = vmul.f32 %v19044_v39, %v24732_v6 }
 0x77d   : > { %19047 = vpow2.f32 %v17622_v7  ;;  %v17628_v5 = vmul.f32 -1.442695, %v24819_v24  ;;  %v24839_v20 = vmul.f32 %v19044_v39, %v24738_v12  ;;  %v17629_v60 = vmul.f32 -1.442695, %v24823_v61 }
 0x77e   : > { %19049 = vpow2.f32 %v17623_v18  ;;  %v24843_v63 = vmul.f32 %v19044_v39, %v24744_v17  ;;  %v17630_v56 = vmul.f32 -1.442695, %v24827_v58  ;;  %v24847_v8 = vmul.f32 %v19044_v39, %v24750_v10 }
 0x77f   : > { %19051 = vpow2.f32 %v17624_v49  ;;  %v17631_v6 = vmul.f32 -1.442695, %v24831_v26  ;;  %v24851_v32 = vmul.f32 %v19044_v39, %v24756_v2  ;;  %v17632_v12 = vmul.f32 -1.442695, %v24835_v57 }
 0x780   : > { %19053 = vpow2.f32 %v17625_v37  ;;  %v24855_v15 = vmul.f32 %v19044_v39, %v24762_v33  ;;  %v17633_v17 = vmul.f32 -1.442695, %v24839_v20  ;;  %v24859_v0 = vmul.f32 %v19044_v39, %v24768_v38 }
 0x781   : > { %19055 = vpow2.f32 %v17626_v59  ;;  %v17634_v10 = vmul.f32 -1.442695, %v24843_v63  ;;  %v24863_v27 = vmul.f32 %v19044_v39, %v24774_v16  ;;  %v17635_v2 = vmul.f32 -1.442695, %v24847_v8 }
 0x782   : > { %19057 = vpow2.f32 %v17627_v29  ;;  %v24867_v33 = vmul.f32 %v19044_v39, %v24780_v25  ;;  %v17636_v19 = vmul.f32 -1.442695, %v24851_v32  ;;  %v24871_v38 = vmul.f32 %v19044_v39, %v24786_v30 }
 0x783   : > { %19059 = vpow2.f32 %v17628_v5  ;;  %v17637_v9 = vmul.f32 -1.442695, %v24855_v15  ;;  %v17638_v16 = vmul.f32 -1.442695, %v24859_v0  ;;  %v17639_v21 = vmul.f32 -1.442695, %v24863_v27 }
 0x784   : > { %19061 = vpow2.f32 %v17629_v60  ;;  %v17640_v47 = vmul.f32 -1.442695, %v24867_v33  ;;  %v17641_v30 = vmul.f32 -1.442695, %v24871_v38 }
 0x785   : > { %19063 = vpow2.f32 %v17630_v56 }
 0x786   : > { %v19046_v46 = vpop.eup %19045  ;;  %19065 = vpow2.f32 %v17631_v6 }
 0x787   : > { %v19048_v34 = vpop.eup %19047  ;;  %19067 = vpow2.f32 %v17632_v12  ;;  %v16861_v53 = vadd.f32 1.0, %v19046_v46 }
 0x788   : > { %v19050_v48 = vpop.eup %19049  ;;  %19069 = vpow2.f32 %v17633_v17  ;;  %v16862_v44 = vadd.f32 1.0, %v19048_v34 }
 0x789   : > { %v19052_v43 = vpop.eup %19051  ;;  %19071 = vpow2.f32 %v17634_v10  ;;  %v16863_v36 = vadd.f32 1.0, %v19050_v48 }
 0x78a   : > { %v19054_v40 = vpop.eup %19053  ;;  %19073 = vpow2.f32 %v17635_v2  ;;  %v16864_v11 = vadd.f32 1.0, %v19052_v43 }
 0x78b   : > { %v19056_v25 = vpop.eup %19055  ;;  %19075 = vpow2.f32 %v17636_v19  ;;  %v16865_v28 = vadd.f32 1.0, %v19054_v40 }
 0x78c   : > { %v19058_v52 = vpop.eup %19057  ;;  %19077 = vpow2.f32 %v17637_v9  ;;  %v16866_v23 = vadd.f32 1.0, %v19056_v25 }
 0x78d   : > { %v19060_v13 = vpop.eup %19059  ;;  %19079 = vpow2.f32 %v17638_v16  ;;  %v16867_v1 = vadd.f32 1.0, %v19058_v52 }
 0x78e   : > { %v19062_v35 = vpop.eup %19061  ;;  %19081 = vpow2.f32 %v17639_v21  ;;  %v16868_v3 = vadd.f32 1.0, %v19060_v13 }
 0x78f   : > { %v19064_v42 = vpop.eup %19063  ;;  %19083 = vpow2.f32 %v17640_v47  ;;  %v16869_v18 = vadd.f32 1.0, %v19062_v35 }
 0x790   : > { %v19066_v55 = vpop.eup %19065  ;;  %19085 = vpow2.f32 %v17641_v30  ;;  %v16870_v37 = vadd.f32 1.0, %v19064_v42 }
 0x791   : > { %v19068_v31 = vpop.eup %19067  ;;  %19087 = vrcp.f32 %v16861_v53  ;;  %v16871_v29 = vadd.f32 1.0, %v19066_v55 }
 0x792   : > { %v19070_v62 = vpop.eup %19069  ;;  %19089 = vrcp.f32 %v16862_v44  ;;  %v16872_v60 = vadd.f32 1.0, %v19068_v31 }
 0x793   : > { %v19072_v51 = vpop.eup %19071  ;;  %19091 = vrcp.f32 %v16863_v36  ;;  %v16873_v6 = vadd.f32 1.0, %v19070_v62 }
 0x794   : > { %v19074_v39 = vpop.eup %19073  ;;  %19093 = vrcp.f32 %v16864_v11  ;;  %v16874_v17 = vadd.f32 1.0, %v19072_v51 }
 0x795   : > { %v19076_v7 = vpop.eup %19075  ;;  %19095 = vrcp.f32 %v16865_v28  ;;  %v16875_v46 = vadd.f32 1.0, %v19074_v39 }
 0x796   : > { %v19078_v49 = vpop.eup %19077  ;;  %19097 = vrcp.f32 %v16866_v23  ;;  %v16876_v34 = vadd.f32 1.0, %v19076_v7 }
 0x797   : > { %v19080_v59 = vpop.eup %19079  ;;  %19099 = vrcp.f32 %v16867_v1  ;;  %v16877_v9 = vadd.f32 1.0, %v19078_v49 }
 0x798   : > { %v19082_v5 = vpop.eup %19081  ;;  %19101 = vrcp.f32 %v16868_v3  ;;  %v16878_v40 = vadd.f32 1.0, %v19080_v59 }
 0x799   : > { %v19084_v56 = vpop.eup %19083  ;;  %19103 = vrcp.f32 %v16869_v18  ;;  %v16879_v47 = vadd.f32 1.0, %v19082_v5 }
 0x79a   : > { %v19086_v12 = vpop.eup %19085  ;;  %19105 = vrcp.f32 %v16870_v37  ;;  %v16880_v30 = vadd.f32 1.0, %v19084_v56 }
 0x79b   : > { %v19088_v10 = vpop.eup %19087  ;;  %19107 = vrcp.f32 %v16871_v29  ;;  %v16881_v53 = vadd.f32 1.0, %v19086_v12 }
 0x79c   : > { %v19090_v2 = vpop.eup %19089  ;;  %19109 = vrcp.f32 %v16872_v60  ;;  %v16924_v19 = vmul.f32 %v19088_v10, %v24795_v54 }
 0x79d   : > { %v19092_v48 = vpop.eup %19091  ;;  %19111 = vrcp.f32 %v16873_v6  ;;  %v16925_v43 = vmul.f32 %v19090_v2, %v24798_v4 }
 0x79e   : > { %v19094_v16 = vpop.eup %19093  ;;  %19113 = vrcp.f32 %v16874_v17  ;;  %v16926_v21 = vmul.f32 %v19092_v48, %v24801_v14  ;;  %16945 = vst [vmem:[%s24882_s6] sm:$0xff] %v16924_v19 }
 0x79f   : > { %v19096_v25 = vpop.eup %19095  ;;  %19115 = vrcp.f32 %v16875_v46  ;;  %v16927_v52 = vmul.f32 %v19094_v16, %v24804_v41  ;;  %16946 = vst [vmem:[%s24882_s6 + $0x8] sm:$0xff] %v16925_v43 }
 0x7a0   : > { %v19098_v54 = vpop.eup %19097  ;;  %19117 = vrcp.f32 %v16876_v34  ;;  %v16928_v4 = vmul.f32 %v19096_v25, %v24807_v50  ;;  %16947 = vst [vmem:[%s24882_s6 + $0x10] sm:$0xff] %v16926_v21 }
 0x7a1   : > { %v19100_v13 = vpop.eup %19099  ;;  %19119 = vrcp.f32 %v16877_v9  ;;  %v16929_v14 = vmul.f32 %v19098_v54, %v24810_v22  ;;  %16948 = vst [vmem:[%s24882_s6 + $0x18] sm:$0xff] %v16927_v52 }
 0x7a2   : > { %v19102_v35 = vpop.eup %19101  ;;  %19121 = vrcp.f32 %v16878_v40  ;;  %v16930_v41 = vmul.f32 %v19100_v13, %v24813_v45  ;;  %16949 = vst [vmem:[%s24882_s6 + $0x20] sm:$0xff] %v16928_v4 }
 0x7a3   : > { %v19104_v44 = vpop.eup %19103  ;;  %19123 = vrcp.f32 %v16879_v47  ;;  %v16931_v50 = vmul.f32 %v19102_v35, %v24819_v24  ;;  %16950 = vst [vmem:[%s24882_s6 + $0x28] sm:$0xff] %v16929_v14 }
 0x7a4   : > { %v19106_v42 = vpop.eup %19105  ;;  %19125 = vrcp.f32 %v16880_v30  ;;  %v16932_v36 = vmul.f32 %v19104_v44, %v24823_v61  ;;  %16951 = vst [vmem:[%s24882_s6 + $0x30] sm:$0xff] %v16930_v41 }
 0x7a5   : > { %v19108_v22 = vpop.eup %19107  ;;  %19127 = vrcp.f32 %v16881_v53  ;;  %v16933_v55 = vmul.f32 %v19106_v42, %v24827_v58  ;;  %16952 = vst [vmem:[%s24882_s6 + $0x38] sm:$0xff] %v16931_v50 }
 0x7a6   : > { %v19110_v45 = vpop.eup %19109  ;;  %v16934_v11 = vmul.f32 %v19108_v22, %v24831_v26  ;;  %16953 = vst [vmem:[%s24882_s6 + $0x40] sm:$0xff] %v16932_v36 }
 0x7a7   : > { %v19112_v24 = vpop.eup %19111  ;;  %v16935_v31 = vmul.f32 %v19110_v45, %v24835_v57  ;;  %16954 = vst [vmem:[%s24882_s6 + $0x48] sm:$0xff] %v16933_v55 }
 0x7a8   : > { %v19114_v28 = vpop.eup %19113  ;;  %v16936_v61 = vmul.f32 %v19112_v24, %v24839_v20  ;;  %16955 = vst [vmem:[%s24882_s6 + $0x50] sm:$0xff] %v16934_v11 }
 0x7a9   : > { %v19116_v62 = vpop.eup %19115  ;;  %v16937_v58 = vmul.f32 %v19114_v28, %v24843_v63  ;;  %16956 = vst [vmem:[%s24882_s6 + $0x58] sm:$0xff] %v16935_v31 }
 0x7aa   : > { %v19118_v23 = vpop.eup %19117  ;;  %v16938_v26 = vmul.f32 %v19116_v62, %v24847_v8  ;;  %16957 = vst [vmem:[%s24882_s6 + $0x60] sm:$0xff] %v16936_v61 }
 0x7ab   : > { %v19120_v51 = vpop.eup %19119  ;;  %v16939_v57 = vmul.f32 %v19118_v23, %v24851_v32  ;;  %16958 = vst [vmem:[%s24882_s6 + $0x68] sm:$0xff] %v16937_v58 }
 0x7ac   : > { %v19122_v20 = vpop.eup %19121  ;;  %v16940_v1 = vmul.f32 %v19120_v51, %v24855_v15  ;;  %16959 = vst [vmem:[%s24882_s6 + $0x70] sm:$0xff] %v16938_v26 }
 0x7ad   : > { %v19124_v39 = vpop.eup %19123  ;;  %v16941_v63 = vmul.f32 %v19122_v20, %v24859_v0  ;;  %16960 = vst [vmem:[%s24882_s6 + $0x78] sm:$0xff] %v16939_v57 }
 0x7ae   : > { %v19126_v3 = vpop.eup %19125  ;;  %v16942_v8 = vmul.f32 %v19124_v39, %v24863_v27  ;;  %16961 = vst [vmem:[%s24882_s6 + $0x80] sm:$0xff] %v16940_v1 }
 0x7af   : > { %v19128_v7 = vpop.eup %19127  ;;  %v16943_v18 = vmul.f32 %v19126_v3, %v24867_v33  ;;  %16962 = vst [vmem:[%s24882_s6 + $0x88] sm:$0xff] %v16941_v63 }
 0x7b0   : > { %v16944_v32 = vmul.f32 %v19128_v7, %v24871_v38  ;;  %16963 = vst [vmem:[%s24882_s6 + $0x90] sm:$0xff] %v16942_v8 }
 0x7b1   : > { %16964 = vst [vmem:[%s24882_s6 + $0x98] sm:$0xff] %v16943_v18 }
 0x7b2   : > { %16965 = vst [vmem:[%s24882_s6 + $0xa0] sm:$0xff] %v16944_v32 }
 0x7b3 PF: > { %s13_s12 = sadd.s32 1, %s19135_s12  }
 0x7b4   : > { %p10_p4 = scmp.ge.s32.totalorder %s13_s12, 4  }
 0x7b6   :  { %12 = sbr.rel (!%p10_p4) target bundleno = 1 (0x1), region = 88 }

</bundles_post_ra>
